<compile_context>
chip_gen: v5e
topology: v5e:2x2
jax: 0.10.0
libtpu: 0.0.40
codegen_flags: <defaults>
</compile_context>

<pallas_src>
import numpy as np
import jax
import jax.numpy as jnp
from jax import lax
from jax.experimental import pallas as pl
from jax.experimental.pallas import tpu as pltpu

BN_EPS = 1e-5


def _round_up(v, m):
    return ((v + m - 1) // m) * m


# ----------------------------------------------------------------------------
# Combined per-tap weights: one (Cin, Ctot) slab per distinct spatial offset.
# Column blocks of Ctot: [1x1 | rate_0 | rate_1 | ...] (PyTorch concat order).
# Tap 0 is the centre (dense: 1x1 + all 3x3 centres share it); the off-centre
# taps fill only their rate's Cout-lane block (see header for why this is the
# right trade-off at small Cin).
# ----------------------------------------------------------------------------
def _build_tap_weights(params, rates, in_channels, out_channels):
    Cout = out_channels
    nr = len(rates)
    Ctot = (1 + nr) * Cout

    offsets = [(0, 0)]
    w_center = jnp.zeros((in_channels, Ctot), jnp.float32)
    w_center = w_center.at[:, 0:Cout].set(params["w1"])             # 1x1 branch
    for bi, r in enumerate(rates):                                   # 3x3 centres
        w_center = w_center.at[:, (bi + 1) * Cout:(bi + 2) * Cout].set(
            params[f"w3_{r}"][1, 1])
    w_list = [w_center]

    for bi, r in enumerate(rates):                                   # off-centre taps
        for ky in range(3):
            for kx in range(3):
                if ky == 1 and kx == 1:
                    continue
                w = jnp.zeros((in_channels, Ctot), jnp.float32)
                w = w.at[:, (bi + 1) * Cout:(bi + 2) * Cout].set(
                    params[f"w3_{r}"][ky, kx])
                offsets.append((r * (ky - 1), r * (kx - 1)))
                w_list.append(w)

    w_taps = jnp.stack(w_list, axis=0).astype(jnp.bfloat16)          # (taps, Cin, Ctot)
    b_all = jnp.concatenate(
        [params["b1"]] + [params[f"b3_{r}"] for r in rates], axis=-1)
    return offsets, w_taps, b_all.astype(jnp.float32)


# ----------------------------------------------------------------------------
# Kernel: one grid step == one image.  Row-chunked inside the kernel so the
# vreg accumulator stays small; the whole padded image is resident in VMEM.
# ----------------------------------------------------------------------------
def _make_aspp_kernel(H, W, Cin, Cout, Ctot, P, Wp, TH, flat_guard,
                      tap_offsets, out_dtype):
    Mc = TH * Wp                     # matmul rows per chunk (full padded width)
    T = H // TH
    C_all = Ctot + Cout
    inv_hw = 1.0 / float(H * W)

    def kernel(x_ref, wt_ref, bt_ref, wp_ref, bp_ref, out_ref):
        # x_ref : (1, Lf, Cin)   whole zero-padded image, flat row-major layout
        # wt_ref: (taps, Cin, Ctot) bf16 fused per-tap weights
        # out_ref:(1, H, W, Ctot+Cout) bf16 final concat layout
        bias_row = bt_ref[...]                                  # (1, Ctot) f32
        psum = jnp.zeros((1, Cin), jnp.float32)                 # global-pool acc

        for t in range(T):                                      # static unroll
            base = flat_guard + (P + t * TH) * Wp               # chunk row start

            # Centre tap doubles as the pool partial sum (same rows; padded
            # columns are zeros and contribute nothing).
            centre = x_ref[0, base:base + Mc, :]                # (Mc, Cin) f32
            psum = psum + jnp.sum(centre, axis=0, keepdims=True)

            # Fused conv branches: vreg accumulator, one matmul per tap.
            acc = jnp.broadcast_to(bias_row, (Mc, Ctot))
            acc = acc + jnp.dot(centre.astype(jnp.bfloat16), wt_ref[0],
                                preferred_element_type=jnp.float32)
            for k, off in enumerate(tap_offsets[1:], start=1):
                lhs = x_ref[0, base + off:base + off + Mc, :].astype(jnp.bfloat16)
                acc = acc + jnp.dot(lhs, wt_ref[k],
                                    preferred_element_type=jnp.float32)

            # Single ReLU, crop the padded columns, one lane-dense 128-wide
            # store per chunk (store slice is sublane-aligned: Wp % 8 == 0).
            acc = jnp.maximum(acc, 0.0).reshape(TH, Wp, Ctot)[:, P:P + W, :]
            out_ref[0, t * TH:(t + 1) * TH, :, 0:Ctot] = acc.astype(out_dtype)

        # Global-average-pool branch: 1x1 conv + ReLU; bilinear upsample of a
        # 1x1 map with align_corners=True == broadcast over (H, W).
        pooled = (psum * inv_hw).astype(jnp.bfloat16)           # (1, Cin)
        yp = jnp.dot(pooled, wp_ref[...],
                     preferred_element_type=jnp.float32) + bp_ref[...]
        yp = jnp.maximum(yp, 0.0)                               # (1, Cout)
        out_ref[0, :, :, Ctot:C_all] = jnp.broadcast_to(
            yp.reshape(1, 1, Cout), (H, W, Cout)).astype(out_dtype)

    return kernel


# ----------------------------------------------------------------------------
# Wrapper: layout glue + pallas_call.
# ----------------------------------------------------------------------------
def aspp_forward(x_nchw, params, rates, row_tile=8, out_dtype=jnp.bfloat16):
    N, Cin, H, W = x_nchw.shape
    Cout = params["w1"].shape[1]
    nr = len(rates)
    Ctot = (1 + nr) * Cout
    C_all = Ctot + Cout
    P = max(rates)

    Wp = _round_up(W + 2 * P, 8)              # padded width, sublane-aligned rows
    TH = row_tile if H % row_tile == 0 else H  # rows per in-kernel chunk
    flat_guard = _round_up(P, 8)               # flat guard so all tap slices are
                                               # in-bounds and chunk starts aligned

    # --- the only wrapper-side input pass: NCHW -> channels-last, zero-pad,
    #     flatten rows.  (No materialized halo-window stack anymore.) ---------
    x_nhwc = jnp.transpose(x_nchw, (0, 2, 3, 1)).astype(jnp.float32)
    xpad = jnp.pad(x_nhwc, ((0, 0), (P, P), (P, Wp - W - P), (0, 0)))
    xflat = xpad.reshape(N, (H + 2 * P) * Wp, Cin)
    xflat = jnp.pad(xflat, ((0, 0), (flat_guard, flat_guard), (0, 0)))
    Lf = xflat.shape[1]

    offsets, w_taps, b_all = _build_tap_weights(params, rates, Cin, Cout)
    tap_offsets = tuple(dy * Wp + dx for dy, dx in offsets)
    n_taps = w_taps.shape[0]

    kernel = _make_aspp_kernel(H, W, Cin, Cout, Ctot, P, Wp, TH, flat_guard,
                               tap_offsets, out_dtype)

    out_nhwc = pl.pallas_call(
        kernel,
        grid=(N,),
        in_specs=[
            pl.BlockSpec((1, Lf, Cin), lambda n: (n, 0, 0)),
            pl.BlockSpec((n_taps, Cin, Ctot), lambda n: (0, 0, 0)),
            pl.BlockSpec((1, Ctot), lambda n: (0, 0)),
            pl.BlockSpec((Cin, Cout), lambda n: (0, 0)),
            pl.BlockSpec((1, Cout), lambda n: (0, 0)),
        ],
        out_specs=pl.BlockSpec((1, H, W, C_all), lambda n: (n, 0, 0, 0)),
        out_shape=jax.ShapeDtypeStruct((N, H, W, C_all), out_dtype),
        compiler_params=pltpu.CompilerParams(
            dimension_semantics=("parallel",),
            vmem_limit_bytes=32 * 1024 * 1024),
    )(xflat, w_taps, b_all,
      params["wp"].astype(jnp.bfloat16), params["bp"].astype(jnp.float32))

    # Module API is NCHW; this transpose is the only wrapper-side output pass
    # (branch concat + pool broadcast already happen inside the kernel).
    return jnp.transpose(out_nhwc, (0, 3, 1, 2))


# ----------------------------------------------------------------------------
# Deterministic synthetic Conv+BN params (BN folded into weight/bias).
# ----------------------------------------------------------------------------
def make_aspp_params(key, in_channels, out_channels, rates):
    branches = len(rates) + 2
    keys = list(jax.random.split(key, 5 * branches))

    def pop():
        return keys.pop()

    def bn_fold(w):
        gamma = 1.0 + 0.1 * jax.random.normal(pop(), (out_channels,), jnp.float32)
        beta = 0.1 * jax.random.normal(pop(), (out_channels,), jnp.float32)
        mean = 0.1 * jax.random.normal(pop(), (out_channels,), jnp.float32)
        var = 0.5 + jnp.abs(jax.random.normal(pop(), (out_channels,), jnp.float32))
        scale = gamma / jnp.sqrt(var + BN_EPS)
        return (w * scale).astype(jnp.float32), \
               ((beta - mean * scale)[None, :]).astype(jnp.float32)

    params = {}
    w = jax.random.normal(pop(), (in_channels, out_channels), jnp.float32) \
        / np.sqrt(in_channels)
    params["w1"], params["b1"] = bn_fold(w)
    for r in rates:
        w = jax.random.normal(pop(), (3, 3, in_channels, out_channels),
                              jnp.float32) / np.sqrt(9 * in_channels)
        params[f"w3_{r}"], params[f"b3_{r}"] = bn_fold(w)
    w = jax.random.normal(pop(), (in_channels, out_channels), jnp.float32) \
        / np.sqrt(in_channels)
    params["wp"], params["bp"] = bn_fold(w)
    return params


# ----------------------------------------------------------------------------
# Pure-JAX reference (mirrors the PyTorch forward; bf16 MXU operands like the
# kernel, f32 accumulation).
# ----------------------------------------------------------------------------
def aspp_ref(x_nchw, params, rates):
    def q(a):  # match the kernel's bf16 MXU operands
        return a.astype(jnp.bfloat16).astype(jnp.float32)

    x = jnp.transpose(x_nchw, (0, 2, 3, 1)).astype(jnp.float32)
    xq = q(x)
    N, H, W, _ = x.shape
    Cout = params["w1"].shape[1]
    outs = [jax.nn.relu(jnp.einsum("nhwc,co->nhwo", xq, q(params["w1"]))
                        + params["b1"][0])]
    for r in rates:
        y = lax.conv_general_dilated(
            xq, q(params[f"w3_{r}"]), window_strides=(1, 1),
            padding=[(r, r), (r, r)], rhs_dilation=(r, r),
            dimension_numbers=("NHWC", "HWIO", "NHWC")) + params[f"b3_{r}"][0]
        outs.append(jax.nn.relu(y))
    pooled = q(x.mean(axis=(1, 2)))   # kernel: f32 sum, bf16 cast at the matmul
    yp = jax.nn.relu(pooled @ q(params["wp"]) + params["bp"][0])
    outs.append(jnp.broadcast_to(yp[:, None, None, :], (N, H, W, Cout)))
    out = jnp.concatenate(outs, axis=-1)
    return jnp.transpose(out, (0, 3, 1, 2))


if __name__ == "__main__":
    key = jax.random.PRNGKey(0)
    # (1 + len(rates)) * out_channels = 128 -> the fused conv slab is exactly
    # one full lane group (lane-dense stores).
    in_channels, out_channels = 8, 32
    atrous_rates = (1, 2, 3)
    N, H, W = 2, 16, 16

    kx, kp = jax.random.split(key)
    x = jax.random.normal(kx, (N, in_channels, H, W), dtype=jnp.float32)
    params = make_aspp_params(kp, in_channels, out_channels, atrous_rates)

    out = aspp_forward(x, params, atrous_rates)
    out = jax.block_until_ready(out)

    ref = aspp_ref(x, params, atrous_rates)
    assert out.shape == (N, (len(atrous_rates) + 2) * out_channels, H, W)
    np.testing.assert_allclose(np.asarray(out.astype(jnp.float32)),
                               np.asarray(ref), rtol=1e-2, atol=1e-2)
    print("KERNEL_OK")
</pallas_src>

<mosaic_0001>
module attributes {stable_mosaic.version = 11 : i64} {
  func.func @kernel(%arg0: i32, %arg1: memref<1x544x8xf32, #tpu.memory_space<vmem>>, %arg2: memref<25x8x128xbf16, #tpu.memory_space<vmem>>, %arg3: memref<1x128xf32, #tpu.memory_space<vmem>>, %arg4: memref<8x32xbf16, #tpu.memory_space<vmem>>, %arg5: memref<1x32xf32, #tpu.memory_space<vmem>>, %arg6: memref<1x16x16x160xbf16, #tpu.memory_space<vmem>>) attributes {dimension_semantics = [#tpu.dimension_semantics<parallel>], iteration_bounds = array<i64: 2>, scalar_prefetch = 0 : i64, scratch_operands = 0 : i64, tpu.core_type = #tpu.core_type<tc>, window_params = [{transform_indices = @transform_0, window_bounds = array<i64: 1, 544, 8>}, {pipeline_mode = #tpu.pipeline_mode<synchronous>, transform_indices = @transform_1, window_bounds = array<i64: 25, 8, 128>}, {pipeline_mode = #tpu.pipeline_mode<synchronous>, transform_indices = @transform_2, window_bounds = array<i64: 1, 128>}, {pipeline_mode = #tpu.pipeline_mode<synchronous>, transform_indices = @transform_3, window_bounds = array<i64: 8, 32>}, {pipeline_mode = #tpu.pipeline_mode<synchronous>, transform_indices = @transform_4, window_bounds = array<i64: 1, 32>}, {transform_indices = @transform_5, window_bounds = array<i64: 1, 16, 16, 160>}]} {
    %c0 = arith.constant 0 : index
    %c0_0 = arith.constant 0 : index
    %0 = vector.load %arg3[%c0, %c0_0] : memref<1x128xf32, #tpu.memory_space<vmem>>, vector<1x128xf32>
    %cst = arith.constant 0.000000e+00 : f32
    %1 = vector.broadcast %cst : f32 to vector<1x8xf32>
    %c0_1 = arith.constant 0 : index
    %c80 = arith.constant 80 : index
    %c0_2 = arith.constant 0 : index
    %2 = vector.load %arg1[%c0_1, %c80, %c0_2] : memref<1x544x8xf32, #tpu.memory_space<vmem>>, vector<1x192x8xf32>
    %3 = vector.shape_cast %2 : vector<1x192x8xf32> to vector<192x8xf32>
    %cst_3 = arith.constant dense<0.000000e+00> : vector<8xf32>
    %4 = vector.multi_reduction <add>, %3, %cst_3 [0] : vector<192x8xf32> to vector<8xf32>
    %5 = vector.shape_cast %4 : vector<8xf32> to vector<1x8xf32>
    %6 = arith.addf %1, %5 : vector<1x8xf32>
    %7 = vector.shape_cast %0 : vector<1x128xf32> to vector<1x128xf32>
    %8 = vector.broadcast %7 : vector<1x128xf32> to vector<192x128xf32>
    %9 = arith.truncf %3 : vector<192x8xf32> to vector<192x8xbf16>
    %c0_4 = arith.constant 0 : index
    %c0_5 = arith.constant 0 : index
    %c0_6 = arith.constant 0 : index
    %10 = vector.load %arg2[%c0_4, %c0_5, %c0_6] : memref<25x8x128xbf16, #tpu.memory_space<vmem>>, vector<1x8x128xbf16>
    %11 = vector.shape_cast %10 : vector<1x8x128xbf16> to vector<8x128xbf16>
    %cst_7 = arith.constant dense<0.000000e+00> : vector<192x128xf32>
    %12 = tpu.matmul %9, %11, %cst_7 {dimension_numbers = #tpu.dot_dimension_numbers<[1], [0], [0], [1], [0, 0, 1, 1], [], []>} : vector<192x8xbf16>, vector<8x128xbf16>, vector<192x128xf32> -> vector<192x128xf32>
    %13 = arith.addf %8, %12 : vector<192x128xf32>
    %c0_8 = arith.constant 0 : index
    %c55 = arith.constant 55 : index
    %c0_9 = arith.constant 0 : index
    %14 = vector.load %arg1[%c0_8, %c55, %c0_9] : memref<1x544x8xf32, #tpu.memory_space<vmem>>, vector<1x192x8xf32>
    %15 = vector.shape_cast %14 : vector<1x192x8xf32> to vector<192x8xf32>
    %16 = arith.truncf %15 : vector<192x8xf32> to vector<192x8xbf16>
    %c1 = arith.constant 1 : index
    %c0_10 = arith.constant 0 : index
    %c0_11 = arith.constant 0 : index
    %17 = vector.load %arg2[%c1, %c0_10, %c0_11] : memref<25x8x128xbf16, #tpu.memory_space<vmem>>, vector<1x8x128xbf16>
    %18 = vector.shape_cast %17 : vector<1x8x128xbf16> to vector<8x128xbf16>
    %cst_12 = arith.constant dense<0.000000e+00> : vector<192x128xf32>
    %19 = tpu.matmul %16, %18, %cst_12 {dimension_numbers = #tpu.dot_dimension_numbers<[1], [0], [0], [1], [0, 0, 1, 1], [], []>} : vector<192x8xbf16>, vector<8x128xbf16>, vector<192x128xf32> -> vector<192x128xf32>
    %20 = arith.addf %13, %19 : vector<192x128xf32>
    %c0_13 = arith.constant 0 : index
    %c56 = arith.constant 56 : index
    %c0_14 = arith.constant 0 : index
    %21 = vector.load %arg1[%c0_13, %c56, %c0_14] : memref<1x544x8xf32, #tpu.memory_space<vmem>>, vector<1x192x8xf32>
    %22 = vector.shape_cast %21 : vector<1x192x8xf32> to vector<192x8xf32>
    %23 = arith.truncf %22 : vector<192x8xf32> to vector<192x8xbf16>
    %c2 = arith.constant 2 : index
    %c0_15 = arith.constant 0 : index
    %c0_16 = arith.constant 0 : index
    %24 = vector.load %arg2[%c2, %c0_15, %c0_16] : memref<25x8x128xbf16, #tpu.memory_space<vmem>>, vector<1x8x128xbf16>
    %25 = vector.shape_cast %24 : vector<1x8x128xbf16> to vector<8x128xbf16>
    %cst_17 = arith.constant dense<0.000000e+00> : vector<192x128xf32>
    %26 = tpu.matmul %23, %25, %cst_17 {dimension_numbers = #tpu.dot_dimension_numbers<[1], [0], [0], [1], [0, 0, 1, 1], [], []>} : vector<192x8xbf16>, vector<8x128xbf16>, vector<192x128xf32> -> vector<192x128xf32>
    %27 = arith.addf %20, %26 : vector<192x128xf32>
    %c0_18 = arith.constant 0 : index
    %c57 = arith.constant 57 : index
    %c0_19 = arith.constant 0 : index
    %28 = vector.load %arg1[%c0_18, %c57, %c0_19] : memref<1x544x8xf32, #tpu.memory_space<vmem>>, vector<1x192x8xf32>
    %29 = vector.shape_cast %28 : vector<1x192x8xf32> to vector<192x8xf32>
    %30 = arith.truncf %29 : vector<192x8xf32> to vector<192x8xbf16>
    %c3 = arith.constant 3 : index
    %c0_20 = arith.constant 0 : index
    %c0_21 = arith.constant 0 : index
    %31 = vector.load %arg2[%c3, %c0_20, %c0_21] : memref<25x8x128xbf16, #tpu.memory_space<vmem>>, vector<1x8x128xbf16>
    %32 = vector.shape_cast %31 : vector<1x8x128xbf16> to vector<8x128xbf16>
    %cst_22 = arith.constant dense<0.000000e+00> : vector<192x128xf32>
    %33 = tpu.matmul %30, %32, %cst_22 {dimension_numbers = #tpu.dot_dimension_numbers<[1], [0], [0], [1], [0, 0, 1, 1], [], []>} : vector<192x8xbf16>, vector<8x128xbf16>, vector<192x128xf32> -> vector<192x128xf32>
    %34 = arith.addf %27, %33 : vector<192x128xf32>
    %c0_23 = arith.constant 0 : index
    %c79 = arith.constant 79 : index
    %c0_24 = arith.constant 0 : index
    %35 = vector.load %arg1[%c0_23, %c79, %c0_24] : memref<1x544x8xf32, #tpu.memory_space<vmem>>, vector<1x192x8xf32>
    %36 = vector.shape_cast %35 : vector<1x192x8xf32> to vector<192x8xf32>
    %37 = arith.truncf %36 : vector<192x8xf32> to vector<192x8xbf16>
    %c4 = arith.constant 4 : index
    %c0_25 = arith.constant 0 : index
    %c0_26 = arith.constant 0 : index
    %38 = vector.load %arg2[%c4, %c0_25, %c0_26] : memref<25x8x128xbf16, #tpu.memory_space<vmem>>, vector<1x8x128xbf16>
    %39 = vector.shape_cast %38 : vector<1x8x128xbf16> to vector<8x128xbf16>
    %cst_27 = arith.constant dense<0.000000e+00> : vector<192x128xf32>
    %40 = tpu.matmul %37, %39, %cst_27 {dimension_numbers = #tpu.dot_dimension_numbers<[1], [0], [0], [1], [0, 0, 1, 1], [], []>} : vector<192x8xbf16>, vector<8x128xbf16>, vector<192x128xf32> -> vector<192x128xf32>
    %41 = arith.addf %34, %40 : vector<192x128xf32>
    %c0_28 = arith.constant 0 : index
    %c81 = arith.constant 81 : index
    %c0_29 = arith.constant 0 : index
    %42 = vector.load %arg1[%c0_28, %c81, %c0_29] : memref<1x544x8xf32, #tpu.memory_space<vmem>>, vector<1x192x8xf32>
    %43 = vector.shape_cast %42 : vector<1x192x8xf32> to vector<192x8xf32>
    %44 = arith.truncf %43 : vector<192x8xf32> to vector<192x8xbf16>
    %c5 = arith.constant 5 : index
    %c0_30 = arith.constant 0 : index
    %c0_31 = arith.constant 0 : index
    %45 = vector.load %arg2[%c5, %c0_30, %c0_31] : memref<25x8x128xbf16, #tpu.memory_space<vmem>>, vector<1x8x128xbf16>
    %46 = vector.shape_cast %45 : vector<1x8x128xbf16> to vector<8x128xbf16>
    %cst_32 = arith.constant dense<0.000000e+00> : vector<192x128xf32>
    %47 = tpu.matmul %44, %46, %cst_32 {dimension_numbers = #tpu.dot_dimension_numbers<[1], [0], [0], [1], [0, 0, 1, 1], [], []>} : vector<192x8xbf16>, vector<8x128xbf16>, vector<192x128xf32> -> vector<192x128xf32>
    %48 = arith.addf %41, %47 : vector<192x128xf32>
    %c0_33 = arith.constant 0 : index
    %c103 = arith.constant 103 : index
    %c0_34 = arith.constant 0 : index
    %49 = vector.load %arg1[%c0_33, %c103, %c0_34] : memref<1x544x8xf32, #tpu.memory_space<vmem>>, vector<1x192x8xf32>
    %50 = vector.shape_cast %49 : vector<1x192x8xf32> to vector<192x8xf32>
    %51 = arith.truncf %50 : vector<192x8xf32> to vector<192x8xbf16>
    %c6 = arith.constant 6 : index
    %c0_35 = arith.constant 0 : index
    %c0_36 = arith.constant 0 : index
    %52 = vector.load %arg2[%c6, %c0_35, %c0_36] : memref<25x8x128xbf16, #tpu.memory_space<vmem>>, vector<1x8x128xbf16>
    %53 = vector.shape_cast %52 : vector<1x8x128xbf16> to vector<8x128xbf16>
    %cst_37 = arith.constant dense<0.000000e+00> : vector<192x128xf32>
    %54 = tpu.matmul %51, %53, %cst_37 {dimension_numbers = #tpu.dot_dimension_numbers<[1], [0], [0], [1], [0, 0, 1, 1], [], []>} : vector<192x8xbf16>, vector<8x128xbf16>, vector<192x128xf32> -> vector<192x128xf32>
    %55 = arith.addf %48, %54 : vector<192x128xf32>
    %c0_38 = arith.constant 0 : index
    %c104 = arith.constant 104 : index
    %c0_39 = arith.constant 0 : index
    %56 = vector.load %arg1[%c0_38, %c104, %c0_39] : memref<1x544x8xf32, #tpu.memory_space<vmem>>, vector<1x192x8xf32>
    %57 = vector.shape_cast %56 : vector<1x192x8xf32> to vector<192x8xf32>
    %58 = arith.truncf %57 : vector<192x8xf32> to vector<192x8xbf16>
    %c7 = arith.constant 7 : index
    %c0_40 = arith.constant 0 : index
    %c0_41 = arith.constant 0 : index
    %59 = vector.load %arg2[%c7, %c0_40, %c0_41] : memref<25x8x128xbf16, #tpu.memory_space<vmem>>, vector<1x8x128xbf16>
    %60 = vector.shape_cast %59 : vector<1x8x128xbf16> to vector<8x128xbf16>
    %cst_42 = arith.constant dense<0.000000e+00> : vector<192x128xf32>
    %61 = tpu.matmul %58, %60, %cst_42 {dimension_numbers = #tpu.dot_dimension_numbers<[1], [0], [0], [1], [0, 0, 1, 1], [], []>} : vector<192x8xbf16>, vector<8x128xbf16>, vector<192x128xf32> -> vector<192x128xf32>
    %62 = arith.addf %55, %61 : vector<192x128xf32>
    %c0_43 = arith.constant 0 : index
    %c105 = arith.constant 105 : index
    %c0_44 = arith.constant 0 : index
    %63 = vector.load %arg1[%c0_43, %c105, %c0_44] : memref<1x544x8xf32, #tpu.memory_space<vmem>>, vector<1x192x8xf32>
    %64 = vector.shape_cast %63 : vector<1x192x8xf32> to vector<192x8xf32>
    %65 = arith.truncf %64 : vector<192x8xf32> to vector<192x8xbf16>
    %c8 = arith.constant 8 : index
    %c0_45 = arith.constant 0 : index
    %c0_46 = arith.constant 0 : index
    %66 = vector.load %arg2[%c8, %c0_45, %c0_46] : memref<25x8x128xbf16, #tpu.memory_space<vmem>>, vector<1x8x128xbf16>
    %67 = vector.shape_cast %66 : vector<1x8x128xbf16> to vector<8x128xbf16>
    %cst_47 = arith.constant dense<0.000000e+00> : vector<192x128xf32>
    %68 = tpu.matmul %65, %67, %cst_47 {dimension_numbers = #tpu.dot_dimension_numbers<[1], [0], [0], [1], [0, 0, 1, 1], [], []>} : vector<192x8xbf16>, vector<8x128xbf16>, vector<192x128xf32> -> vector<192x128xf32>
    %69 = arith.addf %62, %68 : vector<192x128xf32>
    %c0_48 = arith.constant 0 : index
    %c30 = arith.constant 30 : index
    %c0_49 = arith.constant 0 : index
    %70 = vector.load %arg1[%c0_48, %c30, %c0_49] : memref<1x544x8xf32, #tpu.memory_space<vmem>>, vector<1x192x8xf32>
    %71 = vector.shape_cast %70 : vector<1x192x8xf32> to vector<192x8xf32>
    %72 = arith.truncf %71 : vector<192x8xf32> to vector<192x8xbf16>
    %c9 = arith.constant 9 : index
    %c0_50 = arith.constant 0 : index
    %c0_51 = arith.constant 0 : index
    %73 = vector.load %arg2[%c9, %c0_50, %c0_51] : memref<25x8x128xbf16, #tpu.memory_space<vmem>>, vector<1x8x128xbf16>
    %74 = vector.shape_cast %73 : vector<1x8x128xbf16> to vector<8x128xbf16>
    %cst_52 = arith.constant dense<0.000000e+00> : vector<192x128xf32>
    %75 = tpu.matmul %72, %74, %cst_52 {dimension_numbers = #tpu.dot_dimension_numbers<[1], [0], [0], [1], [0, 0, 1, 1], [], []>} : vector<192x8xbf16>, vector<8x128xbf16>, vector<192x128xf32> -> vector<192x128xf32>
    %76 = arith.addf %69, %75 : vector<192x128xf32>
    %c0_53 = arith.constant 0 : index
    %c32 = arith.constant 32 : index
    %c0_54 = arith.constant 0 : index
    %77 = vector.load %arg1[%c0_53, %c32, %c0_54] : memref<1x544x8xf32, #tpu.memory_space<vmem>>, vector<1x192x8xf32>
    %78 = vector.shape_cast %77 : vector<1x192x8xf32> to vector<192x8xf32>
    %79 = arith.truncf %78 : vector<192x8xf32> to vector<192x8xbf16>
    %c10 = arith.constant 10 : index
    %c0_55 = arith.constant 0 : index
    %c0_56 = arith.constant 0 : index
    %80 = vector.load %arg2[%c10, %c0_55, %c0_56] : memref<25x8x128xbf16, #tpu.memory_space<vmem>>, vector<1x8x128xbf16>
    %81 = vector.shape_cast %80 : vector<1x8x128xbf16> to vector<8x128xbf16>
    %cst_57 = arith.constant dense<0.000000e+00> : vector<192x128xf32>
    %82 = tpu.matmul %79, %81, %cst_57 {dimension_numbers = #tpu.dot_dimension_numbers<[1], [0], [0], [1], [0, 0, 1, 1], [], []>} : vector<192x8xbf16>, vector<8x128xbf16>, vector<192x128xf32> -> vector<192x128xf32>
    %83 = arith.addf %76, %82 : vector<192x128xf32>
    %c0_58 = arith.constant 0 : index
    %c34 = arith.constant 34 : index
    %c0_59 = arith.constant 0 : index
    %84 = vector.load %arg1[%c0_58, %c34, %c0_59] : memref<1x544x8xf32, #tpu.memory_space<vmem>>, vector<1x192x8xf32>
    %85 = vector.shape_cast %84 : vector<1x192x8xf32> to vector<192x8xf32>
    %86 = arith.truncf %85 : vector<192x8xf32> to vector<192x8xbf16>
    %c11 = arith.constant 11 : index
    %c0_60 = arith.constant 0 : index
    %c0_61 = arith.constant 0 : index
    %87 = vector.load %arg2[%c11, %c0_60, %c0_61] : memref<25x8x128xbf16, #tpu.memory_space<vmem>>, vector<1x8x128xbf16>
    %88 = vector.shape_cast %87 : vector<1x8x128xbf16> to vector<8x128xbf16>
    %cst_62 = arith.constant dense<0.000000e+00> : vector<192x128xf32>
    %89 = tpu.matmul %86, %88, %cst_62 {dimension_numbers = #tpu.dot_dimension_numbers<[1], [0], [0], [1], [0, 0, 1, 1], [], []>} : vector<192x8xbf16>, vector<8x128xbf16>, vector<192x128xf32> -> vector<192x128xf32>
    %90 = arith.addf %83, %89 : vector<192x128xf32>
    %c0_63 = arith.constant 0 : index
    %c78 = arith.constant 78 : index
    %c0_64 = arith.constant 0 : index
    %91 = vector.load %arg1[%c0_63, %c78, %c0_64] : memref<1x544x8xf32, #tpu.memory_space<vmem>>, vector<1x192x8xf32>
    %92 = vector.shape_cast %91 : vector<1x192x8xf32> to vector<192x8xf32>
    %93 = arith.truncf %92 : vector<192x8xf32> to vector<192x8xbf16>
    %c12 = arith.constant 12 : index
    %c0_65 = arith.constant 0 : index
    %c0_66 = arith.constant 0 : index
    %94 = vector.load %arg2[%c12, %c0_65, %c0_66] : memref<25x8x128xbf16, #tpu.memory_space<vmem>>, vector<1x8x128xbf16>
    %95 = vector.shape_cast %94 : vector<1x8x128xbf16> to vector<8x128xbf16>
    %cst_67 = arith.constant dense<0.000000e+00> : vector<192x128xf32>
    %96 = tpu.matmul %93, %95, %cst_67 {dimension_numbers = #tpu.dot_dimension_numbers<[1], [0], [0], [1], [0, 0, 1, 1], [], []>} : vector<192x8xbf16>, vector<8x128xbf16>, vector<192x128xf32> -> vector<192x128xf32>
    %97 = arith.addf %90, %96 : vector<192x128xf32>
    %c0_68 = arith.constant 0 : index
    %c82 = arith.constant 82 : index
    %c0_69 = arith.constant 0 : index
    %98 = vector.load %arg1[%c0_68, %c82, %c0_69] : memref<1x544x8xf32, #tpu.memory_space<vmem>>, vector<1x192x8xf32>
    %99 = vector.shape_cast %98 : vector<1x192x8xf32> to vector<192x8xf32>
    %100 = arith.truncf %99 : vector<192x8xf32> to vector<192x8xbf16>
    %c13 = arith.constant 13 : index
    %c0_70 = arith.constant 0 : index
    %c0_71 = arith.constant 0 : index
    %101 = vector.load %arg2[%c13, %c0_70, %c0_71] : memref<25x8x128xbf16, #tpu.memory_space<vmem>>, vector<1x8x128xbf16>
    %102 = vector.shape_cast %101 : vector<1x8x128xbf16> to vector<8x128xbf16>
    %cst_72 = arith.constant dense<0.000000e+00> : vector<192x128xf32>
    %103 = tpu.matmul %100, %102, %cst_72 {dimension_numbers = #tpu.dot_dimension_numbers<[1], [0], [0], [1], [0, 0, 1, 1], [], []>} : vector<192x8xbf16>, vector<8x128xbf16>, vector<192x128xf32> -> vector<192x128xf32>
    %104 = arith.addf %97, %103 : vector<192x128xf32>
    %c0_73 = arith.constant 0 : index
    %c126 = arith.constant 126 : index
    %c0_74 = arith.constant 0 : index
    %105 = vector.load %arg1[%c0_73, %c126, %c0_74] : memref<1x544x8xf32, #tpu.memory_space<vmem>>, vector<1x192x8xf32>
    %106 = vector.shape_cast %105 : vector<1x192x8xf32> to vector<192x8xf32>
    %107 = arith.truncf %106 : vector<192x8xf32> to vector<192x8xbf16>
    %c14 = arith.constant 14 : index
    %c0_75 = arith.constant 0 : index
    %c0_76 = arith.constant 0 : index
    %108 = vector.load %arg2[%c14, %c0_75, %c0_76] : memref<25x8x128xbf16, #tpu.memory_space<vmem>>, vector<1x8x128xbf16>
    %109 = vector.shape_cast %108 : vector<1x8x128xbf16> to vector<8x128xbf16>
    %cst_77 = arith.constant dense<0.000000e+00> : vector<192x128xf32>
    %110 = tpu.matmul %107, %109, %cst_77 {dimension_numbers = #tpu.dot_dimension_numbers<[1], [0], [0], [1], [0, 0, 1, 1], [], []>} : vector<192x8xbf16>, vector<8x128xbf16>, vector<192x128xf32> -> vector<192x128xf32>
    %111 = arith.addf %104, %110 : vector<192x128xf32>
    %c0_78 = arith.constant 0 : index
    %c128 = arith.constant 128 : index
    %c0_79 = arith.constant 0 : index
    %112 = vector.load %arg1[%c0_78, %c128, %c0_79] : memref<1x544x8xf32, #tpu.memory_space<vmem>>, vector<1x192x8xf32>
    %113 = vector.shape_cast %112 : vector<1x192x8xf32> to vector<192x8xf32>
    %114 = arith.truncf %113 : vector<192x8xf32> to vector<192x8xbf16>
    %c15 = arith.constant 15 : index
    %c0_80 = arith.constant 0 : index
    %c0_81 = arith.constant 0 : index
    %115 = vector.load %arg2[%c15, %c0_80, %c0_81] : memref<25x8x128xbf16, #tpu.memory_space<vmem>>, vector<1x8x128xbf16>
    %116 = vector.shape_cast %115 : vector<1x8x128xbf16> to vector<8x128xbf16>
    %cst_82 = arith.constant dense<0.000000e+00> : vector<192x128xf32>
    %117 = tpu.matmul %114, %116, %cst_82 {dimension_numbers = #tpu.dot_dimension_numbers<[1], [0], [0], [1], [0, 0, 1, 1], [], []>} : vector<192x8xbf16>, vector<8x128xbf16>, vector<192x128xf32> -> vector<192x128xf32>
    %118 = arith.addf %111, %117 : vector<192x128xf32>
    %c0_83 = arith.constant 0 : index
    %c130 = arith.constant 130 : index
    %c0_84 = arith.constant 0 : index
    %119 = vector.load %arg1[%c0_83, %c130, %c0_84] : memref<1x544x8xf32, #tpu.memory_space<vmem>>, vector<1x192x8xf32>
    %120 = vector.shape_cast %119 : vector<1x192x8xf32> to vector<192x8xf32>
    %121 = arith.truncf %120 : vector<192x8xf32> to vector<192x8xbf16>
    %c16 = arith.constant 16 : index
    %c0_85 = arith.constant 0 : index
    %c0_86 = arith.constant 0 : index
    %122 = vector.load %arg2[%c16, %c0_85, %c0_86] : memref<25x8x128xbf16, #tpu.memory_space<vmem>>, vector<1x8x128xbf16>
    %123 = vector.shape_cast %122 : vector<1x8x128xbf16> to vector<8x128xbf16>
    %cst_87 = arith.constant dense<0.000000e+00> : vector<192x128xf32>
    %124 = tpu.matmul %121, %123, %cst_87 {dimension_numbers = #tpu.dot_dimension_numbers<[1], [0], [0], [1], [0, 0, 1, 1], [], []>} : vector<192x8xbf16>, vector<8x128xbf16>, vector<192x128xf32> -> vector<192x128xf32>
    %125 = arith.addf %118, %124 : vector<192x128xf32>
    %c0_88 = arith.constant 0 : index
    %c5_89 = arith.constant 5 : index
    %c0_90 = arith.constant 0 : index
    %126 = vector.load %arg1[%c0_88, %c5_89, %c0_90] : memref<1x544x8xf32, #tpu.memory_space<vmem>>, vector<1x192x8xf32>
    %127 = vector.shape_cast %126 : vector<1x192x8xf32> to vector<192x8xf32>
    %128 = arith.truncf %127 : vector<192x8xf32> to vector<192x8xbf16>
    %c17 = arith.constant 17 : index
    %c0_91 = arith.constant 0 : index
    %c0_92 = arith.constant 0 : index
    %129 = vector.load %arg2[%c17, %c0_91, %c0_92] : memref<25x8x128xbf16, #tpu.memory_space<vmem>>, vector<1x8x128xbf16>
    %130 = vector.shape_cast %129 : vector<1x8x128xbf16> to vector<8x128xbf16>
    %cst_93 = arith.constant dense<0.000000e+00> : vector<192x128xf32>
    %131 = tpu.matmul %128, %130, %cst_93 {dimension_numbers = #tpu.dot_dimension_numbers<[1], [0], [0], [1], [0, 0, 1, 1], [], []>} : vector<192x8xbf16>, vector<8x128xbf16>, vector<192x128xf32> -> vector<192x128xf32>
    %132 = arith.addf %125, %131 : vector<192x128xf32>
    %c0_94 = arith.constant 0 : index
    %c8_95 = arith.constant 8 : index
    %c0_96 = arith.constant 0 : index
    %133 = vector.load %arg1[%c0_94, %c8_95, %c0_96] : memref<1x544x8xf32, #tpu.memory_space<vmem>>, vector<1x192x8xf32>
    %134 = vector.shape_cast %133 : vector<1x192x8xf32> to vector<192x8xf32>
    %135 = arith.truncf %134 : vector<192x8xf32> to vector<192x8xbf16>
    %c18 = arith.constant 18 : index
    %c0_97 = arith.constant 0 : index
    %c0_98 = arith.constant 0 : index
    %136 = vector.load %arg2[%c18, %c0_97, %c0_98] : memref<25x8x128xbf16, #tpu.memory_space<vmem>>, vector<1x8x128xbf16>
    %137 = vector.shape_cast %136 : vector<1x8x128xbf16> to vector<8x128xbf16>
    %cst_99 = arith.constant dense<0.000000e+00> : vector<192x128xf32>
    %138 = tpu.matmul %135, %137, %cst_99 {dimension_numbers = #tpu.dot_dimension_numbers<[1], [0], [0], [1], [0, 0, 1, 1], [], []>} : vector<192x8xbf16>, vector<8x128xbf16>, vector<192x128xf32> -> vector<192x128xf32>
    %139 = arith.addf %132, %138 : vector<192x128xf32>
    %c0_100 = arith.constant 0 : index
    %c11_101 = arith.constant 11 : index
    %c0_102 = arith.constant 0 : index
    %140 = vector.load %arg1[%c0_100, %c11_101, %c0_102] : memref<1x544x8xf32, #tpu.memory_space<vmem>>, vector<1x192x8xf32>
    %141 = vector.shape_cast %140 : vector<1x192x8xf32> to vector<192x8xf32>
    %142 = arith.truncf %141 : vector<192x8xf32> to vector<192x8xbf16>
    %c19 = arith.constant 19 : index
    %c0_103 = arith.constant 0 : index
    %c0_104 = arith.constant 0 : index
    %143 = vector.load %arg2[%c19, %c0_103, %c0_104] : memref<25x8x128xbf16, #tpu.memory_space<vmem>>, vector<1x8x128xbf16>
    %144 = vector.shape_cast %143 : vector<1x8x128xbf16> to vector<8x128xbf16>
    %cst_105 = arith.constant dense<0.000000e+00> : vector<192x128xf32>
    %145 = tpu.matmul %142, %144, %cst_105 {dimension_numbers = #tpu.dot_dimension_numbers<[1], [0], [0], [1], [0, 0, 1, 1], [], []>} : vector<192x8xbf16>, vector<8x128xbf16>, vector<192x128xf32> -> vector<192x128xf32>
    %146 = arith.addf %139, %145 : vector<192x128xf32>
    %c0_106 = arith.constant 0 : index
    %c77 = arith.constant 77 : index
    %c0_107 = arith.constant 0 : index
    %147 = vector.load %arg1[%c0_106, %c77, %c0_107] : memref<1x544x8xf32, #tpu.memory_space<vmem>>, vector<1x192x8xf32>
    %148 = vector.shape_cast %147 : vector<1x192x8xf32> to vector<192x8xf32>
    %149 = arith.truncf %148 : vector<192x8xf32> to vector<192x8xbf16>
    %c20 = arith.constant 20 : index
    %c0_108 = arith.constant 0 : index
    %c0_109 = arith.constant 0 : index
    %150 = vector.load %arg2[%c20, %c0_108, %c0_109] : memref<25x8x128xbf16, #tpu.memory_space<vmem>>, vector<1x8x128xbf16>
    %151 = vector.shape_cast %150 : vector<1x8x128xbf16> to vector<8x128xbf16>
    %cst_110 = arith.constant dense<0.000000e+00> : vector<192x128xf32>
    %152 = tpu.matmul %149, %151, %cst_110 {dimension_numbers = #tpu.dot_dimension_numbers<[1], [0], [0], [1], [0, 0, 1, 1], [], []>} : vector<192x8xbf16>, vector<8x128xbf16>, vector<192x128xf32> -> vector<192x128xf32>
    %153 = arith.addf %146, %152 : vector<192x128xf32>
    %c0_111 = arith.constant 0 : index
    %c83 = arith.constant 83 : index
    %c0_112 = arith.constant 0 : index
    %154 = vector.load %arg1[%c0_111, %c83, %c0_112] : memref<1x544x8xf32, #tpu.memory_space<vmem>>, vector<1x192x8xf32>
    %155 = vector.shape_cast %154 : vector<1x192x8xf32> to vector<192x8xf32>
    %156 = arith.truncf %155 : vector<192x8xf32> to vector<192x8xbf16>
    %c21 = arith.constant 21 : index
    %c0_113 = arith.constant 0 : index
    %c0_114 = arith.constant 0 : index
    %157 = vector.load %arg2[%c21, %c0_113, %c0_114] : memref<25x8x128xbf16, #tpu.memory_space<vmem>>, vector<1x8x128xbf16>
    %158 = vector.shape_cast %157 : vector<1x8x128xbf16> to vector<8x128xbf16>
    %cst_115 = arith.constant dense<0.000000e+00> : vector<192x128xf32>
    %159 = tpu.matmul %156, %158, %cst_115 {dimension_numbers = #tpu.dot_dimension_numbers<[1], [0], [0], [1], [0, 0, 1, 1], [], []>} : vector<192x8xbf16>, vector<8x128xbf16>, vector<192x128xf32> -> vector<192x128xf32>
    %160 = arith.addf %153, %159 : vector<192x128xf32>
    %c0_116 = arith.constant 0 : index
    %c149 = arith.constant 149 : index
    %c0_117 = arith.constant 0 : index
    %161 = vector.load %arg1[%c0_116, %c149, %c0_117] : memref<1x544x8xf32, #tpu.memory_space<vmem>>, vector<1x192x8xf32>
    %162 = vector.shape_cast %161 : vector<1x192x8xf32> to vector<192x8xf32>
    %163 = arith.truncf %162 : vector<192x8xf32> to vector<192x8xbf16>
    %c22 = arith.constant 22 : index
    %c0_118 = arith.constant 0 : index
    %c0_119 = arith.constant 0 : index
    %164 = vector.load %arg2[%c22, %c0_118, %c0_119] : memref<25x8x128xbf16, #tpu.memory_space<vmem>>, vector<1x8x128xbf16>
    %165 = vector.shape_cast %164 : vector<1x8x128xbf16> to vector<8x128xbf16>
    %cst_120 = arith.constant dense<0.000000e+00> : vector<192x128xf32>
    %166 = tpu.matmul %163, %165, %cst_120 {dimension_numbers = #tpu.dot_dimension_numbers<[1], [0], [0], [1], [0, 0, 1, 1], [], []>} : vector<192x8xbf16>, vector<8x128xbf16>, vector<192x128xf32> -> vector<192x128xf32>
    %167 = arith.addf %160, %166 : vector<192x128xf32>
    %c0_121 = arith.constant 0 : index
    %c152 = arith.constant 152 : index
    %c0_122 = arith.constant 0 : index
    %168 = vector.load %arg1[%c0_121, %c152, %c0_122] : memref<1x544x8xf32, #tpu.memory_space<vmem>>, vector<1x192x8xf32>
    %169 = vector.shape_cast %168 : vector<1x192x8xf32> to vector<192x8xf32>
    %170 = arith.truncf %169 : vector<192x8xf32> to vector<192x8xbf16>
    %c23 = arith.constant 23 : index
    %c0_123 = arith.constant 0 : index
    %c0_124 = arith.constant 0 : index
    %171 = vector.load %arg2[%c23, %c0_123, %c0_124] : memref<25x8x128xbf16, #tpu.memory_space<vmem>>, vector<1x8x128xbf16>
    %172 = vector.shape_cast %171 : vector<1x8x128xbf16> to vector<8x128xbf16>
    %cst_125 = arith.constant dense<0.000000e+00> : vector<192x128xf32>
    %173 = tpu.matmul %170, %172, %cst_125 {dimension_numbers = #tpu.dot_dimension_numbers<[1], [0], [0], [1], [0, 0, 1, 1], [], []>} : vector<192x8xbf16>, vector<8x128xbf16>, vector<192x128xf32> -> vector<192x128xf32>
    %174 = arith.addf %167, %173 : vector<192x128xf32>
    %c0_126 = arith.constant 0 : index
    %c155 = arith.constant 155 : index
    %c0_127 = arith.constant 0 : index
    %175 = vector.load %arg1[%c0_126, %c155, %c0_127] : memref<1x544x8xf32, #tpu.memory_space<vmem>>, vector<1x192x8xf32>
    %176 = vector.shape_cast %175 : vector<1x192x8xf32> to vector<192x8xf32>
    %177 = arith.truncf %176 : vector<192x8xf32> to vector<192x8xbf16>
    %c24 = arith.constant 24 : index
    %c0_128 = arith.constant 0 : index
    %c0_129 = arith.constant 0 : index
    %178 = vector.load %arg2[%c24, %c0_128, %c0_129] : memref<25x8x128xbf16, #tpu.memory_space<vmem>>, vector<1x8x128xbf16>
    %179 = vector.shape_cast %178 : vector<1x8x128xbf16> to vector<8x128xbf16>
    %cst_130 = arith.constant dense<0.000000e+00> : vector<192x128xf32>
    %180 = tpu.matmul %177, %179, %cst_130 {dimension_numbers = #tpu.dot_dimension_numbers<[1], [0], [0], [1], [0, 0, 1, 1], [], []>} : vector<192x8xbf16>, vector<8x128xbf16>, vector<192x128xf32> -> vector<192x128xf32>
    %181 = arith.addf %174, %180 : vector<192x128xf32>
    %cst_131 = arith.constant 0.000000e+00 : f32
    %182 = vector.broadcast %cst_131 : f32 to vector<192x128xf32>
    %183 = arith.maximumf %181, %182 : vector<192x128xf32>
    %184 = vector.shape_cast %183 : vector<192x128xf32> to vector<8x24x128xf32>
    %185 = vector.extract_strided_slice %184 {offsets = [0, 3, 0], sizes = [8, 16, 128], strides = [1, 1, 1]} : vector<8x24x128xf32> to vector<8x16x128xf32>
    %186 = arith.truncf %185 : vector<8x16x128xf32> to vector<8x16x128xbf16>
    %c0_132 = arith.constant 0 : index
    %c0_133 = arith.constant 0 : index
    %c0_134 = arith.constant 0 : index
    %c0_135 = arith.constant 0 : index
    %187 = vector.load %arg6[%c0_132, %c0_133, %c0_134, %c0_135] : memref<1x16x16x160xbf16, #tpu.memory_space<vmem>>, vector<1x8x16x128xbf16>
    %188 = vector.shape_cast %187 : vector<1x8x16x128xbf16> to vector<8x16x128xbf16>
    %189 = vector.shape_cast %186 : vector<8x16x128xbf16> to vector<1x8x16x128xbf16>
    tpu.vector_store %arg6[%c0_132, %c0_133, %c0_134, %c0_135], %189 {strides = array<i32>} : memref<1x16x16x160xbf16, #tpu.memory_space<vmem>>, vector<1x8x16x128xbf16>,
    %c0_136 = arith.constant 0 : index
    %c272 = arith.constant 272 : index
    %c0_137 = arith.constant 0 : index
    %190 = vector.load %arg1[%c0_136, %c272, %c0_137] : memref<1x544x8xf32, #tpu.memory_space<vmem>>, vector<1x192x8xf32>
    %191 = vector.shape_cast %190 : vector<1x192x8xf32> to vector<192x8xf32>
    %cst_138 = arith.constant dense<0.000000e+00> : vector<8xf32>
    %192 = vector.multi_reduction <add>, %191, %cst_138 [0] : vector<192x8xf32> to vector<8xf32>
    %193 = vector.shape_cast %192 : vector<8xf32> to vector<1x8xf32>
    %194 = arith.addf %6, %193 : vector<1x8xf32>
    %195 = vector.shape_cast %0 : vector<1x128xf32> to vector<1x128xf32>
    %196 = vector.broadcast %195 : vector<1x128xf32> to vector<192x128xf32>
    %197 = arith.truncf %191 : vector<192x8xf32> to vector<192x8xbf16>
    %c0_139 = arith.constant 0 : index
    %c0_140 = arith.constant 0 : index
    %c0_141 = arith.constant 0 : index
    %198 = vector.load %arg2[%c0_139, %c0_140, %c0_141] : memref<25x8x128xbf16, #tpu.memory_space<vmem>>, vector<1x8x128xbf16>
    %199 = vector.shape_cast %198 : vector<1x8x128xbf16> to vector<8x128xbf16>
    %cst_142 = arith.constant dense<0.000000e+00> : vector<192x128xf32>
    %200 = tpu.matmul %197, %199, %cst_142 {dimension_numbers = #tpu.dot_dimension_numbers<[1], [0], [0], [1], [0, 0, 1, 1], [], []>} : vector<192x8xbf16>, vector<8x128xbf16>, vector<192x128xf32> -> vector<192x128xf32>
    %201 = arith.addf %196, %200 : vector<192x128xf32>
    %c0_143 = arith.constant 0 : index
    %c247 = arith.constant 247 : index
    %c0_144 = arith.constant 0 : index
    %202 = vector.load %arg1[%c0_143, %c247, %c0_144] : memref<1x544x8xf32, #tpu.memory_space<vmem>>, vector<1x192x8xf32>
    %203 = vector.shape_cast %202 : vector<1x192x8xf32> to vector<192x8xf32>
    %204 = arith.truncf %203 : vector<192x8xf32> to vector<192x8xbf16>
    %c1_145 = arith.constant 1 : index
    %c0_146 = arith.constant 0 : index
    %c0_147 = arith.constant 0 : index
    %205 = vector.load %arg2[%c1_145, %c0_146, %c0_147] : memref<25x8x128xbf16, #tpu.memory_space<vmem>>, vector<1x8x128xbf16>
    %206 = vector.shape_cast %205 : vector<1x8x128xbf16> to vector<8x128xbf16>
    %cst_148 = arith.constant dense<0.000000e+00> : vector<192x128xf32>
    %207 = tpu.matmul %204, %206, %cst_148 {dimension_numbers = #tpu.dot_dimension_numbers<[1], [0], [0], [1], [0, 0, 1, 1], [], []>} : vector<192x8xbf16>, vector<8x128xbf16>, vector<192x128xf32> -> vector<192x128xf32>
    %208 = arith.addf %201, %207 : vector<192x128xf32>
    %c0_149 = arith.constant 0 : index
    %c248 = arith.constant 248 : index
    %c0_150 = arith.constant 0 : index
    %209 = vector.load %arg1[%c0_149, %c248, %c0_150] : memref<1x544x8xf32, #tpu.memory_space<vmem>>, vector<1x192x8xf32>
    %210 = vector.shape_cast %209 : vector<1x192x8xf32> to vector<192x8xf32>
    %211 = arith.truncf %210 : vector<192x8xf32> to vector<192x8xbf16>
    %c2_151 = arith.constant 2 : index
    %c0_152 = arith.constant 0 : index
    %c0_153 = arith.constant 0 : index
    %212 = vector.load %arg2[%c2_151, %c0_152, %c0_153] : memref<25x8x128xbf16, #tpu.memory_space<vmem>>, vector<1x8x128xbf16>
    %213 = vector.shape_cast %212 : vector<1x8x128xbf16> to vector<8x128xbf16>
    %cst_154 = arith.constant dense<0.000000e+00> : vector<192x128xf32>
    %214 = tpu.matmul %211, %213, %cst_154 {dimension_numbers = #tpu.dot_dimension_numbers<[1], [0], [0], [1], [0, 0, 1, 1], [], []>} : vector<192x8xbf16>, vector<8x128xbf16>, vector<192x128xf32> -> vector<192x128xf32>
    %215 = arith.addf %208, %214 : vector<192x128xf32>
    %c0_155 = arith.constant 0 : index
    %c249 = arith.constant 249 : index
    %c0_156 = arith.constant 0 : index
    %216 = vector.load %arg1[%c0_155, %c249, %c0_156] : memref<1x544x8xf32, #tpu.memory_space<vmem>>, vector<1x192x8xf32>
    %217 = vector.shape_cast %216 : vector<1x192x8xf32> to vector<192x8xf32>
    %218 = arith.truncf %217 : vector<192x8xf32> to vector<192x8xbf16>
    %c3_157 = arith.constant 3 : index
    %c0_158 = arith.constant 0 : index
    %c0_159 = arith.constant 0 : index
    %219 = vector.load %arg2[%c3_157, %c0_158, %c0_159] : memref<25x8x128xbf16, #tpu.memory_space<vmem>>, vector<1x8x128xbf16>
    %220 = vector.shape_cast %219 : vector<1x8x128xbf16> to vector<8x128xbf16>
    %cst_160 = arith.constant dense<0.000000e+00> : vector<192x128xf32>
    %221 = tpu.matmul %218, %220, %cst_160 {dimension_numbers = #tpu.dot_dimension_numbers<[1], [0], [0], [1], [0, 0, 1, 1], [], []>} : vector<192x8xbf16>, vector<8x128xbf16>, vector<192x128xf32> -> vector<192x128xf32>
    %222 = arith.addf %215, %221 : vector<192x128xf32>
    %c0_161 = arith.constant 0 : index
    %c271 = arith.constant 271 : index
    %c0_162 = arith.constant 0 : index
    %223 = vector.load %arg1[%c0_161, %c271, %c0_162] : memref<1x544x8xf32, #tpu.memory_space<vmem>>, vector<1x192x8xf32>
    %224 = vector.shape_cast %223 : vector<1x192x8xf32> to vector<192x8xf32>
    %225 = arith.truncf %224 : vector<192x8xf32> to vector<192x8xbf16>
    %c4_163 = arith.constant 4 : index
    %c0_164 = arith.constant 0 : index
    %c0_165 = arith.constant 0 : index
    %226 = vector.load %arg2[%c4_163, %c0_164, %c0_165] : memref<25x8x128xbf16, #tpu.memory_space<vmem>>, vector<1x8x128xbf16>
    %227 = vector.shape_cast %226 : vector<1x8x128xbf16> to vector<8x128xbf16>
    %cst_166 = arith.constant dense<0.000000e+00> : vector<192x128xf32>
    %228 = tpu.matmul %225, %227, %cst_166 {dimension_numbers = #tpu.dot_dimension_numbers<[1], [0], [0], [1], [0, 0, 1, 1], [], []>} : vector<192x8xbf16>, vector<8x128xbf16>, vector<192x128xf32> -> vector<192x128xf32>
    %229 = arith.addf %222, %228 : vector<192x128xf32>
    %c0_167 = arith.constant 0 : index
    %c273 = arith.constant 273 : index
    %c0_168 = arith.constant 0 : index
    %230 = vector.load %arg1[%c0_167, %c273, %c0_168] : memref<1x544x8xf32, #tpu.memory_space<vmem>>, vector<1x192x8xf32>
    %231 = vector.shape_cast %230 : vector<1x192x8xf32> to vector<192x8xf32>
    %232 = arith.truncf %231 : vector<192x8xf32> to vector<192x8xbf16>
    %c5_169 = arith.constant 5 : index
    %c0_170 = arith.constant 0 : index
    %c0_171 = arith.constant 0 : index
    %233 = vector.load %arg2[%c5_169, %c0_170, %c0_171] : memref<25x8x128xbf16, #tpu.memory_space<vmem>>, vector<1x8x128xbf16>
    %234 = vector.shape_cast %233 : vector<1x8x128xbf16> to vector<8x128xbf16>
    %cst_172 = arith.constant dense<0.000000e+00> : vector<192x128xf32>
    %235 = tpu.matmul %232, %234, %cst_172 {dimension_numbers = #tpu.dot_dimension_numbers<[1], [0], [0], [1], [0, 0, 1, 1], [], []>} : vector<192x8xbf16>, vector<8x128xbf16>, vector<192x128xf32> -> vector<192x128xf32>
    %236 = arith.addf %229, %235 : vector<192x128xf32>
    %c0_173 = arith.constant 0 : index
    %c295 = arith.constant 295 : index
    %c0_174 = arith.constant 0 : index
    %237 = vector.load %arg1[%c0_173, %c295, %c0_174] : memref<1x544x8xf32, #tpu.memory_space<vmem>>, vector<1x192x8xf32>
    %238 = vector.shape_cast %237 : vector<1x192x8xf32> to vector<192x8xf32>
    %239 = arith.truncf %238 : vector<192x8xf32> to vector<192x8xbf16>
    %c6_175 = arith.constant 6 : index
    %c0_176 = arith.constant 0 : index
    %c0_177 = arith.constant 0 : index
    %240 = vector.load %arg2[%c6_175, %c0_176, %c0_177] : memref<25x8x128xbf16, #tpu.memory_space<vmem>>, vector<1x8x128xbf16>
    %241 = vector.shape_cast %240 : vector<1x8x128xbf16> to vector<8x128xbf16>
    %cst_178 = arith.constant dense<0.000000e+00> : vector<192x128xf32>
    %242 = tpu.matmul %239, %241, %cst_178 {dimension_numbers = #tpu.dot_dimension_numbers<[1], [0], [0], [1], [0, 0, 1, 1], [], []>} : vector<192x8xbf16>, vector<8x128xbf16>, vector<192x128xf32> -> vector<192x128xf32>
    %243 = arith.addf %236, %242 : vector<192x128xf32>
    %c0_179 = arith.constant 0 : index
    %c296 = arith.constant 296 : index
    %c0_180 = arith.constant 0 : index
    %244 = vector.load %arg1[%c0_179, %c296, %c0_180] : memref<1x544x8xf32, #tpu.memory_space<vmem>>, vector<1x192x8xf32>
    %245 = vector.shape_cast %244 : vector<1x192x8xf32> to vector<192x8xf32>
    %246 = arith.truncf %245 : vector<192x8xf32> to vector<192x8xbf16>
    %c7_181 = arith.constant 7 : index
    %c0_182 = arith.constant 0 : index
    %c0_183 = arith.constant 0 : index
    %247 = vector.load %arg2[%c7_181, %c0_182, %c0_183] : memref<25x8x128xbf16, #tpu.memory_space<vmem>>, vector<1x8x128xbf16>
    %248 = vector.shape_cast %247 : vector<1x8x128xbf16> to vector<8x128xbf16>
    %cst_184 = arith.constant dense<0.000000e+00> : vector<192x128xf32>
    %249 = tpu.matmul %246, %248, %cst_184 {dimension_numbers = #tpu.dot_dimension_numbers<[1], [0], [0], [1], [0, 0, 1, 1], [], []>} : vector<192x8xbf16>, vector<8x128xbf16>, vector<192x128xf32> -> vector<192x128xf32>
    %250 = arith.addf %243, %249 : vector<192x128xf32>
    %c0_185 = arith.constant 0 : index
    %c297 = arith.constant 297 : index
    %c0_186 = arith.constant 0 : index
    %251 = vector.load %arg1[%c0_185, %c297, %c0_186] : memref<1x544x8xf32, #tpu.memory_space<vmem>>, vector<1x192x8xf32>
    %252 = vector.shape_cast %251 : vector<1x192x8xf32> to vector<192x8xf32>
    %253 = arith.truncf %252 : vector<192x8xf32> to vector<192x8xbf16>
    %c8_187 = arith.constant 8 : index
    %c0_188 = arith.constant 0 : index
    %c0_189 = arith.constant 0 : index
    %254 = vector.load %arg2[%c8_187, %c0_188, %c0_189] : memref<25x8x128xbf16, #tpu.memory_space<vmem>>, vector<1x8x128xbf16>
    %255 = vector.shape_cast %254 : vector<1x8x128xbf16> to vector<8x128xbf16>
    %cst_190 = arith.constant dense<0.000000e+00> : vector<192x128xf32>
    %256 = tpu.matmul %253, %255, %cst_190 {dimension_numbers = #tpu.dot_dimension_numbers<[1], [0], [0], [1], [0, 0, 1, 1], [], []>} : vector<192x8xbf16>, vector<8x128xbf16>, vector<192x128xf32> -> vector<192x128xf32>
    %257 = arith.addf %250, %256 : vector<192x128xf32>
    %c0_191 = arith.constant 0 : index
    %c222 = arith.constant 222 : index
    %c0_192 = arith.constant 0 : index
    %258 = vector.load %arg1[%c0_191, %c222, %c0_192] : memref<1x544x8xf32, #tpu.memory_space<vmem>>, vector<1x192x8xf32>
    %259 = vector.shape_cast %258 : vector<1x192x8xf32> to vector<192x8xf32>
    %260 = arith.truncf %259 : vector<192x8xf32> to vector<192x8xbf16>
    %c9_193 = arith.constant 9 : index
    %c0_194 = arith.constant 0 : index
    %c0_195 = arith.constant 0 : index
    %261 = vector.load %arg2[%c9_193, %c0_194, %c0_195] : memref<25x8x128xbf16, #tpu.memory_space<vmem>>, vector<1x8x128xbf16>
    %262 = vector.shape_cast %261 : vector<1x8x128xbf16> to vector<8x128xbf16>
    %cst_196 = arith.constant dense<0.000000e+00> : vector<192x128xf32>
    %263 = tpu.matmul %260, %262, %cst_196 {dimension_numbers = #tpu.dot_dimension_numbers<[1], [0], [0], [1], [0, 0, 1, 1], [], []>} : vector<192x8xbf16>, vector<8x128xbf16>, vector<192x128xf32> -> vector<192x128xf32>
    %264 = arith.addf %257, %263 : vector<192x128xf32>
    %c0_197 = arith.constant 0 : index
    %c224 = arith.constant 224 : index
    %c0_198 = arith.constant 0 : index
    %265 = vector.load %arg1[%c0_197, %c224, %c0_198] : memref<1x544x8xf32, #tpu.memory_space<vmem>>, vector<1x192x8xf32>
    %266 = vector.shape_cast %265 : vector<1x192x8xf32> to vector<192x8xf32>
    %267 = arith.truncf %266 : vector<192x8xf32> to vector<192x8xbf16>
    %c10_199 = arith.constant 10 : index
    %c0_200 = arith.constant 0 : index
    %c0_201 = arith.constant 0 : index
    %268 = vector.load %arg2[%c10_199, %c0_200, %c0_201] : memref<25x8x128xbf16, #tpu.memory_space<vmem>>, vector<1x8x128xbf16>
    %269 = vector.shape_cast %268 : vector<1x8x128xbf16> to vector<8x128xbf16>
    %cst_202 = arith.constant dense<0.000000e+00> : vector<192x128xf32>
    %270 = tpu.matmul %267, %269, %cst_202 {dimension_numbers = #tpu.dot_dimension_numbers<[1], [0], [0], [1], [0, 0, 1, 1], [], []>} : vector<192x8xbf16>, vector<8x128xbf16>, vector<192x128xf32> -> vector<192x128xf32>
    %271 = arith.addf %264, %270 : vector<192x128xf32>
    %c0_203 = arith.constant 0 : index
    %c226 = arith.constant 226 : index
    %c0_204 = arith.constant 0 : index
    %272 = vector.load %arg1[%c0_203, %c226, %c0_204] : memref<1x544x8xf32, #tpu.memory_space<vmem>>, vector<1x192x8xf32>
    %273 = vector.shape_cast %272 : vector<1x192x8xf32> to vector<192x8xf32>
    %274 = arith.truncf %273 : vector<192x8xf32> to vector<192x8xbf16>
    %c11_205 = arith.constant 11 : index
    %c0_206 = arith.constant 0 : index
    %c0_207 = arith.constant 0 : index
    %275 = vector.load %arg2[%c11_205, %c0_206, %c0_207] : memref<25x8x128xbf16, #tpu.memory_space<vmem>>, vector<1x8x128xbf16>
    %276 = vector.shape_cast %275 : vector<1x8x128xbf16> to vector<8x128xbf16>
    %cst_208 = arith.constant dense<0.000000e+00> : vector<192x128xf32>
    %277 = tpu.matmul %274, %276, %cst_208 {dimension_numbers = #tpu.dot_dimension_numbers<[1], [0], [0], [1], [0, 0, 1, 1], [], []>} : vector<192x8xbf16>, vector<8x128xbf16>, vector<192x128xf32> -> vector<192x128xf32>
    %278 = arith.addf %271, %277 : vector<192x128xf32>
    %c0_209 = arith.constant 0 : index
    %c270 = arith.constant 270 : index
    %c0_210 = arith.constant 0 : index
    %279 = vector.load %arg1[%c0_209, %c270, %c0_210] : memref<1x544x8xf32, #tpu.memory_space<vmem>>, vector<1x192x8xf32>
    %280 = vector.shape_cast %279 : vector<1x192x8xf32> to vector<192x8xf32>
    %281 = arith.truncf %280 : vector<192x8xf32> to vector<192x8xbf16>
    %c12_211 = arith.constant 12 : index
    %c0_212 = arith.constant 0 : index
    %c0_213 = arith.constant 0 : index
    %282 = vector.load %arg2[%c12_211, %c0_212, %c0_213] : memref<25x8x128xbf16, #tpu.memory_space<vmem>>, vector<1x8x128xbf16>
    %283 = vector.shape_cast %282 : vector<1x8x128xbf16> to vector<8x128xbf16>
    %cst_214 = arith.constant dense<0.000000e+00> : vector<192x128xf32>
    %284 = tpu.matmul %281, %283, %cst_214 {dimension_numbers = #tpu.dot_dimension_numbers<[1], [0], [0], [1], [0, 0, 1, 1], [], []>} : vector<192x8xbf16>, vector<8x128xbf16>, vector<192x128xf32> -> vector<192x128xf32>
    %285 = arith.addf %278, %284 : vector<192x128xf32>
    %c0_215 = arith.constant 0 : index
    %c274 = arith.constant 274 : index
    %c0_216 = arith.constant 0 : index
    %286 = vector.load %arg1[%c0_215, %c274, %c0_216] : memref<1x544x8xf32, #tpu.memory_space<vmem>>, vector<1x192x8xf32>
    %287 = vector.shape_cast %286 : vector<1x192x8xf32> to vector<192x8xf32>
    %288 = arith.truncf %287 : vector<192x8xf32> to vector<192x8xbf16>
    %c13_217 = arith.constant 13 : index
    %c0_218 = arith.constant 0 : index
    %c0_219 = arith.constant 0 : index
    %289 = vector.load %arg2[%c13_217, %c0_218, %c0_219] : memref<25x8x128xbf16, #tpu.memory_space<vmem>>, vector<1x8x128xbf16>
    %290 = vector.shape_cast %289 : vector<1x8x128xbf16> to vector<8x128xbf16>
    %cst_220 = arith.constant dense<0.000000e+00> : vector<192x128xf32>
    %291 = tpu.matmul %288, %290, %cst_220 {dimension_numbers = #tpu.dot_dimension_numbers<[1], [0], [0], [1], [0, 0, 1, 1], [], []>} : vector<192x8xbf16>, vector<8x128xbf16>, vector<192x128xf32> -> vector<192x128xf32>
    %292 = arith.addf %285, %291 : vector<192x128xf32>
    %c0_221 = arith.constant 0 : index
    %c318 = arith.constant 318 : index
    %c0_222 = arith.constant 0 : index
    %293 = vector.load %arg1[%c0_221, %c318, %c0_222] : memref<1x544x8xf32, #tpu.memory_space<vmem>>, vector<1x192x8xf32>
    %294 = vector.shape_cast %293 : vector<1x192x8xf32> to vector<192x8xf32>
    %295 = arith.truncf %294 : vector<192x8xf32> to vector<192x8xbf16>
    %c14_223 = arith.constant 14 : index
    %c0_224 = arith.constant 0 : index
    %c0_225 = arith.constant 0 : index
    %296 = vector.load %arg2[%c14_223, %c0_224, %c0_225] : memref<25x8x128xbf16, #tpu.memory_space<vmem>>, vector<1x8x128xbf16>
    %297 = vector.shape_cast %296 : vector<1x8x128xbf16> to vector<8x128xbf16>
    %cst_226 = arith.constant dense<0.000000e+00> : vector<192x128xf32>
    %298 = tpu.matmul %295, %297, %cst_226 {dimension_numbers = #tpu.dot_dimension_numbers<[1], [0], [0], [1], [0, 0, 1, 1], [], []>} : vector<192x8xbf16>, vector<8x128xbf16>, vector<192x128xf32> -> vector<192x128xf32>
    %299 = arith.addf %292, %298 : vector<192x128xf32>
    %c0_227 = arith.constant 0 : index
    %c320 = arith.constant 320 : index
    %c0_228 = arith.constant 0 : index
    %300 = vector.load %arg1[%c0_227, %c320, %c0_228] : memref<1x544x8xf32, #tpu.memory_space<vmem>>, vector<1x192x8xf32>
    %301 = vector.shape_cast %300 : vector<1x192x8xf32> to vector<192x8xf32>
    %302 = arith.truncf %301 : vector<192x8xf32> to vector<192x8xbf16>
    %c15_229 = arith.constant 15 : index
    %c0_230 = arith.constant 0 : index
    %c0_231 = arith.constant 0 : index
    %303 = vector.load %arg2[%c15_229, %c0_230, %c0_231] : memref<25x8x128xbf16, #tpu.memory_space<vmem>>, vector<1x8x128xbf16>
    %304 = vector.shape_cast %303 : vector<1x8x128xbf16> to vector<8x128xbf16>
    %cst_232 = arith.constant dense<0.000000e+00> : vector<192x128xf32>
    %305 = tpu.matmul %302, %304, %cst_232 {dimension_numbers = #tpu.dot_dimension_numbers<[1], [0], [0], [1], [0, 0, 1, 1], [], []>} : vector<192x8xbf16>, vector<8x128xbf16>, vector<192x128xf32> -> vector<192x128xf32>
    %306 = arith.addf %299, %305 : vector<192x128xf32>
    %c0_233 = arith.constant 0 : index
    %c322 = arith.constant 322 : index
    %c0_234 = arith.constant 0 : index
    %307 = vector.load %arg1[%c0_233, %c322, %c0_234] : memref<1x544x8xf32, #tpu.memory_space<vmem>>, vector<1x192x8xf32>
    %308 = vector.shape_cast %307 : vector<1x192x8xf32> to vector<192x8xf32>
    %309 = arith.truncf %308 : vector<192x8xf32> to vector<192x8xbf16>
    %c16_235 = arith.constant 16 : index
    %c0_236 = arith.constant 0 : index
    %c0_237 = arith.constant 0 : index
    %310 = vector.load %arg2[%c16_235, %c0_236, %c0_237] : memref<25x8x128xbf16, #tpu.memory_space<vmem>>, vector<1x8x128xbf16>
    %311 = vector.shape_cast %310 : vector<1x8x128xbf16> to vector<8x128xbf16>
    %cst_238 = arith.constant dense<0.000000e+00> : vector<192x128xf32>
    %312 = tpu.matmul %309, %311, %cst_238 {dimension_numbers = #tpu.dot_dimension_numbers<[1], [0], [0], [1], [0, 0, 1, 1], [], []>} : vector<192x8xbf16>, vector<8x128xbf16>, vector<192x128xf32> -> vector<192x128xf32>
    %313 = arith.addf %306, %312 : vector<192x128xf32>
    %c0_239 = arith.constant 0 : index
    %c197 = arith.constant 197 : index
    %c0_240 = arith.constant 0 : index
    %314 = vector.load %arg1[%c0_239, %c197, %c0_240] : memref<1x544x8xf32, #tpu.memory_space<vmem>>, vector<1x192x8xf32>
    %315 = vector.shape_cast %314 : vector<1x192x8xf32> to vector<192x8xf32>
    %316 = arith.truncf %315 : vector<192x8xf32> to vector<192x8xbf16>
    %c17_241 = arith.constant 17 : index
    %c0_242 = arith.constant 0 : index
    %c0_243 = arith.constant 0 : index
    %317 = vector.load %arg2[%c17_241, %c0_242, %c0_243] : memref<25x8x128xbf16, #tpu.memory_space<vmem>>, vector<1x8x128xbf16>
    %318 = vector.shape_cast %317 : vector<1x8x128xbf16> to vector<8x128xbf16>
    %cst_244 = arith.constant dense<0.000000e+00> : vector<192x128xf32>
    %319 = tpu.matmul %316, %318, %cst_244 {dimension_numbers = #tpu.dot_dimension_numbers<[1], [0], [0], [1], [0, 0, 1, 1], [], []>} : vector<192x8xbf16>, vector<8x128xbf16>, vector<192x128xf32> -> vector<192x128xf32>
    %320 = arith.addf %313, %319 : vector<192x128xf32>
    %c0_245 = arith.constant 0 : index
    %c200 = arith.constant 200 : index
    %c0_246 = arith.constant 0 : index
    %321 = vector.load %arg1[%c0_245, %c200, %c0_246] : memref<1x544x8xf32, #tpu.memory_space<vmem>>, vector<1x192x8xf32>
    %322 = vector.shape_cast %321 : vector<1x192x8xf32> to vector<192x8xf32>
    %323 = arith.truncf %322 : vector<192x8xf32> to vector<192x8xbf16>
    %c18_247 = arith.constant 18 : index
    %c0_248 = arith.constant 0 : index
    %c0_249 = arith.constant 0 : index
    %324 = vector.load %arg2[%c18_247, %c0_248, %c0_249] : memref<25x8x128xbf16, #tpu.memory_space<vmem>>, vector<1x8x128xbf16>
    %325 = vector.shape_cast %324 : vector<1x8x128xbf16> to vector<8x128xbf16>
    %cst_250 = arith.constant dense<0.000000e+00> : vector<192x128xf32>
    %326 = tpu.matmul %323, %325, %cst_250 {dimension_numbers = #tpu.dot_dimension_numbers<[1], [0], [0], [1], [0, 0, 1, 1], [], []>} : vector<192x8xbf16>, vector<8x128xbf16>, vector<192x128xf32> -> vector<192x128xf32>
    %327 = arith.addf %320, %326 : vector<192x128xf32>
    %c0_251 = arith.constant 0 : index
    %c203 = arith.constant 203 : index
    %c0_252 = arith.constant 0 : index
    %328 = vector.load %arg1[%c0_251, %c203, %c0_252] : memref<1x544x8xf32, #tpu.memory_space<vmem>>, vector<1x192x8xf32>
    %329 = vector.shape_cast %328 : vector<1x192x8xf32> to vector<192x8xf32>
    %330 = arith.truncf %329 : vector<192x8xf32> to vector<192x8xbf16>
    %c19_253 = arith.constant 19 : index
    %c0_254 = arith.constant 0 : index
    %c0_255 = arith.constant 0 : index
    %331 = vector.load %arg2[%c19_253, %c0_254, %c0_255] : memref<25x8x128xbf16, #tpu.memory_space<vmem>>, vector<1x8x128xbf16>
    %332 = vector.shape_cast %331 : vector<1x8x128xbf16> to vector<8x128xbf16>
    %cst_256 = arith.constant dense<0.000000e+00> : vector<192x128xf32>
    %333 = tpu.matmul %330, %332, %cst_256 {dimension_numbers = #tpu.dot_dimension_numbers<[1], [0], [0], [1], [0, 0, 1, 1], [], []>} : vector<192x8xbf16>, vector<8x128xbf16>, vector<192x128xf32> -> vector<192x128xf32>
    %334 = arith.addf %327, %333 : vector<192x128xf32>
    %c0_257 = arith.constant 0 : index
    %c269 = arith.constant 269 : index
    %c0_258 = arith.constant 0 : index
    %335 = vector.load %arg1[%c0_257, %c269, %c0_258] : memref<1x544x8xf32, #tpu.memory_space<vmem>>, vector<1x192x8xf32>
    %336 = vector.shape_cast %335 : vector<1x192x8xf32> to vector<192x8xf32>
    %337 = arith.truncf %336 : vector<192x8xf32> to vector<192x8xbf16>
    %c20_259 = arith.constant 20 : index
    %c0_260 = arith.constant 0 : index
    %c0_261 = arith.constant 0 : index
    %338 = vector.load %arg2[%c20_259, %c0_260, %c0_261] : memref<25x8x128xbf16, #tpu.memory_space<vmem>>, vector<1x8x128xbf16>
    %339 = vector.shape_cast %338 : vector<1x8x128xbf16> to vector<8x128xbf16>
    %cst_262 = arith.constant dense<0.000000e+00> : vector<192x128xf32>
    %340 = tpu.matmul %337, %339, %cst_262 {dimension_numbers = #tpu.dot_dimension_numbers<[1], [0], [0], [1], [0, 0, 1, 1], [], []>} : vector<192x8xbf16>, vector<8x128xbf16>, vector<192x128xf32> -> vector<192x128xf32>
    %341 = arith.addf %334, %340 : vector<192x128xf32>
    %c0_263 = arith.constant 0 : index
    %c275 = arith.constant 275 : index
    %c0_264 = arith.constant 0 : index
    %342 = vector.load %arg1[%c0_263, %c275, %c0_264] : memref<1x544x8xf32, #tpu.memory_space<vmem>>, vector<1x192x8xf32>
    %343 = vector.shape_cast %342 : vector<1x192x8xf32> to vector<192x8xf32>
    %344 = arith.truncf %343 : vector<192x8xf32> to vector<192x8xbf16>
    %c21_265 = arith.constant 21 : index
    %c0_266 = arith.constant 0 : index
    %c0_267 = arith.constant 0 : index
    %345 = vector.load %arg2[%c21_265, %c0_266, %c0_267] : memref<25x8x128xbf16, #tpu.memory_space<vmem>>, vector<1x8x128xbf16>
    %346 = vector.shape_cast %345 : vector<1x8x128xbf16> to vector<8x128xbf16>
    %cst_268 = arith.constant dense<0.000000e+00> : vector<192x128xf32>
    %347 = tpu.matmul %344, %346, %cst_268 {dimension_numbers = #tpu.dot_dimension_numbers<[1], [0], [0], [1], [0, 0, 1, 1], [], []>} : vector<192x8xbf16>, vector<8x128xbf16>, vector<192x128xf32> -> vector<192x128xf32>
    %348 = arith.addf %341, %347 : vector<192x128xf32>
    %c0_269 = arith.constant 0 : index
    %c341 = arith.constant 341 : index
    %c0_270 = arith.constant 0 : index
    %349 = vector.load %arg1[%c0_269, %c341, %c0_270] : memref<1x544x8xf32, #tpu.memory_space<vmem>>, vector<1x192x8xf32>
    %350 = vector.shape_cast %349 : vector<1x192x8xf32> to vector<192x8xf32>
    %351 = arith.truncf %350 : vector<192x8xf32> to vector<192x8xbf16>
    %c22_271 = arith.constant 22 : index
    %c0_272 = arith.constant 0 : index
    %c0_273 = arith.constant 0 : index
    %352 = vector.load %arg2[%c22_271, %c0_272, %c0_273] : memref<25x8x128xbf16, #tpu.memory_space<vmem>>, vector<1x8x128xbf16>
    %353 = vector.shape_cast %352 : vector<1x8x128xbf16> to vector<8x128xbf16>
    %cst_274 = arith.constant dense<0.000000e+00> : vector<192x128xf32>
    %354 = tpu.matmul %351, %353, %cst_274 {dimension_numbers = #tpu.dot_dimension_numbers<[1], [0], [0], [1], [0, 0, 1, 1], [], []>} : vector<192x8xbf16>, vector<8x128xbf16>, vector<192x128xf32> -> vector<192x128xf32>
    %355 = arith.addf %348, %354 : vector<192x128xf32>
    %c0_275 = arith.constant 0 : index
    %c344 = arith.constant 344 : index
    %c0_276 = arith.constant 0 : index
    %356 = vector.load %arg1[%c0_275, %c344, %c0_276] : memref<1x544x8xf32, #tpu.memory_space<vmem>>, vector<1x192x8xf32>
    %357 = vector.shape_cast %356 : vector<1x192x8xf32> to vector<192x8xf32>
    %358 = arith.truncf %357 : vector<192x8xf32> to vector<192x8xbf16>
    %c23_277 = arith.constant 23 : index
    %c0_278 = arith.constant 0 : index
    %c0_279 = arith.constant 0 : index
    %359 = vector.load %arg2[%c23_277, %c0_278, %c0_279] : memref<25x8x128xbf16, #tpu.memory_space<vmem>>, vector<1x8x128xbf16>
    %360 = vector.shape_cast %359 : vector<1x8x128xbf16> to vector<8x128xbf16>
    %cst_280 = arith.constant dense<0.000000e+00> : vector<192x128xf32>
    %361 = tpu.matmul %358, %360, %cst_280 {dimension_numbers = #tpu.dot_dimension_numbers<[1], [0], [0], [1], [0, 0, 1, 1], [], []>} : vector<192x8xbf16>, vector<8x128xbf16>, vector<192x128xf32> -> vector<192x128xf32>
    %362 = arith.addf %355, %361 : vector<192x128xf32>
    %c0_281 = arith.constant 0 : index
    %c347 = arith.constant 347 : index
    %c0_282 = arith.constant 0 : index
    %363 = vector.load %arg1[%c0_281, %c347, %c0_282] : memref<1x544x8xf32, #tpu.memory_space<vmem>>, vector<1x192x8xf32>
    %364 = vector.shape_cast %363 : vector<1x192x8xf32> to vector<192x8xf32>
    %365 = arith.truncf %364 : vector<192x8xf32> to vector<192x8xbf16>
    %c24_283 = arith.constant 24 : index
    %c0_284 = arith.constant 0 : index
    %c0_285 = arith.constant 0 : index
    %366 = vector.load %arg2[%c24_283, %c0_284, %c0_285] : memref<25x8x128xbf16, #tpu.memory_space<vmem>>, vector<1x8x128xbf16>
    %367 = vector.shape_cast %366 : vector<1x8x128xbf16> to vector<8x128xbf16>
    %cst_286 = arith.constant dense<0.000000e+00> : vector<192x128xf32>
    %368 = tpu.matmul %365, %367, %cst_286 {dimension_numbers = #tpu.dot_dimension_numbers<[1], [0], [0], [1], [0, 0, 1, 1], [], []>} : vector<192x8xbf16>, vector<8x128xbf16>, vector<192x128xf32> -> vector<192x128xf32>
    %369 = arith.addf %362, %368 : vector<192x128xf32>
    %cst_287 = arith.constant 0.000000e+00 : f32
    %370 = vector.broadcast %cst_287 : f32 to vector<192x128xf32>
    %371 = arith.maximumf %369, %370 : vector<192x128xf32>
    %372 = vector.shape_cast %371 : vector<192x128xf32> to vector<8x24x128xf32>
    %373 = vector.extract_strided_slice %372 {offsets = [0, 3, 0], sizes = [8, 16, 128], strides = [1, 1, 1]} : vector<8x24x128xf32> to vector<8x16x128xf32>
    %374 = arith.truncf %373 : vector<8x16x128xf32> to vector<8x16x128xbf16>
    %c0_288 = arith.constant 0 : index
    %c8_289 = arith.constant 8 : index
    %c0_290 = arith.constant 0 : index
    %c0_291 = arith.constant 0 : index
    %375 = vector.load %arg6[%c0_288, %c8_289, %c0_290, %c0_291] : memref<1x16x16x160xbf16, #tpu.memory_space<vmem>>, vector<1x8x16x128xbf16>
    %376 = vector.shape_cast %375 : vector<1x8x16x128xbf16> to vector<8x16x128xbf16>
    %377 = vector.shape_cast %374 : vector<8x16x128xbf16> to vector<1x8x16x128xbf16>
    tpu.vector_store %arg6[%c0_288, %c8_289, %c0_290, %c0_291], %377 {strides = array<i32>} : memref<1x16x16x160xbf16, #tpu.memory_space<vmem>>, vector<1x8x16x128xbf16>,
    %cst_292 = arith.constant 3.906250e-03 : f32
    %378 = vector.broadcast %cst_292 : f32 to vector<1x8xf32>
    %379 = arith.mulf %194, %378 : vector<1x8xf32>
    %380 = arith.truncf %379 : vector<1x8xf32> to vector<1x8xbf16>
    %c0_293 = arith.constant 0 : index
    %c0_294 = arith.constant 0 : index
    %381 = vector.load %arg4[%c0_293, %c0_294] : memref<8x32xbf16, #tpu.memory_space<vmem>>, vector<8x32xbf16>
    %cst_295 = arith.constant dense<0.000000e+00> : vector<1x32xf32>
    %382 = tpu.matmul %380, %381, %cst_295 {dimension_numbers = #tpu.dot_dimension_numbers<[1], [0], [0], [1], [0, 0, 1, 1], [], []>} : vector<1x8xbf16>, vector<8x32xbf16>, vector<1x32xf32> -> vector<1x32xf32>
    %c0_296 = arith.constant 0 : index
    %c0_297 = arith.constant 0 : index
    %383 = vector.load %arg5[%c0_296, %c0_297] : memref<1x32xf32, #tpu.memory_space<vmem>>, vector<1x32xf32>
    %384 = arith.addf %382, %383 : vector<1x32xf32>
    %cst_298 = arith.constant 0.000000e+00 : f32
    %385 = vector.broadcast %cst_298 : f32 to vector<1x32xf32>
    %386 = arith.maximumf %384, %385 : vector<1x32xf32>
    %387 = vector.shape_cast %386 : vector<1x32xf32> to vector<1x1x32xf32>
    %388 = vector.shape_cast %387 : vector<1x1x32xf32> to vector<1x1x32xf32>
    %389 = vector.broadcast %388 : vector<1x1x32xf32> to vector<16x16x32xf32>
    %390 = arith.truncf %389 : vector<16x16x32xf32> to vector<16x16x32xbf16>
    %c0_299 = arith.constant 0 : index
    %c0_300 = arith.constant 0 : index
    %c0_301 = arith.constant 0 : index
    %c128_302 = arith.constant 128 : index
    %391 = vector.load %arg6[%c0_299, %c0_300, %c0_301, %c128_302] : memref<1x16x16x160xbf16, #tpu.memory_space<vmem>>, vector<1x16x16x32xbf16>
    %392 = vector.shape_cast %391 : vector<1x16x16x32xbf16> to vector<16x16x32xbf16>
    %393 = vector.shape_cast %390 : vector<16x16x32xbf16> to vector<1x16x16x32xbf16>
    tpu.vector_store %arg6[%c0_299, %c0_300, %c0_301, %c128_302], %393 {strides = array<i32>} : memref<1x16x16x160xbf16, #tpu.memory_space<vmem>>, vector<1x16x16x32xbf16>,
    return
  }
  func.func @transform_0(%arg0: i32) -> (i32, i32, i32) {
    %c0_i32 = arith.constant 0 : i32
    %c0_i32_0 = arith.constant 0 : i32
    %c0_i32_1 = arith.constant 0 : i32
    return %arg0, %c0_i32, %c0_i32_0 : i32, i32, i32
  }
  func.func @transform_1(%arg0: i32) -> (i32, i32, i32) {
    %c0_i32 = arith.constant 0 : i32
    %c0_i32_0 = arith.constant 0 : i32
    %c0_i32_1 = arith.constant 0 : i32
    %c0_i32_2 = arith.constant 0 : i32
    return %c0_i32, %c0_i32_0, %c0_i32_1 : i32, i32, i32
  }
  func.func @transform_2(%arg0: i32) -> (i32, i32) {
    %c0_i32 = arith.constant 0 : i32
    %c0_i32_0 = arith.constant 0 : i32
    %c0_i32_1 = arith.constant 0 : i32
    return %c0_i32, %c0_i32_0 : i32, i32
  }
  func.func @transform_3(%arg0: i32) -> (i32, i32) {
    %c0_i32 = arith.constant 0 : i32
    %c0_i32_0 = arith.constant 0 : i32
    %c0_i32_1 = arith.constant 0 : i32
    return %c0_i32, %c0_i32_0 : i32, i32
  }
  func.func @transform_4(%arg0: i32) -> (i32, i32) {
    %c0_i32 = arith.constant 0 : i32
    %c0_i32_0 = arith.constant 0 : i32
    %c0_i32_1 = arith.constant 0 : i32
    return %c0_i32, %c0_i32_0 : i32, i32
  }
  func.func @transform_5(%arg0: i32) -> (i32, i32, i32, i32) {
    %c0_i32 = arith.constant 0 : i32
    %c0_i32_0 = arith.constant 0 : i32
    %c0_i32_1 = arith.constant 0 : i32
    %c0_i32_2 = arith.constant 0 : i32
    return %arg0, %c0_i32, %c0_i32_0, %c0_i32_1 : i32, i32, i32, i32
  }
}

</mosaic_0001>

<bundles_post_ra>
// kernel: tpu_custom_call.1
= control target key start
LH: loop header
LB: loop body
LE: loop exit
PB: predicated region body
PF: predicated region fallthrough
CT: control target
= control target key end

     0   :  { %10 = vsyncpa [#allocation3], 0  ;;  %s14538_s0 = inlined_call_operand.vmem [shape: f32[2,544,8], index: 0, kind: input, shape index: {}]   ;;  %s14539_s1 = inlined_call_operand.vmem [shape: bf16[25,8,128], index: 1, kind: input, shape index: {}]   ;;  %s14540_s2 = inlined_call_operand.vmem [shape: f32[1,128], index: 2, kind: input, shape index: {}]   ;;  %s14541_s3 = inlined_call_operand.vmem [shape: bf16[8,32], index: 3, kind: input, shape index: {}]   ;;  %s14542_s4 = inlined_call_operand.vmem [shape: f32[1,32], index: 4, kind: input, shape index: {}]   ;;  %s14543_s5 = inlined_call_operand.hbm [shape: bf16[2,16,16,160], index: 5, kind: output, shape index: {}]  }
   0x1   :  { %12 = vsyncpa [#allocation3 + $0x1], 0  ;;  %s10381_s18 = smov 0   ;;  %s10383_s19 = smov 0  }
   0x2   :  { %s10385_s20 = smov 0   ;;  %s10387_s21 = smov 0  }
   0x3 LB: > { %s10402_s22 = sadd.s32 4294967295, %s10347_s21   ;;  %s9561_s23 = sadd.s32 4294967294, %s10347_s21   ;;  %s10347_s21 = sphi %s10387_s21, %s14630_s21   ;;  %s10343_s20 = sphi %s10385_s20, %s14629_s20   ;;  %s10339_s19 = sphi %s10383_s19, %s14628_s19   ;;  %s10335_s18 = sphi %s10381_s18, %s14627_s18  }
   0x4   : > { %s10406_s24 = sadd.s32 1, %s10347_s21   ;;  %s135_s25 = sadd.s32 1, %s10343_s20 }
   0x5   : > { %s132_s26 = ssub.s32 %s10347_s21, %s10406_s24  ;;  %p145_p0 = scmp.ne.s32.totalorder %s10343_s20, %s10339_s19 }
   0x6   : > { %p133_p1 = scmp.eq.s32.totalorder %s132_s26, 0  ;;  %p146_p2 = scmp.eq.s32.totalorder %s10402_s22, 1 }
   0x7   : > { %p151_p3 = scmp.ne.s32.totalorder %s10339_s19, %s10335_s18  ;;  %p152_p4 = scmp.eq.s32.totalorder %s9561_s23, 1 }
   0x8   : > { %s10417_s27 = scalar_select %p133_p1, %s10343_s20, %s135_s25  }
   0x9   : > { %p10419_p5 = por %p146_p2, %p145_p0  ;;  %p10423_p6 = por %p152_p4, %p151_p3 }
   0xa   : > { %p9564_p7 = scmp.ge.s32.totalorder %s10347_s21, 1  ;;  %p190_p8 = scmp.lt.s32.totalorder %s10347_s21, 3 }
   0xc   : > { %p191_p9 = pnand %p9564_p7, %p190_p8 }
   0xe   : > { %194 = sbr.rel (%p191_p9) target bundleno = 2592 (0xa20), region = 40 }
  0x13   : > { %v319_v0 = vld [vmem:[%s14539_s1] sm:$0xf]  ;;  %vm356_vm0 = vcmask 1043456   ;;  %v9579_v1 = vld [vmem:[%s14539_s1 + $0x4] sm:$0xf]  ;;  %p218_p10 = scmp.lt.s32.totalorder %s10402_s22, 1 }
  0x14   : > { %v358_v2 = vsel %vm356_vm0, %v319_v0, 0  ;;  %v528_v3 = vsel %vm356_vm0, %v9579_v1, 0  ;;  %v9618_v4 = vld [vmem:[%s14539_s1 + $0x10] sm:$0xf]  ;;  %v9631_v6 = vld [vmem:[%s14539_s1 + $0x14] sm:$0xf] }
  0x15   : > { %367 = vmatpush.bf16.msra.mxu0 %v358_v2  ;;  %537 = vmatpush.bf16.msra.mxu1 %v528_v3  ;;  %s219_s11 = scalar_select %p218_p10, %s10402_s22, 1  ;;  %v1038_v5 = vsel %vm356_vm0, %v9618_v4, 0  ;;  %v9592_v7 = vld [vmem:[%s14539_s1 + $0x8] sm:$0xf]  ;;  %v1208_v8 = vsel %vm356_vm0, %v9631_v6, 0  ;;  %vm249_vm1 = vcmask 64512  }
  0x16   : > { %10239 = vmatpush.bf16.msra.mxu2 %v528_v3  ;;  %10238 = vmatpush.bf16.msra.mxu3 %v358_v2  ;;  %v698_v9 = vsel %vm356_vm0, %v9592_v7, 0  ;;  %v9605_v10 = vld [vmem:[%s14539_s1 + $0xc] sm:$0xf]  ;;  %vm4581_vm2 = vsmask.f32 2304  ;;  %vm9450_vm5 = vcmask 257024  }
  0x17   : > { %s10240_s23 = smul.u32 544, %s219_s11  ;;  %v868_v11 = vsel %vm356_vm0, %v9605_v10, 0  ;;  %s215_s11 = sand.u32 1, %s10339_s19   ;;  %vm4582_vm3 = vsmask.f32 6416 }
  0x18   : > { %s9565_s12 = sshll.u32 %s215_s11, 8  ;;  %vm12442_vm4 = vmor %vm4581_vm2, %vm4582_vm3  ;;  %s10237_s26 = sshll.u32 %s10402_s22, 8 }
  0x19   : > { %1047 = vmatpush.bf16.msrb.mxu0 %v1038_v5  ;;  %1217 = vmatpush.bf16.msrb.mxu1 %v1208_v8  ;;  %s10458_s30 = scalar_lea.vmem %s14538_s0, %s10240_s23  ;;  %s12453_s13 = scalar_lea.vmem [#allocation2], %s9565_s12 }
  0x1a   : > { %707 = vmatpush.bf16.msrb.mxu2 %v698_v9  ;;  %877 = vmatpush.bf16.msrb.mxu3 %v868_v11  ;;  %v10461_v12 = vld [vmem:[%s10458_s30 + $0x50] sm:$0xff]  ;;  %v10464_v13 = vld [vmem:[%s10458_s30 + $0x58] sm:$0xff]  ;;  %v10471_v17 = vld [vmem:[%s10458_s30 + $0xa7] sm:$0xff]  ;;  %s9495_s8 = scalar_lea.hbm %s14543_s5, %s10237_s26  ;;  %s9496_s22 = sshll.u32 %s12453_s13, 4  ;;  %s9497_s22 = int_to_ptr.vmem [resolvable:$true] %s9496_s22 }
  0x1b   : > { %v453_v14 = vld [vmem:[%s10458_s30 + $0x37] sm:$0xff]  ;;  %v307_v15 = vpack.c.bf16 %v10464_v13, %v10461_v12  ;;  %v454_v16 = vld [vmem:[%s10458_s30 + $0x3f] sm:$0xff]  ;;  %v10474_v18 = vld [vmem:[%s10458_s30 + $0xaf] sm:$0xff]  ;;  %v250_v24 = vsel %vm249_vm1, %v10461_v12, 0.0  ;;  %v251_v25 = vsel %vm249_vm1, %v10464_v13, 0.0  ;;  %s9498_s9 = sshll.u32 %s9495_s8, 4  ;;  %s9499_s9 = int_to_ptr.hbm [resolvable:$true] %s9498_s9 }
  0x1c   : > { %v477_v19 = vpack.c.bf16 %v454_v16, %v453_v14  ;;  %v484_v20 = vpack.c.bf16 %v10474_v18, %v10471_v17  ;;  %v10479_v21 = vld [vmem:[%s10458_s30 + $0xc0] sm:$0xff]  ;;  %v10482_v22 = vld [vmem:[%s10458_s30 + $0xc8] sm:$0xff]  ;;  %v252_v26 = vadd.f32 %v251_v25, %v250_v24  ;;  %v10507_v32 = vld [vmem:[%s10458_s30 + $0xb7] sm:$0xff]  ;;  %s9484_s10 = scalar_lea.sflag [#allocation3], %s215_s11  ;;  %s10299_s12 = sshra.s32 %s9499_s9, 4  ;;  %s10300_s12 = int_to_ptr.hbm [resolvable:$true] %s10299_s12 }
  0x1d   : > { %9567 = vmatmul.msk.bf16.vlgmr.msra.gmra.mxu0 %vm249_vm1, %v307_v15  ;;  %v314_v23 = vpack.c.bf16 %v10482_v22, %v10479_v21  ;;  %v10495_v27 = vld [vmem:[%s10458_s30 + $0x60] sm:$0xff]  ;;  %v10498_v28 = vld [vmem:[%s10458_s30 + $0x68] sm:$0xff]  ;;  %v10513_v34 = vld [vmem:[%s10458_s30 + $0xd0] sm:$0xff]  ;;  %s10301_s14 = scalar_lea.hbm %s10300_s12, 256  ;;  %s10305_s17 = scalar_lea.hbm %s14543_s5, 512 }
  0x1e   : > { %9580 = vmatmul.msk.bf16.vlgmr.msra.gmra.mxu1 %vm249_vm1, %v477_v19  ;;  %9587 = vmatmul.msk.bf16.vlgmr.msra.gmra.mxu2 %vm249_vm1, %v484_v20  ;;  %v253_v29 = vsel %vm249_vm1, %v10495_v27, 0.0  ;;  %v455_v30 = vld [vmem:[%s10458_s30 + $0x47] sm:$0xff]  ;;  %v10504_v31 = vld [vmem:[%s10458_s30 + $0x4f] sm:$0xff]  ;;  %v10510_v33 = vld [vmem:[%s10458_s30 + $0xbf] sm:$0xff]  ;;  %v308_v37 = vpack.c.bf16 %v10498_v28, %v10495_v27  ;;  %v255_v38 = vsel %vm249_vm1, %v10498_v28, 0.0  ;;  %p10302_p11 = scmp.ne.s32.totalorder %s10300_s12, %s10301_s14  ;;  %p10306_p0 = scmp.lt.s32.totalorder %s10300_s12, %s14543_s5 }
  0x1f   : > { %9574 = vmatmul.msk.bf16.vlgmr.msra.gmra.mxu3 %vm249_vm1, %v314_v23  ;;  %v10516_v35 = vld [vmem:[%s10458_s30 + $0xd8] sm:$0xff]  ;;  %v254_v36 = vadd.f32 %v253_v29, %v252_v26  ;;  %v478_v39 = vpack.c.bf16 %v10504_v31, %v455_v30  ;;  %v485_v40 = vpack.c.bf16 %v10510_v33, %v10507_v32  ;;  %v10529_v43 = vld [vmem:[%s10458_s30 + $0x70] sm:$0xff]  ;;  %v10542_v49 = vld [vmem:[%s10458_s30 + $0x80] sm:$0xff]  ;;  %p10307_p1 = scmp.lt.s32.totalorder %s10305_s17, %s10301_s14 }
  0x20   : > { %v315_v41 = vpack.c.bf16 %v10516_v35, %v10513_v34  ;;  %v257_v44 = vsel %vm249_vm1, %v10529_v43, 0.0  ;;  %v10537_v45 = vld [vmem:[%s10458_s30 + $0x78] sm:$0xff]  ;;  %v261_v51 = vsel %vm249_vm1, %v10542_v49, 0.0  ;;  %v10553_v53 = vld [vmem:[%s10458_s30 + $0xc7] sm:$0xff]  ;;  %v10556_v54 = vld [vmem:[%s10458_s30 + $0xcf] sm:$0xff]  ;;  %p10303_p12 = pnand %p10302_p11, %p10419_p5 }
  0x21   : > { %v256_v42 = vadd.f32 %v255_v38, %v254_v36  ;;  %v259_v47 = vsel %vm249_vm1, %v10537_v45, 0.0  ;;  %v10545_v50 = vld [vmem:[%s10458_s30 + $0x57] sm:$0xff]  ;;  %v10550_v52 = vld [vmem:[%s10458_s30 + $0x5f] sm:$0xff]  ;;  %v10562_v56 = vld [vmem:[%s10458_s30 + $0xe8] sm:$0xff]  ;;  %v309_v57 = vpack.c.bf16 %v10537_v45, %v10529_v43  ;;  %v486_v61 = vpack.c.bf16 %v10556_v54, %v10553_v53  ;;  %p10308_p2 = por %p10307_p1, %p10306_p0 }
  0x22   : > { %v10559_v55 = vld [vmem:[%s10458_s30 + $0xe0] sm:$0xff]  ;;  %v10567_v58 = vld [vmem:[%s10458_s30 + $0x88] sm:$0xff]  ;;  %v479_v60 = vpack.c.bf16 %v10550_v52, %v10545_v50  ;;  %v10579_v1 = vld [vmem:[%s10458_s30 + $0x90] sm:$0xff]  ;;  %p10304_p13 = pneg %p10303_p12 }
  0x23   : > { %v258_v46 = vadd.f32 %v257_v44, %v256_v42  ;;  %v263_v62 = vsel %vm249_vm1, %v10567_v58, 0.0  ;;  %v316_v63 = vpack.c.bf16 %v10562_v56, %v10559_v55  ;;  %v265_v2 = vsel %vm249_vm1, %v10579_v1, 0.0  ;;  %v10587_v3 = vld [vmem:[%s10458_s30 + $0x98] sm:$0xff]  ;;  %v10592_v7 = vld [vmem:[%s10458_s30 + $0xa0] sm:$0xff]  ;;  %v10600_v10 = vld [vmem:[%s10458_s30 + $0x6f] sm:$0xff] }
  0x24   : > { %v267_v5 = vsel %vm249_vm1, %v10587_v3, 0.0  ;;  %v10595_v8 = vld [vmem:[%s10458_s30 + $0x67] sm:$0xff]  ;;  %v269_v9 = vsel %vm249_vm1, %v10592_v7, 0.0  ;;  %v10603_v11 = vld [vmem:[%s10458_s30 + $0xd7] sm:$0xff]  ;;  %v10606_v14 = vld [vmem:[%s10458_s30 + $0xdf] sm:$0xff]  ;;  %v310_v19 = vpack.c.bf16 %v10567_v58, %v10542_v49  ;;  %v279_v44 = vsel %vm249_vm1, %v10482_v22, 0.0  ;;  %p10309_p3 = pnand %p10308_p2, %p10304_p13 }
  0x25   : > { %v260_v48 = vadd.f32 %v259_v47, %v258_v46  ;;  %v10609_v15 = vld [vmem:[%s10458_s30 + $0xf0] sm:$0xff]  ;;  %v246_v16 = vld [vmem:[%s10458_s30 + $0xf8] sm:$0xff]  ;;  %v10615_v20 = vld [vmem:[%s10458_s30 + $0xa8] sm:$0xff]  ;;  %v10619_v24 = vpack.c.bf16 %v10600_v10, %v10595_v8  ;;  %v487_v25 = vpack.c.bf16 %v10606_v14, %v10603_v11  ;;  %v281_v47 = vsel %vm249_vm1, %v10513_v34, 0.0 }
  0x26   : > { %v271_v26 = vsel %vm249_vm1, %v10615_v20, 0.0  ;;  %v317_v29 = vpack.c.bf16 %v246_v16, %v10609_v15  ;;  %v10632_v36 = vld [vmem:[%s10458_s30 + $0xb0] sm:$0xff] }
  0x27   : > { %v262_v59 = vadd.f32 %v261_v51, %v260_v48  ;;  %v273_v38 = vsel %vm249_vm1, %v10632_v36, 0.0  ;;  %v10648_v48 = vld [vmem:[%s10458_s30 + $0x77] sm:$0xff]  ;;  %v10651_v51 = vld [vmem:[%s10458_s30 + $0x7f] sm:$0xff] }
  0x29   : > { %v264_v0 = vadd.f32 %v263_v62, %v262_v59  ;;  %v10657_v59 = vld [vmem:[%s10458_s30 + $0xef] sm:$0xff]  ;;  %v247_v62 = vld [vmem:[%s10458_s30 + $0x100] sm:$0xff] }
  0x2b   : > { %v266_v4 = vadd.f32 %v265_v2, %v264_v0  ;;  %v311_v0 = vpack.c.bf16 %v10587_v3, %v10579_v1 }
  0x2d   : > { %9568 = vmatmul.msk.bf16.gmra.mxu0 %vm249_vm1, %v308_v37  ;;  %v268_v6 = vadd.f32 %v267_v5, %v266_v4  ;;  %v10635_v37 = vld [vmem:[%s10458_s30 + $0xb8] sm:$0xff]  ;;  %v285_v4 = vsel %vm249_vm1, %v10559_v55, 0.0  ;;  %v10669_v5 = vpack.c.bf16 %v10651_v51, %v10648_v48 }
  0x2e   : > { %9581 = vmatmul.msk.bf16.gmra.mxu1 %vm249_vm1, %v478_v39  ;;  %9588 = vmatmul.msk.bf16.gmra.mxu2 %vm249_vm1, %v485_v40  ;;  %v275_v39 = vsel %vm249_vm1, %v10635_v37, 0.0 }
  0x2f   : > { %9575 = vmatmul.msk.bf16.gmra.mxu3 %vm249_vm1, %v315_v41  ;;  %v270_v23 = vadd.f32 %v269_v9, %v268_v6  ;;  %v277_v41 = vsel %vm249_vm1, %v10479_v21, 0.0 }
  0x31   : > { %v272_v30 = vadd.f32 %v271_v26, %v270_v23  ;;  %v287_v23 = vsel %vm249_vm1, %v10562_v56, 0.0  ;;  %v289_v26 = vsel %vm249_vm1, %v10609_v15, 0.0 }
  0x33   : > { %v274_v40 = vadd.f32 %v273_v38, %v272_v30  ;;  %v9644_v30 = vld [vmem:[%s14539_s1 + $0x18] sm:$0xf]  ;;  %v9657_v38 = vld [vmem:[%s14539_s1 + $0x1c] sm:$0xf] }
  0x35   : > { %v276_v42 = vadd.f32 %v275_v39, %v274_v40  ;;  %v291_v39 = vsel %vm249_vm1, %v246_v16, 0.0  ;;  %v1378_v40 = vsel %vm356_vm0, %v9644_v30, 0  ;;  %v794_v16 = vld [vmem:[%s10458_s30 + $0x41] sm:$0xff] }
  0x36   : > { %1387 = vmatpush.bf16.msra.mxu2 %v1378_v40  ;;  %v10727_v30 = vld [vmem:[%s10458_s30 + $0x9f] sm:$0xff]  ;;  %v796_v40 = vld [vmem:[%s10458_s30 + $0x51] sm:$0xff] }
  0x37   : > { %v278_v46 = vadd.f32 %v277_v41, %v276_v42  ;;  %v1548_v41 = vsel %vm356_vm0, %v9657_v38, 0  ;;  %v625_v38 = vld [vmem:[%s10458_s30 + $0x48] sm:$0xff] }
  0x38   : > { %1557 = vmatpush.bf16.msra.mxu3 %v1548_v41  ;;  %v313_v41 = vpack.c.bf16 %v10635_v37, %v10632_v36 }
  0x3d   : > { %9569 = vmatmul.msk.bf16.gmra.mxu0 %vm249_vm1, %v309_v57  ;;  %v10654_v57 = vld [vmem:[%s10458_s30 + $0xe7] sm:$0xff] }
  0x3e   : > { %9582 = vmatmul.msk.bf16.gmra.mxu1 %vm249_vm1, %v479_v60  ;;  %9589 = vmatmul.msk.bf16.gmra.mxu2 %vm249_vm1, %v486_v61  ;;  %v280_v60 = vadd.f32 %v279_v44, %v278_v46  ;;  %v283_v61 = vsel %vm249_vm1, %v10516_v35, 0.0  ;;  %v488_v6 = vpack.c.bf16 %v10657_v59, %v10654_v57  ;;  %v293_v44 = vsel %vm249_vm1, %v247_v62, 0.0 }
  0x3f   : > { %9576 = vmatmul.msk.bf16.gmra.mxu3 %vm249_vm1, %v316_v63  ;;  %v248_v63 = vld [vmem:[%s10458_s30 + $0x108] sm:$0xff] }
  0x40   : > { %v282_v2 = vadd.f32 %v281_v47, %v280_v60  ;;  %v318_v9 = vpack.c.bf16 %v248_v63, %v247_v62  ;;  %v10695_v60 = vld [vmem:[%s10458_s30 + $0x87] sm:$0xff]  ;;  %v623_v63 = vld [vmem:[%s10458_s30 + $0x38] sm:$0xff] }
  0x4d   : > { %9570 = vmatmul.msk.bf16.gmra.mxu0 %vm249_vm1, %v310_v19  ;;  %v284_v19 = vadd.f32 %v283_v61, %v282_v2  ;;  %v10698_v61 = vld [vmem:[%s10458_s30 + $0x8f] sm:$0xff]  ;;  %v793_v2 = vld [vmem:[%s10458_s30 + $0x39] sm:$0xff] }
  0x4e   : > { %9583 = vmatmul.msk.bf16.gmra.mxu1 %vm249_vm1, %v10619_v24  ;;  %9590 = vmatmul.msk.bf16.gmra.mxu2 %vm249_vm1, %v487_v25  ;;  %v10708_v62 = vpack.c.bf16 %v10698_v61, %v10695_v60 }
  0x4f   : > { %9577 = vmatmul.msk.bf16.gmra.mxu3 %vm249_vm1, %v317_v29  ;;  %v286_v25 = vadd.f32 %v285_v4, %v284_v19  ;;  %v312_v4 = vpack.c.bf16 %v10615_v20, %v10592_v7  ;;  %v9670_v19 = vld [vmem:[%s14539_s1 + $0x20] sm:$0xf] }
  0x51   : > { %v288_v29 = vadd.f32 %v287_v23, %v286_v25  ;;  %v1718_v23 = vsel %vm356_vm0, %v9670_v19, 0  ;;  %v9683_v25 = vld [vmem:[%s14539_s1 + $0x24] sm:$0xf] }
  0x52   : > { %1727 = vmatpush.bf16.msra.mxu0 %v1718_v23 }
  0x53   : > { %v290_v42 = vadd.f32 %v289_v26, %v288_v29  ;;  %v1888_v26 = vsel %vm356_vm0, %v9683_v25, 0  ;;  %v10724_v29 = vld [vmem:[%s10458_s30 + $0x97] sm:$0xff] }
  0x54   : > { %1897 = vmatpush.bf16.msra.mxu1 %v1888_v26 }
  0x55   : > { %v292_v46 = vadd.f32 %v291_v39, %v290_v42  ;;  %v795_v39 = vld [vmem:[%s10458_s30 + $0x49] sm:$0xff]  ;;  %v10736_v42 = vpack.c.bf16 %v10727_v30, %v10724_v29 }
  0x57   : > { %v10692_v47 = vadd.f32 %v293_v44, %v292_v46  ;;  %v648_v44 = vpack.c.bf16 %v10461_v12, %v625_v38  ;;  %v818_v46 = vpack.c.bf16 %v796_v40, %v795_v39  ;;  %v649_v12 = vpack.c.bf16 %v10495_v27, %v10464_v13 }
  0x58   : > { %v988_v13 = vpack.c.bf16 %v10595_v8, %v10550_v52 }
  0x59   : > { %14559 = vst [vmem:[#allocation5_spill] sm:$0xff] %v10692_v47 }
  0x5d   : > { %9571 = vmatmul.msk.bf16.gmra.mxu0 %vm249_vm1, %v311_v0  ;;  %v624_v0 = vld [vmem:[%s10458_s30 + $0x40] sm:$0xff] }
  0x5e   : > { %9584 = vmatmul.msk.bf16.gmra.mxu1 %vm249_vm1, %v10669_v5  ;;  %9591 = vmatmul.msk.bf16.gmra.mxu2 %vm249_vm1, %v488_v6  ;;  %v647_v6 = vpack.c.bf16 %v624_v0, %v623_v63  ;;  %v1134_v63 = vld [vmem:[%s10458_s30 + $0x59] sm:$0xff]  ;;  %v798_v0 = vld [vmem:[%s10458_s30 + $0x61] sm:$0xff] }
  0x5f   : > { %9578 = vmatmul.msk.bf16.gmra.mxu3 %vm249_vm1, %v318_v9  ;;  %v817_v9 = vpack.c.bf16 %v794_v16, %v793_v2  ;;  %v987_v2 = vpack.c.bf16 %v10545_v50, %v10504_v31  ;;  %v1157_v16 = vpack.c.bf16 %v1134_v63, %v796_v40  ;;  %v800_v31 = vld [vmem:[%s10458_s30 + $0x71] sm:$0xff]  ;;  %v10765_v50 = vpack.c.bf16 %v10529_v43, %v10498_v28 }
  0x6d   : > { %9572 = vmatmul.msk.bf16.gmra.mxu0 %vm249_vm1, %v312_v4  ;;  %v819_v4 = vpack.c.bf16 %v798_v0, %v1134_v63  ;;  %v802_v63 = vld [vmem:[%s10458_s30 + $0x81] sm:$0xff] }
  0x6e   : > { %9585 = vmatmul.msk.bf16.gmra.mxu1 %vm249_vm1, %v10708_v62  ;;  %9593 = vmatmul.msk.bf16.vlgmr.msrb.gmra.mxu2 %vm249_vm1, %v647_v6  ;;  %v10757_v6 = vld [vmem:[%s14540_s2] ss:$0 sm:$0xff] }
  0x6f   : > { %9606 = vmatmul.msk.bf16.vlgmr.msrb.gmra.mxu3 %vm249_vm1, %v817_v9  ;;  %v1136_v9 = vld [vmem:[%s10458_s30 + $0x69] sm:$0xff] }
  0x70   : > { %v1158_v19 = vpack.c.bf16 %v1136_v9, %v798_v0  ;;  %v10768_v26 = vpack.c.bf16 %v800_v31, %v1136_v9 }
  0x7d   : > { %9573 = vmatmul.msk.bf16.gmra.mxu0 %vm249_vm1, %v313_v41 }
  0x7e   : > { %9586 = vmatmul.msk.bf16.gmra.mxu1 %vm249_vm1, %v10736_v42  ;;  %9594 = vmatmul.msk.bf16.gmra.mxu2 %vm249_vm1, %v648_v44 }
  0x7f   : > { %9607 = vmatmul.msk.bf16.gmra.mxu3 %vm249_vm1, %v818_v46  ;;  %v1138_v46 = vld [vmem:[%s10458_s30 + $0x79] sm:$0xff] }
  0x80   : > { %v1159_v9 = vpack.c.bf16 %v1138_v46, %v800_v31 }
  0x8d   : > { %9619 = vmatmul.msk.bf16.vlgmr.msrb.gmra.mxu0 %vm249_vm1, %v987_v2  ;;  %v989_v2 = vpack.c.bf16 %v10648_v48, %v10600_v10 }
  0x8e   : > { %9595 = vmatmul.msk.bf16.gmra.mxu2 %vm249_vm1, %v649_v12  ;;  %9632 = vmatmul.msk.bf16.vlgmr.msrb.gmra.mxu1 %vm249_vm1, %v1157_v16 }
  0x8f   : > { %9608 = vmatmul.msk.bf16.gmra.mxu3 %vm249_vm1, %v819_v4  ;;  %v10790_v4 = vpack.c.bf16 %v10542_v49, %v10537_v45 }
  0x9a   : > { %v369_v27 = vpop.f32.mrf.mxu0 }
  0x9b   : > { %v429_v23 = vadd.f32 %v10757_v6, %v369_v27  ;;  %v539_v25 = vpop.f32.mrf.mxu1 }
  0x9d   : > { %v10770_v38 = vadd.f32 %v539_v25, %v429_v23  ;;  %9620 = vmatmul.msk.bf16.gmra.mxu0 %vm249_vm1, %v988_v13  ;;  %v10794_v23 = vpack.c.bf16 %v802_v63, %v1138_v46 }
  0x9e   : > { %9596 = vmatmul.msk.bf16.gmra.mxu2 %vm249_vm1, %v10765_v50  ;;  %9633 = vmatmul.msk.bf16.gmra.mxu1 %vm249_vm1, %v1158_v19 }
  0x9f   : > { %9609 = vmatmul.msk.bf16.gmra.mxu3 %vm249_vm1, %v10768_v26 }
  0xa1   : > { %v574_v28 = vpop.f32.mrf.mxu2 }
  0xa2   : > { %v371_v43 = vpop.f32.mrf.mxu0  ;;  %v404_v52 = vpop.f32.mrf.mxu3 }
  0xa3   : > { %v430_v8 = vadd.f32 %v10757_v6, %v371_v43  ;;  %v443_v39 = vadd.f32 %v10757_v6, %v404_v52  ;;  %v541_v40 = vpop.f32.mrf.mxu1 }
  0xa5   : > { %v10780_v41 = vadd.f32 %v541_v40, %v430_v8  ;;  %v10782_v44 = vadd.f32 %v574_v28, %v443_v39  ;;  %v1140_v39 = vld [vmem:[%s10458_s30 + $0x89] sm:$0xff]  ;;  %v804_v40 = vld [vmem:[%s10458_s30 + $0x91] sm:$0xff] }
  0xa9   : > { %v576_v0 = vpop.f32.mrf.mxu2 }
  0xaa   : > { %v374_v12 = vpop.f32.mrf.mxu0  ;;  %v406_v16 = vpop.f32.mrf.mxu3 }
  0xab   : > { %v431_v13 = vadd.f32 %v10757_v6, %v374_v12  ;;  %v444_v27 = vadd.f32 %v10757_v6, %v406_v16  ;;  %v544_v19 = vpop.f32.mrf.mxu1  ;;  %v10818_v16 = vpack.c.bf16 %v10579_v1, %v10567_v58 }
  0xad   : > { %v10796_v25 = vadd.f32 %v544_v19, %v431_v13  ;;  %9621 = vmatmul.msk.bf16.gmra.mxu0 %vm249_vm1, %v989_v2  ;;  %v10799_v10 = vadd.f32 %v576_v0, %v444_v27  ;;  %v990_v0 = vpack.c.bf16 %v10695_v60, %v10651_v51 }
  0xae   : > { %9597 = vmatmul.msk.bf16.gmra.mxu2 %vm249_vm1, %v10790_v4  ;;  %9634 = vmatmul.msk.bf16.gmra.mxu1 %vm249_vm1, %v1159_v9  ;;  %v1160_v9 = vpack.c.bf16 %v1140_v39, %v802_v63 }
  0xaf   : > { %9610 = vmatmul.msk.bf16.gmra.mxu3 %vm249_vm1, %v10794_v23 }
  0xb1   : > { %v579_v45 = vpop.f32.mrf.mxu2 }
  0xb2   : > { %v376_v49 = vpop.f32.mrf.mxu0  ;;  %v409_v48 = vpop.f32.mrf.mxu3 }
  0xb3   : > { %v432_v31 = vadd.f32 %v10757_v6, %v376_v49  ;;  %v445_v28 = vadd.f32 %v10757_v6, %v409_v48  ;;  %v546_v43 = vpop.f32.mrf.mxu1 }
  0xb5   : > { %v10808_v52 = vadd.f32 %v546_v43, %v432_v31  ;;  %v10810_v8 = vadd.f32 %v579_v45, %v445_v28  ;;  %v10822_v45 = vpack.c.bf16 %v804_v40, %v1140_v39  ;;  %v1142_v39 = vld [vmem:[%s10458_s30 + $0x99] sm:$0xff] }
  0xb9   : > { %v581_v46 = vpop.f32.mrf.mxu2 }
  0xba   : > { %v379_v2 = vpop.f32.mrf.mxu0  ;;  %v411_v12 = vpop.f32.mrf.mxu3 }
  0xbb   : > { %v433_v13 = vadd.f32 %v10757_v6, %v379_v2  ;;  %v446_v27 = vadd.f32 %v10757_v6, %v411_v12  ;;  %v549_v19 = vpop.f32.mrf.mxu1  ;;  %v991_v2 = vpack.c.bf16 %v10724_v29, %v10698_v61 }
  0xbd   : > { %v10824_v49 = vadd.f32 %v549_v19, %v433_v13  ;;  %9622 = vmatmul.msk.bf16.gmra.mxu0 %vm249_vm1, %v990_v0  ;;  %v10827_v51 = vadd.f32 %v581_v46, %v446_v27  ;;  %v806_v46 = vld [vmem:[%s10458_s30 + $0xa1] sm:$0xff]  ;;  %v10846_v13 = vpack.c.bf16 %v10592_v7, %v10587_v3  ;;  %v1161_v27 = vpack.c.bf16 %v1142_v39, %v804_v40 }
  0xbe   : > { %9598 = vmatmul.msk.bf16.gmra.mxu2 %vm249_vm1, %v10818_v16  ;;  %9635 = vmatmul.msk.bf16.gmra.mxu1 %vm249_vm1, %v1160_v9 }
  0xbf   : > { %9611 = vmatmul.msk.bf16.gmra.mxu3 %vm249_vm1, %v10822_v45 }
  0xc1   : > { %v584_v58 = vpop.f32.mrf.mxu2 }
  0xc2   : > { %v381_v1 = vpop.f32.mrf.mxu0  ;;  %v414_v60 = vpop.f32.mrf.mxu3 }
  0xc3   : > { %v434_v63 = vadd.f32 %v10757_v6, %v381_v1  ;;  %v447_v48 = vadd.f32 %v10757_v6, %v414_v60  ;;  %v551_v31 = vpop.f32.mrf.mxu1 }
  0xc5   : > { %v10836_v28 = vadd.f32 %v551_v31, %v434_v63  ;;  %v10838_v43 = vadd.f32 %v584_v58, %v447_v48  ;;  %v10850_v58 = vpack.c.bf16 %v806_v46, %v1142_v39 }
  0xc9   : > { %v586_v0 = vpop.f32.mrf.mxu2 }
  0xca   : > { %v384_v12 = vpop.f32.mrf.mxu0  ;;  %v416_v9 = vpop.f32.mrf.mxu3 }
  0xcb   : > { %v435_v19 = vadd.f32 %v10757_v6, %v384_v12  ;;  %v448_v1 = vadd.f32 %v10757_v6, %v416_v9  ;;  %v554_v60 = vpop.f32.mrf.mxu1  ;;  %v808_v12 = vld [vmem:[%s10458_s30 + $0xb1] sm:$0xff] }
  0xcd   : > { %v10852_v63 = vadd.f32 %v554_v60, %v435_v19  ;;  %9623 = vmatmul.msk.bf16.gmra.mxu0 %vm249_vm1, %v991_v2  ;;  %v10855_v61 = vadd.f32 %v586_v0, %v448_v1  ;;  %v1144_v2 = vld [vmem:[%s10458_s30 + $0xa9] sm:$0xff]  ;;  %v654_v60 = vpack.c.bf16 %v10632_v36, %v10615_v20 }
  0xce   : > { %9599 = vmatmul.msk.bf16.gmra.mxu2 %vm249_vm1, %v10846_v13  ;;  %9636 = vmatmul.msk.bf16.gmra.mxu1 %vm249_vm1, %v1161_v27  ;;  %v992_v27 = vpack.c.bf16 %v10471_v17, %v10727_v30  ;;  %v1162_v47 = vpack.c.bf16 %v1144_v2, %v806_v46 }
  0xcf   : > { %9612 = vmatmul.msk.bf16.gmra.mxu3 %vm249_vm1, %v10850_v58 }
  0xd1   : > { %v589_v3 = vpop.f32.mrf.mxu2 }
  0xd2   : > { %v386_v7 = vpop.f32.mrf.mxu0  ;;  %v419_v29 = vpop.f32.mrf.mxu3 }
  0xd3   : > { %v436_v40 = vadd.f32 %v10757_v6, %v386_v7  ;;  %v449_v48 = vadd.f32 %v10757_v6, %v419_v29  ;;  %v556_v31 = vpop.f32.mrf.mxu1 }
  0xd5   : > { %v10864_v39 = vadd.f32 %v556_v31, %v436_v40  ;;  %v10866_v0 = vadd.f32 %v589_v3, %v449_v48  ;;  %v10876_v3 = vpack.c.bf16 %v808_v12, %v1144_v2 }
  0xd7   : > { %14560 = vst [vmem:[#allocation6_spill] sm:$0xff] %v10866_v0 }
  0xd9   : > { %v591_v9 = vpop.f32.mrf.mxu2 }
  0xda   : > { %v389_v19 = vpop.f32.mrf.mxu0  ;;  %v421_v1 = vpop.f32.mrf.mxu3 }
  0xdb   : > { %v437_v7 = vadd.f32 %v10757_v6, %v389_v19  ;;  %v450_v29 = vadd.f32 %v10757_v6, %v421_v1  ;;  %v559_v40 = vpop.f32.mrf.mxu1 }
  0xdd   : > { %v10878_v48 = vadd.f32 %v559_v40, %v437_v7  ;;  %9624 = vmatmul.msk.bf16.gmra.mxu0 %vm249_vm1, %v992_v27  ;;  %v10881_v17 = vadd.f32 %v591_v9, %v450_v29  ;;  %v1146_v9 = vld [vmem:[%s10458_s30 + $0xb9] sm:$0xff]  ;;  %v810_v7 = vld [vmem:[%s10458_s30 + $0xc1] sm:$0xff] }
  0xde   : > { %9600 = vmatmul.msk.bf16.gmra.mxu2 %vm249_vm1, %v654_v60  ;;  %9637 = vmatmul.msk.bf16.gmra.mxu1 %vm249_vm1, %v1162_v47  ;;  %v993_v47 = vpack.c.bf16 %v10507_v32, %v10474_v18  ;;  %v1163_v0 = vpack.c.bf16 %v1146_v9, %v808_v12 }
  0xdf   : > { %14561 = vst [vmem:[#allocation7_spill] sm:$0xff] %v10881_v17  ;;  %9613 = vmatmul.msk.bf16.gmra.mxu3 %vm249_vm1, %v10876_v3  ;;  %v655_v17 = vpack.c.bf16 %v10479_v21, %v10635_v37 }
  0xe1   : > { %v594_v20 = vpop.f32.mrf.mxu2 }
  0xe2   : > { %v391_v30 = vpop.f32.mrf.mxu0  ;;  %v424_v46 = vpop.f32.mrf.mxu3 }
  0xe3   : > { %v438_v31 = vadd.f32 %v10757_v6, %v391_v30  ;;  %v451_v2 = vadd.f32 %v10757_v6, %v424_v46  ;;  %v561_v19 = vpop.f32.mrf.mxu1 }
  0xe5   : > { %v10889_v1 = vadd.f32 %v561_v19, %v438_v31  ;;  %v10891_v27 = vadd.f32 %v594_v20, %v451_v2  ;;  %v10901_v20 = vpack.c.bf16 %v810_v7, %v1146_v9 }
  0xe9   : > { %v596_v60 = vpop.f32.mrf.mxu2 }
  0xea   : > { %v394_v29 = vpop.f32.mrf.mxu0  ;;  %v426_v40 = vpop.f32.mrf.mxu3 }
  0xeb   : > { %v439_v30 = vadd.f32 %v10757_v6, %v394_v29  ;;  %v452_v46 = vadd.f32 %v10757_v6, %v426_v40  ;;  %v564_v31 = vpop.f32.mrf.mxu1 }
  0xed   : > { %v10903_v2 = vadd.f32 %v564_v31, %v439_v30  ;;  %9625 = vmatmul.msk.bf16.gmra.mxu0 %vm249_vm1, %v993_v47  ;;  %v10906_v18 = vadd.f32 %v596_v60, %v452_v46  ;;  %v1148_v60 = vld [vmem:[%s10458_s30 + $0xc9] sm:$0xff]  ;;  %v812_v47 = vld [vmem:[%s10458_s30 + $0xd1] sm:$0xff] }
  0xee   : > { %9601 = vmatmul.msk.bf16.gmra.mxu2 %vm249_vm1, %v655_v17  ;;  %9638 = vmatmul.msk.bf16.gmra.mxu1 %vm249_vm1, %v1163_v0  ;;  %v994_v0 = vpack.c.bf16 %v10553_v53, %v10510_v33 }
  0xef   : > { %14562 = vst [vmem:[#allocation8_spill] sm:$0xff] %v10906_v18  ;;  %9614 = vmatmul.msk.bf16.gmra.mxu3 %vm249_vm1, %v10901_v20 }
  0xf1   : > { %v709_v21 = vpop.f32.mrf.mxu2 }
  0xf2   : > { %v769_v32 = vadd.f32 %v709_v21, %v10770_v38  ;;  %v396_v37 = vpop.f32.mrf.mxu0  ;;  %v879_v12 = vpop.f32.mrf.mxu3  ;;  %v656_v38 = vpack.c.bf16 %v10513_v34, %v10482_v22  ;;  %v1164_v21 = vpack.c.bf16 %v1148_v60, %v810_v7 }
  0xf3   : > { %v440_v19 = vadd.f32 %v10757_v6, %v396_v37  ;;  %v566_v9 = vpop.f32.mrf.mxu1 }
  0xf4   : > { %v939_v29 = vadd.f32 %v879_v12, %v769_v32  ;;  %v10924_v32 = vpack.c.bf16 %v812_v47, %v1148_v60  ;;  %v1150_v60 = vld [vmem:[%s10458_s30 + $0xd9] sm:$0xff] }
  0xf5   : > { %v10914_v40 = vadd.f32 %v566_v9, %v440_v19 }
  0xf9   : > { %v711_v30 = vpop.f32.mrf.mxu2 }
  0xfa   : > { %v770_v17 = vadd.f32 %v711_v30, %v10780_v41  ;;  %v399_v46 = vpop.f32.mrf.mxu0  ;;  %v881_v31 = vpop.f32.mrf.mxu3  ;;  %v814_v30 = vld [vmem:[%s10458_s30 + $0xe1] sm:$0xff] }
  0xfb   : > { %v441_v37 = vadd.f32 %v10757_v6, %v399_v46  ;;  %v569_v18 = vpop.f32.mrf.mxu1 }
  0xfc   : > { %v940_v12 = vadd.f32 %v881_v31, %v770_v17  ;;  %v995_v17 = vpack.c.bf16 %v10603_v11, %v10556_v54 }
  0xfd   : > { %v10926_v19 = vadd.f32 %v569_v18, %v441_v37  ;;  %9626 = vmatmul.msk.bf16.gmra.mxu0 %vm249_vm1, %v994_v0 }
  0xfe   : > { %9602 = vmatmul.msk.bf16.gmra.mxu2 %vm249_vm1, %v656_v38  ;;  %9639 = vmatmul.msk.bf16.gmra.mxu1 %vm249_vm1, %v1164_v21  ;;  %v1165_v21 = vpack.c.bf16 %v1150_v60, %v812_v47 }
  0xff   : > { %9615 = vmatmul.msk.bf16.gmra.mxu3 %vm249_vm1, %v10924_v32 }
 0x101   : > { %v714_v22 = vpop.f32.mrf.mxu2 }
 0x102   : > { %v771_v33 = vadd.f32 %v714_v22, %v10796_v25  ;;  %v401_v34 = vpop.f32.mrf.mxu0  ;;  %v884_v53 = vpop.f32.mrf.mxu3  ;;  %v657_v25 = vpack.c.bf16 %v10559_v55, %v10516_v35  ;;  %v10944_v22 = vpack.c.bf16 %v814_v30, %v1150_v60 }
 0x103   : > { %v442_v41 = vadd.f32 %v10757_v6, %v401_v34  ;;  %v571_v7 = vpop.f32.mrf.mxu1 }
 0x104   : > { %v941_v9 = vadd.f32 %v884_v53, %v771_v33 }
 0x105   : > { %v10935_v18 = vadd.f32 %v571_v7, %v442_v41  ;;  %v1152_v41 = vld [vmem:[%s10458_s30 + $0xe9] sm:$0xff]  ;;  %v816_v7 = vld [vmem:[%s10458_s30 + $0xf1] sm:$0xff] }
 0x109   : > { %v716_v0 = vpop.f32.mrf.mxu2 }
 0x10a   : > { %v772_v46 = vadd.f32 %v716_v0, %v10808_v52  ;;  %v886_v31 = vpop.f32.mrf.mxu3  ;;  %v1049_v38 = vpop.f32.mrf.mxu0  ;;  %v996_v0 = vpack.c.bf16 %v10654_v57, %v10606_v14 }
 0x10b   : > { %v1109_v37 = vadd.f32 %v1049_v38, %v939_v29  ;;  %v1219_v6 = vpop.f32.mrf.mxu1  ;;  %v1166_v38 = vpack.c.bf16 %v1152_v41, %v814_v30 }
 0x10c   : > { %v942_v33 = vadd.f32 %v886_v31, %v772_v46 }
 0x10d   : > { %v10946_v34 = vadd.f32 %v1219_v6, %v1109_v37  ;;  %9627 = vmatmul.msk.bf16.gmra.mxu0 %vm249_vm1, %v995_v17 }
 0x10e   : > { %9603 = vmatmul.msk.bf16.gmra.mxu2 %vm249_vm1, %v657_v25  ;;  %9640 = vmatmul.msk.bf16.gmra.mxu1 %vm249_vm1, %v1165_v21  ;;  %v10963_v21 = vpack.c.bf16 %v816_v7, %v1152_v41 }
 0x10f   : > { %9616 = vmatmul.msk.bf16.gmra.mxu3 %vm249_vm1, %v10944_v22 }
 0x111   : > { %v719_v35 = vpop.f32.mrf.mxu2 }
 0x112   : > { %v773_v54 = vadd.f32 %v719_v35, %v10824_v49  ;;  %v889_v55 = vpop.f32.mrf.mxu3  ;;  %v1051_v11 = vpop.f32.mrf.mxu0  ;;  %v658_v49 = vpack.c.bf16 %v10609_v15, %v10562_v56 }
 0x113   : > { %v1110_v52 = vadd.f32 %v1051_v11, %v940_v12  ;;  %v1221_v29 = vpop.f32.mrf.mxu1  ;;  %v10982_v11 = vld [vmem:[%s10458_s30 + $0xf7] sm:$0xff] }
 0x114   : > { %v943_v47 = vadd.f32 %v889_v55, %v773_v54  ;;  %v9696_v54 = vld [vmem:[%s14539_s1 + $0x28] sm:$0xf]  ;;  %v9709_v55 = vld [vmem:[%s14539_s1 + $0x2c] sm:$0xf]  ;;  %v997_v41 = vpack.c.bf16 %v10982_v11, %v10657_v59  ;;  %v9722_v59 = vld [vmem:[%s14539_s1 + $0x30] sm:$0xf] }
 0x115   : > { %v10954_v53 = vadd.f32 %v1221_v29, %v1110_v52  ;;  %v2058_v52 = vsel %vm356_vm0, %v9696_v54, 0  ;;  %v10987_v29 = vld [vmem:[%s10458_s30 + $0xf9] sm:$0xff]  ;;  %v11016_v54 = vld [vmem:[%s10458_s30 + $0x107] sm:$0xff] }
 0x116   : > { %2067 = vmatpush.bf16.msrb.mxu2 %v2058_v52  ;;  %v11022_v52 = vld [vmem:[%s10458_s30 + $0x109] sm:$0xff] }
 0x119   : > { %v721_v60 = vpop.f32.mrf.mxu2 }
 0x11a   : > { %v774_v17 = vadd.f32 %v721_v60, %v10836_v28  ;;  %v891_v46 = vpop.f32.mrf.mxu3  ;;  %v1054_v31 = vpop.f32.mrf.mxu0 }
 0x11b   : > { %v1111_v25 = vadd.f32 %v1054_v31, %v941_v9  ;;  %v1224_v12 = vpop.f32.mrf.mxu1 }
 0x11c   : > { %v944_v37 = vadd.f32 %v891_v46, %v774_v17  ;;  %v1167_v46 = vpack.c.bf16 %v10987_v29, %v816_v7 }
 0x11d   : > { %v10965_v6 = vadd.f32 %v1224_v12, %v1111_v25  ;;  %9628 = vmatmul.msk.bf16.gmra.mxu0 %vm249_vm1, %v996_v0 }
 0x11e   : > { %9604 = vmatmul.msk.bf16.gmra.mxu2 %vm249_vm1, %v658_v49  ;;  %9641 = vmatmul.msk.bf16.gmra.mxu1 %vm249_vm1, %v1166_v38 }
 0x11f   : > { %9617 = vmatmul.msk.bf16.gmra.mxu3 %vm249_vm1, %v10963_v21 }
 0x121   : > { %v724_v56 = vpop.f32.mrf.mxu2 }
 0x122   : > { %v775_v14 = vadd.f32 %v724_v56, %v10852_v63  ;;  %v894_v15 = vpop.f32.mrf.mxu3  ;;  %v1056_v57 = vpop.f32.mrf.mxu0  ;;  %v2228_v63 = vsel %vm356_vm0, %v9709_v55, 0  ;;  %v11019_v55 = vld [vmem:[%s10458_s30 + $0x101] sm:$0xff] }
 0x123   : > { %v1112_v28 = vadd.f32 %v1056_v57, %v942_v33  ;;  %v1226_v9 = vpop.f32.mrf.mxu1  ;;  %2237 = vmatpush.bf16.msrb.mxu3 %v2228_v63 }
 0x124   : > { %v945_v30 = vadd.f32 %v894_v15, %v775_v14 }
 0x125   : > { %v10973_v35 = vadd.f32 %v1226_v9, %v1112_v28  ;;  %v11013_v9 = vld [vmem:[%s10458_s30 + $0xff] sm:$0xff] }
 0x129   : > { %v726_v33 = vpop.f32.mrf.mxu2 }
 0x12a   : > { %v776_v60 = vadd.f32 %v726_v33, %v10864_v39  ;;  %v896_v0 = vpop.f32.mrf.mxu3  ;;  %v1059_v17 = vpop.f32.mrf.mxu0  ;;  %v2398_v39 = vsel %vm356_vm0, %v9722_v59, 0  ;;  %v998_v33 = vpack.c.bf16 %v11016_v54, %v11013_v9 }
 0x12b   : > { %v1113_v31 = vadd.f32 %v1059_v17, %v943_v47  ;;  %v1229_v49 = vpop.f32.mrf.mxu1  ;;  %v9735_v47 = vld [vmem:[%s14539_s1 + $0x34] sm:$0xf]  ;;  %2407 = vmatpush.bf16.msrb.mxu0 %v2398_v39 }
 0x12c   : > { %v946_v38 = vadd.f32 %v896_v0, %v776_v60  ;;  %v1168_v60 = vpack.c.bf16 %v11022_v52, %v11019_v55 }
 0x12d   : > { %v10993_v25 = vadd.f32 %v1229_v49, %v1113_v31  ;;  %9629 = vmatmul.msk.bf16.gmra.mxu0 %vm249_vm1, %v997_v41 }
 0x12e   : > { %9642 = vmatmul.msk.bf16.gmra.mxu1 %vm249_vm1, %v1167_v46  ;;  %9645 = vmatmul.msk.bf16.vlgmr.msra.gmra.mxu2 %vm249_vm1, %v10619_v24  ;;  %v2568_v24 = vsel %vm356_vm0, %v9735_v47, 0 }
 0x12f   : > { %9658 = vmatmul.msk.bf16.vlgmr.msra.gmra.mxu3 %vm249_vm1, %v10765_v50  ;;  %2577 = vmatpush.bf16.msrb.mxu1 %v2568_v24 }
 0x131   : > { %v729_v7 = vpop.f32.mrf.mxu2 }
 0x132   : > { %v777_v12 = vadd.f32 %v729_v7, %v10878_v48  ;;  %v899_v56 = vpop.f32.mrf.mxu3  ;;  %v1061_v14 = vpop.f32.mrf.mxu0 }
 0x133   : > { %v1114_v15 = vadd.f32 %v1061_v14, %v944_v37  ;;  %v1231_v57 = vpop.f32.mrf.mxu1 }
 0x134   : > { %v947_v50 = vadd.f32 %v899_v56, %v777_v12  ;;  %v1813_v12 = vld [vmem:[%s10458_s30 + $0x1e] sm:$0xff]  ;;  %v1814_v56 = vld [vmem:[%s10458_s30 + $0x26] sm:$0xff] }
 0x135   : > { %v11010_v28 = vadd.f32 %v1231_v57, %v1114_v15 }
 0x139   : > { %v731_v63 = vpop.f32.mrf.mxu2 }
 0x13a   : > { %v778_v48 = vadd.f32 %v731_v63, %v10889_v1  ;;  %v901_v41 = vpop.f32.mrf.mxu3  ;;  %v1064_v37 = vpop.f32.mrf.mxu0  ;;  %v1837_v63 = vpack.c.bf16 %v1814_v56, %v1813_v12 }
 0x13b   : > { %v1115_v0 = vadd.f32 %v1064_v37, %v945_v30  ;;  %v1234_v17 = vpop.f32.mrf.mxu1 }
 0x13c   : > { %v948_v46 = vadd.f32 %v901_v41, %v778_v48 }
 0x13d   : > { %v11029_v31 = vadd.f32 %v1234_v17, %v1115_v0  ;;  %9630 = vmatmul.msk.bf16.gmra.mxu0 %vm249_vm1, %v998_v33 }
 0x13e   : > { %9643 = vmatmul.msk.bf16.gmra.mxu1 %vm249_vm1, %v1168_v60  ;;  %9646 = vmatmul.msk.bf16.gmra.mxu2 %vm249_vm1, %v10669_v5 }
 0x13f   : > { %9659 = vmatmul.msk.bf16.gmra.mxu3 %vm249_vm1, %v10790_v4 }
 0x141   : > { %v734_v1 = vpop.f32.mrf.mxu2 }
 0x142   : > { %v779_v49 = vadd.f32 %v734_v1, %v10903_v2  ;;  %v904_v30 = vpop.f32.mrf.mxu3  ;;  %v1066_v59 = vpop.f32.mrf.mxu0  ;;  %v1815_v1 = vld [vmem:[%s10458_s30 + $0x2e] sm:$0xff] }
 0x143   : > { %v1116_v39 = vadd.f32 %v1066_v59, %v946_v38  ;;  %v1236_v47 = vpop.f32.mrf.mxu1 }
 0x144   : > { %v949_v24 = vadd.f32 %v904_v30, %v779_v49 }
 0x145   : > { %v11038_v7 = vadd.f32 %v1236_v47, %v1116_v39 }
 0x149   : > { %v736_v14 = vpop.f32.mrf.mxu2 }
 0x14a   : > { %v780_v15 = vadd.f32 %v736_v14, %v10914_v40  ;;  %v906_v57 = vpop.f32.mrf.mxu3  ;;  %v1069_v5 = vpop.f32.mrf.mxu0 }
 0x14b   : > { %v1117_v33 = vadd.f32 %v1069_v5, %v947_v50  ;;  %v1239_v4 = vpop.f32.mrf.mxu1 }
 0x14c   : > { %v950_v2 = vadd.f32 %v906_v57, %v780_v15 }
 0x14d   : > { %v11043_v48 = vadd.f32 %v1239_v4, %v1117_v33  ;;  %9671 = vmatmul.msk.bf16.vlgmr.msra.gmra.mxu0 %vm249_vm1, %v10768_v26  ;;  %v1816_v26 = vld [vmem:[%s10458_s30 + $0x36] sm:$0xff]  ;;  %v1817_v33 = vld [vmem:[%s10458_s30 + $0x3e] sm:$0xff]  ;;  %v1818_v4 = vld [vmem:[%s10458_s30 + $0x46] sm:$0xff] }
 0x14e   : > { %9647 = vmatmul.msk.bf16.gmra.mxu2 %vm249_vm1, %v10708_v62  ;;  %9684 = vmatmul.msk.bf16.vlgmr.msra.gmra.mxu1 %vm249_vm1, %v1837_v63  ;;  %v1838_v39 = vpack.c.bf16 %v1816_v26, %v1815_v1  ;;  %v1312_v63 = vld [vmem:[%s10458_s30 + $0xaf] sm:$0xff] }
 0x14f   : > { %9660 = vmatmul.msk.bf16.gmra.mxu3 %vm249_vm1, %v10818_v16 }
 0x151   : > { %v739_v40 = vpop.f32.mrf.mxu2 }
 0x152   : > { %v781_v38 = vadd.f32 %v739_v40, %v10926_v19  ;;  %v909_v50 = vpop.f32.mrf.mxu3  ;;  %v1071_v41 = vpop.f32.mrf.mxu0 }
 0x153   : > { %v1118_v37 = vadd.f32 %v1071_v41, %v948_v46  ;;  %v1241_v60 = vpop.f32.mrf.mxu1 }
 0x154   : > { %v951_v0 = vadd.f32 %v909_v50, %v781_v38 }
 0x155   : > { %v11053_v17 = vadd.f32 %v1241_v60, %v1118_v37  ;;  %v1839_v37 = vpack.c.bf16 %v1818_v4, %v1817_v33 }
 0x159   : > { %v741_v49 = vpop.f32.mrf.mxu2 }
 0x15a   : > { %v782_v62 = vadd.f32 %v741_v49, %v10935_v18  ;;  %v911_v30 = vpop.f32.mrf.mxu3  ;;  %v1074_v59 = vpop.f32.mrf.mxu0 }
 0x15b   : > { %v1119_v47 = vadd.f32 %v1074_v59, %v949_v24  ;;  %v1244_v16 = vpop.f32.mrf.mxu1 }
 0x15c   : > { %v952_v19 = vadd.f32 %v911_v30, %v782_v62 }
 0x15d   : > { %v11058_v12 = vadd.f32 %v1244_v16, %v1119_v47  ;;  %9672 = vmatmul.msk.bf16.gmra.mxu0 %vm249_vm1, %v10794_v23  ;;  %v1311_v23 = vld [vmem:[%s10458_s30 + $0xa7] sm:$0xff]  ;;  %v1313_v47 = vld [vmem:[%s10458_s30 + $0xb7] sm:$0xff] }
 0x15e   : > { %9648 = vmatmul.msk.bf16.gmra.mxu2 %vm249_vm1, %v10736_v42  ;;  %9685 = vmatmul.msk.bf16.gmra.mxu1 %vm249_vm1, %v1838_v39  ;;  %v1481_v42 = vld [vmem:[%s10458_s30 + $0xa8] sm:$0xff]  ;;  %v1331_v41 = vpack.c.bf16 %v1312_v63, %v1311_v23 }
 0x15f   : > { %9661 = vmatmul.msk.bf16.gmra.mxu3 %vm249_vm1, %v10846_v13  ;;  %v1819_v16 = vld [vmem:[%s10458_s30 + $0x4e] sm:$0xff] }
 0x161   : > { %v744_v18 = vpop.f32.mrf.mxu2 }
 0x162   : > { %v783_v46 = vadd.f32 %v744_v18, %v10782_v44  ;;  %v914_v24 = vpop.f32.mrf.mxu3  ;;  %v1076_v56 = vpop.f32.mrf.mxu0  ;;  %v1820_v18 = vld [vmem:[%s10458_s30 + $0x56] sm:$0xff] }
 0x163   : > { %v1120_v14 = vadd.f32 %v1076_v56, %v950_v2  ;;  %v1246_v15 = vpop.f32.mrf.mxu1  ;;  %v1501_v2 = vpack.c.bf16 %v10632_v36, %v1481_v42 }
 0x164   : > { %v953_v57 = vadd.f32 %v914_v24, %v783_v46  ;;  %v1483_v46 = vld [vmem:[%s10458_s30 + $0xb8] sm:$0xff]  ;;  %v1484_v24 = vld [vmem:[%s10458_s30 + $0xc0] sm:$0xff] }
 0x165   : > { %v11068_v5 = vadd.f32 %v1246_v15, %v1120_v14  ;;  %v1502_v4 = vpack.c.bf16 %v1484_v24, %v1483_v46 }
 0x169   : > { %v746_v40 = vpop.f32.mrf.mxu2 }
 0x16a   : > { %v784_v38 = vadd.f32 %v746_v40, %v10799_v10  ;;  %v916_v50 = vpop.f32.mrf.mxu3  ;;  %v1079_v13 = vpop.f32.mrf.mxu0 }
 0x16b   : > { %v1121_v44 = vadd.f32 %v1079_v13, %v951_v0  ;;  %v1249_v60 = vpop.f32.mrf.mxu1 }
 0x16c   : > { %v954_v1 = vadd.f32 %v916_v50, %v784_v38 }
 0x16d   : > { %v11077_v26 = vadd.f32 %v1249_v60, %v1121_v44  ;;  %9673 = vmatmul.msk.bf16.gmra.mxu0 %vm249_vm1, %v10822_v45  ;;  %v1314_v45 = vld [vmem:[%s10458_s30 + $0xbf] sm:$0xff]  ;;  %v1316_v60 = vld [vmem:[%s10458_s30 + $0xcf] sm:$0xff] }
 0x16e   : > { %9649 = vmatmul.msk.bf16.gmra.mxu2 %vm249_vm1, %v1331_v41  ;;  %9686 = vmatmul.msk.bf16.gmra.mxu1 %vm249_vm1, %v1839_v37  ;;  %v1332_v63 = vpack.c.bf16 %v1314_v45, %v1313_v47 }
 0x16f   : > { %9662 = vmatmul.msk.bf16.gmra.mxu3 %vm249_vm1, %v1501_v2  ;;  %v1821_v2 = vld [vmem:[%s10458_s30 + $0x5e] sm:$0xff] }
 0x171   : > { %v749_v10 = vpop.f32.mrf.mxu2 }
 0x172   : > { %v785_v36 = vadd.f32 %v749_v10, %v10810_v8  ;;  %v919_v0 = vpop.f32.mrf.mxu3  ;;  %v1081_v49 = vpop.f32.mrf.mxu0  ;;  %v11094_v8 = vpack.c.bf16 %v1820_v18, %v1819_v16  ;;  %v1822_v10 = vld [vmem:[%s10458_s30 + $0x66] sm:$0xff] }
 0x173   : > { %v1122_v62 = vadd.f32 %v1081_v49, %v952_v19  ;;  %v1251_v30 = vpop.f32.mrf.mxu1 }
 0x174   : > { %v955_v59 = vadd.f32 %v919_v0, %v785_v36  ;;  %v1485_v36 = vld [vmem:[%s10458_s30 + $0xc8] sm:$0xff]  ;;  %v1486_v0 = vld [vmem:[%s10458_s30 + $0xd0] sm:$0xff] }
 0x175   : > { %v11085_v39 = vadd.f32 %v1251_v30, %v1122_v62  ;;  %v1503_v18 = vpack.c.bf16 %v1486_v0, %v1485_v36 }
 0x179   : > { %v751_v56 = vpop.f32.mrf.mxu2 }
 0x17a   : > { %v786_v14 = vadd.f32 %v751_v56, %v10827_v51  ;;  %v921_v15 = vpop.f32.mrf.mxu3  ;;  %v1084_v23 = vpop.f32.mrf.mxu0 }
 0x17b   : > { %v1123_v33 = vadd.f32 %v1084_v23, %v953_v57  ;;  %v1254_v19 = vpop.f32.mrf.mxu1 }
 0x17c   : > { %v956_v42 = vadd.f32 %v921_v15, %v786_v14 }
 0x17d   : > { %v11096_v40 = vadd.f32 %v1254_v19, %v1123_v33  ;;  %9674 = vmatmul.msk.bf16.gmra.mxu0 %vm249_vm1, %v10850_v58  ;;  %v1315_v58 = vld [vmem:[%s10458_s30 + $0xc7] sm:$0xff] }
 0x17e   : > { %9650 = vmatmul.msk.bf16.gmra.mxu2 %vm249_vm1, %v1332_v63  ;;  %9687 = vmatmul.msk.bf16.gmra.mxu1 %vm249_vm1, %v11094_v8  ;;  %v1333_v45 = vpack.c.bf16 %v1316_v60, %v1315_v58 }
 0x17f   : > { %9663 = vmatmul.msk.bf16.gmra.mxu3 %vm249_vm1, %v1502_v4  ;;  %v1318_v4 = vld [vmem:[%s10458_s30 + $0xdf] sm:$0xff] }
 0x181   : > { %v754_v51 = vpop.f32.mrf.mxu2 }
 0x182   : > { %v787_v57 = vadd.f32 %v754_v51, %v10838_v43  ;;  %v924_v38 = vpop.f32.mrf.mxu3  ;;  %v1086_v50 = vpop.f32.mrf.mxu0  ;;  %v11114_v43 = vpack.c.bf16 %v1822_v10, %v1821_v2  ;;  %v1823_v51 = vld [vmem:[%s10458_s30 + $0x6e] sm:$0xff] }
 0x183   : > { %v1124_v13 = vadd.f32 %v1086_v50, %v954_v1  ;;  %v1256_v41 = vpop.f32.mrf.mxu1  ;;  %v1488_v50 = vld [vmem:[%s10458_s30 + $0xe0] sm:$0xff] }
 0x184   : > { %v957_v37 = vadd.f32 %v924_v38, %v787_v57  ;;  %v1824_v57 = vld [vmem:[%s10458_s30 + $0x76] sm:$0xff] }
 0x185   : > { %v11105_v44 = vadd.f32 %v1256_v41, %v1124_v13  ;;  %v1487_v38 = vld [vmem:[%s10458_s30 + $0xd8] sm:$0xff]  ;;  %v14564_v41 = vld [vmem:[#allocation7_spill] sm:$0xff]  ;;  %v11134_v36 = vpack.c.bf16 %v1824_v57, %v1823_v51 }
 0x189   : > { %v756_v49 = vpop.f32.mrf.mxu2 }
 0x18a   : > { %v788_v62 = vadd.f32 %v756_v49, %v10855_v61  ;;  %v926_v30 = vpop.f32.mrf.mxu3  ;;  %v1089_v47 = vpop.f32.mrf.mxu0  ;;  %v1504_v49 = vpack.c.bf16 %v1488_v50, %v1487_v38 }
 0x18b   : > { %v1125_v16 = vadd.f32 %v1089_v47, %v955_v59  ;;  %v1259_v1 = vpop.f32.mrf.mxu1  ;;  %v14563_v59 = vld [vmem:[#allocation6_spill] sm:$0xff] }
 0x18c   : > { %v958_v46 = vadd.f32 %v926_v30, %v788_v62 }
 0x18d   : > { %v11116_v24 = vadd.f32 %v1259_v1, %v1125_v16  ;;  %9675 = vmatmul.msk.bf16.gmra.mxu0 %vm249_vm1, %v10876_v3  ;;  %v1317_v3 = vld [vmem:[%s10458_s30 + $0xd7] sm:$0xff] }
 0x18e   : > { %9651 = vmatmul.msk.bf16.gmra.mxu2 %vm249_vm1, %v1333_v45  ;;  %9688 = vmatmul.msk.bf16.gmra.mxu1 %vm249_vm1, %v11114_v43  ;;  %v1334_v10 = vpack.c.bf16 %v1318_v4, %v1317_v3  ;;  %v14565_v4 = vld [vmem:[#allocation8_spill] sm:$0xff] }
 0x18f   : > { %9664 = vmatmul.msk.bf16.gmra.mxu3 %vm249_vm1, %v1503_v18 }
 0x191   : > { %v759_v61 = vpop.f32.mrf.mxu2 }
 0x192   : > { %v789_v56 = vadd.f32 %v759_v61, %v14563_v59  ;;  %v929_v14 = vpop.f32.mrf.mxu3  ;;  %v1091_v15 = vpop.f32.mrf.mxu0 }
 0x193   : > { %v1126_v23 = vadd.f32 %v1091_v15, %v956_v42  ;;  %v1261_v63 = vpop.f32.mrf.mxu1  ;;  %v1826_v15 = vld [vmem:[%s10458_s30 + $0x86] sm:$0xff] }
 0x194   : > { %v959_v33 = vadd.f32 %v929_v14, %v789_v56  ;;  %v1320_v56 = vld [vmem:[%s10458_s30 + $0xef] sm:$0xff]  ;;  %v1825_v14 = vld [vmem:[%s10458_s30 + $0x7e] sm:$0xff] }
 0x195   : > { %v11125_v19 = vadd.f32 %v1261_v63, %v1126_v23  ;;  %v1489_v23 = vld [vmem:[%s10458_s30 + $0xe8] sm:$0xff]  ;;  %v1490_v63 = vld [vmem:[%s10458_s30 + $0xf0] sm:$0xff] }
 0x199   : > { %v761_v13 = vpop.f32.mrf.mxu2 }
 0x19a   : > { %v790_v58 = vadd.f32 %v761_v13, %v14564_v41  ;;  %v931_v60 = vpop.f32.mrf.mxu3  ;;  %v1094_v2 = vpop.f32.mrf.mxu0  ;;  %v1505_v41 = vpack.c.bf16 %v1490_v63, %v1489_v23 }
 0x19b   : > { %v1127_v0 = vadd.f32 %v1094_v2, %v957_v37  ;;  %v1264_v42 = vpop.f32.mrf.mxu1 }
 0x19c   : > { %v960_v62 = vadd.f32 %v931_v60, %v790_v58 }
 0x19d   : > { %v11136_v30 = vadd.f32 %v1264_v42, %v1127_v0  ;;  %9676 = vmatmul.msk.bf16.gmra.mxu0 %vm249_vm1, %v10901_v20  ;;  %v1319_v20 = vld [vmem:[%s10458_s30 + $0xe7] sm:$0xff] }
 0x19e   : > { %9652 = vmatmul.msk.bf16.gmra.mxu2 %vm249_vm1, %v1334_v10  ;;  %9689 = vmatmul.msk.bf16.gmra.mxu1 %vm249_vm1, %v11134_v36  ;;  %v1335_v50 = vpack.c.bf16 %v1320_v56, %v1319_v20 }
 0x19f   : > { %9665 = vmatmul.msk.bf16.gmra.mxu3 %vm249_vm1, %v1504_v49 }
 0x1a1   : > { %v764_v37 = vpop.f32.mrf.mxu2 }
 0x1a2   : > { %v791_v47 = vadd.f32 %v764_v37, %v10891_v27  ;;  %v934_v45 = vpop.f32.mrf.mxu3  ;;  %v1096_v16 = vpop.f32.mrf.mxu0  ;;  %v11154_v27 = vpack.c.bf16 %v1826_v15, %v1825_v14  ;;  %v1336_v15 = vpack.c.bf16 %v11013_v9, %v10982_v11 }
 0x1a3   : > { %v1128_v1 = vadd.f32 %v1096_v16, %v958_v46  ;;  %v1266_v18 = vpop.f32.mrf.mxu1  ;;  %v1828_v16 = vld [vmem:[%s10458_s30 + $0x96] sm:$0xff] }
 0x1a4   : > { %v961_v61 = vadd.f32 %v934_v45, %v791_v47  ;;  %v1827_v45 = vld [vmem:[%s10458_s30 + $0x8e] sm:$0xff] }
 0x1a5   : > { %v11145_v59 = vadd.f32 %v1266_v18, %v1128_v1  ;;  %v1492_v1 = vld [vmem:[%s10458_s30 + $0x100] sm:$0xff] }
 0x1a9   : > { %v766_v3 = vpop.f32.mrf.mxu2 }
 0x1aa   : > { %v792_v51 = vadd.f32 %v766_v3, %v14565_v4  ;;  %v936_v57 = vpop.f32.mrf.mxu3  ;;  %v1099_v38 = vpop.f32.mrf.mxu0 }
 0x1ab   : > { %v1129_v13 = vadd.f32 %v1099_v38, %v959_v33  ;;  %v1269_v46 = vpop.f32.mrf.mxu1 }
 0x1ac   : > { %v962_v58 = vadd.f32 %v936_v57, %v792_v51 }
 0x1ad   : > { %v11156_v60 = vadd.f32 %v1269_v46, %v1129_v13  ;;  %9677 = vmatmul.msk.bf16.gmra.mxu0 %vm249_vm1, %v10924_v32  ;;  %v1491_v32 = vld [vmem:[%s10458_s30 + $0xf8] sm:$0xff]  ;;  %v1324_v13 = vld [vmem:[%s10458_s30 + $0x10f] sm:$0xff]  ;;  %v1830_v46 = vld [vmem:[%s10458_s30 + $0xa6] sm:$0xff] }
 0x1ae   : > { %9653 = vmatmul.msk.bf16.gmra.mxu2 %vm249_vm1, %v1335_v50  ;;  %9690 = vmatmul.msk.bf16.gmra.mxu1 %vm249_vm1, %v11154_v27  ;;  %v1506_v63 = vpack.c.bf16 %v1492_v1, %v1491_v32 }
 0x1af   : > { %9666 = vmatmul.msk.bf16.gmra.mxu3 %vm249_vm1, %v1505_v41  ;;  %v1493_v41 = vld [vmem:[%s10458_s30 + $0x108] sm:$0xff] }
 0x1b1   : > { %v1389_v33 = vpop.f32.mrf.mxu2 }
 0x1b2   : > { %v1449_v2 = vadd.f32 %v1389_v33, %v10946_v34  ;;  %v1101_v10 = vpop.f32.mrf.mxu0  ;;  %v1559_v0 = vpop.f32.mrf.mxu3  ;;  %v11174_v34 = vpack.c.bf16 %v1828_v16, %v1827_v45  ;;  %v1494_v33 = vld [vmem:[%s10458_s30 + $0x110] sm:$0xff] }
 0x1b3   : > { %v1130_v42 = vadd.f32 %v1101_v10, %v960_v62  ;;  %v1271_v49 = vpop.f32.mrf.mxu1  ;;  %v1507_v16 = vpack.c.bf16 %v1494_v33, %v1493_v41 }
 0x1b4   : > { %v1619_v37 = vadd.f32 %v1559_v0, %v1449_v2 }
 0x1b5   : > { %v11165_v47 = vadd.f32 %v1271_v49, %v1130_v42  ;;  %v1337_v49 = vpack.c.bf16 %v1324_v13, %v11016_v54 }
 0x1b9   : > { %v1391_v18 = vpop.f32.mrf.mxu2 }
 0x1ba   : > { %v1450_v20 = vadd.f32 %v1391_v18, %v10954_v53  ;;  %v1104_v56 = vpop.f32.mrf.mxu0  ;;  %v1561_v14 = vpop.f32.mrf.mxu3 }
 0x1bb   : > { %v1131_v23 = vadd.f32 %v1104_v56, %v961_v61  ;;  %v1274_v62 = vpop.f32.mrf.mxu1 }
 0x1bc   : > { %v1620_v3 = vadd.f32 %v1561_v14, %v1450_v20 }
 0x1bd   : > { %v11176_v4 = vadd.f32 %v1274_v62, %v1131_v23  ;;  %9678 = vmatmul.msk.bf16.gmra.mxu0 %vm249_vm1, %v10944_v22  ;;  %v1829_v22 = vld [vmem:[%s10458_s30 + $0x9e] sm:$0xff]  ;;  %v1831_v62 = vld [vmem:[%s10458_s30 + $0xae] sm:$0xff] }
 0x1be   : > { %9654 = vmatmul.msk.bf16.gmra.mxu2 %vm249_vm1, %v1336_v15  ;;  %9691 = vmatmul.msk.bf16.gmra.mxu1 %vm249_vm1, %v11174_v34  ;;  %v1326_v23 = vld [vmem:[%s10458_s30 + $0x11f] sm:$0xff] }
 0x1bf   : > { %9667 = vmatmul.msk.bf16.gmra.mxu3 %vm249_vm1, %v1506_v63  ;;  %v1832_v63 = vld [vmem:[%s10458_s30 + $0xb6] sm:$0xff] }
 0x1c1   : > { %v1394_v53 = vpop.f32.mrf.mxu2 }
 0x1c2   : > { %v1451_v11 = vadd.f32 %v1394_v53, %v10965_v6  ;;  %v1106_v9 = vpop.f32.mrf.mxu0  ;;  %v1564_v61 = vpop.f32.mrf.mxu3  ;;  %v11194_v6 = vpack.c.bf16 %v1830_v46, %v1829_v22  ;;  %v1495_v53 = vld [vmem:[%s10458_s30 + $0x118] sm:$0xff] }
 0x1c3   : > { %v1132_v51 = vadd.f32 %v1106_v9, %v962_v58  ;;  %v1276_v57 = vpop.f32.mrf.mxu1 }
 0x1c4   : > { %v1621_v38 = vadd.f32 %v1564_v61, %v1451_v11  ;;  %v1496_v11 = vld [vmem:[%s10458_s30 + $0x120] sm:$0xff]  ;;  %v1676_v61 = vpack.c.bf16 %v11019_v55, %v10987_v29 }
 0x1c5   : > { %v11185_v50 = vadd.f32 %v1276_v57, %v1132_v51  ;;  %v1508_v41 = vpack.c.bf16 %v1496_v11, %v1495_v53 }
 0x1c9   : > { %v1396_v2 = vpop.f32.mrf.mxu2 }
 0x1ca   : > { %v1452_v10 = vadd.f32 %v1396_v2, %v10973_v35  ;;  %v1566_v0 = vpop.f32.mrf.mxu3  ;;  %v1729_v42 = vpop.f32.mrf.mxu0 }
 0x1cb   : > { %v1789_v45 = vadd.f32 %v1729_v42, %v1619_v37  ;;  %v1899_v58 = vpop.f32.mrf.mxu1 }
 0x1cc   : > { %v1622_v32 = vadd.f32 %v1566_v0, %v1452_v10 }
 0x1cd   : > { %v11196_v1 = vadd.f32 %v1899_v58, %v1789_v45  ;;  %9679 = vmatmul.msk.bf16.gmra.mxu0 %vm249_vm1, %v10963_v21  ;;  %v1325_v21 = vld [vmem:[%s10458_s30 + $0x117] sm:$0xff] }
 0x1ce   : > { %9655 = vmatmul.msk.bf16.gmra.mxu2 %vm249_vm1, %v1337_v49  ;;  %9692 = vmatmul.msk.bf16.gmra.mxu1 %vm249_vm1, %v11194_v6  ;;  %v1338_v13 = vpack.c.bf16 %v1326_v23, %v1325_v21  ;;  %v9748_v45 = vld [vmem:[%s14539_s1 + $0x38] sm:$0xf]  ;;  %v9761_v58 = vld [vmem:[%s14539_s1 + $0x3c] sm:$0xf] }
 0x1cf   : > { %9668 = vmatmul.msk.bf16.gmra.mxu3 %vm249_vm1, %v1507_v16  ;;  %v1664_v16 = vld [vmem:[%s10458_s30 + $0x111] sm:$0xff] }
 0x1d0   : > { %v1677_v23 = vpack.c.bf16 %v1664_v16, %v11022_v52  ;;  %v9774_v52 = vld [vmem:[%s14539_s1 + $0x40] sm:$0xf]  ;;  %v1835_v16 = vld [vmem:[%s10458_s30 + $0xce] sm:$0xff] }
 0x1d1   : > { %v1399_v35 = vpop.f32.mrf.mxu2 }
 0x1d2   : > { %v1453_v54 = vadd.f32 %v1399_v35, %v10993_v25  ;;  %v1569_v37 = vpop.f32.mrf.mxu3  ;;  %v1731_v18 = vpop.f32.mrf.mxu0  ;;  %v1833_v35 = vld [vmem:[%s10458_s30 + $0xbe] sm:$0xff] }
 0x1d3   : > { %v1790_v20 = vadd.f32 %v1731_v18, %v1620_v3  ;;  %v1901_v56 = vpop.f32.mrf.mxu1  ;;  %v11216_v3 = vpack.c.bf16 %v1832_v63, %v1831_v62  ;;  %v1984_v18 = vld [vmem:[%s10458_s30 + $0x28] sm:$0xff] }
 0x1d4   : > { %v1623_v14 = vadd.f32 %v1569_v37, %v1453_v54  ;;  %v2908_v54 = vsel %vm356_vm0, %v9761_v58, 0  ;;  %v1983_v37 = vld [vmem:[%s10458_s30 + $0x20] sm:$0xff] }
 0x1d5   : > { %v11205_v15 = vadd.f32 %v1901_v56, %v1790_v20  ;;  %2917 = vmatpush.bf16.msra.mxu3 %v2908_v54  ;;  %v2153_v20 = vld [vmem:[%s10458_s30 + $0x22] sm:$0xff]  ;;  %v2154_v56 = vld [vmem:[%s10458_s30 + $0x2a] sm:$0xff]  ;;  %v1986_v54 = vld [vmem:[%s10458_s30 + $0x38] sm:$0xff] }
 0x1d6   : > { %v1666_v58 = vld [vmem:[%s10458_s30 + $0x121] sm:$0xff] }
 0x1d9   : > { %v1401_v9 = vpop.f32.mrf.mxu2 }
 0x1da   : > { %v1454_v51 = vadd.f32 %v1401_v9, %v11010_v28  ;;  %v1571_v25 = vpop.f32.mrf.mxu3  ;;  %v1734_v57 = vpop.f32.mrf.mxu0  ;;  %v2007_v9 = vpack.c.bf16 %v1984_v18, %v1983_v37  ;;  %v2156_v37 = vld [vmem:[%s10458_s30 + $0x3a] sm:$0xff] }
 0x1db   : > { %v1791_v22 = vadd.f32 %v1734_v57, %v1621_v38  ;;  %v1904_v46 = vpop.f32.mrf.mxu1 }
 0x1dc   : > { %v1624_v33 = vadd.f32 %v1571_v25, %v1454_v51  ;;  %v2177_v25 = vpack.c.bf16 %v2154_v56, %v2153_v20 }
 0x1dd   : > { %v11218_v2 = vadd.f32 %v1904_v46, %v1791_v22  ;;  %9680 = vmatmul.msk.bf16.gmra.mxu0 %vm249_vm1, %v1676_v61 }
 0x1de   : > { %9656 = vmatmul.msk.bf16.gmra.mxu2 %vm249_vm1, %v1338_v13  ;;  %9693 = vmatmul.msk.bf16.gmra.mxu1 %vm249_vm1, %v11216_v3 }
 0x1df   : > { %9669 = vmatmul.msk.bf16.gmra.mxu3 %vm249_vm1, %v1508_v41 }
 0x1e1   : > { %v1404_v29 = vpop.f32.mrf.mxu2 }
 0x1e2   : > { %v1455_v28 = vadd.f32 %v1404_v29, %v11029_v31  ;;  %v1574_v55 = vpop.f32.mrf.mxu3  ;;  %v1736_v38 = vpop.f32.mrf.mxu0  ;;  %v2738_v31 = vsel %vm356_vm0, %v9748_v45, 0  ;;  %v1665_v45 = vld [vmem:[%s10458_s30 + $0x119] sm:$0xff] }
 0x1e3   : > { %v1792_v10 = vadd.f32 %v1736_v38, %v1622_v32  ;;  %v1906_v0 = vpop.f32.mrf.mxu1  ;;  %v1834_v32 = vld [vmem:[%s10458_s30 + $0xc6] sm:$0xff]  ;;  %2747 = vmatpush.bf16.msra.mxu2 %v2738_v31  ;;  %v1985_v31 = vld [vmem:[%s10458_s30 + $0x30] sm:$0xff]  ;;  %v1678_v20 = vpack.c.bf16 %v1666_v58, %v1665_v45 }
 0x1e4   : > { %v1625_v42 = vadd.f32 %v1574_v55, %v1455_v28  ;;  %v11245_v11 = vpack.c.bf16 %v1834_v32, %v1833_v35  ;;  %v1836_v35 = vld [vmem:[%s10458_s30 + $0xd6] sm:$0xff] }
 0x1e5   : > { %v11226_v49 = vadd.f32 %v1906_v0, %v1792_v10  ;;  %v2155_v32 = vld [vmem:[%s10458_s30 + $0x32] sm:$0xff] }
 0x1e9   : > { %v1406_v21 = vpop.f32.mrf.mxu2 }
 0x1ea   : > { %v1456_v62 = vadd.f32 %v1406_v21, %v11038_v7  ;;  %v1576_v63 = vpop.f32.mrf.mxu3  ;;  %v1739_v53 = vpop.f32.mrf.mxu0  ;;  %v3078_v7 = vsel %vm356_vm0, %v9774_v52, 0 }
 0x1eb   : > { %v1793_v61 = vadd.f32 %v1739_v53, %v1623_v14  ;;  %v1909_v51 = vpop.f32.mrf.mxu1  ;;  %v9787_v14 = vld [vmem:[%s14539_s1 + $0x44] sm:$0xf]  ;;  %3087 = vmatpush.bf16.msra.mxu0 %v3078_v7  ;;  %v2178_v53 = vpack.c.bf16 %v2156_v37, %v2155_v32 }
 0x1ec   : > { %v1626_v57 = vadd.f32 %v1576_v63, %v1456_v62  ;;  %v3248_v22 = vsel %vm356_vm0, %v9787_v14, 0 }
 0x1ed   : > { %v11247_v13 = vadd.f32 %v1909_v51, %v1793_v61  ;;  %9681 = vmatmul.msk.bf16.gmra.mxu0 %vm249_vm1, %v1677_v23  ;;  %3257 = vmatpush.bf16.msra.mxu1 %v3248_v22  ;;  %v11274_v23 = vpack.c.bf16 %v1836_v35, %v1835_v16 }
 0x1ee   : > { %9694 = vmatmul.msk.bf16.gmra.mxu1 %vm249_vm1, %v11245_v11  ;;  %9697 = vmatmul.msk.bf16.vlgmr.msrb.gmra.mxu2 %vm249_vm1, %v2007_v9 }
 0x1ef   : > { %9710 = vmatmul.msk.bf16.vlgmr.msrb.gmra.mxu3 %vm249_vm1, %v2177_v25 }
 0x1f1   : > { %v1409_v46 = vpop.f32.mrf.mxu2 }
 0x1f2   : > { %v1457_v41 = vadd.f32 %v1409_v46, %v11043_v48  ;;  %v1579_v29 = vpop.f32.mrf.mxu3  ;;  %v1741_v28 = vpop.f32.mrf.mxu0  ;;  %v1987_v46 = vld [vmem:[%s10458_s30 + $0x40] sm:$0xff] }
 0x1f3   : > { %v1794_v55 = vadd.f32 %v1741_v28, %v1624_v33  ;;  %v1911_v38 = vpop.f32.mrf.mxu1  ;;  %v2008_v33 = vpack.c.bf16 %v1986_v54, %v1985_v31  ;;  %v2494_v28 = vld [vmem:[%s10458_s30 + $0x5a] sm:$0xff] }
 0x1f4   : > { %v1627_v10 = vadd.f32 %v1579_v29, %v1457_v41  ;;  %v1988_v41 = vld [vmem:[%s10458_s30 + $0x48] sm:$0xff]  ;;  %v2493_v29 = vld [vmem:[%s10458_s30 + $0x52] sm:$0xff] }
 0x1f5   : > { %v11263_v0 = vadd.f32 %v1911_v38, %v1794_v55  ;;  %v2157_v55 = vld [vmem:[%s10458_s30 + $0x42] sm:$0xff]  ;;  %v2158_v38 = vld [vmem:[%s10458_s30 + $0x4a] sm:$0xff]  ;;  %v2009_v31 = vpack.c.bf16 %v1988_v41, %v1987_v46 }
 0x1f9   : > { %v1411_v18 = vpop.f32.mrf.mxu2 }
 0x1fa   : > { %v1458_v56 = vadd.f32 %v1411_v18, %v11053_v17  ;;  %v1581_v48 = vpop.f32.mrf.mxu3  ;;  %v1744_v21 = vpop.f32.mrf.mxu0 }
 0x1fb   : > { %v1795_v62 = vadd.f32 %v1744_v21, %v1625_v42  ;;  %v1914_v63 = vpop.f32.mrf.mxu1 }
 0x1fc   : > { %v1628_v9 = vadd.f32 %v1581_v48, %v1458_v56 }
 0x1fd   : > { %v11276_v61 = vadd.f32 %v1914_v63, %v1795_v62  ;;  %9682 = vmatmul.msk.bf16.gmra.mxu0 %vm249_vm1, %v1678_v20  ;;  %v1989_v63 = vld [vmem:[%s10458_s30 + $0x50] sm:$0xff] }
 0x1fe   : > { %9695 = vmatmul.msk.bf16.gmra.mxu1 %vm249_vm1, %v11274_v23  ;;  %9698 = vmatmul.msk.bf16.gmra.mxu2 %vm249_vm1, %v2008_v33 }
 0x1ff   : > { %9711 = vmatmul.msk.bf16.gmra.mxu3 %vm249_vm1, %v2178_v53  ;;  %v1990_v53 = vld [vmem:[%s10458_s30 + $0x58] sm:$0xff] }
 0x201   : > { %v1414_v17 = vpop.f32.mrf.mxu2 }
 0x202   : > { %v1459_v42 = vadd.f32 %v1414_v17, %v11058_v12  ;;  %v1584_v51 = vpop.f32.mrf.mxu3  ;;  %v1746_v25 = vpop.f32.mrf.mxu0  ;;  %v2517_v12 = vpack.c.bf16 %v2494_v28, %v2493_v29  ;;  %v2495_v17 = vld [vmem:[%s10458_s30 + $0x62] sm:$0xff] }
 0x203   : > { %v1796_v52 = vadd.f32 %v1746_v25, %v1626_v57  ;;  %v1916_v7 = vpop.f32.mrf.mxu1  ;;  %v2179_v57 = vpack.c.bf16 %v2158_v38, %v2157_v55 }
 0x204   : > { %v1629_v14 = vadd.f32 %v1584_v51, %v1459_v42 }
 0x205   : > { %v11284_v22 = vadd.f32 %v1916_v7, %v1796_v52  ;;  %v2010_v7 = vpack.c.bf16 %v1990_v53, %v1989_v63 }
 0x209   : > { %v1416_v45 = vpop.f32.mrf.mxu2 }
 0x20a   : > { %v1460_v58 = vadd.f32 %v1416_v45, %v11068_v5  ;;  %v1586_v16 = vpop.f32.mrf.mxu3  ;;  %v1749_v35 = vpop.f32.mrf.mxu0 }
 0x20b   : > { %v1797_v54 = vadd.f32 %v1749_v35, %v1627_v10  ;;  %v1919_v32 = vpop.f32.mrf.mxu1  ;;  %v1991_v35 = vld [vmem:[%s10458_s30 + $0x60] sm:$0xff] }
 0x20c   : > { %v1630_v37 = vadd.f32 %v1586_v16, %v1460_v58 }
 0x20d   : > { %v11293_v18 = vadd.f32 %v1919_v32, %v1797_v54  ;;  %9723 = vmatmul.msk.bf16.vlgmr.msrb.gmra.mxu0 %vm249_vm1, %v11094_v8  ;;  %v2496_v8 = vld [vmem:[%s10458_s30 + $0x6a] sm:$0xff]  ;;  %v2497_v54 = vld [vmem:[%s10458_s30 + $0x72] sm:$0xff] }
 0x20e   : > { %9699 = vmatmul.msk.bf16.gmra.mxu2 %vm249_vm1, %v2009_v31  ;;  %9736 = vmatmul.msk.bf16.vlgmr.msrb.gmra.mxu1 %vm249_vm1, %v2517_v12  ;;  %v2518_v46 = vpack.c.bf16 %v2496_v8, %v2495_v17  ;;  %v1992_v31 = vld [vmem:[%s10458_s30 + $0x68] sm:$0xff] }
 0x20f   : > { %9712 = vmatmul.msk.bf16.gmra.mxu3 %vm249_vm1, %v2179_v57 }
 0x211   : > { %v1419_v5 = vpop.f32.mrf.mxu2 }
 0x212   : > { %v1461_v10 = vadd.f32 %v1419_v5, %v11077_v26  ;;  %v1589_v20 = vpop.f32.mrf.mxu3  ;;  %v1751_v56 = vpop.f32.mrf.mxu0 }
 0x213   : > { %v1798_v48 = vadd.f32 %v1751_v56, %v1628_v9  ;;  %v1921_v21 = vpop.f32.mrf.mxu1 }
 0x214   : > { %v1631_v33 = vadd.f32 %v1589_v20, %v1461_v10 }
 0x215   : > { %v11301_v62 = vadd.f32 %v1921_v21, %v1798_v48 }
 0x219   : > { %v1421_v42 = vpop.f32.mrf.mxu2 }
 0x21a   : > { %v1462_v51 = vadd.f32 %v1421_v42, %v11085_v39  ;;  %v1591_v25 = vpop.f32.mrf.mxu3  ;;  %v1754_v52 = vpop.f32.mrf.mxu0 }
 0x21b   : > { %v1799_v41 = vadd.f32 %v1754_v52, %v1629_v14  ;;  %v1924_v26 = vpop.f32.mrf.mxu1  ;;  %v2499_v52 = vld [vmem:[%s10458_s30 + $0x82] sm:$0xff] }
 0x21c   : > { %v1632_v9 = vadd.f32 %v1591_v25, %v1462_v51  ;;  %v1993_v51 = vld [vmem:[%s10458_s30 + $0x70] sm:$0xff]  ;;  %v1994_v25 = vld [vmem:[%s10458_s30 + $0x78] sm:$0xff] }
 0x21d   : > { %v11308_v29 = vadd.f32 %v1924_v26, %v1799_v41  ;;  %9724 = vmatmul.msk.bf16.gmra.mxu0 %vm249_vm1, %v11114_v43  ;;  %v2498_v43 = vld [vmem:[%s10458_s30 + $0x7a] sm:$0xff] }
 0x21e   : > { %9700 = vmatmul.msk.bf16.gmra.mxu2 %vm249_vm1, %v2010_v7  ;;  %9737 = vmatmul.msk.bf16.gmra.mxu1 %vm249_vm1, %v2518_v46  ;;  %v2519_v20 = vpack.c.bf16 %v2498_v43, %v2497_v54 }
 0x21f   : > { %9713 = vmatmul.msk.bf16.gmra.mxu3 %vm249_vm1, %v2517_v12  ;;  %v2011_v12 = vpack.c.bf16 %v1992_v31, %v1991_v35 }
 0x221   : > { %v1424_v39 = vpop.f32.mrf.mxu2 }
 0x222   : > { %v1463_v14 = vadd.f32 %v1424_v39, %v11096_v40  ;;  %v1594_v28 = vpop.f32.mrf.mxu3  ;;  %v1756_v55 = vpop.f32.mrf.mxu0 }
 0x223   : > { %v1800_v38 = vadd.f32 %v1756_v55, %v1630_v37  ;;  %v1926_v45 = vpop.f32.mrf.mxu1 }
 0x224   : > { %v1633_v58 = vadd.f32 %v1594_v28, %v1463_v14 }
 0x225   : > { %v11316_v16 = vadd.f32 %v1926_v45, %v1800_v38 }
 0x229   : > { %v1426_v32 = vpop.f32.mrf.mxu2 }
 0x22a   : > { %v1464_v57 = vadd.f32 %v1426_v32, %v11105_v44  ;;  %v1596_v5 = vpop.f32.mrf.mxu3  ;;  %v1759_v10 = vpop.f32.mrf.mxu0  ;;  %v1995_v32 = vld [vmem:[%s10458_s30 + $0x80] sm:$0xff] }
 0x22b   : > { %v1801_v56 = vadd.f32 %v1759_v10, %v1631_v33  ;;  %v1929_v40 = vpop.f32.mrf.mxu1 }
 0x22c   : > { %v1634_v37 = vadd.f32 %v1596_v5, %v1464_v57  ;;  %v1996_v57 = vld [vmem:[%s10458_s30 + $0x88] sm:$0xff]  ;;  %v2502_v5 = vld [vmem:[%s10458_s30 + $0x9a] sm:$0xff] }
 0x22d   : > { %v11323_v48 = vadd.f32 %v1929_v40, %v1801_v56  ;;  %9725 = vmatmul.msk.bf16.gmra.mxu0 %vm249_vm1, %v11134_v36  ;;  %v2500_v36 = vld [vmem:[%s10458_s30 + $0x8a] sm:$0xff] }
 0x22e   : > { %9701 = vmatmul.msk.bf16.gmra.mxu2 %vm249_vm1, %v2011_v12  ;;  %9738 = vmatmul.msk.bf16.gmra.mxu1 %vm249_vm1, %v2519_v20  ;;  %v11338_v14 = vpack.c.bf16 %v2500_v36, %v2499_v52  ;;  %v1998_v36 = vld [vmem:[%s10458_s30 + $0x98] sm:$0xff] }
 0x22f   : > { %9714 = vmatmul.msk.bf16.gmra.mxu3 %vm249_vm1, %v2518_v46  ;;  %v2012_v46 = vpack.c.bf16 %v1994_v25, %v1993_v51 }
 0x231   : > { %v1429_v44 = vpop.f32.mrf.mxu2 }
 0x232   : > { %v1465_v21 = vadd.f32 %v1429_v44, %v11116_v24  ;;  %v1599_v33 = vpop.f32.mrf.mxu3  ;;  %v1761_v63 = vpop.f32.mrf.mxu0 }
 0x233   : > { %v1802_v53 = vadd.f32 %v1761_v63, %v1632_v9  ;;  %v1931_v17 = vpop.f32.mrf.mxu1 }
 0x234   : > { %v1635_v8 = vadd.f32 %v1599_v33, %v1465_v21 }
 0x235   : > { %v11331_v42 = vadd.f32 %v1931_v17, %v1802_v53 }
 0x239   : > { %v1431_v7 = vpop.f32.mrf.mxu2 }
 0x23a   : > { %v1466_v41 = vadd.f32 %v1431_v7, %v11125_v19  ;;  %v1601_v26 = vpop.f32.mrf.mxu3  ;;  %v1764_v39 = vpop.f32.mrf.mxu0  ;;  %v2503_v7 = vld [vmem:[%s10458_s30 + $0xa2] sm:$0xff] }
 0x23b   : > { %v1803_v24 = vadd.f32 %v1764_v39, %v1633_v58  ;;  %v1934_v28 = vpop.f32.mrf.mxu1 }
 0x23c   : > { %v1636_v9 = vadd.f32 %v1601_v26, %v1466_v41  ;;  %v2504_v41 = vld [vmem:[%s10458_s30 + $0xaa] sm:$0xff] }
 0x23d   : > { %v11340_v55 = vadd.f32 %v1934_v28, %v1803_v24  ;;  %9726 = vmatmul.msk.bf16.gmra.mxu0 %vm249_vm1, %v11154_v27  ;;  %v2501_v27 = vld [vmem:[%s10458_s30 + $0x92] sm:$0xff] }
 0x23e   : > { %9702 = vmatmul.msk.bf16.gmra.mxu2 %vm249_vm1, %v2012_v46  ;;  %9739 = vmatmul.msk.bf16.gmra.mxu1 %vm249_vm1, %v11338_v14  ;;  %v11358_v44 = vpack.c.bf16 %v2502_v5, %v2501_v27  ;;  %v2000_v5 = vld [vmem:[%s10458_s30 + $0xa8] sm:$0xff] }
 0x23f   : > { %9715 = vmatmul.msk.bf16.gmra.mxu3 %vm249_vm1, %v2519_v20  ;;  %v11356_v20 = vpack.c.bf16 %v1996_v57, %v1995_v32 }
 0x241   : > { %v1434_v19 = vpop.f32.mrf.mxu2 }
 0x242   : > { %v1467_v38 = vadd.f32 %v1434_v19, %v11136_v30  ;;  %v1604_v45 = vpop.f32.mrf.mxu3  ;;  %v1766_v58 = vpop.f32.mrf.mxu0  ;;  %v11380_v19 = vpack.c.bf16 %v2504_v41, %v2503_v7 }
 0x243   : > { %v1804_v35 = vadd.f32 %v1766_v58, %v1634_v37  ;;  %v1936_v31 = vpop.f32.mrf.mxu1 }
 0x244   : > { %v1637_v54 = vadd.f32 %v1604_v45, %v1467_v38 }
 0x245   : > { %v11349_v43 = vadd.f32 %v1936_v31, %v1804_v35 }
 0x249   : > { %v1436_v10 = vpop.f32.mrf.mxu2 }
 0x24a   : > { %v1468_v12 = vadd.f32 %v1436_v10, %v11145_v59  ;;  %v1606_v56 = vpop.f32.mrf.mxu3  ;;  %v1769_v40 = vpop.f32.mrf.mxu0  ;;  %v2505_v10 = vld [vmem:[%s10458_s30 + $0xb2] sm:$0xff] }
 0x24b   : > { %v1805_v30 = vadd.f32 %v1769_v40, %v1635_v8  ;;  %v1939_v37 = vpop.f32.mrf.mxu1 }
 0x24c   : > { %v1638_v21 = vadd.f32 %v1606_v56, %v1468_v12  ;;  %v2506_v12 = vld [vmem:[%s10458_s30 + $0xba] sm:$0xff] }
 0x24d   : > { %v11360_v33 = vadd.f32 %v1939_v37, %v1805_v30  ;;  %9727 = vmatmul.msk.bf16.gmra.mxu0 %vm249_vm1, %v11174_v34  ;;  %v1997_v34 = vld [vmem:[%s10458_s30 + $0x90] sm:$0xff] }
 0x24e   : > { %9703 = vmatmul.msk.bf16.gmra.mxu2 %vm249_vm1, %v11356_v20  ;;  %9740 = vmatmul.msk.bf16.gmra.mxu1 %vm249_vm1, %v11358_v44  ;;  %v11378_v28 = vpack.c.bf16 %v1998_v36, %v1997_v34 }
 0x24f   : > { %9716 = vmatmul.msk.bf16.gmra.mxu3 %vm249_vm1, %v11338_v14 }
 0x251   : > { %v1439_v59 = vpop.f32.mrf.mxu2 }
 0x252   : > { %v1469_v63 = vadd.f32 %v1439_v59, %v11156_v60  ;;  %v1609_v53 = vpop.f32.mrf.mxu3  ;;  %v1771_v17 = vpop.f32.mrf.mxu0 }
 0x253   : > { %v1806_v8 = vadd.f32 %v1771_v17, %v1636_v9  ;;  %v1941_v51 = vpop.f32.mrf.mxu1 }
 0x254   : > { %v1639_v25 = vadd.f32 %v1609_v53, %v1469_v63  ;;  %v11402_v63 = vpack.c.bf16 %v2506_v12, %v2505_v10 }
 0x255   : > { %v11371_v52 = vadd.f32 %v1941_v51, %v1806_v8 }
 0x259   : > { %v1441_v26 = vpop.f32.mrf.mxu2 }
 0x25a   : > { %v1470_v39 = vadd.f32 %v1441_v26, %v11165_v47  ;;  %v1611_v46 = vpop.f32.mrf.mxu3  ;;  %v1774_v24 = vpop.f32.mrf.mxu0  ;;  %v2002_v26 = vld [vmem:[%s10458_s30 + $0xb8] sm:$0xff] }
 0x25b   : > { %v1807_v60 = vadd.f32 %v1774_v24, %v1637_v54  ;;  %v1944_v9 = vpop.f32.mrf.mxu1 }
 0x25c   : > { %v1640_v38 = vadd.f32 %v1611_v46, %v1470_v39  ;;  %v2507_v39 = vld [vmem:[%s10458_s30 + $0xc2] sm:$0xff]  ;;  %v2508_v46 = vld [vmem:[%s10458_s30 + $0xca] sm:$0xff] }
 0x25d   : > { %v11382_v45 = vadd.f32 %v1944_v9, %v1807_v60  ;;  %9728 = vmatmul.msk.bf16.gmra.mxu0 %vm249_vm1, %v11194_v6  ;;  %v1999_v6 = vld [vmem:[%s10458_s30 + $0xa0] sm:$0xff] }
 0x25e   : > { %9704 = vmatmul.msk.bf16.gmra.mxu2 %vm249_vm1, %v11378_v28  ;;  %9741 = vmatmul.msk.bf16.gmra.mxu1 %vm249_vm1, %v11380_v19  ;;  %v11400_v59 = vpack.c.bf16 %v2000_v5, %v1999_v6 }
 0x25f   : > { %9717 = vmatmul.msk.bf16.gmra.mxu3 %vm249_vm1, %v11358_v44 }
 0x261   : > { %v1444_v47 = vpop.f32.mrf.mxu2 }
 0x262   : > { %v1471_v58 = vadd.f32 %v1444_v47, %v11176_v4  ;;  %v1614_v35 = vpop.f32.mrf.mxu3  ;;  %v1776_v31 = vpop.f32.mrf.mxu0 }
 0x263   : > { %v1808_v54 = vadd.f32 %v1776_v31, %v1638_v21  ;;  %v1946_v32 = vpop.f32.mrf.mxu1 }
 0x264   : > { %v1641_v57 = vadd.f32 %v1614_v35, %v1471_v58  ;;  %v11424_v35 = vpack.c.bf16 %v2508_v46, %v2507_v39 }
 0x265   : > { %v11393_v27 = vadd.f32 %v1946_v32, %v1808_v54 }
 0x269   : > { %v1446_v56 = vpop.f32.mrf.mxu2 }
 0x26a   : > { %v1472_v40 = vadd.f32 %v1446_v56, %v11185_v50  ;;  %v1616_v30 = vpop.f32.mrf.mxu3  ;;  %v1779_v37 = vpop.f32.mrf.mxu0 }
 0x26b   : > { %v1809_v4 = vadd.f32 %v1779_v37, %v1639_v25  ;;  %v1949_v21 = vpop.f32.mrf.mxu1  ;;  %v2510_v37 = vld [vmem:[%s10458_s30 + $0xda] sm:$0xff] }
 0x26c   : > { %v1642_v53 = vadd.f32 %v1616_v30, %v1472_v40  ;;  %v2004_v40 = vld [vmem:[%s10458_s30 + $0xc8] sm:$0xff]  ;;  %v2509_v30 = vld [vmem:[%s10458_s30 + $0xd2] sm:$0xff] }
 0x26d   : > { %v11404_v17 = vadd.f32 %v1949_v21, %v1809_v4  ;;  %9729 = vmatmul.msk.bf16.gmra.mxu0 %vm249_vm1, %v11216_v3  ;;  %v2001_v3 = vld [vmem:[%s10458_s30 + $0xb0] sm:$0xff] }
 0x26e   : > { %9705 = vmatmul.msk.bf16.gmra.mxu2 %vm249_vm1, %v11400_v59  ;;  %9742 = vmatmul.msk.bf16.gmra.mxu1 %vm249_vm1, %v11402_v63  ;;  %v11422_v58 = vpack.c.bf16 %v2002_v26, %v2001_v3 }
 0x26f   : > { %9718 = vmatmul.msk.bf16.gmra.mxu3 %vm249_vm1, %v11380_v19 }
 0x271   : > { %v2069_v50 = vpop.f32.mrf.mxu2 }
 0x272   : > { %v2129_v8 = vadd.f32 %v2069_v50, %v11196_v1  ;;  %v1781_v51 = vpop.f32.mrf.mxu0  ;;  %v2239_v25 = vpop.f32.mrf.mxu3 }
 0x273   : > { %v1810_v34 = vadd.f32 %v1781_v51, %v1640_v38  ;;  %v1951_v36 = vpop.f32.mrf.mxu1 }
 0x274   : > { %v2299_v7 = vadd.f32 %v2239_v25, %v2129_v8  ;;  %v11446_v25 = vpack.c.bf16 %v2510_v37, %v2509_v30 }
 0x275   : > { %v11415_v41 = vadd.f32 %v1951_v36, %v1810_v34 }
 0x279   : > { %v2071_v24 = vpop.f32.mrf.mxu2 }
 0x27a   : > { %v2130_v60 = vadd.f32 %v2071_v24, %v11205_v15  ;;  %v1784_v9 = vpop.f32.mrf.mxu0  ;;  %v2241_v47 = vpop.f32.mrf.mxu3 }
 0x27b   : > { %v1811_v1 = vadd.f32 %v1784_v9, %v1641_v57  ;;  %v1954_v38 = vpop.f32.mrf.mxu1  ;;  %v2341_v9 = vld [vmem:[%s10458_s30 + $0xde] sm:$0xff] }
 0x27c   : > { %v2300_v31 = vadd.f32 %v2241_v47, %v2130_v60  ;;  %v2005_v60 = vld [vmem:[%s10458_s30 + $0xd0] sm:$0xff]  ;;  %v2342_v47 = vld [vmem:[%s10458_s30 + $0xe6] sm:$0xff] }
 0x27d   : > { %v11426_v54 = vadd.f32 %v1954_v38, %v1811_v1  ;;  %9730 = vmatmul.msk.bf16.gmra.mxu0 %vm249_vm1, %v11245_v11  ;;  %v2003_v11 = vld [vmem:[%s10458_s30 + $0xc0] sm:$0xff]  ;;  %v2006_v1 = vld [vmem:[%s10458_s30 + $0xd8] sm:$0xff] }
 0x27e   : > { %9706 = vmatmul.msk.bf16.gmra.mxu2 %vm249_vm1, %v11422_v58  ;;  %9743 = vmatmul.msk.bf16.gmra.mxu1 %vm249_vm1, %v11424_v35  ;;  %v11444_v51 = vpack.c.bf16 %v2004_v40, %v2003_v11  ;;  %v2511_v38 = vld [vmem:[%s10458_s30 + $0xe2] sm:$0xff] }
 0x27f   : > { %9719 = vmatmul.msk.bf16.gmra.mxu3 %vm249_vm1, %v11402_v63 }
 0x281   : > { %v2074_v15 = vpop.f32.mrf.mxu2 }
 0x282   : > { %v2131_v32 = vadd.f32 %v2074_v15, %v11218_v2  ;;  %v1786_v57 = vpop.f32.mrf.mxu0  ;;  %v2244_v6 = vpop.f32.mrf.mxu3  ;;  %v2512_v15 = vld [vmem:[%s10458_s30 + $0xea] sm:$0xff] }
 0x283   : > { %v1812_v5 = vadd.f32 %v1786_v57, %v1642_v53  ;;  %v1956_v10 = vpop.f32.mrf.mxu1  ;;  %v11467_v57 = vpack.c.bf16 %v2342_v47, %v2341_v9  ;;  %v2664_v9 = vld [vmem:[%s10458_s30 + $0x86] sm:$0xff] }
 0x284   : > { %v2301_v12 = vadd.f32 %v2244_v6, %v2131_v32 }
 0x285   : > { %v11437_v56 = vadd.f32 %v1956_v10, %v1812_v5  ;;  %v11470_v10 = vpack.c.bf16 %v2006_v1, %v2005_v60  ;;  %v2663_v60 = vld [vmem:[%s10458_s30 + $0x7e] sm:$0xff] }
 0x289   : > { %v2076_v4 = vpop.f32.mrf.mxu2 }
 0x28a   : > { %v2132_v21 = vadd.f32 %v2076_v4, %v11226_v49  ;;  %v2246_v50 = vpop.f32.mrf.mxu3  ;;  %v2409_v8 = vpop.f32.mrf.mxu0 }
 0x28b   : > { %v2469_v2 = vadd.f32 %v2409_v8, %v2299_v7  ;;  %v2579_v53 = vpop.f32.mrf.mxu1 }
 0x28c   : > { %v2302_v34 = vadd.f32 %v2246_v50, %v2132_v21 }
 0x28d   : > { %v11448_v36 = vadd.f32 %v2579_v53, %v2469_v2  ;;  %9731 = vmatmul.msk.bf16.gmra.mxu0 %vm249_vm1, %v11274_v23 }
 0x28e   : > { %9707 = vmatmul.msk.bf16.gmra.mxu2 %vm249_vm1, %v11444_v51  ;;  %9744 = vmatmul.msk.bf16.gmra.mxu1 %vm249_vm1, %v11446_v25 }
 0x28f   : > { %9720 = vmatmul.msk.bf16.gmra.mxu3 %vm249_vm1, %v11424_v35 }
 0x291   : > { %v2079_v49 = vpop.f32.mrf.mxu2 }
 0x292   : > { %v2133_v7 = vadd.f32 %v2079_v49, %v11247_v13  ;;  %v2249_v3 = vpop.f32.mrf.mxu3  ;;  %v2411_v26 = vpop.f32.mrf.mxu0  ;;  %v9800_v49 = vld [vmem:[%s14539_s1 + $0x48] sm:$0xf] }
 0x293   : > { %v2470_v39 = vadd.f32 %v2411_v26, %v2300_v31  ;;  %v2581_v46 = vpop.f32.mrf.mxu1  ;;  %v11472_v31 = vpack.c.bf16 %v2512_v15, %v2511_v38  ;;  %v2344_v26 = vld [vmem:[%s10458_s30 + $0xf6] sm:$0xff] }
 0x294   : > { %v2303_v24 = vadd.f32 %v2249_v3, %v2133_v7  ;;  %v9813_v7 = vld [vmem:[%s14539_s1 + $0x4c] sm:$0xf] }
 0x295   : > { %v11459_v23 = vadd.f32 %v2581_v46, %v2470_v39  ;;  %v2343_v3 = vld [vmem:[%s10458_s30 + $0xee] sm:$0xff]  ;;  %v3588_v46 = vsel %vm356_vm0, %v9813_v7, 0 }
 0x296   : > { %v2513_v39 = vld [vmem:[%s10458_s30 + $0xf2] sm:$0xff]  ;;  %3597 = vmatpush.bf16.msrb.mxu3 %v3588_v46  ;;  %v11501_v1 = vpack.c.bf16 %v2344_v26, %v2343_v3  ;;  %v2515_v46 = vld [vmem:[%s10458_s30 + $0x102] sm:$0xff] }
 0x299   : > { %v2081_v32 = vpop.f32.mrf.mxu2 }
 0x29a   : > { %v2134_v6 = vadd.f32 %v2081_v32, %v11263_v0  ;;  %v2251_v5 = vpop.f32.mrf.mxu3  ;;  %v2414_v13 = vpop.f32.mrf.mxu0 }
 0x29b   : > { %v2471_v11 = vadd.f32 %v2414_v13, %v2301_v12  ;;  %v2584_v40 = vpop.f32.mrf.mxu1 }
 0x29c   : > { %v2304_v30 = vadd.f32 %v2251_v5, %v2134_v6  ;;  %v2687_v5 = vpack.c.bf16 %v2664_v9, %v2663_v60  ;;  %v2665_v60 = vld [vmem:[%s10458_s30 + $0x8e] sm:$0xff]  ;;  %v2666_v9 = vld [vmem:[%s10458_s30 + $0x96] sm:$0xff] }
 0x29d   : > { %v11474_v37 = vadd.f32 %v2584_v40, %v2471_v11  ;;  %9732 = vmatmul.msk.bf16.gmra.mxu0 %vm249_vm1, %v11467_v57 }
 0x29e   : > { %9708 = vmatmul.msk.bf16.gmra.mxu2 %vm249_vm1, %v11470_v10  ;;  %9745 = vmatmul.msk.bf16.gmra.mxu1 %vm249_vm1, %v11472_v31 }
 0x29f   : > { %9721 = vmatmul.msk.bf16.gmra.mxu3 %vm249_vm1, %v11446_v25 }
 0x2a1   : > { %v2084_v0 = vpop.f32.mrf.mxu2 }
 0x2a2   : > { %v2135_v12 = vadd.f32 %v2084_v0, %v11276_v61  ;;  %v2254_v4 = vpop.f32.mrf.mxu3  ;;  %v2416_v21 = vpop.f32.mrf.mxu0  ;;  %v3418_v61 = vsel %vm356_vm0, %v9800_v49, 0 }
 0x2a3   : > { %v2472_v50 = vadd.f32 %v2416_v21, %v2302_v34  ;;  %v2586_v8 = vpop.f32.mrf.mxu1  ;;  %v2514_v34 = vld [vmem:[%s10458_s30 + $0xfa] sm:$0xff]  ;;  %3427 = vmatpush.bf16.msrb.mxu2 %v3418_v61  ;;  %v2346_v61 = vld [vmem:[%s10458_s30 + $0x106] sm:$0xff] }
 0x2a4   : > { %v2305_v2 = vadd.f32 %v2254_v4, %v2135_v12  ;;  %v11504_v6 = vpack.c.bf16 %v2514_v34, %v2513_v39  ;;  %v9839_v12 = vld [vmem:[%s14539_s1 + $0x54] sm:$0xf]  ;;  %v2345_v39 = vld [vmem:[%s10458_s30 + $0xfe] sm:$0xff]  ;;  %v2516_v34 = vld [vmem:[%s10458_s30 + $0x10a] sm:$0xff] }
 0x2a5   : > { %v11485_v53 = vadd.f32 %v2586_v8, %v2472_v50  ;;  %v3928_v4 = vsel %vm356_vm0, %v9839_v12, 0 }
 0x2a6   : > { %3937 = vmatpush.bf16.msrb.mxu1 %v3928_v4 }
 0x2a9   : > { %v2086_v47 = vpop.f32.mrf.mxu2 }
 0x2aa   : > { %v2136_v38 = vadd.f32 %v2086_v47, %v11284_v22  ;;  %v2256_v15 = vpop.f32.mrf.mxu3  ;;  %v2419_v32 = vpop.f32.mrf.mxu0  ;;  %v9826_v22 = vld [vmem:[%s14539_s1 + $0x50] sm:$0xf] }
 0x2ab   : > { %v2473_v13 = vadd.f32 %v2419_v32, %v2303_v24  ;;  %v2589_v11 = vpop.f32.mrf.mxu1  ;;  %v3758_v24 = vsel %vm356_vm0, %v9826_v22, 0 }
 0x2ac   : > { %v2306_v40 = vadd.f32 %v2256_v15, %v2136_v38  ;;  %3767 = vmatpush.bf16.msrb.mxu0 %v3758_v24  ;;  %v11532_v38 = vpack.c.bf16 %v2346_v61, %v2345_v39  ;;  %v3173_v39 = vld [vmem:[%s10458_s30 + $0x5] sm:$0xff]  ;;  %v3174_v61 = vld [vmem:[%s10458_s30 + $0xd] sm:$0xff] }
 0x2ad   : > { %v11506_v0 = vadd.f32 %v2589_v11, %v2473_v13  ;;  %9733 = vmatmul.msk.bf16.gmra.mxu0 %vm249_vm1, %v11501_v1 }
 0x2ae   : > { %9746 = vmatmul.msk.bf16.gmra.mxu1 %vm249_vm1, %v11504_v6  ;;  %9749 = vmatmul.msk.bf16.vlgmr.msra.gmra.mxu2 %vm249_vm1, %v2687_v5  ;;  %v11535_v5 = vpack.c.bf16 %v2516_v34, %v2515_v46 }
 0x2af   : > { %9762 = vmatmul.msk.bf16.vlgmr.msra.gmra.mxu3 %vm249_vm1, %v11356_v20 }
 0x2b1   : > { %v2089_v21 = vpop.f32.mrf.mxu2 }
 0x2b2   : > { %v2137_v50 = vadd.f32 %v2089_v21, %v11293_v18  ;;  %v2259_v8 = vpop.f32.mrf.mxu3  ;;  %v2421_v49 = vpop.f32.mrf.mxu0 }
 0x2b3   : > { %v2474_v20 = vadd.f32 %v2421_v49, %v2304_v30  ;;  %v2591_v7 = vpop.f32.mrf.mxu1  ;;  %v2688_v30 = vpack.c.bf16 %v2666_v9, %v2665_v60 }
 0x2b4   : > { %v2307_v3 = vadd.f32 %v2259_v8, %v2137_v50 }
 0x2b5   : > { %v11524_v26 = vadd.f32 %v2591_v7, %v2474_v20  ;;  %v2667_v20 = vld [vmem:[%s10458_s30 + $0x9e] sm:$0xff]  ;;  %v2668_v7 = vld [vmem:[%s10458_s30 + $0xa6] sm:$0xff] }
 0x2b9   : > { %v2091_v47 = vpop.f32.mrf.mxu2 }
 0x2ba   : > { %v2138_v15 = vadd.f32 %v2091_v47, %v11301_v62  ;;  %v2261_v32 = vpop.f32.mrf.mxu3  ;;  %v2424_v18 = vpop.f32.mrf.mxu0  ;;  %v3197_v47 = vpack.c.bf16 %v3174_v61, %v3173_v39 }
 0x2bb   : > { %v2475_v13 = vadd.f32 %v2424_v18, %v2305_v2  ;;  %v2594_v11 = vpop.f32.mrf.mxu1 }
 0x2bc   : > { %v2308_v22 = vadd.f32 %v2261_v32, %v2138_v15 }
 0x2bd   : > { %v11537_v24 = vadd.f32 %v2594_v11, %v2475_v13  ;;  %9734 = vmatmul.msk.bf16.gmra.mxu0 %vm249_vm1, %v11532_v38 }
 0x2be   : > { %9747 = vmatmul.msk.bf16.gmra.mxu1 %vm249_vm1, %v11535_v5  ;;  %9750 = vmatmul.msk.bf16.gmra.mxu2 %vm249_vm1, %v2688_v30 }
 0x2bf   : > { %9763 = vmatmul.msk.bf16.gmra.mxu3 %vm249_vm1, %v11378_v28  ;;  %v2689_v28 = vpack.c.bf16 %v2668_v7, %v2667_v20 }
 0x2c1   : > { %v2094_v62 = vpop.f32.mrf.mxu2 }
 0x2c2   : > { %v2139_v2 = vadd.f32 %v2094_v62, %v11308_v29  ;;  %v2264_v12 = vpop.f32.mrf.mxu3  ;;  %v2426_v4 = vpop.f32.mrf.mxu0 }
 0x2c3   : > { %v2476_v21 = vadd.f32 %v2426_v4, %v2306_v40  ;;  %v2596_v50 = vpop.f32.mrf.mxu1  ;;  %v2670_v4 = vld [vmem:[%s10458_s30 + $0xb6] sm:$0xff] }
 0x2c4   : > { %v2309_v8 = vadd.f32 %v2264_v12, %v2139_v2  ;;  %v2669_v12 = vld [vmem:[%s10458_s30 + $0xae] sm:$0xff] }
 0x2c5   : > { %v11547_v49 = vadd.f32 %v2596_v50, %v2476_v21  ;;  %v3176_v21 = vld [vmem:[%s10458_s30 + $0x1d] sm:$0xff] }
 0x2c9   : > { %v2096_v46 = vpop.f32.mrf.mxu2 }
 0x2ca   : > { %v2140_v34 = vadd.f32 %v2096_v46, %v11316_v16  ;;  %v2266_v60 = vpop.f32.mrf.mxu3  ;;  %v2429_v9 = vpop.f32.mrf.mxu0 }
 0x2cb   : > { %v2477_v15 = vadd.f32 %v2429_v9, %v2307_v3  ;;  %v2599_v29 = vpop.f32.mrf.mxu1 }
 0x2cc   : > { %v2310_v40 = vadd.f32 %v2266_v60, %v2140_v34 }
 0x2cd   : > { %v11554_v32 = vadd.f32 %v2599_v29, %v2477_v15  ;;  %9775 = vmatmul.msk.bf16.vlgmr.msra.gmra.mxu0 %vm249_vm1, %v11338_v14  ;;  %v3175_v14 = vld [vmem:[%s10458_s30 + $0x15] sm:$0xff] }
 0x2ce   : > { %9751 = vmatmul.msk.bf16.gmra.mxu2 %vm249_vm1, %v2689_v28  ;;  %9788 = vmatmul.msk.bf16.vlgmr.msra.gmra.mxu1 %vm249_vm1, %v3197_v47  ;;  %v3198_v61 = vpack.c.bf16 %v3176_v21, %v3175_v14 }
 0x2cf   : > { %9764 = vmatmul.msk.bf16.gmra.mxu3 %vm249_vm1, %v11400_v59  ;;  %v2690_v59 = vpack.c.bf16 %v2670_v4, %v2669_v12 }
 0x2d1   : > { %v2099_v16 = vpop.f32.mrf.mxu2 }
 0x2d2   : > { %v2141_v3 = vadd.f32 %v2099_v16, %v11323_v48  ;;  %v2269_v18 = vpop.f32.mrf.mxu3  ;;  %v2431_v30 = vpop.f32.mrf.mxu0  ;;  %v2671_v16 = vld [vmem:[%s10458_s30 + $0xbe] sm:$0xff] }
 0x2d3   : > { %v2478_v13 = vadd.f32 %v2431_v30, %v2308_v22  ;;  %v2601_v11 = vpop.f32.mrf.mxu1 }
 0x2d4   : > { %v2311_v62 = vadd.f32 %v2269_v18, %v2141_v3  ;;  %v2672_v3 = vld [vmem:[%s10458_s30 + $0xc6] sm:$0xff] }
 0x2d5   : > { %v11563_v2 = vadd.f32 %v2601_v11, %v2478_v13  ;;  %v3178_v18 = vld [vmem:[%s10458_s30 + $0x2d] sm:$0xff] }
 0x2d9   : > { %v2101_v50 = vpop.f32.mrf.mxu2 }
 0x2da   : > { %v2142_v20 = vadd.f32 %v2101_v50, %v11331_v42  ;;  %v2271_v7 = vpop.f32.mrf.mxu3  ;;  %v2434_v39 = vpop.f32.mrf.mxu0 }
 0x2db   : > { %v2479_v46 = vadd.f32 %v2434_v39, %v2309_v8  ;;  %v2604_v48 = vpop.f32.mrf.mxu1 }
 0x2dc   : > { %v2312_v22 = vadd.f32 %v2271_v7, %v2142_v20 }
 0x2dd   : > { %v11570_v34 = vadd.f32 %v2604_v48, %v2479_v46  ;;  %9776 = vmatmul.msk.bf16.gmra.mxu0 %vm249_vm1, %v11358_v44  ;;  %v3177_v44 = vld [vmem:[%s10458_s30 + $0x25] sm:$0xff]  ;;  %v2673_v46 = vld [vmem:[%s10458_s30 + $0xce] sm:$0xff]  ;;  %v2674_v48 = vld [vmem:[%s10458_s30 + $0xd6] sm:$0xff] }
 0x2de   : > { %9752 = vmatmul.msk.bf16.gmra.mxu2 %vm249_vm1, %v2690_v59  ;;  %9789 = vmatmul.msk.bf16.gmra.mxu1 %vm249_vm1, %v3198_v61  ;;  %v3199_v4 = vpack.c.bf16 %v3178_v18, %v3177_v44 }
 0x2df   : > { %9765 = vmatmul.msk.bf16.gmra.mxu3 %vm249_vm1, %v11422_v58  ;;  %v2691_v58 = vpack.c.bf16 %v2672_v3, %v2671_v16 }
 0x2e1   : > { %v2104_v42 = vpop.f32.mrf.mxu2 }
 0x2e2   : > { %v2143_v8 = vadd.f32 %v2104_v42, %v11340_v55  ;;  %v2274_v60 = vpop.f32.mrf.mxu3  ;;  %v2436_v9 = vpop.f32.mrf.mxu0  ;;  %v3180_v42 = vld [vmem:[%s10458_s30 + $0x3d] sm:$0xff] }
 0x2e3   : > { %v2480_v28 = vadd.f32 %v2436_v9, %v2310_v40  ;;  %v2606_v47 = vpop.f32.mrf.mxu1 }
 0x2e4   : > { %v2313_v15 = vadd.f32 %v2274_v60, %v2143_v8 }
 0x2e5   : > { %v11579_v29 = vadd.f32 %v2606_v47, %v2480_v28 }
 0x2e9   : > { %v2106_v30 = vpop.f32.mrf.mxu2 }
 0x2ea   : > { %v2144_v13 = vadd.f32 %v2106_v30, %v11349_v43  ;;  %v2276_v11 = vpop.f32.mrf.mxu3  ;;  %v2439_v12 = vpop.f32.mrf.mxu0 }
 0x2eb   : > { %v2481_v14 = vadd.f32 %v2439_v12, %v2311_v62  ;;  %v2609_v55 = vpop.f32.mrf.mxu1 }
 0x2ec   : > { %v2314_v40 = vadd.f32 %v2276_v11, %v2144_v13 }
 0x2ed   : > { %v11586_v21 = vadd.f32 %v2609_v55, %v2481_v14  ;;  %9777 = vmatmul.msk.bf16.gmra.mxu0 %vm249_vm1, %v11380_v19  ;;  %v3179_v19 = vld [vmem:[%s10458_s30 + $0x35] sm:$0xff]  ;;  %v2846_v14 = vld [vmem:[%s10458_s30 + $0xe8] sm:$0xff] }
 0x2ee   : > { %9753 = vmatmul.msk.bf16.gmra.mxu2 %vm249_vm1, %v2691_v58  ;;  %9790 = vmatmul.msk.bf16.gmra.mxu1 %vm249_vm1, %v3199_v4  ;;  %v3200_v47 = vpack.c.bf16 %v3180_v42, %v3179_v19  ;;  %v3181_v58 = vld [vmem:[%s10458_s30 + $0x45] sm:$0xff]  ;;  %v11615_v4 = vld [vmem:[%s10458_s30 + $0x4d] sm:$0xff] }
 0x2ef   : > { %9766 = vmatmul.msk.bf16.gmra.mxu3 %vm249_vm1, %v11444_v51  ;;  %v2692_v51 = vpack.c.bf16 %v2674_v48, %v2673_v46 }
 0x2f1   : > { %v2109_v43 = vpop.f32.mrf.mxu2 }
 0x2f2   : > { %v2145_v62 = vadd.f32 %v2109_v43, %v11360_v33  ;;  %v2279_v50 = vpop.f32.mrf.mxu3  ;;  %v2441_v20 = vpop.f32.mrf.mxu0 }
 0x2f3   : > { %v2482_v7 = vadd.f32 %v2441_v20, %v2312_v22  ;;  %v2611_v39 = vpop.f32.mrf.mxu1 }
 0x2f4   : > { %v2315_v59 = vadd.f32 %v2279_v50, %v2145_v62  ;;  %v3201_v50 = vpack.c.bf16 %v11615_v4, %v3181_v58 }
 0x2f5   : > { %v11595_v61 = vadd.f32 %v2611_v39, %v2482_v7 }
 0x2f9   : > { %v2111_v8 = vpop.f32.mrf.mxu2 }
 0x2fa   : > { %v2146_v60 = vadd.f32 %v2111_v8, %v11371_v52  ;;  %v2281_v9 = vpop.f32.mrf.mxu3  ;;  %v2444_v28 = vpop.f32.mrf.mxu0 }
 0x2fb   : > { %v2483_v16 = vadd.f32 %v2444_v28, %v2313_v15  ;;  %v2614_v33 = vpop.f32.mrf.mxu1  ;;  %v2847_v28 = vld [vmem:[%s10458_s30 + $0xf0] sm:$0xff] }
 0x2fc   : > { %v2316_v22 = vadd.f32 %v2281_v9, %v2146_v60  ;;  %v11633_v9 = vld [vmem:[%s10458_s30 + $0x55] sm:$0xff] }
 0x2fd   : > { %v11602_v3 = vadd.f32 %v2614_v33, %v2483_v16  ;;  %9778 = vmatmul.msk.bf16.gmra.mxu0 %vm249_vm1, %v11402_v63  ;;  %v2845_v63 = vld [vmem:[%s10458_s30 + $0xe0] sm:$0xff] }
 0x2fe   : > { %9754 = vmatmul.msk.bf16.gmra.mxu2 %vm249_vm1, %v2692_v51  ;;  %9791 = vmatmul.msk.bf16.gmra.mxu1 %vm249_vm1, %v3200_v47 }
 0x2ff   : > { %9767 = vmatmul.msk.bf16.gmra.mxu3 %vm249_vm1, %v11470_v10 }
 0x301   : > { %v2114_v52 = vpop.f32.mrf.mxu2 }
 0x302   : > { %v2147_v15 = vadd.f32 %v2114_v52, %v11382_v45  ;;  %v2284_v44 = vpop.f32.mrf.mxu3  ;;  %v2446_v18 = vpop.f32.mrf.mxu0 }
 0x303   : > { %v2484_v30 = vadd.f32 %v2446_v18, %v2314_v40  ;;  %v2616_v13 = vpop.f32.mrf.mxu1  ;;  %v2863_v40 = vpack.c.bf16 %v2846_v14, %v2845_v63 }
 0x304   : > { %v2317_v11 = vadd.f32 %v2284_v44, %v2147_v15 }
 0x305   : > { %v11611_v12 = vadd.f32 %v2616_v13, %v2484_v30 }
 0x309   : > { %v2116_v55 = vpop.f32.mrf.mxu2 }
 0x30a   : > { %v2148_v43 = vadd.f32 %v2116_v55, %v11393_v27  ;;  %v2286_v62 = vpop.f32.mrf.mxu3  ;;  %v2449_v10 = vpop.f32.mrf.mxu0 }
 0x30b   : > { %v2485_v45 = vadd.f32 %v2449_v10, %v2315_v59  ;;  %v2619_v20 = vpop.f32.mrf.mxu1 }
 0x30c   : > { %v2318_v7 = vadd.f32 %v2286_v62, %v2148_v43  ;;  %v11655_v43 = vld [vmem:[%s10458_s30 + $0x65] sm:$0xff] }
 0x30d   : > { %v11621_v39 = vadd.f32 %v2619_v20, %v2485_v45  ;;  %9779 = vmatmul.msk.bf16.gmra.mxu0 %vm249_vm1, %v11424_v35  ;;  %v11636_v35 = vld [vmem:[%s10458_s30 + $0x5d] sm:$0xff] }
 0x30e   : > { %9755 = vmatmul.msk.bf16.gmra.mxu2 %vm249_vm1, %v11467_v57  ;;  %9792 = vmatmul.msk.bf16.gmra.mxu1 %vm249_vm1, %v3201_v50  ;;  %v2848_v57 = vld [vmem:[%s10458_s30 + $0xf8] sm:$0xff]  ;;  %v2849_v62 = vld [vmem:[%s10458_s30 + $0x100] sm:$0xff] }
 0x30f   : > { %9768 = vmatmul.msk.bf16.gmra.mxu3 %vm249_vm1, %v2863_v40  ;;  %v2864_v15 = vpack.c.bf16 %v2848_v57, %v2847_v28 }
 0x311   : > { %v2119_v27 = vpop.f32.mrf.mxu2 }
 0x312   : > { %v2149_v59 = vadd.f32 %v2119_v27, %v11404_v17  ;;  %v2289_v46 = vpop.f32.mrf.mxu3  ;;  %v2451_v48 = vpop.f32.mrf.mxu0  ;;  %v3202_v17 = vpack.c.bf16 %v11636_v35, %v11633_v9 }
 0x313   : > { %v2486_v19 = vadd.f32 %v2451_v48, %v2316_v22  ;;  %v2621_v42 = vpop.f32.mrf.mxu1 }
 0x314   : > { %v2319_v8 = vadd.f32 %v2289_v46, %v2149_v59 }
 0x315   : > { %v11630_v60 = vadd.f32 %v2621_v42, %v2486_v19 }
 0x319   : > { %v2121_v51 = vpop.f32.mrf.mxu2 }
 0x31a   : > { %v2150_v47 = vadd.f32 %v2121_v51, %v11415_v41  ;;  %v2291_v16 = vpop.f32.mrf.mxu3  ;;  %v2454_v33 = vpop.f32.mrf.mxu0 }
 0x31b   : > { %v2487_v52 = vadd.f32 %v2454_v33, %v2317_v11  ;;  %v2624_v22 = vpop.f32.mrf.mxu1  ;;  %v2851_v33 = vld [vmem:[%s10458_s30 + $0x110] sm:$0xff] }
 0x31c   : > { %v2320_v44 = vadd.f32 %v2291_v16, %v2150_v47  ;;  %v2682_v47 = vld [vmem:[%s10458_s30 + $0x116] sm:$0xff] }
 0x31d   : > { %v11643_v18 = vadd.f32 %v2624_v22, %v2487_v52  ;;  %9780 = vmatmul.msk.bf16.gmra.mxu0 %vm249_vm1, %v11446_v25  ;;  %v11658_v25 = vld [vmem:[%s10458_s30 + $0x6d] sm:$0xff]  ;;  %v11679_v16 = vld [vmem:[%s10458_s30 + $0x75] sm:$0xff] }
 0x31e   : > { %9756 = vmatmul.msk.bf16.gmra.mxu2 %vm249_vm1, %v11501_v1  ;;  %9793 = vmatmul.msk.bf16.gmra.mxu1 %vm249_vm1, %v3202_v17  ;;  %v2850_v1 = vld [vmem:[%s10458_s30 + $0x108] sm:$0xff]  ;;  %v2852_v17 = vld [vmem:[%s10458_s30 + $0x118] sm:$0xff] }
 0x31f   : > { %9769 = vmatmul.msk.bf16.gmra.mxu3 %vm249_vm1, %v2864_v15  ;;  %v2865_v27 = vpack.c.bf16 %v2850_v1, %v2849_v62 }
 0x321   : > { %v2124_v41 = vpop.f32.mrf.mxu2 }
 0x322   : > { %v2151_v30 = vadd.f32 %v2124_v41, %v11426_v54  ;;  %v2294_v13 = vpop.f32.mrf.mxu3  ;;  %v2456_v11 = vpop.f32.mrf.mxu0  ;;  %v3203_v54 = vpack.c.bf16 %v11658_v25, %v11655_v43 }
 0x323   : > { %v2488_v58 = vadd.f32 %v2456_v11, %v2318_v7  ;;  %v2626_v63 = vpop.f32.mrf.mxu1  ;;  %v2866_v11 = vpack.c.bf16 %v2852_v17, %v2851_v33 }
 0x324   : > { %v2321_v14 = vadd.f32 %v2294_v13, %v2151_v30 }
 0x325   : > { %v11652_v55 = vadd.f32 %v2626_v63, %v2488_v58 }
 0x329   : > { %v2126_v10 = vpop.f32.mrf.mxu2 }
 0x32a   : > { %v2152_v50 = vadd.f32 %v2126_v10, %v11437_v56  ;;  %v2296_v45 = vpop.f32.mrf.mxu3  ;;  %v2459_v20 = vpop.f32.mrf.mxu0 }
 0x32b   : > { %v2489_v40 = vadd.f32 %v2459_v20, %v2319_v8  ;;  %v2629_v7 = vpop.f32.mrf.mxu1 }
 0x32c   : > { %v2322_v59 = vadd.f32 %v2296_v45, %v2152_v50 }
 0x32d   : > { %v11665_v46 = vadd.f32 %v2629_v7, %v2489_v40  ;;  %9781 = vmatmul.msk.bf16.gmra.mxu0 %vm249_vm1, %v11472_v31  ;;  %v2681_v31 = vld [vmem:[%s10458_s30 + $0x10e] sm:$0xff]  ;;  %v11702_v40 = vld [vmem:[%s10458_s30 + $0x85] sm:$0xff] }
 0x32e   : > { %9757 = vmatmul.msk.bf16.gmra.mxu2 %vm249_vm1, %v11532_v38  ;;  %9794 = vmatmul.msk.bf16.gmra.mxu1 %vm249_vm1, %v3203_v54  ;;  %v11682_v38 = vld [vmem:[%s10458_s30 + $0x7d] sm:$0xff]  ;;  %v2696_v41 = vpack.c.bf16 %v2682_v47, %v2681_v31  ;;  %v11705_v7 = vld [vmem:[%s10458_s30 + $0x8d] sm:$0xff] }
 0x32f   : > { %9770 = vmatmul.msk.bf16.gmra.mxu3 %vm249_vm1, %v2865_v27  ;;  %v2683_v54 = vld [vmem:[%s10458_s30 + $0x11e] sm:$0xff] }
 0x330   : > { %v2853_v27 = vld [vmem:[%s10458_s30 + $0x120] sm:$0xff] }
 0x331   : > { %v2749_v56 = vpop.f32.mrf.mxu2 }
 0x332   : > { %v2809_v48 = vadd.f32 %v2749_v56, %v11448_v36  ;;  %v2461_v19 = vpop.f32.mrf.mxu0  ;;  %v2919_v42 = vpop.f32.mrf.mxu3  ;;  %v2854_v56 = vld [vmem:[%s10458_s30 + $0x128] sm:$0xff] }
 0x333   : > { %v2490_v8 = vadd.f32 %v2461_v19, %v2320_v44  ;;  %v2631_v28 = vpop.f32.mrf.mxu1  ;;  %v3204_v44 = vpack.c.bf16 %v11682_v38, %v11679_v16  ;;  %v2867_v47 = vpack.c.bf16 %v2854_v56, %v2853_v27 }
 0x334   : > { %v2979_v57 = vadd.f32 %v2919_v42, %v2809_v48 }
 0x335   : > { %v11674_v51 = vadd.f32 %v2631_v28, %v2490_v8 }
 0x339   : > { %v2751_v52 = vpop.f32.mrf.mxu2 }
 0x33a   : > { %v2810_v22 = vadd.f32 %v2751_v52, %v11459_v23  ;;  %v2464_v15 = vpop.f32.mrf.mxu0  ;;  %v2921_v36 = vpop.f32.mrf.mxu3 }
 0x33b   : > { %v2491_v30 = vadd.f32 %v2464_v15, %v2321_v14  ;;  %v2634_v13 = vpop.f32.mrf.mxu1 }
 0x33c   : > { %v2980_v58 = vadd.f32 %v2921_v36, %v2810_v22 }
 0x33d   : > { %v11689_v63 = vadd.f32 %v2634_v13, %v2491_v30  ;;  %9782 = vmatmul.msk.bf16.gmra.mxu0 %vm249_vm1, %v11504_v6  ;;  %v2684_v6 = vld [vmem:[%s10458_s30 + $0x126] sm:$0xff]  ;;  %v3021_v30 = vld [vmem:[%s10458_s30 + $0x112] sm:$0xff]  ;;  %v3022_v13 = vld [vmem:[%s10458_s30 + $0x11a] sm:$0xff] }
 0x33e   : > { %9758 = vmatmul.msk.bf16.gmra.mxu2 %vm249_vm1, %v2696_v41  ;;  %9795 = vmatmul.msk.bf16.gmra.mxu1 %vm249_vm1, %v3204_v44  ;;  %v2697_v8 = vpack.c.bf16 %v2684_v6, %v2683_v54 }
 0x33f   : > { %9771 = vmatmul.msk.bf16.gmra.mxu3 %vm249_vm1, %v2866_v11  ;;  %v2686_v11 = vld [vmem:[%s10458_s30 + $0x136] sm:$0xff] }
 0x341   : > { %v2754_v23 = vpop.f32.mrf.mxu2 }
 0x342   : > { %v2811_v14 = vadd.f32 %v2754_v23, %v11474_v37  ;;  %v2466_v62 = vpop.f32.mrf.mxu0  ;;  %v2924_v1 = vpop.f32.mrf.mxu3  ;;  %v11727_v23 = vld [vmem:[%s10458_s30 + $0x95] sm:$0xff] }
 0x343   : > { %v2492_v10 = vadd.f32 %v2466_v62, %v2322_v59  ;;  %v2636_v50 = vpop.f32.mrf.mxu1  ;;  %v3205_v59 = vpack.c.bf16 %v11705_v7, %v11702_v40  ;;  %v2855_v62 = vld [vmem:[%s10458_s30 + $0x130] sm:$0xff] }
 0x344   : > { %v2981_v45 = vadd.f32 %v2924_v1, %v2811_v14  ;;  %v11730_v14 = vld [vmem:[%s10458_s30 + $0x9d] sm:$0xff] }
 0x345   : > { %v11697_v20 = vadd.f32 %v2636_v50, %v2492_v10  ;;  %v2856_v1 = vld [vmem:[%s10458_s30 + $0x138] sm:$0xff]  ;;  %v3036_v50 = vpack.c.bf16 %v3022_v13, %v3021_v30  ;;  %v11737_v27 = vpack.c.bf16 %v11730_v14, %v11727_v23  ;;  %v3343_v30 = vld [vmem:[%s10458_s30 + $0x8] sm:$0xff]  ;;  %v3344_v13 = vld [vmem:[%s10458_s30 + $0x10] sm:$0xff] }
 0x349   : > { %v2756_v48 = vpop.f32.mrf.mxu2 }
 0x34a   : > { %v2812_v19 = vadd.f32 %v2756_v48, %v11485_v53  ;;  %v2926_v42 = vpop.f32.mrf.mxu3  ;;  %v3089_v37 = vpop.f32.mrf.mxu0 }
 0x34b   : > { %v3149_v28 = vadd.f32 %v3089_v37, %v2979_v57  ;;  %v3259_v31 = vpop.f32.mrf.mxu1 }
 0x34c   : > { %v2982_v33 = vadd.f32 %v2926_v42, %v2812_v19  ;;  %v2868_v19 = vpack.c.bf16 %v2856_v1, %v2855_v62  ;;  %v3514_v62 = vld [vmem:[%s10458_s30 + $0x13] sm:$0xff] }
 0x34d   : > { %v11712_v17 = vadd.f32 %v3259_v31, %v3149_v28  ;;  %9783 = vmatmul.msk.bf16.gmra.mxu0 %vm249_vm1, %v11535_v5  ;;  %v2685_v5 = vld [vmem:[%s10458_s30 + $0x12e] sm:$0xff] }
 0x34e   : > { %9759 = vmatmul.msk.bf16.gmra.mxu2 %vm249_vm1, %v2697_v8  ;;  %9796 = vmatmul.msk.bf16.gmra.mxu1 %vm249_vm1, %v3205_v59  ;;  %v2698_v6 = vpack.c.bf16 %v2686_v11, %v2685_v5  ;;  %v11763_v5 = vld [vmem:[%s10458_s30 + $0xad] sm:$0xff] }
 0x34f   : > { %9772 = vmatmul.msk.bf16.gmra.mxu3 %vm249_vm1, %v2867_v47  ;;  %v3513_v11 = vld [vmem:[%s10458_s30 + $0xb] sm:$0xff] }
 0x351   : > { %v2759_v53 = vpop.f32.mrf.mxu2 }
 0x352   : > { %v2813_v57 = vadd.f32 %v2759_v53, %v11506_v0  ;;  %v2929_v52 = vpop.f32.mrf.mxu3  ;;  %v3091_v22 = vpop.f32.mrf.mxu0 }
 0x353   : > { %v3150_v15 = vadd.f32 %v3091_v22, %v2980_v58  ;;  %v3261_v36 = vpop.f32.mrf.mxu1  ;;  %v3023_v22 = vld [vmem:[%s10458_s30 + $0x122] sm:$0xff] }
 0x354   : > { %v2983_v41 = vadd.f32 %v2929_v52, %v2813_v57  ;;  %v9852_v57 = vld [vmem:[%s14539_s1 + $0x58] sm:$0xf]  ;;  %v9865_v52 = vld [vmem:[%s14539_s1 + $0x5c] sm:$0xf] }
 0x355   : > { %v11720_v44 = vadd.f32 %v3261_v36, %v3150_v15  ;;  %v11758_v15 = vld [vmem:[%s10458_s30 + $0xa5] sm:$0xff]  ;;  %v4268_v36 = vsel %vm356_vm0, %v9865_v52, 0 }
 0x356   : > { %4277 = vmatpush.bf16.msra.mxu3 %v4268_v36 }
 0x359   : > { %v2761_v10 = vpop.f32.mrf.mxu2 }
 0x35a   : > { %v2814_v0 = vadd.f32 %v2761_v10, %v11524_v26  ;;  %v2931_v54 = vpop.f32.mrf.mxu3  ;;  %v3094_v58 = vpop.f32.mrf.mxu0 }
 0x35b   : > { %v3151_v56 = vadd.f32 %v3094_v58, %v2981_v45  ;;  %v3264_v48 = vpop.f32.mrf.mxu1  ;;  %v11772_v58 = vpack.c.bf16 %v11763_v5, %v11758_v15 }
 0x35c   : > { %v2984_v42 = vadd.f32 %v2931_v54, %v2814_v0 }
 0x35d   : > { %v11739_v37 = vadd.f32 %v3264_v48, %v3151_v56  ;;  %9784 = vmatmul.msk.bf16.gmra.mxu0 %vm249_vm1, %v3036_v50 }
 0x35e   : > { %9760 = vmatmul.msk.bf16.gmra.mxu2 %vm249_vm1, %v2698_v6  ;;  %9797 = vmatmul.msk.bf16.gmra.mxu1 %vm249_vm1, %v11737_v27  ;;  %v3367_v6 = vpack.c.bf16 %v3344_v13, %v3343_v30  ;;  %v3025_v30 = vld [vmem:[%s10458_s30 + $0x132] sm:$0xff]  ;;  %v3026_v13 = vld [vmem:[%s10458_s30 + $0x13a] sm:$0xff] }
 0x35f   : > { %9773 = vmatmul.msk.bf16.gmra.mxu3 %vm249_vm1, %v2868_v19  ;;  %v3537_v19 = vpack.c.bf16 %v3514_v62, %v3513_v11  ;;  %v11795_v11 = vld [vmem:[%s10458_s30 + $0xb5] sm:$0xff]  ;;  %v11798_v62 = vld [vmem:[%s10458_s30 + $0xbd] sm:$0xff] }
 0x361   : > { %v2764_v26 = vpop.f32.mrf.mxu2 }
 0x362   : > { %v2815_v45 = vadd.f32 %v2764_v26, %v11537_v24  ;;  %v2934_v8 = vpop.f32.mrf.mxu3  ;;  %v3096_v59 = vpop.f32.mrf.mxu0  ;;  %v3024_v24 = vld [vmem:[%s10458_s30 + $0x12a] sm:$0xff] }
 0x363   : > { %v3152_v28 = vadd.f32 %v3096_v59, %v2982_v33  ;;  %v3266_v31 = vpop.f32.mrf.mxu1  ;;  %v4098_v33 = vsel %vm356_vm0, %v9852_v57, 0  ;;  %v3037_v10 = vpack.c.bf16 %v3024_v24, %v3023_v22 }
 0x364   : > { %v2985_v47 = vadd.f32 %v2934_v8, %v2815_v45  ;;  %4107 = vmatpush.bf16.msra.mxu2 %v4098_v33  ;;  %v4930_v8 = vld [vmem:[%s14539_s1] sm:$0xf] }
 0x365   : > { %v11747_v53 = vadd.f32 %v3266_v31, %v3152_v28  ;;  %v4968_v59 = vsel %vm356_vm0, %v4930_v8, 0 }
 0x366   : > { %4977 = vmatpush.bf16.msra.mxu1 %v4968_v59 }
 0x369   : > { %v2766_v1 = vpop.f32.mrf.mxu2 }
 0x36a   : > { %v2816_v50 = vadd.f32 %v2766_v1, %v11547_v49  ;;  %v2936_v0 = vpop.f32.mrf.mxu3  ;;  %v3099_v54 = vpop.f32.mrf.mxu0  ;;  %v9878_v49 = vld [vmem:[%s14539_s1 + $0x60] sm:$0xf]  ;;  %v3345_v1 = vld [vmem:[%s10458_s30 + $0x18] sm:$0xff] }
 0x36b   : > { %v3153_v56 = vadd.f32 %v3099_v54, %v2983_v41  ;;  %v3269_v48 = vpop.f32.mrf.mxu1  ;;  %v4438_v41 = vsel %vm356_vm0, %v9878_v49, 0 }
 0x36c   : > { %v2986_v26 = vadd.f32 %v2936_v0, %v2816_v50  ;;  %4447 = vmatpush.bf16.msra.mxu0 %v4438_v41  ;;  %v3515_v50 = vld [vmem:[%s10458_s30 + $0x1b] sm:$0xff]  ;;  %v3516_v0 = vld [vmem:[%s10458_s30 + $0x23] sm:$0xff] }
 0x36d   : > { %v11774_v45 = vadd.f32 %v3269_v48, %v3153_v56  ;;  %9785 = vmatmul.msk.bf16.gmra.mxu0 %vm249_vm1, %v3037_v10  ;;  %v3346_v10 = vld [vmem:[%s10458_s30 + $0x20] sm:$0xff]  ;;  %v11807_v48 = vpack.c.bf16 %v11798_v62, %v11795_v11  ;;  %v3538_v8 = vpack.c.bf16 %v3516_v0, %v3515_v50  ;;  %v3517_v0 = vld [vmem:[%s10458_s30 + $0x2b] sm:$0xff] }
 0x36e   : > { %9798 = vmatmul.msk.bf16.gmra.mxu1 %vm249_vm1, %v11772_v58  ;;  %9801 = vmatmul.msk.bf16.vlgmr.msrb.gmra.mxu2 %vm249_vm1, %v3367_v6  ;;  %v3038_v6 = vpack.c.bf16 %v3026_v13, %v3025_v30  ;;  %v3347_v13 = vld [vmem:[%s10458_s30 + $0x28] sm:$0xff]  ;;  %v11825_v50 = vld [vmem:[%s10458_s30 + $0x5b] sm:$0xff] }
 0x36f   : > { %9814 = vmatmul.msk.bf16.vlgmr.msrb.gmra.mxu3 %vm249_vm1, %v3537_v19  ;;  %v3368_v19 = vpack.c.bf16 %v3346_v10, %v3345_v1  ;;  %v3348_v1 = vld [vmem:[%s10458_s30 + $0x30] sm:$0xff] }
 0x370   : > { %v11822_v10 = vld [vmem:[%s10458_s30 + $0x53] sm:$0xff] }
 0x371   : > { %v2769_v28 = vpop.f32.mrf.mxu2 }
 0x372   : > { %v2817_v31 = vadd.f32 %v2769_v28, %v11554_v32  ;;  %v2939_v57 = vpop.f32.mrf.mxu3  ;;  %v3101_v52 = vpop.f32.mrf.mxu0 }
 0x373   : > { %v3154_v22 = vadd.f32 %v3101_v52, %v2984_v42  ;;  %v3271_v24 = vpop.f32.mrf.mxu1 }
 0x374   : > { %v2987_v33 = vadd.f32 %v2939_v57, %v2817_v31 }
 0x375   : > { %v11790_v36 = vadd.f32 %v3271_v24, %v3154_v22 }
 0x379   : > { %v2771_v54 = vpop.f32.mrf.mxu2 }
 0x37a   : > { %v2818_v32 = vadd.f32 %v2771_v54, %v11563_v2  ;;  %v2941_v56 = vpop.f32.mrf.mxu3  ;;  %v3104_v42 = vpop.f32.mrf.mxu0  ;;  %v3518_v54 = vld [vmem:[%s10458_s30 + $0x33] sm:$0xff] }
 0x37b   : > { %v3155_v49 = vadd.f32 %v3104_v42, %v2985_v47  ;;  %v3274_v41 = vpop.f32.mrf.mxu1  ;;  %v3369_v42 = vpack.c.bf16 %v3348_v1, %v3347_v13  ;;  %v3349_v13 = vld [vmem:[%s10458_s30 + $0x38] sm:$0xff]  ;;  %v3350_v1 = vld [vmem:[%s10458_s30 + $0x40] sm:$0xff] }
 0x37c   : > { %v2988_v59 = vadd.f32 %v2941_v56, %v2818_v32  ;;  %v3707_v32 = vpack.c.bf16 %v11633_v9, %v11615_v4 }
 0x37d   : > { %v11809_v28 = vadd.f32 %v3274_v41, %v3155_v49  ;;  %9786 = vmatmul.msk.bf16.gmra.mxu0 %vm249_vm1, %v3038_v6 }
 0x37e   : > { %9799 = vmatmul.msk.bf16.gmra.mxu1 %vm249_vm1, %v11807_v48  ;;  %9802 = vmatmul.msk.bf16.gmra.mxu2 %vm249_vm1, %v3368_v19  ;;  %v3877_v19 = vpack.c.bf16 %v11825_v50, %v11822_v10 }
 0x37f   : > { %9815 = vmatmul.msk.bf16.gmra.mxu3 %vm249_vm1, %v3538_v8  ;;  %v3539_v8 = vpack.c.bf16 %v3518_v54, %v3517_v0  ;;  %v11846_v0 = vld [vmem:[%s10458_s30 + $0x63] sm:$0xff]  ;;  %v11849_v54 = vld [vmem:[%s10458_s30 + $0x6b] sm:$0xff] }
 0x381   : > { %v2774_v2 = vpop.f32.mrf.mxu2 }
 0x382   : > { %v2819_v47 = vadd.f32 %v2774_v2, %v11570_v34  ;;  %v2944_v31 = vpop.f32.mrf.mxu3  ;;  %v3106_v57 = vpop.f32.mrf.mxu0 }
 0x383   : > { %v3156_v52 = vadd.f32 %v3106_v57, %v2986_v26  ;;  %v3276_v22 = vpop.f32.mrf.mxu1 }
 0x384   : > { %v2989_v24 = vadd.f32 %v2944_v31, %v2819_v47 }
 0x385   : > { %v11817_v30 = vadd.f32 %v3276_v22, %v3156_v52 }
 0x389   : > { %v2776_v6 = vpop.f32.mrf.mxu2 }
 0x38a   : > { %v2820_v34 = vadd.f32 %v2776_v6, %v11579_v29  ;;  %v2946_v56 = vpop.f32.mrf.mxu3  ;;  %v3109_v26 = vpop.f32.mrf.mxu0  ;;  %v3519_v6 = vld [vmem:[%s10458_s30 + $0x3b] sm:$0xff] }
 0x38b   : > { %v3157_v49 = vadd.f32 %v3109_v26, %v2987_v33  ;;  %v3279_v41 = vpop.f32.mrf.mxu1 }
 0x38c   : > { %v2990_v2 = vadd.f32 %v2946_v56, %v2820_v34  ;;  %v3708_v56 = vpack.c.bf16 %v11655_v43, %v11636_v35 }
 0x38d   : > { %v11834_v47 = vadd.f32 %v3279_v41, %v3157_v49  ;;  %9827 = vmatmul.msk.bf16.vlgmr.msrb.gmra.mxu0 %vm249_vm1, %v3707_v32  ;;  %v3520_v32 = vld [vmem:[%s10458_s30 + $0x43] sm:$0xff] }
 0x38e   : > { %9803 = vmatmul.msk.bf16.gmra.mxu2 %vm249_vm1, %v3369_v42  ;;  %9840 = vmatmul.msk.bf16.vlgmr.msrb.gmra.mxu1 %vm249_vm1, %v3877_v19  ;;  %v3370_v42 = vpack.c.bf16 %v3350_v1, %v3349_v13  ;;  %v3878_v19 = vpack.c.bf16 %v11849_v54, %v11846_v0  ;;  %v3351_v13 = vld [vmem:[%s10458_s30 + $0x48] sm:$0xff]  ;;  %v3352_v1 = vld [vmem:[%s10458_s30 + $0x50] sm:$0xff] }
 0x38f   : > { %9816 = vmatmul.msk.bf16.gmra.mxu3 %vm249_vm1, %v3539_v8  ;;  %v3540_v8 = vpack.c.bf16 %v3520_v32, %v3519_v6  ;;  %v11870_v6 = vld [vmem:[%s10458_s30 + $0x73] sm:$0xff]  ;;  %v11873_v32 = vld [vmem:[%s10458_s30 + $0x7b] sm:$0xff] }
 0x391   : > { %v2779_v29 = vpop.f32.mrf.mxu2 }
 0x392   : > { %v2821_v4 = vadd.f32 %v2779_v29, %v11586_v21  ;;  %v2949_v9 = vpop.f32.mrf.mxu3  ;;  %v3111_v33 = vpop.f32.mrf.mxu0 }
 0x393   : > { %v3158_v31 = vadd.f32 %v3111_v33, %v2988_v59  ;;  %v3281_v57 = vpop.f32.mrf.mxu1 }
 0x394   : > { %v2991_v52 = vadd.f32 %v2949_v9, %v2821_v4 }
 0x395   : > { %v11841_v22 = vadd.f32 %v3281_v57, %v3158_v31 }
 0x399   : > { %v2781_v34 = vpop.f32.mrf.mxu2 }
 0x39a   : > { %v2822_v21 = vadd.f32 %v2781_v34, %v11595_v61  ;;  %v2951_v26 = vpop.f32.mrf.mxu3  ;;  %v3114_v59 = vpop.f32.mrf.mxu0  ;;  %v3521_v34 = vld [vmem:[%s10458_s30 + $0x4b] sm:$0xff] }
 0x39b   : > { %v3159_v49 = vadd.f32 %v3114_v59, %v2989_v24  ;;  %v3284_v41 = vpop.f32.mrf.mxu1 }
 0x39c   : > { %v2992_v29 = vadd.f32 %v2951_v26, %v2822_v21  ;;  %v3709_v21 = vpack.c.bf16 %v11679_v16, %v11658_v25 }
 0x39d   : > { %v11858_v4 = vadd.f32 %v3284_v41, %v3159_v49  ;;  %9828 = vmatmul.msk.bf16.gmra.mxu0 %vm249_vm1, %v3708_v56  ;;  %v3541_v41 = vpack.c.bf16 %v11822_v10, %v3521_v34 }
 0x39e   : > { %9804 = vmatmul.msk.bf16.gmra.mxu2 %vm249_vm1, %v3370_v42  ;;  %9841 = vmatmul.msk.bf16.gmra.mxu1 %vm249_vm1, %v3878_v19  ;;  %v3879_v42 = vpack.c.bf16 %v11873_v32, %v11870_v6 }
 0x39f   : > { %9817 = vmatmul.msk.bf16.gmra.mxu3 %vm249_vm1, %v3540_v8 }
 0x3a1   : > { %v2784_v61 = vpop.f32.mrf.mxu2 }
 0x3a2   : > { %v2823_v35 = vadd.f32 %v2784_v61, %v11602_v3  ;;  %v2954_v43 = vpop.f32.mrf.mxu3  ;;  %v3116_v24 = vpop.f32.mrf.mxu0 }
 0x3a3   : > { %v3160_v9 = vadd.f32 %v3116_v24, %v2990_v2  ;;  %v3286_v33 = vpop.f32.mrf.mxu1  ;;  %v3371_v2 = vpack.c.bf16 %v3352_v1, %v3351_v13  ;;  %v11894_v13 = vld [vmem:[%s10458_s30 + $0x83] sm:$0xff]  ;;  %v11897_v1 = vld [vmem:[%s10458_s30 + $0x8b] sm:$0xff] }
 0x3a4   : > { %v2993_v31 = vadd.f32 %v2954_v43, %v2823_v35 }
 0x3a5   : > { %v11865_v57 = vadd.f32 %v3286_v33, %v3160_v9  ;;  %v3353_v9 = vld [vmem:[%s10458_s30 + $0x58] sm:$0xff]  ;;  %v3354_v33 = vld [vmem:[%s10458_s30 + $0x60] sm:$0xff] }
 0x3a9   : > { %v2786_v56 = vpop.f32.mrf.mxu2 }
 0x3aa   : > { %v2824_v3 = vadd.f32 %v2786_v56, %v11611_v12  ;;  %v2956_v26 = vpop.f32.mrf.mxu3  ;;  %v3119_v59 = vpop.f32.mrf.mxu0  ;;  %v3710_v56 = vpack.c.bf16 %v11702_v40, %v11682_v38 }
 0x3ab   : > { %v3161_v19 = vadd.f32 %v3119_v59, %v2991_v52  ;;  %v3289_v49 = vpop.f32.mrf.mxu1 }
 0x3ac   : > { %v2994_v8 = vadd.f32 %v2956_v26, %v2824_v3  ;;  %v3372_v26 = vpack.c.bf16 %v3354_v33, %v3353_v9  ;;  %v3711_v9 = vpack.c.bf16 %v11727_v23, %v11705_v7 }
 0x3ad   : > { %v11882_v61 = vadd.f32 %v3289_v49, %v3161_v19  ;;  %9829 = vmatmul.msk.bf16.gmra.mxu0 %vm249_vm1, %v3709_v21 }
 0x3ae   : > { %9805 = vmatmul.msk.bf16.gmra.mxu2 %vm249_vm1, %v3371_v2  ;;  %9842 = vmatmul.msk.bf16.gmra.mxu1 %vm249_vm1, %v3879_v42  ;;  %v3542_v42 = vpack.c.bf16 %v11846_v0, %v11825_v50 }
 0x3af   : > { %9818 = vmatmul.msk.bf16.gmra.mxu3 %vm249_vm1, %v3541_v41 }
 0x3b1   : > { %v2789_v12 = vpop.f32.mrf.mxu2 }
 0x3b2   : > { %v2825_v25 = vadd.f32 %v2789_v12, %v11621_v39  ;;  %v2959_v16 = vpop.f32.mrf.mxu3  ;;  %v3121_v52 = vpop.f32.mrf.mxu0 }
 0x3b3   : > { %v3162_v10 = vadd.f32 %v3121_v52, %v2992_v29  ;;  %v3291_v35 = vpop.f32.mrf.mxu1  ;;  %v3880_v29 = vpack.c.bf16 %v11897_v1, %v11894_v13  ;;  %v11918_v52 = vld [vmem:[%s10458_s30 + $0x93] sm:$0xff] }
 0x3b4   : > { %v2995_v43 = vadd.f32 %v2959_v16, %v2825_v25  ;;  %v3355_v25 = vld [vmem:[%s10458_s30 + $0x68] sm:$0xff]  ;;  %v3356_v16 = vld [vmem:[%s10458_s30 + $0x70] sm:$0xff] }
 0x3b5   : > { %v11889_v24 = vadd.f32 %v3291_v35, %v3162_v10  ;;  %v11921_v10 = vld [vmem:[%s10458_s30 + $0x9b] sm:$0xff] }
 0x3b9   : > { %v2791_v34 = vpop.f32.mrf.mxu2 }
 0x3ba   : > { %v2826_v21 = vadd.f32 %v2791_v34, %v11630_v60  ;;  %v2961_v39 = vpop.f32.mrf.mxu3  ;;  %v3124_v3 = vpop.f32.mrf.mxu0 }
 0x3bb   : > { %v3163_v59 = vadd.f32 %v3124_v3, %v2993_v31  ;;  %v3294_v2 = vpop.f32.mrf.mxu1  ;;  %v3543_v3 = vpack.c.bf16 %v11870_v6, %v11849_v54 }
 0x3bc   : > { %v2996_v19 = vadd.f32 %v2961_v39, %v2826_v21 }
 0x3bd   : > { %v11906_v49 = vadd.f32 %v3294_v2, %v3163_v59  ;;  %9830 = vmatmul.msk.bf16.gmra.mxu0 %vm249_vm1, %v3710_v56  ;;  %v3373_v56 = vpack.c.bf16 %v3356_v16, %v3355_v25 }
 0x3be   : > { %9806 = vmatmul.msk.bf16.gmra.mxu2 %vm249_vm1, %v3372_v26  ;;  %9843 = vmatmul.msk.bf16.gmra.mxu1 %vm249_vm1, %v3880_v29 }
 0x3bf   : > { %9819 = vmatmul.msk.bf16.gmra.mxu3 %vm249_vm1, %v3542_v42  ;;  %v3357_v42 = vld [vmem:[%s10458_s30 + $0x78] sm:$0xff] }
 0x3c1   : > { %v2794_v60 = vpop.f32.mrf.mxu2 }
 0x3c2   : > { %v2827_v38 = vadd.f32 %v2794_v60, %v11643_v18  ;;  %v2964_v40 = vpop.f32.mrf.mxu3  ;;  %v3126_v31 = vpop.f32.mrf.mxu0  ;;  %v3358_v60 = vld [vmem:[%s10458_s30 + $0x80] sm:$0xff] }
 0x3c3   : > { %v3164_v50 = vadd.f32 %v3126_v31, %v2994_v8  ;;  %v3296_v0 = vpop.f32.mrf.mxu1  ;;  %v3881_v8 = vpack.c.bf16 %v11921_v10, %v11918_v52  ;;  %v3374_v16 = vpack.c.bf16 %v3358_v60, %v3357_v42 }
 0x3c4   : > { %v2997_v41 = vadd.f32 %v2964_v40, %v2827_v38  ;;  %v11942_v38 = vld [vmem:[%s10458_s30 + $0xa3] sm:$0xff]  ;;  %v11945_v40 = vld [vmem:[%s10458_s30 + $0xab] sm:$0xff] }
 0x3c5   : > { %v11913_v12 = vadd.f32 %v3296_v0, %v3164_v50  ;;  %v3712_v50 = vpack.c.bf16 %v11758_v15, %v11730_v14 }
 0x3c9   : > { %v2796_v35 = vpop.f32.mrf.mxu2 }
 0x3ca   : > { %v2828_v33 = vadd.f32 %v2796_v35, %v11652_v55  ;;  %v2966_v18 = vpop.f32.mrf.mxu3  ;;  %v3129_v34 = vpop.f32.mrf.mxu0 }
 0x3cb   : > { %v3165_v21 = vadd.f32 %v3129_v34, %v2995_v43  ;;  %v3299_v39 = vpop.f32.mrf.mxu1 }
 0x3cc   : > { %v2998_v26 = vadd.f32 %v2966_v18, %v2828_v33  ;;  %v3544_v33 = vpack.c.bf16 %v11894_v13, %v11873_v32 }
 0x3cd   : > { %v11930_v29 = vadd.f32 %v3299_v39, %v3165_v21  ;;  %9831 = vmatmul.msk.bf16.gmra.mxu0 %vm249_vm1, %v3711_v9  ;;  %v3359_v21 = vld [vmem:[%s10458_s30 + $0x88] sm:$0xff]  ;;  %v3360_v39 = vld [vmem:[%s10458_s30 + $0x90] sm:$0xff] }
 0x3ce   : > { %9807 = vmatmul.msk.bf16.gmra.mxu2 %vm249_vm1, %v3373_v56  ;;  %9844 = vmatmul.msk.bf16.gmra.mxu1 %vm249_vm1, %v3881_v8 }
 0x3cf   : > { %9820 = vmatmul.msk.bf16.gmra.mxu3 %vm249_vm1, %v3543_v3  ;;  %v11966_v3 = vld [vmem:[%s10458_s30 + $0xb3] sm:$0xff] }
 0x3d1   : > { %v2799_v55 = vpop.f32.mrf.mxu2 }
 0x3d2   : > { %v2829_v7 = vadd.f32 %v2799_v55, %v11665_v46  ;;  %v2969_v23 = vpop.f32.mrf.mxu3  ;;  %v3131_v43 = vpop.f32.mrf.mxu0  ;;  %v11969_v55 = vld [vmem:[%s10458_s30 + $0xbb] sm:$0xff] }
 0x3d3   : > { %v3166_v54 = vadd.f32 %v3131_v43, %v2996_v19  ;;  %v3301_v6 = vpop.f32.mrf.mxu1  ;;  %v3882_v19 = vpack.c.bf16 %v11945_v40, %v11942_v38 }
 0x3d4   : > { %v2999_v59 = vadd.f32 %v2969_v23, %v2829_v7  ;;  %v3713_v23 = vpack.c.bf16 %v11795_v11, %v11763_v5 }
 0x3d5   : > { %v11937_v2 = vadd.f32 %v3301_v6, %v3166_v54  ;;  %v3375_v6 = vpack.c.bf16 %v3360_v39, %v3359_v21  ;;  %v12007_v39 = vpack.c.bf16 %v11942_v38, %v11921_v10 }
 0x3d9   : > { %v2801_v31 = vpop.f32.mrf.mxu2 }
 0x3da   : > { %v2830_v0 = vadd.f32 %v2801_v31, %v11674_v51  ;;  %v2971_v46 = vpop.f32.mrf.mxu3  ;;  %v3134_v25 = vpop.f32.mrf.mxu0  ;;  %v3545_v31 = vpack.c.bf16 %v11918_v52, %v11897_v1 }
 0x3db   : > { %v3167_v35 = vadd.f32 %v3134_v25, %v2997_v41  ;;  %v3304_v9 = vpop.f32.mrf.mxu1 }
 0x3dc   : > { %v3000_v18 = vadd.f32 %v2971_v46, %v2830_v0 }
 0x3dd   : > { %v11954_v34 = vadd.f32 %v3304_v9, %v3167_v35  ;;  %9832 = vmatmul.msk.bf16.gmra.mxu0 %vm249_vm1, %v3712_v50  ;;  %v3362_v35 = vld [vmem:[%s10458_s30 + $0xa0] sm:$0xff] }
 0x3de   : > { %9808 = vmatmul.msk.bf16.gmra.mxu2 %vm249_vm1, %v3374_v16  ;;  %9845 = vmatmul.msk.bf16.gmra.mxu1 %vm249_vm1, %v3882_v19  ;;  %v3361_v16 = vld [vmem:[%s10458_s30 + $0x98] sm:$0xff]  ;;  %v11989_v19 = vld [vmem:[%s10458_s30 + $0xc5] sm:$0xff] }
 0x3df   : > { %9821 = vmatmul.msk.bf16.gmra.mxu3 %vm249_vm1, %v3544_v33  ;;  %v11993_v9 = vld [vmem:[%s10458_s30 + $0xc3] sm:$0xff]  ;;  %v11996_v33 = vld [vmem:[%s10458_s30 + $0xcb] sm:$0xff] }
 0x3e1   : > { %v2804_v51 = vpop.f32.mrf.mxu2 }
 0x3e2   : > { %v2831_v14 = vadd.f32 %v2804_v51, %v11689_v63  ;;  %v2974_v15 = vpop.f32.mrf.mxu3  ;;  %v3136_v41 = vpop.f32.mrf.mxu0 }
 0x3e3   : > { %v3168_v32 = vadd.f32 %v3136_v41, %v2998_v26  ;;  %v3306_v13 = vpop.f32.mrf.mxu1  ;;  %v3883_v26 = vpack.c.bf16 %v11969_v55, %v11966_v3  ;;  %v12001_v41 = vpack.c.bf16 %v3362_v35, %v3361_v16 }
 0x3e4   : > { %v3001_v56 = vadd.f32 %v2974_v15, %v2831_v14  ;;  %v3714_v14 = vpack.c.bf16 %v11989_v19, %v11798_v62 }
 0x3e5   : > { %v11961_v8 = vadd.f32 %v3306_v13, %v3168_v32  ;;  %v3884_v32 = vpack.c.bf16 %v11996_v33, %v11993_v9 }
 0x3e9   : > { %v2806_v7 = vpop.f32.mrf.mxu2 }
 0x3ea   : > { %v2832_v43 = vadd.f32 %v2806_v7, %v11697_v20  ;;  %v2976_v63 = vpop.f32.mrf.mxu3  ;;  %v3139_v54 = vpop.f32.mrf.mxu0 }
 0x3eb   : > { %v3169_v42 = vadd.f32 %v3139_v54, %v2999_v59  ;;  %v3309_v60 = vpop.f32.mrf.mxu1 }
 0x3ec   : > { %v3002_v50 = vadd.f32 %v2976_v63, %v2832_v43 }
 0x3ed   : > { %v11978_v0 = vadd.f32 %v3309_v60, %v3169_v42  ;;  %9833 = vmatmul.msk.bf16.gmra.mxu0 %vm249_vm1, %v3713_v23  ;;  %v12025_v42 = vld [vmem:[%s10458_s30 + $0xd5] sm:$0xff] }
 0x3ee   : > { %9809 = vmatmul.msk.bf16.gmra.mxu2 %vm249_vm1, %v3375_v6  ;;  %9846 = vmatmul.msk.bf16.gmra.mxu1 %vm249_vm1, %v3883_v26  ;;  %v3363_v6 = vld [vmem:[%s10458_s30 + $0xa8] sm:$0xff]  ;;  %v3364_v60 = vld [vmem:[%s10458_s30 + $0xb0] sm:$0xff] }
 0x3ef   : > { %9822 = vmatmul.msk.bf16.gmra.mxu3 %vm249_vm1, %v3545_v31  ;;  %v12022_v26 = vld [vmem:[%s10458_s30 + $0xcd] sm:$0xff] }
 0x3f0   : > { %v12029_v31 = vld [vmem:[%s10458_s30 + $0xd3] sm:$0xff] }
 0x3f1   : > { %v3429_v20 = vpop.f32.mrf.mxu2 }
 0x3f2   : > { %v3489_v5 = vadd.f32 %v3429_v20, %v11712_v17  ;;  %v3141_v11 = vpop.f32.mrf.mxu0  ;;  %v3599_v1 = vpop.f32.mrf.mxu3  ;;  %v12032_v20 = vld [vmem:[%s10458_s30 + $0xdb] sm:$0xff] }
 0x3f3   : > { %v3170_v52 = vadd.f32 %v3141_v11, %v3000_v18  ;;  %v3311_v59 = vpop.f32.mrf.mxu1 }
 0x3f4   : > { %v3659_v46 = vadd.f32 %v3599_v1, %v3489_v5 }
 0x3f5   : > { %v11985_v25 = vadd.f32 %v3311_v59, %v3170_v52  ;;  %v12037_v52 = vpack.c.bf16 %v3364_v60, %v3363_v6  ;;  %v3885_v59 = vpack.c.bf16 %v12032_v20, %v12029_v31 }
 0x3f9   : > { %v3431_v51 = vpop.f32.mrf.mxu2 }
 0x3fa   : > { %v3490_v17 = vadd.f32 %v3431_v51, %v11720_v44  ;;  %v3144_v15 = vpop.f32.mrf.mxu0  ;;  %v3601_v18 = vpop.f32.mrf.mxu3  ;;  %v12043_v51 = vpack.c.bf16 %v11966_v3, %v11945_v40 }
 0x3fb   : > { %v3171_v13 = vadd.f32 %v3144_v15, %v3001_v56  ;;  %v3314_v21 = vpop.f32.mrf.mxu1 }
 0x3fc   : > { %v3660_v7 = vadd.f32 %v3601_v18, %v3490_v17 }
 0x3fd   : > { %v12009_v62 = vadd.f32 %v3314_v21, %v3171_v13  ;;  %9834 = vmatmul.msk.bf16.gmra.mxu0 %vm249_vm1, %v3714_v14  ;;  %v3365_v21 = vld [vmem:[%s10458_s30 + $0xb8] sm:$0xff] }
 0x3fe   : > { %9810 = vmatmul.msk.bf16.gmra.mxu2 %vm249_vm1, %v12001_v41  ;;  %9847 = vmatmul.msk.bf16.gmra.mxu1 %vm249_vm1, %v3884_v32 }
 0x3ff   : > { %9823 = vmatmul.msk.bf16.gmra.mxu3 %vm249_vm1, %v12007_v39 }
 0x401   : > { %v3434_v44 = vpop.f32.mrf.mxu2 }
 0x402   : > { %v3491_v10 = vadd.f32 %v3434_v44, %v11739_v37  ;;  %v3146_v38 = vpop.f32.mrf.mxu0  ;;  %v3604_v56 = vpop.f32.mrf.mxu3  ;;  %v3715_v37 = vpack.c.bf16 %v12025_v42, %v12022_v26  ;;  %v12058_v44 = vld [vmem:[%s10458_s30 + $0xdd] sm:$0xff] }
 0x403   : > { %v3172_v23 = vadd.f32 %v3146_v38, %v3002_v50  ;;  %v3316_v43 = vpop.f32.mrf.mxu1  ;;  %v3366_v38 = vld [vmem:[%s10458_s30 + $0xc0] sm:$0xff] }
 0x404   : > { %v3661_v63 = vadd.f32 %v3604_v56, %v3491_v10  ;;  %v12061_v10 = vld [vmem:[%s10458_s30 + $0xe5] sm:$0xff] }
 0x405   : > { %v12018_v54 = vadd.f32 %v3316_v43, %v3172_v23  ;;  %v12065_v56 = vld [vmem:[%s10458_s30 + $0xe3] sm:$0xff]  ;;  %v12068_v23 = vld [vmem:[%s10458_s30 + $0xeb] sm:$0xff] }
 0x409   : > { %v3436_v5 = vpop.f32.mrf.mxu2 }
 0x40a   : > { %v3492_v50 = vadd.f32 %v3436_v5, %v11747_v53  ;;  %v3606_v11 = vpop.f32.mrf.mxu3  ;;  %v3769_v1 = vpop.f32.mrf.mxu0  ;;  %v12073_v5 = vpack.c.bf16 %v3366_v38, %v3365_v21  ;;  %v12102_v21 = vld [vmem:[%s10458_s30 + $0xf5] sm:$0xff] }
 0x40b   : > { %v3829_v16 = vadd.f32 %v3769_v1, %v3659_v46  ;;  %v3939_v35 = vpop.f32.mrf.mxu1  ;;  %v12079_v1 = vpack.c.bf16 %v11993_v9, %v11969_v55  ;;  %v12107_v38 = vld [vmem:[%s10458_s30 + $0xf3] sm:$0xff] }
 0x40c   : > { %v3662_v14 = vadd.f32 %v3606_v11, %v3492_v50 }
 0x40d   : > { %v12045_v17 = vadd.f32 %v3939_v35, %v3829_v16  ;;  %9835 = vmatmul.msk.bf16.gmra.mxu0 %vm249_vm1, %v3715_v37  ;;  %v3886_v37 = vpack.c.bf16 %v12068_v23, %v12065_v56 }
 0x40e   : > { %9811 = vmatmul.msk.bf16.gmra.mxu2 %vm249_vm1, %v12037_v52  ;;  %9848 = vmatmul.msk.bf16.gmra.mxu1 %vm249_vm1, %v3885_v59 }
 0x40f   : > { %9824 = vmatmul.msk.bf16.gmra.mxu3 %vm249_vm1, %v12043_v51 }
 0x411   : > { %v3439_v53 = vpop.f32.mrf.mxu2 }
 0x412   : > { %v3493_v40 = vadd.f32 %v3439_v53, %v11774_v45  ;;  %v3609_v3 = vpop.f32.mrf.mxu3  ;;  %v3771_v46 = vpop.f32.mrf.mxu0  ;;  %v3716_v45 = vpack.c.bf16 %v12061_v10, %v12058_v44 }
 0x413   : > { %v3830_v15 = vadd.f32 %v3771_v46, %v3660_v7  ;;  %v3941_v18 = vpop.f32.mrf.mxu1  ;;  %v9903_v46 = vld [vmem:[%s14539_s1 + $0x4] sm:$0xf] }
 0x414   : > { %v3663_v32 = vadd.f32 %v3609_v3, %v3493_v40 }
 0x415   : > { %v12054_v13 = vadd.f32 %v3941_v18, %v3830_v15  ;;  %v9916_v15 = vld [vmem:[%s14539_s1 + $0x8] sm:$0xf]  ;;  %v12099_v18 = vld [vmem:[%s10458_s30 + $0xed] sm:$0xff] }
 0x419   : > { %v3441_v43 = vpop.f32.mrf.mxu2 }
 0x41a   : > { %v3494_v7 = vadd.f32 %v3441_v43, %v11790_v36  ;;  %v3611_v6 = vpop.f32.mrf.mxu3  ;;  %v3774_v60 = vpop.f32.mrf.mxu0  ;;  %v12110_v43 = vld [vmem:[%s10458_s30 + $0xfb] sm:$0xff] }
 0x41b   : > { %v3831_v50 = vadd.f32 %v3774_v60, %v3661_v63  ;;  %v3944_v11 = vpop.f32.mrf.mxu1 }
 0x41c   : > { %v3664_v59 = vadd.f32 %v3611_v6, %v3494_v7  ;;  %v3717_v7 = vpack.c.bf16 %v12102_v21, %v12099_v18 }
 0x41d   : > { %v12081_v16 = vadd.f32 %v3944_v11, %v3831_v50  ;;  %9836 = vmatmul.msk.bf16.gmra.mxu0 %vm249_vm1, %v3716_v45  ;;  %v3887_v50 = vpack.c.bf16 %v12110_v43, %v12107_v38 }
 0x41e   : > { %9812 = vmatmul.msk.bf16.gmra.mxu2 %vm249_vm1, %v12073_v5  ;;  %9849 = vmatmul.msk.bf16.gmra.mxu1 %vm249_vm1, %v3886_v37 }
 0x41f   : > { %9825 = vmatmul.msk.bf16.gmra.mxu3 %vm249_vm1, %v12079_v1 }
 0x421   : > { %v3444_v36 = vpop.f32.mrf.mxu2 }
 0x422   : > { %v3495_v55 = vadd.f32 %v3444_v36, %v11809_v28  ;;  %v3614_v9 = vpop.f32.mrf.mxu3  ;;  %v3776_v63 = vpop.f32.mrf.mxu0  ;;  %v5137_v28 = vsel %vm356_vm0, %v9903_v46, 0 }
 0x423   : > { %v3832_v35 = vadd.f32 %v3776_v63, %v3662_v14  ;;  %v3946_v53 = vpop.f32.mrf.mxu1  ;;  %v5306_v14 = vsel %vm356_vm0, %v9916_v15, 0  ;;  %5146 = vmatpush.bf16.msrb.mxu2 %v5137_v28  ;;  %v9942_v63 = vld [vmem:[%s14539_s1 + $0x10] sm:$0xf] }
 0x424   : > { %v3665_v40 = vadd.f32 %v3614_v9, %v3495_v55  ;;  %5315 = vmatpush.bf16.msrb.mxu3 %v5306_v14 }
 0x425   : > { %v12090_v3 = vadd.f32 %v3946_v53, %v3832_v35 }
 0x429   : > { %v3446_v45 = vpop.f32.mrf.mxu2 }
 0x42a   : > { %v3496_v6 = vadd.f32 %v3446_v45, %v11817_v30  ;;  %v3616_v60 = vpop.f32.mrf.mxu3  ;;  %v3779_v37 = vpop.f32.mrf.mxu0  ;;  %v9929_v30 = vld [vmem:[%s14539_s1 + $0xc] sm:$0xf] }
 0x42b   : > { %v3833_v11 = vadd.f32 %v3779_v37, %v3663_v32  ;;  %v3949_v36 = vpop.f32.mrf.mxu1  ;;  %v5475_v32 = vsel %vm356_vm0, %v9929_v30, 0  ;;  %v12146_v37 = vld [vmem:[%s10458_s30 + $0x10b] sm:$0xff] }
 0x42c   : > { %v3666_v55 = vadd.f32 %v3616_v60, %v3496_v6  ;;  %5484 = vmatpush.bf16.msrb.mxu0 %v5475_v32  ;;  %v12140_v6 = vld [vmem:[%s10458_s30 + $0x105] sm:$0xff] }
 0x42d   : > { %v12117_v9 = vadd.f32 %v3949_v36, %v3833_v11  ;;  %9837 = vmatmul.msk.bf16.gmra.mxu0 %vm249_vm1, %v3717_v7  ;;  %v12137_v7 = vld [vmem:[%s10458_s30 + $0xfd] sm:$0xff] }
 0x42e   : > { %9850 = vmatmul.msk.bf16.gmra.mxu1 %vm249_vm1, %v3887_v50  ;;  %9853 = vmatmul.msk.bf16.vlgmr.msra.gmra.mxu2 %vm249_vm1, %v11737_v27  ;;  %v5644_v27 = vsel %vm356_vm0, %v9942_v63, 0  ;;  %v12143_v60 = vld [vmem:[%s10458_s30 + $0x103] sm:$0xff]  ;;  %v3718_v11 = vpack.c.bf16 %v12140_v6, %v12137_v7 }
 0x42f   : > { %9866 = vmatmul.msk.bf16.vlgmr.msra.gmra.mxu3 %vm249_vm1, %v12001_v41  ;;  %5653 = vmatpush.bf16.msrb.mxu1 %v5644_v27  ;;  %v3888_v30 = vpack.c.bf16 %v12146_v37, %v12143_v60 }
 0x431   : > { %v3449_v35 = vpop.f32.mrf.mxu2 }
 0x432   : > { %v3497_v53 = vadd.f32 %v3449_v35, %v11834_v47  ;;  %v3619_v46 = vpop.f32.mrf.mxu3  ;;  %v3781_v15 = vpop.f32.mrf.mxu0 }
 0x433   : > { %v3834_v28 = vadd.f32 %v3781_v15, %v3664_v59  ;;  %v3951_v14 = vpop.f32.mrf.mxu1 }
 0x434   : > { %v3667_v41 = vadd.f32 %v3619_v46, %v3497_v53 }
 0x435   : > { %v12134_v45 = vadd.f32 %v3951_v14, %v3834_v28 }
 0x439   : > { %v3451_v50 = vpop.f32.mrf.mxu2 }
 0x43a   : > { %v3498_v47 = vadd.f32 %v3451_v50, %v11841_v22  ;;  %v3621_v36 = vpop.f32.mrf.mxu3  ;;  %v3784_v59 = vpop.f32.mrf.mxu0 }
 0x43b   : > { %v3835_v32 = vadd.f32 %v3784_v59, %v3665_v40  ;;  %v3954_v63 = vpop.f32.mrf.mxu1 }
 0x43c   : > { %v3668_v27 = vadd.f32 %v3621_v36, %v3498_v47  ;;  %v12165_v47 = vld [vmem:[%s10458_s30 + $0x110] sm:$0xff] }
 0x43d   : > { %v12153_v35 = vadd.f32 %v3954_v63, %v3835_v32  ;;  %9838 = vmatmul.msk.bf16.gmra.mxu0 %vm249_vm1, %v3718_v11  ;;  %v12168_v11 = vld [vmem:[%s10458_s30 + $0x118] sm:$0xff] }
 0x43e   : > { %9851 = vmatmul.msk.bf16.gmra.mxu1 %vm249_vm1, %v3888_v30  ;;  %9854 = vmatmul.msk.bf16.gmra.mxu2 %vm249_vm1, %v11772_v58 }
 0x43f   : > { %9867 = vmatmul.msk.bf16.gmra.mxu3 %vm249_vm1, %v12037_v52  ;;  %v4918_v52 = vpack.c.bf16 %v12168_v11, %v12165_v47 }
 0x441   : > { %v3454_v22 = vpop.f32.mrf.mxu2 }
 0x442   : > { %v3499_v53 = vadd.f32 %v3454_v22, %v11858_v4  ;;  %v3624_v40 = vpop.f32.mrf.mxu3  ;;  %v3786_v46 = vpop.f32.mrf.mxu0 }
 0x443   : > { %v3836_v15 = vadd.f32 %v3786_v46, %v3666_v55  ;;  %v3956_v28 = vpop.f32.mrf.mxu1 }
 0x444   : > { %v3669_v14 = vadd.f32 %v3624_v40, %v3499_v53 }
 0x445   : > { %v12162_v50 = vadd.f32 %v3956_v28, %v3836_v15 }
 0x449   : > { %v3456_v36 = vpop.f32.mrf.mxu2 }
 0x44a   : > { %v3500_v58 = vadd.f32 %v3456_v36, %v11865_v57  ;;  %v3626_v59 = vpop.f32.mrf.mxu3  ;;  %v3789_v30 = vpop.f32.mrf.mxu0  ;;  %v12189_v36 = vld [vmem:[%s10458_s30 + $0x128] sm:$0xff] }
 0x44b   : > { %v3837_v4 = vadd.f32 %v3789_v30, %v3667_v41  ;;  %v3959_v32 = vpop.f32.mrf.mxu1 }
 0x44c   : > { %v3670_v55 = vadd.f32 %v3626_v59, %v3500_v58  ;;  %v4199_v58 = vld [vmem:[%s10458_s30 + $0xc8] sm:$0xff]  ;;  %v4200_v59 = vld [vmem:[%s10458_s30 + $0xd0] sm:$0xff] }
 0x44d   : > { %v12173_v63 = vadd.f32 %v3959_v32, %v3837_v4  ;;  %9879 = vmatmul.msk.bf16.vlgmr.msra.gmra.mxu0 %vm249_vm1, %v12007_v39  ;;  %v12186_v39 = vld [vmem:[%s10458_s30 + $0x120] sm:$0xff]  ;;  %v4050_v4 = vpack.c.bf16 %v12022_v26, %v11989_v19  ;;  %v4869_v19 = vsel %vm249_vm1, %v12189_v36, 0.0 }
 0x44e   : > { %9855 = vmatmul.msk.bf16.gmra.mxu2 %vm249_vm1, %v11807_v48  ;;  %9891 = vmatmul.msk.bf16.vlgmr.msra.gmra.mxu1 %vm249_vm1, %v4918_v52  ;;  %v4864_v48 = vsel %vm249_vm1, %v12165_v47, 0.0  ;;  %v4919_v32 = vpack.c.bf16 %v12189_v36, %v12186_v39 }
 0x44f   : > { %9868 = vmatmul.msk.bf16.gmra.mxu3 %vm249_vm1, %v12073_v5  ;;  %v4865_v5 = vsel %vm249_vm1, %v12168_v11, 0.0 }
 0x451   : > { %v3459_v57 = vpop.f32.mrf.mxu2 }
 0x452   : > { %v3501_v41 = vadd.f32 %v3459_v57, %v11882_v61  ;;  %v3629_v22 = vpop.f32.mrf.mxu3  ;;  %v3791_v53 = vpop.f32.mrf.mxu0 }
 0x453   : > { %v3838_v40 = vadd.f32 %v3791_v53, %v3668_v27  ;;  %v3961_v46 = vpop.f32.mrf.mxu1  ;;  %v4220_v53 = vpack.c.bf16 %v4200_v59, %v4199_v58 }
 0x454   : > { %v3671_v15 = vadd.f32 %v3629_v22, %v3501_v41  ;;  %v4866_v22 = vadd.f32 %v4865_v5, %v4864_v48 }
 0x455   : > { %v12183_v28 = vadd.f32 %v3961_v46, %v3838_v40  ;;  %v4867_v46 = vsel %vm249_vm1, %v12186_v39, 0.0 }
 0x457   : > { %14566 = vst [vmem:[#allocation6_spill] sm:$0xff] %v12183_v28 }
 0x459   : > { %v3461_v61 = vpop.f32.mrf.mxu2 }
 0x45a   : > { %v3502_v30 = vadd.f32 %v3461_v61, %v11889_v24  ;;  %v3631_v27 = vpop.f32.mrf.mxu3  ;;  %v3794_v52 = vpop.f32.mrf.mxu0  ;;  %v4868_v24 = vadd.f32 %v4867_v46, %v4866_v22  ;;  %v12215_v61 = vld [vmem:[%s10458_s30 + $0x130] sm:$0xff] }
 0x45b   : > { %v3839_v57 = vadd.f32 %v3794_v52, %v3669_v14  ;;  %v3964_v41 = vpop.f32.mrf.mxu1 }
 0x45c   : > { %v3672_v40 = vadd.f32 %v3631_v27, %v3502_v30  ;;  %v4870_v58 = vadd.f32 %v4869_v19, %v4868_v24  ;;  %v4871_v27 = vsel %vm249_vm1, %v12215_v61, 0.0  ;;  %v4051_v24 = vpack.c.bf16 %v12058_v44, %v12025_v42  ;;  %v12246_v42 = vld [vmem:[%s10458_s30 + $0x148] sm:$0xff] }
 0x45d   : > { %v12204_v28 = vadd.f32 %v3964_v41, %v3839_v57  ;;  %9880 = vmatmul.msk.bf16.gmra.mxu0 %vm249_vm1, %v12043_v51  ;;  %v4201_v57 = vld [vmem:[%s10458_s30 + $0xd8] sm:$0xff]  ;;  %v4202_v41 = vld [vmem:[%s10458_s30 + $0xe0] sm:$0xff] }
 0x45e   : > { %9856 = vmatmul.msk.bf16.gmra.mxu2 %vm249_vm1, %v4050_v4  ;;  %9892 = vmatmul.msk.bf16.gmra.mxu1 %vm249_vm1, %v4919_v32  ;;  %v12222_v4 = vld [vmem:[%s10458_s30 + $0x138] sm:$0xff]  ;;  %v4872_v32 = vadd.f32 %v4871_v27, %v4870_v58  ;;  %v12234_v58 = vld [vmem:[%s10458_s30 + $0x140] sm:$0xff] }
 0x45f   : > { %9869 = vmatmul.msk.bf16.gmra.mxu3 %vm249_vm1, %v4220_v53  ;;  %v4920_v19 = vpack.c.bf16 %v12222_v4, %v12215_v61 }
 0x461   : > { %v3464_v26 = vpop.f32.mrf.mxu2 }
 0x462   : > { %v3503_v14 = vadd.f32 %v3464_v26, %v11906_v49  ;;  %v3634_v48 = vpop.f32.mrf.mxu3  ;;  %v3796_v5 = vpop.f32.mrf.mxu0  ;;  %v4873_v49 = vsel %vm249_vm1, %v12222_v4, 0.0 }
 0x463   : > { %v3840_v51 = vadd.f32 %v3796_v5, %v3670_v55  ;;  %v3966_v59 = vpop.f32.mrf.mxu1  ;;  %v4221_v5 = vpack.c.bf16 %v4202_v41, %v4201_v57 }
 0x464   : > { %v3673_v30 = vadd.f32 %v3634_v48, %v3503_v14  ;;  %v4874_v48 = vadd.f32 %v4873_v49, %v4872_v32 }
 0x465   : > { %v12219_v52 = vadd.f32 %v3966_v59, %v3840_v51  ;;  %v4875_v59 = vsel %vm249_vm1, %v12234_v58, 0.0 }
 0x466   : > { %v4876_v44 = vadd.f32 %v4875_v59, %v4874_v48  ;;  %v4204_v48 = vld [vmem:[%s10458_s30 + $0xf0] sm:$0xff] }
 0x469   : > { %v3466_v22 = vpop.f32.mrf.mxu2 }
 0x46a   : > { %v3504_v55 = vadd.f32 %v3466_v22, %v11913_v12  ;;  %v3636_v53 = vpop.f32.mrf.mxu3  ;;  %v3799_v46 = vpop.f32.mrf.mxu0 }
 0x46b   : > { %v3841_v26 = vadd.f32 %v3799_v46, %v3671_v15  ;;  %v3969_v14 = vpop.f32.mrf.mxu1  ;;  %v4877_v15 = vsel %vm249_vm1, %v12246_v42, 0.0 }
 0x46c   : > { %v3674_v51 = vadd.f32 %v3636_v53, %v3504_v55  ;;  %v4878_v22 = vadd.f32 %v4877_v15, %v4876_v44  ;;  %v12252_v55 = vld [vmem:[%s10458_s30 + $0x150] sm:$0xff] }
 0x46d   : > { %v12238_v12 = vadd.f32 %v3969_v14, %v3841_v26  ;;  %9881 = vmatmul.msk.bf16.gmra.mxu0 %vm249_vm1, %v12079_v1  ;;  %v4879_v46 = vsel %vm249_vm1, %v12252_v55, 0.0  ;;  %v4203_v14 = vld [vmem:[%s10458_s30 + $0xe8] sm:$0xff] }
 0x46e   : > { %9857 = vmatmul.msk.bf16.gmra.mxu2 %vm249_vm1, %v4051_v24  ;;  %9893 = vmatmul.msk.bf16.gmra.mxu1 %vm249_vm1, %v4920_v19  ;;  %v4849_v19 = vld [vmem:[%s10458_s30 + $0x158] sm:$0xff]  ;;  %v4880_v26 = vadd.f32 %v4879_v46, %v4878_v22 }
 0x46f   : > { %9870 = vmatmul.msk.bf16.gmra.mxu3 %vm249_vm1, %v4221_v5 }
 0x471   : > { %v3469_v27 = vpop.f32.mrf.mxu2 }
 0x472   : > { %v3505_v32 = vadd.f32 %v3469_v27, %v11930_v29  ;;  %v3639_v49 = vpop.f32.mrf.mxu3  ;;  %v3801_v1 = vpop.f32.mrf.mxu0  ;;  %v4881_v29 = vsel %vm249_vm1, %v4849_v19, 0.0  ;;  %v4052_v27 = vpack.c.bf16 %v12099_v18, %v12061_v10 }
 0x473   : > { %v3842_v57 = vadd.f32 %v3801_v1, %v3672_v40  ;;  %v3971_v41 = vpop.f32.mrf.mxu1  ;;  %v4390_v40 = vpack.c.bf16 %v12029_v31, %v11996_v33  ;;  %v12273_v33 = vld [vmem:[%s10458_s30 + $0x160] sm:$0xff] }
 0x474   : > { %v3675_v53 = vadd.f32 %v3639_v49, %v3505_v32  ;;  %v4921_v32 = vpack.c.bf16 %v12246_v42, %v12234_v58  ;;  %v4883_v31 = vsel %vm249_vm1, %v12273_v33, 0.0 }
 0x475   : > { %v12256_v24 = vadd.f32 %v3971_v41, %v3842_v57  ;;  %v4222_v57 = vpack.c.bf16 %v4204_v48, %v4203_v14  ;;  %v4882_v41 = vadd.f32 %v4881_v29, %v4880_v26 }
 0x477   : > { %v4884_v18 = vadd.f32 %v4883_v31, %v4882_v41 }
 0x479   : > { %v3471_v5 = vpop.f32.mrf.mxu2 }
 0x47a   : > { %v3506_v59 = vadd.f32 %v3471_v5, %v11937_v2  ;;  %v3641_v44 = vpop.f32.mrf.mxu3  ;;  %v3804_v15 = vpop.f32.mrf.mxu0  ;;  %v12276_v2 = vld [vmem:[%s10458_s30 + $0x168] sm:$0xff] }
 0x47b   : > { %v3843_v49 = vadd.f32 %v3804_v15, %v3673_v30  ;;  %v3974_v1 = vpop.f32.mrf.mxu1  ;;  %v4885_v10 = vsel %vm249_vm1, %v12276_v2, 0.0  ;;  %v4205_v15 = vld [vmem:[%s10458_s30 + $0xf8] sm:$0xff] }
 0x47c   : > { %v3676_v22 = vadd.f32 %v3641_v44, %v3506_v59  ;;  %v4886_v26 = vadd.f32 %v4885_v10, %v4884_v18 }
 0x47d   : > { %v12269_v46 = vadd.f32 %v3974_v1, %v3843_v49  ;;  %9882 = vmatmul.msk.bf16.gmra.mxu0 %vm249_vm1, %v4390_v40  ;;  %v4391_v49 = vpack.c.bf16 %v12065_v56, %v12032_v20  ;;  %v12305_v20 = vld [vmem:[%s10458_s30 + $0x178] sm:$0xff] }
 0x47e   : > { %9858 = vmatmul.msk.bf16.gmra.mxu2 %vm249_vm1, %v4052_v27  ;;  %9894 = vmatmul.msk.bf16.gmra.mxu1 %vm249_vm1, %v4921_v32  ;;  %v4206_v27 = vld [vmem:[%s10458_s30 + $0x100] sm:$0xff]  ;;  %v4889_v56 = vsel %vm249_vm1, %v12305_v20, 0.0 }
 0x47f   : > { %9871 = vmatmul.msk.bf16.gmra.mxu3 %vm249_vm1, %v4222_v57  ;;  %v12296_v18 = vpack.c.bf16 %v4206_v27, %v4205_v15 }
 0x481   : > { %v3474_v30 = vpop.f32.mrf.mxu2 }
 0x482   : > { %v3507_v14 = vadd.f32 %v3474_v30, %v11954_v34  ;;  %v3644_v48 = vpop.f32.mrf.mxu3  ;;  %v3806_v29 = vpop.f32.mrf.mxu0  ;;  %v4053_v34 = vpack.c.bf16 %v12137_v7, %v12102_v21 }
 0x483   : > { %v3844_v5 = vadd.f32 %v3806_v29, %v3674_v51  ;;  %v3976_v40 = vpop.f32.mrf.mxu1  ;;  %v4922_v51 = vpack.c.bf16 %v4849_v19, %v12252_v55 }
 0x484   : > { %v3677_v59 = vadd.f32 %v3644_v48, %v3507_v14  ;;  %v12302_v48 = vld [vmem:[%s10458_s30 + $0x170] sm:$0xff] }
 0x485   : > { %v12286_v44 = vadd.f32 %v3976_v40, %v3844_v5 }
 0x489   : > { %v3476_v32 = vpop.f32.mrf.mxu2 }
 0x48a   : > { %v3508_v1 = vadd.f32 %v3476_v32, %v11961_v8  ;;  %v3646_v57 = vpop.f32.mrf.mxu3  ;;  %v3809_v41 = vpop.f32.mrf.mxu0  ;;  %v4887_v8 = vsel %vm249_vm1, %v12302_v48, 0.0 }
 0x48b   : > { %v3845_v31 = vadd.f32 %v3809_v41, %v3675_v53  ;;  %v3979_v10 = vpop.f32.mrf.mxu1  ;;  %v4888_v21 = vadd.f32 %v4887_v8, %v4886_v26  ;;  %v4392_v41 = vpack.c.bf16 %v12107_v38, %v12068_v23  ;;  %v12333_v23 = vld [vmem:[%s10458_s30 + $0x180] sm:$0xff] }
 0x48c   : > { %v3678_v30 = vadd.f32 %v3646_v57, %v3508_v1  ;;  %v4207_v1 = vld [vmem:[%s10458_s30 + $0x108] sm:$0xff]  ;;  %v4891_v38 = vsel %vm249_vm1, %v12333_v23, 0.0 }
 0x48d   : > { %v12298_v14 = vadd.f32 %v3979_v10, %v3845_v31  ;;  %9883 = vmatmul.msk.bf16.gmra.mxu0 %vm249_vm1, %v4391_v49  ;;  %v4890_v53 = vadd.f32 %v4889_v56, %v4888_v21  ;;  %v4038_v49 = vld [vmem:[%s10458_s30 + $0x10d] sm:$0xff]  ;;  %v12327_v8 = vpack.c.bf16 %v12165_v47, %v4207_v1  ;;  %v4040_v1 = vld [vmem:[%s10458_s30 + $0x11d] sm:$0xff] }
 0x48e   : > { %9859 = vmatmul.msk.bf16.gmra.mxu2 %vm249_vm1, %v4053_v34  ;;  %9895 = vmatmul.msk.bf16.gmra.mxu1 %vm249_vm1, %v4922_v51 }
 0x48f   : > { %9872 = vmatmul.msk.bf16.gmra.mxu3 %vm249_vm1, %v12296_v18  ;;  %v4892_v47 = vadd.f32 %v4891_v38, %v4890_v53  ;;  %v4856_v38 = vld [vmem:[%s10458_s30 + $0x190] sm:$0xff] }
 0x491   : > { %v3479_v7 = vpop.f32.mrf.mxu2 }
 0x492   : > { %v3509_v19 = vadd.f32 %v3479_v7, %v11978_v0  ;;  %v3649_v29 = vpop.f32.mrf.mxu3  ;;  %v3811_v5 = vpop.f32.mrf.mxu0  ;;  %v4054_v0 = vpack.c.bf16 %v4038_v49, %v12140_v6  ;;  %v4039_v49 = vld [vmem:[%s10458_s30 + $0x115] sm:$0xff] }
 0x493   : > { %v3846_v40 = vadd.f32 %v3811_v5, %v3676_v22  ;;  %v3981_v15 = vpop.f32.mrf.mxu1  ;;  %v4923_v22 = vpack.c.bf16 %v12276_v2, %v12273_v33 }
 0x494   : > { %v3679_v27 = vadd.f32 %v3649_v29, %v3509_v19 }
 0x495   : > { %v12316_v32 = vadd.f32 %v3981_v15, %v3846_v40 }
 0x499   : > { %v3481_v57 = vpop.f32.mrf.mxu2 }
 0x49a   : > { %v3510_v26 = vadd.f32 %v3481_v57, %v11985_v25  ;;  %v3651_v34 = vpop.f32.mrf.mxu3  ;;  %v3814_v51 = vpop.f32.mrf.mxu0  ;;  %v4855_v25 = vld [vmem:[%s10458_s30 + $0x188] sm:$0xff] }
 0x49b   : > { %v3847_v31 = vadd.f32 %v3814_v51, %v3677_v59  ;;  %v3984_v10 = vpop.f32.mrf.mxu1  ;;  %v4893_v6 = vsel %vm249_vm1, %v4855_v25, 0.0  ;;  %v4055_v51 = vpack.c.bf16 %v4040_v1, %v4039_v49 }
 0x49c   : > { %v3680_v56 = vadd.f32 %v3651_v34, %v3510_v26  ;;  %v4894_v2 = vadd.f32 %v4893_v6, %v4892_v47  ;;  %v4857_v6 = vld [vmem:[%s10458_s30 + $0x198] sm:$0xff]  ;;  %v4041_v47 = vld [vmem:[%s10458_s30 + $0x125] sm:$0xff] }
 0x49d   : > { %v12329_v21 = vadd.f32 %v3984_v10, %v3847_v31  ;;  %9884 = vmatmul.msk.bf16.gmra.mxu0 %vm249_vm1, %v4392_v41  ;;  %v4393_v41 = vpack.c.bf16 %v12143_v60, %v12110_v43 }
 0x49e   : > { %9860 = vmatmul.msk.bf16.gmra.mxu2 %vm249_vm1, %v4054_v0  ;;  %9896 = vmatmul.msk.bf16.gmra.mxu1 %vm249_vm1, %v4923_v22  ;;  %v4225_v22 = vpack.c.bf16 %v12186_v39, %v12168_v11  ;;  %v4378_v11 = vld [vmem:[%s10458_s30 + $0x113] sm:$0xff] }
 0x49f   : > { %9873 = vmatmul.msk.bf16.gmra.mxu3 %vm249_vm1, %v12327_v8 }
 0x4a1   : > { %v3484_v33 = vpop.f32.mrf.mxu2 }
 0x4a2   : > { %v3511_v59 = vadd.f32 %v3484_v33, %v12009_v62  ;;  %v3654_v7 = vpop.f32.mrf.mxu3  ;;  %v3816_v19 = vpop.f32.mrf.mxu0  ;;  %v4924_v62 = vpack.c.bf16 %v12305_v20, %v12302_v48  ;;  %v4042_v33 = vld [vmem:[%s10458_s30 + $0x12d] sm:$0xff] }
 0x4a3   : > { %v3848_v29 = vadd.f32 %v3816_v19, %v3678_v30  ;;  %v3986_v5 = vpop.f32.mrf.mxu1 }
 0x4a4   : > { %v3681_v40 = vadd.f32 %v3654_v7, %v3511_v59  ;;  %v4895_v59 = vsel %vm249_vm1, %v4856_v38, 0.0  ;;  %v4897_v7 = vsel %vm249_vm1, %v4857_v6, 0.0 }
 0x4a5   : > { %v12344_v15 = vadd.f32 %v3986_v5, %v3848_v29  ;;  %v4896_v19 = vadd.f32 %v4895_v59, %v4894_v2  ;;  %v4394_v5 = vpack.c.bf16 %v4378_v11, %v12146_v37 }
 0x4a9   : > { %v3486_v57 = vpop.f32.mrf.mxu2 }
 0x4aa   : > { %v3512_v26 = vadd.f32 %v3486_v57, %v12018_v54  ;;  %v3656_v53 = vpop.f32.mrf.mxu3  ;;  %v3819_v34 = vpop.f32.mrf.mxu0  ;;  %v4056_v57 = vpack.c.bf16 %v4042_v33, %v4041_v47 }
 0x4ab   : > { %v3849_v30 = vadd.f32 %v3819_v34, %v3679_v27  ;;  %v3989_v0 = vpop.f32.mrf.mxu1  ;;  %v4226_v34 = vpack.c.bf16 %v12215_v61, %v12189_v36 }
 0x4ac   : > { %v3682_v31 = vadd.f32 %v3656_v53, %v3512_v26 }
 0x4ad   : > { %v12355_v43 = vadd.f32 %v3989_v0, %v3849_v30  ;;  %9885 = vmatmul.msk.bf16.gmra.mxu0 %vm249_vm1, %v4393_v41  ;;  %v4898_v41 = vadd.f32 %v4897_v7, %v4896_v19  ;;  %v4379_v30 = vld [vmem:[%s10458_s30 + $0x11b] sm:$0xff]  ;;  %v4380_v0 = vld [vmem:[%s10458_s30 + $0x123] sm:$0xff]  ;;  %v4926_v19 = vpack.c.bf16 %v4857_v6, %v4856_v38 }
 0x4ae   : > { %9861 = vmatmul.msk.bf16.gmra.mxu2 %vm249_vm1, %v4055_v51  ;;  %9897 = vmatmul.msk.bf16.gmra.mxu1 %vm249_vm1, %v4924_v62  ;;  %v4043_v62 = vld [vmem:[%s10458_s30 + $0x135] sm:$0xff]  ;;  %v4395_v33 = vpack.c.bf16 %v4380_v0, %v4379_v30  ;;  %v4045_v30 = vld [vmem:[%s10458_s30 + $0x145] sm:$0xff] }
 0x4af   : > { %9874 = vmatmul.msk.bf16.gmra.mxu3 %vm249_vm1, %v4225_v22  ;;  %v4044_v22 = vld [vmem:[%s10458_s30 + $0x13d] sm:$0xff] }
 0x4b0   : > { %v4057_v7 = vpack.c.bf16 %v4044_v22, %v4043_v62  ;;  %v4381_v62 = vld [vmem:[%s10458_s30 + $0x12b] sm:$0xff] }
 0x4b1   : > { %v4109_v54 = vpop.f32.mrf.mxu2  ;;  %v4046_v22 = vld [vmem:[%s10458_s30 + $0x14d] sm:$0xff] }
 0x4b2   : > { %v3821_v60 = vpop.f32.mrf.mxu0  ;;  %v4279_v48 = vpop.f32.mrf.mxu3  ;;  %v4169_v36 = vadd.f32 %v4109_v54, %v12045_v17 }
 0x4b3   : > { %v3850_v20 = vadd.f32 %v3821_v60, %v3680_v56  ;;  %v3991_v27 = vpop.f32.mrf.mxu1  ;;  %v4925_v56 = vpack.c.bf16 %v4855_v25, %v12333_v23  ;;  %v12388_v60 = vld [vmem:[%s10458_s30 + $0x1a0] sm:$0xff] }
 0x4b5   : > { %v12361_v10 = vadd.f32 %v3991_v27, %v3850_v20  ;;  %v12391_v20 = vld [vmem:[%s10458_s30 + $0x1a8] sm:$0xff]  ;;  %v4899_v27 = vsel %vm249_vm1, %v12388_v60, 0.0 }
 0x4b6   : > { %v4901_v11 = vsel %vm249_vm1, %v12391_v20, 0.0  ;;  %v4900_v17 = vadd.f32 %v4899_v27, %v4898_v41  ;;  %v12419_v27 = vld [vmem:[%s10458_s30 + $0x1b0] sm:$0xff] }
 0x4b9   : > { %v4111_v29 = vpop.f32.mrf.mxu2 }
 0x4ba   : > { %v3824_v49 = vpop.f32.mrf.mxu0  ;;  %v4281_v1 = vpop.f32.mrf.mxu3 }
 0x4bb   : > { %v3851_v26 = vadd.f32 %v3824_v49, %v3681_v40  ;;  %v3994_v53 = vpop.f32.mrf.mxu1 }
 0x4bd   : > { %v12374_v51 = vadd.f32 %v3994_v53, %v3851_v26  ;;  %9886 = vmatmul.msk.bf16.gmra.mxu0 %vm249_vm1, %v4394_v5  ;;  %v4170_v26 = vadd.f32 %v4111_v29, %v12054_v13 }
 0x4be   : > { %9862 = vmatmul.msk.bf16.gmra.mxu2 %vm249_vm1, %v4056_v57  ;;  %9898 = vmatmul.msk.bf16.gmra.mxu1 %vm249_vm1, %v4925_v56  ;;  %v4227_v57 = vpack.c.bf16 %v12234_v58, %v12222_v4  ;;  %v4902_v56 = vadd.f32 %v4901_v11, %v4900_v17  ;;  %v12422_v11 = vld [vmem:[%s10458_s30 + $0x1b8] sm:$0xff] }
 0x4bf   : > { %9875 = vmatmul.msk.bf16.gmra.mxu3 %vm249_vm1, %v4226_v34  ;;  %v4340_v38 = vadd.f32 %v4281_v1, %v4170_v26  ;;  %v4382_v1 = vld [vmem:[%s10458_s30 + $0x133] sm:$0xff] }
 0x4c1   : > { %v4114_v37 = vpop.f32.mrf.mxu2 }
 0x4c2   : > { %v3826_v23 = vpop.f32.mrf.mxu0  ;;  %v4284_v25 = vpop.f32.mrf.mxu3 }
 0x4c3   : > { %v3852_v2 = vadd.f32 %v3826_v23, %v3682_v31  ;;  %v3996_v40 = vpop.f32.mrf.mxu1  ;;  %v4339_v31 = vadd.f32 %v4279_v48, %v4169_v36  ;;  %v4171_v23 = vadd.f32 %v4114_v37, %v12081_v16  ;;  %v4903_v16 = vsel %vm249_vm1, %v12419_v27, 0.0 }
 0x4c4   : > { %v4905_v37 = vsel %vm249_vm1, %v12422_v11, 0.0 }
 0x4c5   : > { %v12381_v61 = vadd.f32 %v3996_v40, %v3852_v2 }
 0x4c9   : > { %v4116_v47 = vpop.f32.mrf.mxu2 }
 0x4ca   : > { %v12397_v54 = vpop.f32.mrf.mxu3  ;;  %v4449_v59 = vpop.f32.mrf.mxu0 }
 0x4cb   : > { %v4509_v5 = vadd.f32 %v4449_v59, %v4339_v31  ;;  %v12399_v49 = vpop.f32.mrf.mxu1  ;;  %v4341_v31 = vadd.f32 %v4284_v25, %v4171_v23  ;;  %v4927_v25 = vpack.c.bf16 %v12391_v20, %v12388_v60  ;;  %v4172_v23 = vadd.f32 %v4116_v47, %v12090_v3 }
 0x4cd   : > { %v4533_v53 = vmax.f32 %v4509_v5, 0.0  ;;  %9887 = vmatmul.msk.bf16.gmra.mxu0 %vm249_vm1, %v4395_v33  ;;  %v4396_v33 = vpack.c.bf16 %v4382_v1, %v4381_v62  ;;  %v4904_v5 = vadd.f32 %v4903_v16, %v4902_v56  ;;  %v14567_v56 = vmov 0 }
 0x4ce   : > { %9863 = vmatmul.msk.bf16.gmra.mxu2 %vm249_vm1, %v4057_v7  ;;  %9899 = vmatmul.msk.bf16.gmra.mxu1 %vm249_vm1, %v4926_v19  ;;  %v14568_v56 = vsel %vm12442_vm4, 4294967295, %v14567_v56  ;;  %v4342_v3 = vadd.f32 %v12397_v54, %v4172_v23 }
 0x4cf   : > { %v4557_v48 = vpack.c.bf16 %v4533_v53, %v4533_v53  ;;  %9876 = vmatmul.msk.bf16.gmra.mxu3 %vm249_vm1, %v4227_v57  ;;  %v4058_v53 = vpack.c.bf16 %v4046_v22, %v4045_v30  ;;  %14569 = vst [vmem:[#allocation7_spill] sm:$0xff] %v14568_v56 }
 0x4d1   : > { %v4585_v6 = vshrl.u32 %v4557_v48, 16  ;;  %v4588_v4 = vshll.u32 %v4557_v48, 16  ;;  %v4119_v58 = vpop.f32.mrf.mxu2  ;;  %v4228_v48 = vpack.c.bf16 %v12252_v55, %v12246_v42 }
 0x4d2   : > { %v12408_v13 = vpop.f32.mrf.mxu3  ;;  %v4451_v29 = vpop.f32.mrf.mxu0 }
 0x4d3   : > { %v4510_v41 = vadd.f32 %v4451_v29, %v4340_v38  ;;  %v12410_v34 = vpop.f32.mrf.mxu1  ;;  %v4587_v2 = vrot.slane %v4585_v6, 5  ;;  %v4590_v40 = vrot.slane %v4588_v4, 6 }
 0x4d5   : > { %v4534_v36 = vmax.f32 %v4510_v41, 0.0  ;;  %v4591_v17 = vor.u32 %v4590_v40, %v4587_v2  ;;  %v4906_v41 = vadd.f32 %v4905_v37, %v4904_v5  ;;  %v12468_v5 = vld [vmem:[%s10458_s30 + $0x1c8] sm:$0xff] }
 0x4d7   : > { %v4558_v0 = vpack.c.bf16 %v4534_v36, %v4534_v36  ;;  %v4592_v2 = vrot.slane %v4591_v17, 4  ;;  %v4383_v17 = vld [vmem:[%s10458_s30 + $0x13b] sm:$0xff] }
 0x4d9   : > { %v4594_v59 = vshrl.u32 %v4558_v0, 16  ;;  %v4597_v7 = vshll.u32 %v4558_v0, 16  ;;  %v12428_v19 = vpop.f32.mrf.mxu2 }
 0x4da   : > { %v12432_v57 = vpop.f32.mrf.mxu3  ;;  %v4454_v26 = vpop.f32.mrf.mxu0 }
 0x4db   : > { %v4596_v38 = vrot.slane %v4594_v59, 5  ;;  %v4599_v6 = vrot.slane %v4597_v7, 6  ;;  %v4511_v4 = vadd.f32 %v4454_v26, %v4341_v31  ;;  %v12438_v29 = vpop.f32.mrf.mxu1  ;;  %v4384_v59 = vld [vmem:[%s10458_s30 + $0x143] sm:$0xff] }
 0x4dc   : > { %v12465_v7 = vld [vmem:[%s10458_s30 + $0x1c0] sm:$0xff] }
 0x4dd   : > { %v4600_v40 = vor.u32 %v4599_v6, %v4596_v38  ;;  %v4535_v60 = vmax.f32 %v4511_v4, 0.0  ;;  %9888 = vmatmul.msk.bf16.gmra.mxu0 %vm249_vm1, %v4396_v33  ;;  %v4173_v33 = vadd.f32 %v4119_v58, %v12117_v9  ;;  %v4907_v38 = vsel %vm249_vm1, %v12465_v7, 0.0 }
 0x4de   : > { %9864 = vmatmul.msk.bf16.gmra.mxu2 %vm249_vm1, %v4058_v53  ;;  %9900 = vmatmul.msk.bf16.gmra.mxu1 %vm249_vm1, %v4927_v25  ;;  %v5063_v25 = vld [vmem:[%s10458_s30 + $0xf7] sm:$0xff]  ;;  %v4909_v9 = vsel %vm249_vm1, %v12468_v5, 0.0  ;;  %v4908_v58 = vadd.f32 %v4907_v38, %v4906_v41 }
 0x4df   : > { %v4601_v42 = vsel %vm12442_vm4, %v4592_v2, %v4600_v40  ;;  %v4559_v55 = vpack.c.bf16 %v4535_v60, %v4535_v60  ;;  %9877 = vmatmul.msk.bf16.gmra.mxu3 %vm249_vm1, %v4228_v48  ;;  %v4602_v16 = vrot.slane %v4600_v40, 4  ;;  %v5064_v48 = vld [vmem:[%s10458_s30 + $0xff] sm:$0xff]  ;;  %v4343_v6 = vadd.f32 %v12408_v13, %v4173_v33 }
 0x4e0   : > { %4824 = vst [vmem:[%s12453_s13] sm:$0xf] %v4601_v42  ;;  %v4397_v40 = vpack.c.bf16 %v4384_v59, %v4383_v17  ;;  %v4174_v13 = vadd.f32 %v12428_v19, %v12134_v45  ;;  %v9955_v45 = vld [vmem:[%s14539_s1 + $0x14] sm:$0xf]  ;;  %v9968_v19 = vld [vmem:[%s14539_s1 + $0x18] sm:$0xf] }
 0x4e1   : > { %v4604_v20 = vshrl.u32 %v4559_v55, 16  ;;  %v4607_v47 = vshll.u32 %v4559_v55, 16  ;;  %v4124_v36 = vpop.f32.mrf.mxu2  ;;  %v4928_v55 = vpack.c.bf16 %v12422_v11, %v12419_v27 }
 0x4e2   : > { %v12457_v62 = vpop.f32.mrf.mxu3  ;;  %v4456_v1 = vpop.f32.mrf.mxu0  ;;  %v4344_v27 = vadd.f32 %v12432_v57, %v4174_v13 }
 0x4e3   : > { %v4606_v30 = vrot.slane %v4604_v20, 5  ;;  %v4609_v0 = vrot.slane %v4607_v47, 6  ;;  %v4512_v22 = vadd.f32 %v4456_v1, %v4342_v3  ;;  %v12459_v31 = vpop.f32.mrf.mxu1  ;;  %v5087_v3 = vpack.c.bf16 %v5064_v48, %v5063_v25 }
 0x4e4   : > { %v12486_v20 = vadd.f32 %v4909_v9, %v4908_v58  ;;  %v4175_v48 = vadd.f32 %v4124_v36, %v12153_v35  ;;  %v9981_v35 = vld [vmem:[%s14539_s1 + $0x1c] sm:$0xf]  ;;  %v9994_v36 = vld [vmem:[%s14539_s1 + $0x20] sm:$0xf] }
 0x4e5   : > { %v4610_v54 = vor.u32 %v4609_v0, %v4606_v30  ;;  %v4536_v37 = vmax.f32 %v4512_v22, 0.0 }
 0x4e6   : > { %14570 = vst [vmem:[#allocation8_spill] sm:$0xff] %v12486_v20 }
 0x4e7   : > { %v4611_v26 = vsel %vm12442_vm4, %v4602_v16, %v4610_v54  ;;  %v4560_v53 = vpack.c.bf16 %v4536_v37, %v4536_v37  ;;  %v5813_v37 = vsel %vm356_vm0, %v9955_v45, 0 }
 0x4e8   : > { %4825 = vst [vmem:[%s12453_s13 + $0x8] sm:$0xf] %v4611_v26  ;;  %5822 = vmatpush.bf16.msra.mxu2 %v5813_v37 }
 0x4e9   : > { %v4613_v4 = vshrl.u32 %v4560_v53, 16  ;;  %v4616_v23 = vshll.u32 %v4560_v53, 16  ;;  %v12480_v2 = vpop.f32.mrf.mxu2 }
 0x4ea   : > { %v12482_v60 = vpop.f32.mrf.mxu3  ;;  %v4459_v42 = vpop.f32.mrf.mxu0 }
 0x4eb   : > { %v4513_v47 = vadd.f32 %v4459_v42, %v4343_v6  ;;  %v12488_v1 = vpop.f32.mrf.mxu1  ;;  %v4615_v41 = vrot.slane %v4613_v4, 5  ;;  %v4618_v30 = vrot.slane %v4616_v23, 6  ;;  %v4385_v6 = vld [vmem:[%s10458_s30 + $0x14b] sm:$0xff]  ;;  %v4386_v4 = vld [vmem:[%s10458_s30 + $0x153] sm:$0xff] }
 0x4ec   : > { %v5065_v42 = vld [vmem:[%s10458_s30 + $0x107] sm:$0xff] }
 0x4ed   : > { %v4537_v0 = vmax.f32 %v4513_v47, 0.0  ;;  %9889 = vmatmul.msk.bf16.gmra.mxu0 %vm249_vm1, %v4397_v40  ;;  %v4619_v11 = vor.u32 %v4618_v30, %v4615_v41  ;;  %v4398_v47 = vpack.c.bf16 %v4386_v4, %v4385_v6 }
 0x4ee   : > { %9901 = vmatmul.msk.bf16.gmra.mxu1 %vm249_vm1, %v4928_v55  ;;  %9904 = vmatmul.msk.bf16.vlgmr.msrb.gmra.mxu2 %vm249_vm1, %v5087_v3  ;;  %v12517_v55 = vld [vmem:[%s10458_s30 + $0x10f] sm:$0xff]  ;;  %v4345_v3 = vadd.f32 %v12457_v62, %v4175_v48 }
 0x4ef   : > { %v4561_v22 = vpack.c.bf16 %v4537_v0, %v4537_v0  ;;  %9917 = vmatmul.msk.bf16.vlgmr.msrb.gmra.mxu3 %vm249_vm1, %v12296_v18  ;;  %v5982_v18 = vsel %vm356_vm0, %v9968_v19, 0  ;;  %v4620_v38 = vrot.slane %v4619_v11, 4  ;;  %v6151_v0 = vsel %vm356_vm0, %v9981_v35, 0  ;;  %v12556_v35 = vld [vmem:[%s10458_s30 + $0x11f] sm:$0xff] }
 0x4f0   : > { %5991 = vmatpush.bf16.msra.mxu3 %v5982_v18  ;;  %v4929_v11 = vpack.c.bf16 %v12468_v5, %v12465_v7  ;;  %v5088_v45 = vpack.c.bf16 %v12517_v55, %v5065_v42  ;;  %6160 = vmatpush.bf16.msra.mxu0 %v6151_v0  ;;  %v4176_v18 = vadd.f32 %v12480_v2, %v12162_v50  ;;  %v5401_v42 = vld [vmem:[%s10458_s30 + $0xf9] sm:$0xff] }
 0x4f1   : > { %v4622_v33 = vshrl.u32 %v4561_v22, 16  ;;  %v4625_v16 = vshll.u32 %v4561_v22, 16  ;;  %v4129_v54 = vpop.f32.mrf.mxu2  ;;  %v6320_v22 = vsel %vm356_vm0, %v9994_v36, 0 }
 0x4f2   : > { %v12506_v17 = vpop.f32.mrf.mxu3  ;;  %v4461_v57 = vpop.f32.mrf.mxu0  ;;  %6329 = vmatpush.bf16.msra.mxu1 %v6320_v22  ;;  %v4346_v50 = vadd.f32 %v12482_v60, %v4176_v18  ;;  %v4177_v4 = vadd.f32 %v4129_v54, %v12173_v63  ;;  %v5067_v60 = vld [vmem:[%s10458_s30 + $0x117] sm:$0xff] }
 0x4f3   : > { %v4624_v59 = vrot.slane %v4622_v33, 5  ;;  %v4627_v26 = vrot.slane %v4625_v16, 6  ;;  %v4514_v53 = vadd.f32 %v4461_v57, %v4344_v27  ;;  %v12508_v25 = vpop.f32.mrf.mxu1  ;;  %v5089_v54 = vpack.c.bf16 %v12556_v35, %v5067_v60 }
 0x4f5   : > { %v4628_v9 = vor.u32 %v4627_v26, %v4624_v59  ;;  %v4538_v58 = vmax.f32 %v4514_v53, 0.0 }
 0x4f7   : > { %v4629_v23 = vsel %vm12442_vm4, %v4620_v38, %v4628_v9  ;;  %v4562_v40 = vpack.c.bf16 %v4538_v58, %v4538_v58  ;;  %v4630_v57 = vrot.slane %v4628_v9, 4 }
 0x4f8   : > { %4826 = vst [vmem:[%s12453_s13 + $0x10] sm:$0xf] %v4629_v23 }
 0x4f9   : > { %v4632_v13 = vshrl.u32 %v4562_v40, 16  ;;  %v4635_v41 = vshll.u32 %v4562_v40, 16  ;;  %v4131_v30 = vpop.f32.mrf.mxu2 }
 0x4fa   : > { %v12529_v27 = vpop.f32.mrf.mxu3  ;;  %v4464_v62 = vpop.f32.mrf.mxu0 }
 0x4fb   : > { %v4634_v19 = vrot.slane %v4632_v13, 5  ;;  %v4637_v33 = vrot.slane %v4635_v41, 6  ;;  %v4515_v16 = vadd.f32 %v4464_v62, %v4345_v3  ;;  %v12534_v37 = vpop.f32.mrf.mxu1  ;;  %v5402_v3 = vld [vmem:[%s10458_s30 + $0x101] sm:$0xff]  ;;  %v5236_v13 = vld [vmem:[%s10458_s30 + $0x118] sm:$0xff]  ;;  %v4347_v41 = vadd.f32 %v12506_v17, %v4177_v4 }
 0x4fc   : > { %v5425_v36 = vpack.c.bf16 %v5402_v3, %v5401_v42  ;;  %v14571_v17 = vld [vmem:[#allocation6_spill] sm:$0xff] }
 0x4fd   : > { %v4638_v59 = vor.u32 %v4637_v33, %v4634_v19  ;;  %v4539_v26 = vmax.f32 %v4515_v16, 0.0  ;;  %9890 = vmatmul.msk.bf16.gmra.mxu0 %vm249_vm1, %v4398_v47  ;;  %v5594_v19 = vpack.c.bf16 %v5067_v60, %v12517_v55 }
 0x4fe   : > { %9902 = vmatmul.msk.bf16.gmra.mxu1 %vm249_vm1, %v4929_v11  ;;  %9905 = vmatmul.msk.bf16.gmra.mxu2 %vm249_vm1, %v5088_v45 }
 0x4ff   : > { %v4639_v7 = vsel %vm12442_vm4, %v4630_v57, %v4638_v59  ;;  %v4563_v5 = vpack.c.bf16 %v4539_v26, %v4539_v26  ;;  %9918 = vmatmul.msk.bf16.gmra.mxu3 %vm249_vm1, %v12327_v8  ;;  %v5258_v59 = vpack.c.bf16 %v12186_v39, %v5236_v13  ;;  %v4178_v26 = vadd.f32 %v4131_v30, %v14571_v17  ;;  %v12583_v13 = vld [vmem:[%s10458_s30 + $0x111] sm:$0xff] }
 0x500   : > { %4827 = vst [vmem:[%s12453_s13 + $0x18] sm:$0xf] %v4639_v7 }
 0x501   : > { %v4641_v2 = vshrl.u32 %v4563_v5, 16  ;;  %v4644_v53 = vshll.u32 %v4563_v5, 16  ;;  %v4134_v48 = vpop.f32.mrf.mxu2  ;;  %v4348_v39 = vadd.f32 %v12529_v27, %v4178_v26 }
 0x502   : > { %v12547_v38 = vpop.f32.mrf.mxu3  ;;  %v4466_v9 = vpop.f32.mrf.mxu0  ;;  %v4179_v3 = vadd.f32 %v4134_v48, %v12204_v28 }
 0x503   : > { %v4516_v58 = vadd.f32 %v4466_v9, %v4346_v50  ;;  %v12549_v6 = vpop.f32.mrf.mxu1  ;;  %v4643_v23 = vrot.slane %v4641_v2, 5  ;;  %v4646_v40 = vrot.slane %v4644_v53, 6 }
 0x505   : > { %v4540_v8 = vmax.f32 %v4516_v58, 0.0  ;;  %v4647_v0 = vor.u32 %v4646_v40, %v4643_v23 }
 0x507   : > { %v4564_v47 = vpack.c.bf16 %v4540_v8, %v4540_v8  ;;  %v4648_v7 = vrot.slane %v4647_v0, 4 }
 0x509   : > { %v4650_v22 = vshrl.u32 %v4564_v47, 16  ;;  %v4653_v62 = vshll.u32 %v4564_v47, 16  ;;  %v4136_v11 = vpop.f32.mrf.mxu2 }
 0x50a   : > { %v12560_v45 = vpop.f32.mrf.mxu3  ;;  %v4469_v63 = vpop.f32.mrf.mxu0 }
 0x50b   : > { %v4652_v33 = vrot.slane %v4650_v22, 5  ;;  %v4655_v16 = vrot.slane %v4653_v62, 6  ;;  %v4517_v18 = vadd.f32 %v4469_v63, %v4347_v41  ;;  %v12564_v57 = vpop.f32.mrf.mxu1  ;;  %v5069_v22 = vld [vmem:[%s10458_s30 + $0x127] sm:$0xff]  ;;  %v12589_v62 = vld [vmem:[%s10458_s30 + $0x12f] sm:$0xff] }
 0x50c   : > { %v5238_v63 = vld [vmem:[%s10458_s30 + $0x128] sm:$0xff]  ;;  %v12599_v17 = vpack.c.bf16 %v12589_v62, %v5069_v22  ;;  %v5595_v26 = vpack.c.bf16 %v5069_v22, %v12556_v35 }
 0x50d   : > { %v4656_v5 = vor.u32 %v4655_v16, %v4652_v33  ;;  %v4541_v50 = vmax.f32 %v4517_v18, 0.0  ;;  %9930 = vmatmul.msk.bf16.vlgmr.msrb.gmra.mxu0 %vm249_vm1, %v5425_v36  ;;  %v5403_v36 = vld [vmem:[%s10458_s30 + $0x109] sm:$0xff]  ;;  %v12623_v22 = vld [vmem:[%s10458_s30 + $0x121] sm:$0xff] }
 0x50e   : > { %9906 = vmatmul.msk.bf16.gmra.mxu2 %vm249_vm1, %v5089_v54  ;;  %9943 = vmatmul.msk.bf16.vlgmr.msrb.gmra.mxu1 %vm249_vm1, %v5594_v19  ;;  %v5239_v54 = vld [vmem:[%s10458_s30 + $0x130] sm:$0xff]  ;;  %v4349_v19 = vadd.f32 %v12547_v38, %v4179_v3  ;;  %v5426_v16 = vpack.c.bf16 %v12583_v13, %v5403_v36  ;;  %v4180_v38 = vadd.f32 %v4136_v11, %v12219_v52 }
 0x50f   : > { %v4657_v55 = vsel %vm12442_vm4, %v4648_v7, %v4656_v5  ;;  %v4565_v2 = vpack.c.bf16 %v4541_v50, %v4541_v50  ;;  %9919 = vmatmul.msk.bf16.gmra.mxu3 %vm249_vm1, %v5258_v59  ;;  %v4658_v47 = vrot.slane %v4656_v5, 4  ;;  %v12604_v50 = vpack.c.bf16 %v5239_v54, %v5238_v63 }
 0x510   : > { %4828 = vst [vmem:[%s12453_s13 + $0x20] sm:$0xf] %v4657_v55  ;;  %v4350_v35 = vadd.f32 %v12560_v45, %v4180_v38 }
 0x511   : > { %v4660_v30 = vshrl.u32 %v4565_v2, 16  ;;  %v4663_v53 = vshll.u32 %v4565_v2, 16  ;;  %v4139_v9 = vpop.f32.mrf.mxu2 }
 0x512   : > { %v12576_v58 = vpop.f32.mrf.mxu3  ;;  %v4471_v4 = vpop.f32.mrf.mxu0  ;;  %v4181_v45 = vadd.f32 %v4139_v9, %v12238_v12 }
 0x513   : > { %v4662_v23 = vrot.slane %v4660_v30, 5  ;;  %v4665_v40 = vrot.slane %v4663_v53, 6  ;;  %v4518_v8 = vadd.f32 %v4471_v4, %v4348_v39  ;;  %v12578_v42 = vpop.f32.mrf.mxu1 }
 0x515   : > { %v4666_v27 = vor.u32 %v4665_v40, %v4662_v23  ;;  %v4542_v60 = vmax.f32 %v4518_v8, 0.0 }
 0x517   : > { %v4667_v41 = vsel %vm12442_vm4, %v4658_v47, %v4666_v27  ;;  %v4566_v0 = vpack.c.bf16 %v4542_v60, %v4542_v60 }
 0x518   : > { %4829 = vst [vmem:[%s12453_s13 + $0x28] sm:$0xf] %v4667_v41 }
 0x519   : > { %v4669_v33 = vshrl.u32 %v4566_v0, 16  ;;  %v4672_v28 = vshll.u32 %v4566_v0, 16  ;;  %v4141_v48 = vpop.f32.mrf.mxu2  ;;  %v12620_v0 = vld [vmem:[%s10458_s30 + $0x119] sm:$0xff] }
 0x51a   : > { %v12596_v18 = vpop.f32.mrf.mxu3  ;;  %v4474_v59 = vpop.f32.mrf.mxu0 }
 0x51b   : > { %v4519_v7 = vadd.f32 %v4474_v59, %v4349_v19  ;;  %v12602_v5 = vpop.f32.mrf.mxu1  ;;  %v4671_v55 = vrot.slane %v4669_v33, 5  ;;  %v4674_v2 = vrot.slane %v4672_v28, 6  ;;  %v5071_v19 = vld [vmem:[%s10458_s30 + $0x137] sm:$0xff]  ;;  %v12629_v33 = vld [vmem:[%s10458_s30 + $0x13f] sm:$0xff]  ;;  %v4351_v59 = vadd.f32 %v12576_v58, %v4181_v45 }
 0x51c   : > { %v5240_v28 = vld [vmem:[%s10458_s30 + $0x138] sm:$0xff] }
 0x51d   : > { %v4543_v39 = vmax.f32 %v4519_v7, 0.0  ;;  %9931 = vmatmul.msk.bf16.gmra.mxu0 %vm249_vm1, %v5426_v16  ;;  %v4675_v53 = vor.u32 %v4674_v2, %v4671_v55  ;;  %v5241_v16 = vld [vmem:[%s10458_s30 + $0x140] sm:$0xff]  ;;  %v5427_v7 = vpack.c.bf16 %v12623_v22, %v12620_v0  ;;  %v12640_v2 = vpack.c.bf16 %v12629_v33, %v5071_v19 }
 0x51e   : > { %9907 = vmatmul.msk.bf16.gmra.mxu2 %vm249_vm1, %v12599_v17  ;;  %9944 = vmatmul.msk.bf16.gmra.mxu1 %vm249_vm1, %v5595_v26  ;;  %v12645_v58 = vpack.c.bf16 %v5241_v16, %v5240_v28 }
 0x51f   : > { %v4567_v30 = vpack.c.bf16 %v4543_v39, %v4543_v39  ;;  %9920 = vmatmul.msk.bf16.gmra.mxu3 %vm249_vm1, %v12604_v50  ;;  %v4676_v60 = vrot.slane %v4675_v53, 4  ;;  %v5596_v39 = vpack.c.bf16 %v5071_v19, %v12589_v62 }
 0x521   : > { %v4678_v52 = vshrl.u32 %v4567_v30, 16  ;;  %v4681_v11 = vshll.u32 %v4567_v30, 16  ;;  %v4144_v4 = vpop.f32.mrf.mxu2 }
 0x522   : > { %v12614_v23 = vpop.f32.mrf.mxu3  ;;  %v4476_v40 = vpop.f32.mrf.mxu0  ;;  %v4183_v19 = vadd.f32 %v4144_v4, %v12269_v46 }
 0x523   : > { %v4680_v8 = vrot.slane %v4678_v52, 5  ;;  %v4683_v3 = vrot.slane %v4681_v11, 6  ;;  %v4520_v47 = vadd.f32 %v4476_v40, %v4350_v35  ;;  %v12616_v27 = vpop.f32.mrf.mxu1  ;;  %v4182_v11 = vadd.f32 %v4141_v48, %v12256_v24 }
 0x525   : > { %v4684_v36 = vor.u32 %v4683_v3, %v4680_v8  ;;  %v4544_v41 = vmax.f32 %v4520_v47, 0.0  ;;  %v4352_v24 = vadd.f32 %v12596_v18, %v4182_v11  ;;  %v12667_v18 = vld [vmem:[%s10458_s30 + $0x131] sm:$0xff] }
 0x527   : > { %v4685_v63 = vsel %vm12442_vm4, %v4676_v60, %v4684_v36  ;;  %v4568_v54 = vpack.c.bf16 %v4544_v41, %v4544_v41  ;;  %v4686_v40 = vrot.slane %v4684_v36, 4 }
 0x528   : > { %4830 = vst [vmem:[%s12453_s13 + $0x30] sm:$0xf] %v4685_v63 }
 0x529   : > { %v4688_v12 = vshrl.u32 %v4568_v54, 16  ;;  %v4691_v9 = vshll.u32 %v4568_v54, 16  ;;  %v4146_v26 = vpop.f32.mrf.mxu2 }
 0x52a   : > { %v12637_v38 = vpop.f32.mrf.mxu3  ;;  %v4479_v55 = vpop.f32.mrf.mxu0 }
 0x52b   : > { %v4690_v30 = vrot.slane %v4688_v12, 5  ;;  %v4693_v35 = vrot.slane %v4691_v9, 6  ;;  %v4521_v53 = vadd.f32 %v4479_v55, %v4351_v59  ;;  %v12643_v52 = vpop.f32.mrf.mxu1  ;;  %v12664_v12 = vld [vmem:[%s10458_s30 + $0x129] sm:$0xff] }
 0x52c   : > { %v12671_v55 = vld [vmem:[%s10458_s30 + $0x14f] sm:$0xff] }
 0x52d   : > { %v4694_v8 = vor.u32 %v4693_v35, %v4690_v30  ;;  %v4545_v3 = vmax.f32 %v4521_v53, 0.0  ;;  %9932 = vmatmul.msk.bf16.gmra.mxu0 %vm249_vm1, %v5427_v7  ;;  %v5073_v7 = vld [vmem:[%s10458_s30 + $0x147] sm:$0xff]  ;;  %v5243_v35 = vld [vmem:[%s10458_s30 + $0x150] sm:$0xff]  ;;  %v4353_v53 = vadd.f32 %v12614_v23, %v4183_v19  ;;  %v4184_v23 = vadd.f32 %v4146_v26, %v12286_v44 }
 0x52e   : > { %9908 = vmatmul.msk.bf16.gmra.mxu2 %vm249_vm1, %v12640_v2  ;;  %9945 = vmatmul.msk.bf16.gmra.mxu1 %vm249_vm1, %v5596_v39  ;;  %v12675_v39 = vpack.c.bf16 %v12667_v18, %v12664_v12  ;;  %v5242_v30 = vld [vmem:[%s10458_s30 + $0x148] sm:$0xff] }
 0x52f   : > { %v4695_v62 = vsel %vm12442_vm4, %v4686_v40, %v4694_v8  ;;  %v4569_v47 = vpack.c.bf16 %v4545_v3, %v4545_v3  ;;  %9921 = vmatmul.msk.bf16.gmra.mxu3 %vm249_vm1, %v12645_v58  ;;  %v4354_v44 = vadd.f32 %v12637_v38, %v4184_v23 }
 0x530   : > { %4831 = vst [vmem:[%s12453_s13 + $0x38] sm:$0xf] %v4695_v62  ;;  %v12683_v62 = vpack.c.bf16 %v12671_v55, %v5073_v7 }
 0x531   : > { %v4697_v48 = vshrl.u32 %v4569_v47, 16  ;;  %v4700_v45 = vshll.u32 %v4569_v47, 16  ;;  %v4149_v60 = vpop.f32.mrf.mxu2  ;;  %v5597_v47 = vpack.c.bf16 %v5073_v7, %v12629_v33 }
 0x532   : > { %v12658_v36 = vpop.f32.mrf.mxu3  ;;  %v4481_v41 = vpop.f32.mrf.mxu0 }
 0x533   : > { %v4522_v63 = vadd.f32 %v4481_v41, %v4352_v24  ;;  %v12660_v54 = vpop.f32.mrf.mxu1  ;;  %v4699_v28 = vrot.slane %v4697_v48, 5  ;;  %v4702_v16 = vrot.slane %v4700_v45, 6 }
 0x535   : > { %v4546_v59 = vmax.f32 %v4522_v63, 0.0  ;;  %v4703_v46 = vor.u32 %v4702_v16, %v4699_v28  ;;  %v12688_v63 = vpack.c.bf16 %v5243_v35, %v5242_v30 }
 0x537   : > { %v4570_v9 = vpack.c.bf16 %v4546_v59, %v4546_v59  ;;  %14573 = vst [vmem:[#allocation9_spill] sm:$0xff] %v12688_v63  ;;  %v4704_v19 = vrot.slane %v4703_v46, 4 }
 0x539   : > { %v4706_v4 = vshrl.u32 %v4570_v9, 16  ;;  %v4709_v11 = vshll.u32 %v4570_v9, 16  ;;  %v4151_v40 = vpop.f32.mrf.mxu2 }
 0x53a   : > { %v12680_v8 = vpop.f32.mrf.mxu3  ;;  %v4484_v3 = vpop.f32.mrf.mxu0 }
 0x53b   : > { %v4708_v24 = vrot.slane %v4706_v4, 5  ;;  %v4711_v48 = vrot.slane %v4709_v11, 6  ;;  %v4523_v45 = vadd.f32 %v4484_v3, %v4353_v53  ;;  %v12686_v41 = vpop.f32.mrf.mxu1  ;;  %v4185_v3 = vadd.f32 %v4149_v60, %v12298_v14 }
 0x53c   : > { %14572 = vst [vmem:[#allocation6_spill] sm:$0xff] %v12686_v41 }
 0x53d   : > { %v4712_v28 = vor.u32 %v4711_v48, %v4708_v24  ;;  %v4547_v16 = vmax.f32 %v4523_v45, 0.0  ;;  %9933 = vmatmul.msk.bf16.gmra.mxu0 %vm249_vm1, %v12675_v39  ;;  %v12708_v48 = vld [vmem:[%s10458_s30 + $0x139] sm:$0xff]  ;;  %v12711_v45 = vld [vmem:[%s10458_s30 + $0x141] sm:$0xff] }
 0x53e   : > { %9909 = vmatmul.msk.bf16.gmra.mxu2 %vm249_vm1, %v12683_v62  ;;  %9946 = vmatmul.msk.bf16.gmra.mxu1 %vm249_vm1, %v5597_v47 }
 0x53f   : > { %v4713_v33 = vsel %vm12442_vm4, %v4704_v19, %v4712_v28  ;;  %v4571_v59 = vpack.c.bf16 %v4547_v16, %v4547_v16  ;;  %9922 = vmatmul.msk.bf16.gmra.mxu3 %vm249_vm1, %v12688_v63  ;;  %v4714_v47 = vrot.slane %v4712_v28, 4  ;;  %v5075_v16 = vld [vmem:[%s10458_s30 + $0x157] sm:$0xff] }
 0x540   : > { %4832 = vst [vmem:[%s12453_s13 + $0x40] sm:$0xf] %v4713_v33  ;;  %v12717_v33 = vld [vmem:[%s10458_s30 + $0x15f] sm:$0xff] }
 0x541   : > { %v4716_v26 = vshrl.u32 %v4571_v59, 16  ;;  %v4719_v9 = vshll.u32 %v4571_v59, 16  ;;  %v4154_v7 = vpop.f32.mrf.mxu2  ;;  %v5244_v59 = vld [vmem:[%s10458_s30 + $0x158] sm:$0xff] }
 0x542   : > { %v12702_v30 = vpop.f32.mrf.mxu3  ;;  %v4486_v35 = vpop.f32.mrf.mxu0 }
 0x543   : > { %v4718_v53 = vrot.slane %v4716_v26, 5  ;;  %v4721_v46 = vrot.slane %v4719_v9, 6  ;;  %v4524_v4 = vadd.f32 %v4486_v35, %v4354_v44  ;;  %v12704_v11 = vpop.f32.mrf.mxu1  ;;  %v5245_v44 = vld [vmem:[%s10458_s30 + $0x160] sm:$0xff]  ;;  %v4355_v26 = vadd.f32 %v12658_v36, %v4185_v3 }
 0x544   : > { %14574 = vst [vmem:[#allocation10_spill] sm:$0xff] %v12704_v11  ;;  %v12725_v9 = vpack.c.bf16 %v12711_v45, %v12708_v48  ;;  %v4186_v36 = vadd.f32 %v4151_v40, %v12316_v32 }
 0x545   : > { %v4722_v38 = vor.u32 %v4721_v46, %v4718_v53  ;;  %v4548_v24 = vmax.f32 %v4524_v4, 0.0  ;;  %v12730_v46 = vpack.c.bf16 %v12717_v33, %v5075_v16  ;;  %v5598_v4 = vpack.c.bf16 %v5075_v16, %v12671_v55 }
 0x546   : > { %v4356_v55 = vadd.f32 %v12680_v8, %v4186_v36  ;;  %v4187_v8 = vadd.f32 %v4154_v7, %v12329_v21 }
 0x547   : > { %v4723_v23 = vsel %vm12442_vm4, %v4714_v47, %v4722_v38  ;;  %v4572_v19 = vpack.c.bf16 %v4548_v24, %v4548_v24  ;;  %v12735_v24 = vpack.c.bf16 %v5245_v44, %v5244_v59 }
 0x548   : > { %4833 = vst [vmem:[%s12453_s13 + $0x48] sm:$0xf] %v4723_v23 }
 0x549   : > { %v4725_v14 = vshrl.u32 %v4572_v19, 16  ;;  %v4728_v60 = vshll.u32 %v4572_v19, 16  ;;  %v4156_v28 = vpop.f32.mrf.mxu2  ;;  %14576 = vst [vmem:[#allocation12_spill] sm:$0xff] %v12735_v24 }
 0x54a   : > { %v12727_v35 = vpop.f32.mrf.mxu3  ;;  %v4489_v53 = vpop.f32.mrf.mxu0 }
 0x54b   : > { %v4525_v47 = vadd.f32 %v4489_v53, %v4355_v26  ;;  %v12733_v38 = vpop.f32.mrf.mxu1  ;;  %v4727_v3 = vrot.slane %v4725_v14, 5  ;;  %v4730_v23 = vrot.slane %v4728_v60, 6 }
 0x54c   : > { %14575 = vst [vmem:[#allocation11_spill] sm:$0xff] %v12733_v38  ;;  %v5077_v38 = vld [vmem:[%s10458_s30 + $0x167] sm:$0xff] }
 0x54d   : > { %v4549_v19 = vmax.f32 %v4525_v47, 0.0  ;;  %9934 = vmatmul.msk.bf16.gmra.mxu0 %vm249_vm1, %v12725_v9  ;;  %v4731_v32 = vor.u32 %v4730_v23, %v4727_v3  ;;  %v12755_v23 = vld [vmem:[%s10458_s30 + $0x151] sm:$0xff] }
 0x54e   : > { %9910 = vmatmul.msk.bf16.gmra.mxu2 %vm249_vm1, %v12730_v46  ;;  %9947 = vmatmul.msk.bf16.gmra.mxu1 %vm249_vm1, %v5598_v4  ;;  %14578 = vst [vmem:[#allocation14_spill] sm:$0xff] %v12755_v23 }
 0x54f   : > { %v4573_v20 = vpack.c.bf16 %v4549_v19, %v4549_v19  ;;  %9923 = vmatmul.msk.bf16.gmra.mxu3 %vm249_vm1, %v12735_v24  ;;  %v4732_v47 = vrot.slane %v4731_v32, 4 }
 0x551   : > { %v4734_v40 = vshrl.u32 %v4573_v20, 16  ;;  %v4737_v16 = vshll.u32 %v4573_v20, 16  ;;  %v4159_v59 = vpop.f32.mrf.mxu2  ;;  %v12752_v20 = vld [vmem:[%s10458_s30 + $0x149] sm:$0xff] }
 0x552   : > { %v12746_v44 = vpop.f32.mrf.mxu3  ;;  %v4491_v26 = vpop.f32.mrf.mxu0 }
 0x553   : > { %v4736_v14 = vrot.slane %v4734_v40, 5  ;;  %v4739_v60 = vrot.slane %v4737_v16, 6  ;;  %v4526_v53 = vadd.f32 %v4491_v26, %v4356_v55  ;;  %v12748_v4 = vpop.f32.mrf.mxu1  ;;  %v12761_v40 = vld [vmem:[%s10458_s30 + $0x16f] sm:$0xff]  ;;  %v4357_v26 = vadd.f32 %v12702_v30, %v4187_v8 }
 0x554   : > { %14577 = vst [vmem:[#allocation13_spill] sm:$0xff] %v12748_v4  ;;  %v5246_v55 = vld [vmem:[%s10458_s30 + $0x168] sm:$0xff]  ;;  %v5247_v16 = vld [vmem:[%s10458_s30 + $0x170] sm:$0xff]  ;;  %v4188_v8 = vadd.f32 %v4156_v28, %v12344_v15 }
 0x555   : > { %v4740_v36 = vor.u32 %v4739_v60, %v4736_v14  ;;  %v4550_v3 = vmax.f32 %v4526_v53, 0.0  ;;  %v12769_v14 = vpack.c.bf16 %v12755_v23, %v12752_v20 }
 0x556   : > { %v4358_v15 = vadd.f32 %v12727_v35, %v4188_v8  ;;  %v12802_v35 = vld [vmem:[%s10458_s30 + $0x161] sm:$0xff] }
 0x557   : > { %v4741_v19 = vsel %vm12442_vm4, %v4732_v47, %v4740_v36  ;;  %v4574_v24 = vpack.c.bf16 %v4550_v3, %v4550_v3  ;;  %v12774_v47 = vpack.c.bf16 %v12761_v40, %v5077_v38  ;;  %v5599_v3 = vpack.c.bf16 %v5077_v38, %v12717_v33  ;;  %14583 = vst [vmem:[#allocation19_spill] sm:$0xff] %v12802_v35 }
 0x558   : > { %4834 = vst [vmem:[%s12453_s13 + $0x50] sm:$0xf] %v4741_v19  ;;  %v4742_v23 = vrot.slane %v4740_v36, 4 }
 0x559   : > { %v4744_v21 = vshrl.u32 %v4574_v24, 16  ;;  %v4747_v7 = vshll.u32 %v4574_v24, 16  ;;  %v4161_v32 = vpop.f32.mrf.mxu2  ;;  %14579 = vst [vmem:[#allocation15_spill] sm:$0xff] %v12774_v47  ;;  %v12779_v24 = vpack.c.bf16 %v5247_v16, %v5246_v55 }
 0x55a   : > { %v12771_v60 = vpop.f32.mrf.mxu3  ;;  %v4494_v53 = vpop.f32.mrf.mxu0 }
 0x55b   : > { %v4746_v19 = vrot.slane %v4744_v21, 5  ;;  %v4749_v4 = vrot.slane %v4747_v7, 6  ;;  %v4527_v63 = vadd.f32 %v4494_v53, %v4357_v26  ;;  %v12777_v30 = vpop.f32.mrf.mxu1  ;;  %14581 = vst [vmem:[#allocation17_spill] sm:$0xff] %v12779_v24  ;;  %v12799_v7 = vld [vmem:[%s10458_s30 + $0x159] sm:$0xff] }
 0x55c   : > { %14580 = vst [vmem:[#allocation16_spill] sm:$0xff] %v12777_v30  ;;  %v12810_v8 = vpack.c.bf16 %v12802_v35, %v12799_v7 }
 0x55d   : > { %v4750_v11 = vor.u32 %v4749_v4, %v4746_v19  ;;  %v4551_v41 = vmax.f32 %v4527_v63, 0.0  ;;  %9935 = vmatmul.msk.bf16.gmra.mxu0 %vm249_vm1, %v12769_v14  ;;  %v12806_v19 = vld [vmem:[%s10458_s30 + $0x17f] sm:$0xff] }
 0x55e   : > { %9911 = vmatmul.msk.bf16.gmra.mxu2 %vm249_vm1, %v12774_v47  ;;  %9948 = vmatmul.msk.bf16.gmra.mxu1 %vm249_vm1, %v5599_v3  ;;  %v5079_v3 = vld [vmem:[%s10458_s30 + $0x177] sm:$0xff] }
 0x55f   : > { %v4751_v33 = vsel %vm12442_vm4, %v4742_v23, %v4750_v11  ;;  %v4575_v38 = vpack.c.bf16 %v4551_v41, %v4551_v41  ;;  %9924 = vmatmul.msk.bf16.gmra.mxu3 %vm249_vm1, %v12779_v24  ;;  %v4189_v41 = vadd.f32 %v4159_v59, %v12355_v43  ;;  %v5600_v24 = vpack.c.bf16 %v5079_v3, %v12761_v40 }
 0x560   : > { %4835 = vst [vmem:[%s12453_s13 + $0x58] sm:$0xf] %v4751_v33  ;;  %v5248_v33 = vld [vmem:[%s10458_s30 + $0x178] sm:$0xff] }
 0x561   : > { %v4753_v63 = vshrl.u32 %v4575_v38, 16  ;;  %v4756_v28 = vshll.u32 %v4575_v38, 16  ;;  %v4164_v4 = vpop.f32.mrf.mxu2  ;;  %v5249_v38 = vld [vmem:[%s10458_s30 + $0x180] sm:$0xff] }
 0x562   : > { %v12793_v36 = vpop.f32.mrf.mxu3  ;;  %v4496_v55 = vpop.f32.mrf.mxu0 }
 0x563   : > { %v4528_v11 = vadd.f32 %v4496_v55, %v4358_v15  ;;  %v12795_v23 = vpop.f32.mrf.mxu1  ;;  %v4755_v16 = vrot.slane %v4753_v63, 5  ;;  %v4758_v26 = vrot.slane %v4756_v28, 6  ;;  %v4359_v15 = vadd.f32 %v12746_v44, %v4189_v41 }
 0x564   : > { %14582 = vst [vmem:[#allocation18_spill] sm:$0xff] %v12795_v23  ;;  %v12825_v44 = vpack.c.bf16 %v5249_v38, %v5248_v33  ;;  %v4190_v41 = vadd.f32 %v4161_v32, %v12361_v10  ;;  %v12840_v10 = vld [vmem:[%s14540_s2] ss:$0 sm:$0xff] }
 0x565   : > { %v4552_v21 = vmax.f32 %v4528_v11, 0.0  ;;  %v4759_v43 = vor.u32 %v4758_v26, %v4755_v16  ;;  %v5039_v32 = vadd.f32 %v12840_v10, %v12399_v49 }
 0x566   : > { %14585 = vst [vmem:[#allocation21_spill] sm:$0xff] %v12825_v44 }
 0x567   : > { %v4576_v53 = vpack.c.bf16 %v4552_v21, %v4552_v21  ;;  %v12820_v21 = vpack.c.bf16 %v12806_v19, %v5079_v3  ;;  %v4760_v16 = vrot.slane %v4759_v43, 4 }
 0x569   : > { %v4762_v59 = vshrl.u32 %v4576_v53, 16  ;;  %v4765_v63 = vshll.u32 %v4576_v53, 16  ;;  %v12815_v28 = vpop.f32.mrf.mxu2 }
 0x56a   : > { %v12817_v55 = vpop.f32.mrf.mxu3  ;;  %v4499_v11 = vpop.f32.mrf.mxu0 }
 0x56b   : > { %v4764_v23 = vrot.slane %v4762_v59, 5  ;;  %v4767_v30 = vrot.slane %v4765_v63, 6  ;;  %v4529_v35 = vadd.f32 %v4499_v11, %v4359_v15  ;;  %v12823_v47 = vpop.f32.mrf.mxu1 }
 0x56c   : > { %14584 = vst [vmem:[#allocation20_spill] sm:$0xff] %v12823_v47 }
 0x56d   : > { %v4768_v26 = vor.u32 %v4767_v30, %v4764_v23  ;;  %v4553_v53 = vmax.f32 %v4529_v35, 0.0  ;;  %9936 = vmatmul.msk.bf16.gmra.mxu0 %vm249_vm1, %v12810_v8  ;;  %v4360_v30 = vadd.f32 %v12771_v60, %v4190_v41  ;;  %v4191_v60 = vadd.f32 %v4164_v4, %v12374_v51  ;;  %v5251_v51 = vld [vmem:[%s10458_s30 + $0x190] sm:$0xff] }
 0x56e   : > { %9912 = vmatmul.msk.bf16.gmra.mxu2 %vm249_vm1, %v12820_v21  ;;  %9949 = vmatmul.msk.bf16.gmra.mxu1 %vm249_vm1, %v5600_v24 }
 0x56f   : > { %v4769_v40 = vsel %vm12442_vm4, %v4760_v16, %v4768_v26  ;;  %v4577_v3 = vpack.c.bf16 %v4553_v53, %v4553_v53  ;;  %9925 = vmatmul.msk.bf16.gmra.mxu3 %vm249_vm1, %v12825_v44  ;;  %v4770_v41 = vrot.slane %v4768_v26, 4  ;;  %v4361_v4 = vadd.f32 %v12793_v36, %v4191_v60 }
 0x570   : > { %4836 = vst [vmem:[%s12453_s13 + $0x60] sm:$0xf] %v4769_v40  ;;  %v12852_v40 = vld [vmem:[%s10458_s30 + $0x169] sm:$0xff]  ;;  %v4192_v60 = vadd.f32 %v12815_v28, %v12381_v61 }
 0x571   : > { %v4772_v24 = vshrl.u32 %v4577_v3, 16  ;;  %v4775_v23 = vshll.u32 %v4577_v3, 16  ;;  %v5148_v35 = vpop.f32.mrf.mxu2  ;;  %v12855_v3 = vld [vmem:[%s10458_s30 + $0x171] sm:$0xff] }
 0x572   : > { %v5208_v33 = vadd.f32 %v5148_v35, %v5039_v32  ;;  %v4501_v38 = vpop.f32.mrf.mxu0  ;;  %v5317_v15 = vpop.f32.mrf.mxu3  ;;  %v5040_v35 = vadd.f32 %v12840_v10, %v12410_v34  ;;  %v4362_v61 = vadd.f32 %v12817_v55, %v4192_v60  ;;  %v12898_v60 = vld [vmem:[%s10458_s30 + $0x179] sm:$0xff] }
 0x573   : > { %v4774_v43 = vrot.slane %v4772_v24, 5  ;;  %v4777_v59 = vrot.slane %v4775_v23, 6  ;;  %v4530_v63 = vadd.f32 %v4501_v38, %v4360_v30  ;;  %v12846_v49 = vpop.f32.mrf.mxu1  ;;  %v5081_v23 = vld [vmem:[%s10458_s30 + $0x187] sm:$0xff]  ;;  %v12861_v30 = vld [vmem:[%s10458_s30 + $0x18f] sm:$0xff] }
 0x574   : > { %14586 = vst [vmem:[#allocation22_spill] sm:$0xff] %v12846_v49  ;;  %v12848_v11 = vadd.f32 %v5317_v15, %v5208_v33  ;;  %v5250_v33 = vld [vmem:[%s10458_s30 + $0x188] sm:$0xff]  ;;  %v5601_v34 = vpack.c.bf16 %v5081_v23, %v12806_v19 }
 0x575   : > { %v4778_v16 = vor.u32 %v4777_v59, %v4774_v43  ;;  %v4554_v53 = vmax.f32 %v4530_v63, 0.0  ;;  %v12871_v43 = vpack.c.bf16 %v12855_v3, %v12852_v40  ;;  %v12879_v44 = vpack.c.bf16 %v5251_v51, %v5250_v33 }
 0x577   : > { %v4779_v32 = vsel %vm12442_vm4, %v4770_v41, %v4778_v16  ;;  %v4578_v24 = vpack.c.bf16 %v4554_v53, %v4554_v53  ;;  %v12874_v16 = vpack.c.bf16 %v12861_v30, %v5081_v23  ;;  %14589 = vst [vmem:[#allocation25_spill] sm:$0xff] %v12879_v44  ;;  %v5041_v23 = vadd.f32 %v12840_v10, %v12438_v29 }
 0x578   : > { %4837 = vst [vmem:[%s12453_s13 + $0x68] sm:$0xf] %v4779_v32 }
 0x579   : > { %v4781_v26 = vshrl.u32 %v4578_v24, 16  ;;  %v4784_v38 = vshll.u32 %v4578_v24, 16  ;;  %v5150_v15 = vpop.f32.mrf.mxu2  ;;  %14587 = vst [vmem:[#allocation23_spill] sm:$0xff] %v12874_v16 }
 0x57a   : > { %v5209_v59 = vadd.f32 %v5150_v15, %v5040_v35  ;;  %v4504_v63 = vpop.f32.mrf.mxu0  ;;  %v5319_v41 = vpop.f32.mrf.mxu3 }
 0x57b   : > { %v4531_v53 = vadd.f32 %v4504_v63, %v4361_v4  ;;  %v12877_v32 = vpop.f32.mrf.mxu1  ;;  %v4783_v24 = vrot.slane %v4781_v26, 5  ;;  %v4786_v49 = vrot.slane %v4784_v38, 6 }
 0x57c   : > { %14588 = vst [vmem:[#allocation24_spill] sm:$0xff] %v12877_v32  ;;  %v12881_v36 = vadd.f32 %v5319_v41, %v5209_v59 }
 0x57d   : > { %v4555_v35 = vmax.f32 %v4531_v53, 0.0  ;;  %9937 = vmatmul.msk.bf16.gmra.mxu0 %vm249_vm1, %v12871_v43  ;;  %v4787_v28 = vor.u32 %v4786_v49, %v4783_v24  ;;  %v12901_v24 = vld [vmem:[%s10458_s30 + $0x181] sm:$0xff] }
 0x57e   : > { %9913 = vmatmul.msk.bf16.gmra.mxu2 %vm249_vm1, %v12874_v16  ;;  %9950 = vmatmul.msk.bf16.gmra.mxu1 %vm249_vm1, %v5601_v34  ;;  %14591 = vst [vmem:[#allocation27_spill] sm:$0xff] %v12901_v24 }
 0x57f   : > { %v4579_v19 = vpack.c.bf16 %v4555_v35, %v4555_v35  ;;  %9926 = vmatmul.msk.bf16.gmra.mxu3 %vm249_vm1, %v12879_v44  ;;  %v4788_v34 = vrot.slane %v4787_v28, 4 }
 0x581   : > { %v4790_v33 = vshrl.u32 %v4579_v19, 16  ;;  %v4793_v51 = vshll.u32 %v4579_v19, 16  ;;  %v5153_v4 = vpop.f32.mrf.mxu2 }
 0x582   : > { %v5210_v26 = vadd.f32 %v5153_v4, %v5041_v23  ;;  %v4506_v38 = vpop.f32.mrf.mxu0  ;;  %v5322_v15 = vpop.f32.mrf.mxu3  ;;  %v5083_v23 = vld [vmem:[%s10458_s30 + $0x197] sm:$0xff]  ;;  %v5253_v4 = vld [vmem:[%s10458_s30 + $0x1a0] sm:$0xff] }
 0x583   : > { %v4792_v59 = vrot.slane %v4790_v33, 5  ;;  %v4795_v63 = vrot.slane %v4793_v51, 6  ;;  %v4532_v41 = vadd.f32 %v4506_v38, %v4362_v61  ;;  %v12895_v29 = vpop.f32.mrf.mxu1  ;;  %v5084_v33 = vld [vmem:[%s10458_s30 + $0x19f] sm:$0xff]  ;;  %v5042_v51 = vadd.f32 %v12840_v10, %v12459_v31 }
 0x584   : > { %14590 = vst [vmem:[#allocation26_spill] sm:$0xff] %v12895_v29  ;;  %v5379_v55 = vadd.f32 %v5322_v15, %v5210_v26  ;;  %v5252_v61 = vld [vmem:[%s10458_s30 + $0x198] sm:$0xff]  ;;  %v12914_v15 = vpack.c.bf16 %v12901_v24, %v12898_v60 }
 0x585   : > { %v4796_v49 = vor.u32 %v4795_v63, %v4792_v59  ;;  %v4556_v53 = vmax.f32 %v4532_v41, 0.0  ;;  %v12920_v32 = vpack.c.bf16 %v5253_v4, %v5252_v61 }
 0x587   : > { %v4797_v35 = vsel %vm12442_vm4, %v4788_v34, %v4796_v49  ;;  %v4580_v19 = vpack.c.bf16 %v4556_v53, %v4556_v53  ;;  %v12916_v34 = vpack.c.bf16 %v5084_v33, %v5083_v23  ;;  %v5602_v53 = vpack.c.bf16 %v5083_v23, %v12861_v30 }
 0x588   : > { %4838 = vst [vmem:[%s12453_s13 + $0x70] sm:$0xf] %v4797_v35  ;;  %v4798_v47 = vrot.slane %v4796_v49, 4 }
 0x589   : > { %v4800_v26 = vshrl.u32 %v4580_v19, 16  ;;  %v4803_v28 = vshll.u32 %v4580_v19, 16  ;;  %v5155_v38 = vpop.f32.mrf.mxu2 }
 0x58a   : > { %v5211_v59 = vadd.f32 %v5155_v38, %v5042_v51  ;;  %v5324_v63 = vpop.f32.mrf.mxu3  ;;  %v5486_v41 = vpop.f32.mrf.mxu0  ;;  %v5086_v38 = vld [vmem:[%s10458_s30 + $0x1af] sm:$0xff] }
 0x58b   : > { %v4802_v44 = vrot.slane %v4800_v26, 5  ;;  %v4805_v31 = vrot.slane %v4803_v28, 6  ;;  %v5546_v35 = vadd.f32 %v5486_v41, %v12848_v11  ;;  %v5655_v29 = vpop.f32.mrf.mxu1  ;;  %v5085_v28 = vld [vmem:[%s10458_s30 + $0x1a7] sm:$0xff] }
 0x58c   : > { %v5380_v19 = vadd.f32 %v5324_v63, %v5211_v59  ;;  %v5254_v59 = vld [vmem:[%s10458_s30 + $0x1a8] sm:$0xff]  ;;  %v5255_v63 = vld [vmem:[%s10458_s30 + $0x1b0] sm:$0xff] }
 0x58d   : > { %v4806_v16 = vor.u32 %v4805_v31, %v4802_v44  ;;  %v12922_v24 = vadd.f32 %v5655_v29, %v5546_v35  ;;  %9938 = vmatmul.msk.bf16.gmra.mxu0 %vm249_vm1, %v12914_v15  ;;  %v5043_v44 = vadd.f32 %v12840_v10, %v12488_v1  ;;  %v5044_v1 = vadd.f32 %v12840_v10, %v12508_v25 }
 0x58e   : > { %9914 = vmatmul.msk.bf16.gmra.mxu2 %vm249_vm1, %v12916_v34  ;;  %9951 = vmatmul.msk.bf16.gmra.mxu1 %vm249_vm1, %v5602_v53  ;;  %v5045_v25 = vadd.f32 %v12840_v10, %v12534_v37  ;;  %v12982_v37 = vld [vmem:[%s10458_s30 + $0x1a1] sm:$0xff] }
 0x58f   : > { %v4807_v11 = vsel %vm12442_vm4, %v4798_v47, %v4806_v16  ;;  %9927 = vmatmul.msk.bf16.gmra.mxu3 %vm249_vm1, %v12920_v32  ;;  %v12940_v47 = vld [vmem:[%s10458_s30 + $0x189] sm:$0xff]  ;;  %v12943_v16 = vld [vmem:[%s10458_s30 + $0x191] sm:$0xff] }
 0x590   : > { %4839 = vst [vmem:[%s12453_s13 + $0x78] sm:$0xf] %v4807_v11  ;;  %v12953_v53 = vpack.c.bf16 %v12943_v16, %v12940_v47  ;;  %v12955_v11 = vpack.c.bf16 %v5086_v38, %v5085_v28 }
 0x591   : > { %v5158_v30 = vpop.f32.mrf.mxu2 }
 0x592   : > { %v5212_v29 = vadd.f32 %v5158_v30, %v5043_v44  ;;  %v5327_v49 = vpop.f32.mrf.mxu3  ;;  %v5488_v23 = vpop.f32.mrf.mxu0  ;;  %v5603_v44 = vpack.c.bf16 %v5085_v28, %v5084_v33 }
 0x593   : > { %v5547_v51 = vadd.f32 %v5488_v23, %v12881_v36  ;;  %v5657_v61 = vpop.f32.mrf.mxu1 }
 0x594   : > { %v5381_v4 = vadd.f32 %v5327_v49, %v5212_v29  ;;  %v12957_v49 = vpack.c.bf16 %v5255_v63, %v5254_v59 }
 0x595   : > { %v12937_v26 = vadd.f32 %v5657_v61, %v5547_v51 }
 0x599   : > { %v5160_v41 = vpop.f32.mrf.mxu2 }
 0x59a   : > { %v5213_v36 = vadd.f32 %v5160_v41, %v5044_v1  ;;  %v5329_v31 = vpop.f32.mrf.mxu3  ;;  %v5491_v35 = vpop.f32.mrf.mxu0 }
 0x59b   : > { %v5548_v30 = vadd.f32 %v5491_v35, %v5379_v55  ;;  %v5660_v29 = vpop.f32.mrf.mxu1  ;;  %v12979_v35 = vld [vmem:[%s10458_s30 + $0x199] sm:$0xff] }
 0x59c   : > { %v5382_v23 = vadd.f32 %v5329_v31, %v5213_v36  ;;  %v10007_v36 = vld [vmem:[%s14539_s1 + $0x24] sm:$0xf]  ;;  %v10020_v31 = vld [vmem:[%s14539_s1 + $0x28] sm:$0xf] }
 0x59d   : > { %v12959_v51 = vadd.f32 %v5660_v29, %v5548_v30  ;;  %9939 = vmatmul.msk.bf16.gmra.mxu0 %vm249_vm1, %v12953_v53  ;;  %v12987_v30 = vld [vmem:[%s10458_s30 + $0x1b7] sm:$0xff]  ;;  %v5046_v29 = vadd.f32 %v12840_v10, %v12549_v6  ;;  %v10033_v6 = vld [vmem:[%s14539_s1 + $0x2c] sm:$0xf] }
 0x59e   : > { %9915 = vmatmul.msk.bf16.gmra.mxu2 %vm249_vm1, %v12955_v11  ;;  %9952 = vmatmul.msk.bf16.gmra.mxu1 %vm249_vm1, %v5603_v44  ;;  %v6489_v44 = vsel %vm356_vm0, %v10007_v36, 0 }
 0x59f   : > { %9928 = vmatmul.msk.bf16.gmra.mxu3 %vm249_vm1, %v12957_v49  ;;  %6498 = vmatpush.bf16.msrb.mxu2 %v6489_v44 }
 0x5a1   : > { %v5163_v55 = vpop.f32.mrf.mxu2 }
 0x5a2   : > { %v5214_v33 = vadd.f32 %v5163_v55, %v5045_v25  ;;  %v5332_v61 = vpop.f32.mrf.mxu3  ;;  %v5493_v28 = vpop.f32.mrf.mxu0  ;;  %v12993_v55 = vpack.c.bf16 %v12982_v37, %v12979_v35 }
 0x5a3   : > { %v5549_v1 = vadd.f32 %v5493_v28, %v5380_v19  ;;  %v5662_v59 = vpop.f32.mrf.mxu1  ;;  %v6658_v19 = vsel %vm356_vm0, %v10020_v31, 0 }
 0x5a4   : > { %v5383_v63 = vadd.f32 %v5332_v61, %v5214_v33  ;;  %6667 = vmatpush.bf16.msrb.mxu3 %v6658_v19 }
 0x5a5   : > { %v12970_v41 = vadd.f32 %v5662_v59, %v5549_v1  ;;  %v5604_v1 = vpack.c.bf16 %v12987_v30, %v5086_v38  ;;  %v5763_v59 = vpack.c.bf16 %v12620_v0, %v12583_v13  ;;  %v6827_v13 = vsel %vm356_vm0, %v10033_v6, 0  ;;  %v10046_v0 = vld [vmem:[%s14539_s1 + $0x30] sm:$0xf]  ;;  %v13025_v6 = vld [vmem:[%s10458_s30 + $0x1bf] sm:$0xff] }
 0x5a6   : > { %6836 = vmatpush.bf16.msrb.mxu0 %v6827_v13  ;;  %v6996_v38 = vsel %vm356_vm0, %v10046_v0, 0  ;;  %v5048_v13 = vadd.f32 %v12840_v10, %v12578_v42  ;;  %v5049_v42 = vadd.f32 %v12840_v10, %v12602_v5 }
 0x5a7   : > { %7005 = vmatpush.bf16.msrb.mxu1 %v6996_v38 }
 0x5a9   : > { %v5165_v25 = vpop.f32.mrf.mxu2 }
 0x5aa   : > { %v5215_v33 = vadd.f32 %v5165_v25, %v5046_v29  ;;  %v5334_v61 = vpop.f32.mrf.mxu3  ;;  %v5496_v28 = vpop.f32.mrf.mxu0 }
 0x5ab   : > { %v5550_v36 = vadd.f32 %v5496_v28, %v5381_v4  ;;  %v5665_v31 = vpop.f32.mrf.mxu1  ;;  %v5047_v4 = vadd.f32 %v12840_v10, %v12564_v57  ;;  %v13028_v57 = vld [vmem:[%s10458_s30 + $0x1c7] sm:$0xff] }
 0x5ac   : > { %v5384_v44 = vadd.f32 %v5334_v61, %v5215_v33 }
 0x5ad   : > { %v12998_v19 = vadd.f32 %v5665_v31, %v5550_v36  ;;  %9940 = vmatmul.msk.bf16.gmra.mxu0 %vm249_vm1, %v12993_v55  ;;  %v13019_v36 = vld [vmem:[%s10458_s30 + $0x1a9] sm:$0xff]  ;;  %v13022_v31 = vld [vmem:[%s10458_s30 + $0x1b1] sm:$0xff] }
 0x5ae   : > { %9953 = vmatmul.msk.bf16.gmra.mxu1 %vm249_vm1, %v5604_v1  ;;  %9956 = vmatmul.msk.bf16.vlgmr.msra.gmra.mxu2 %vm249_vm1, %v5763_v59 }
 0x5af   : > { %9969 = vmatmul.msk.bf16.vlgmr.msra.gmra.mxu3 %vm249_vm1, %v12599_v17 }
 0x5b1   : > { %v5168_v29 = vpop.f32.mrf.mxu2 }
 0x5b2   : > { %v5216_v25 = vadd.f32 %v5168_v29, %v5047_v4  ;;  %v5337_v33 = vpop.f32.mrf.mxu3  ;;  %v5498_v17 = vpop.f32.mrf.mxu0  ;;  %v13034_v4 = vpack.c.bf16 %v13022_v31, %v13019_v36 }
 0x5b3   : > { %v5551_v61 = vadd.f32 %v5498_v17, %v5382_v23  ;;  %v5667_v28 = vpop.f32.mrf.mxu1 }
 0x5b4   : > { %v5385_v1 = vadd.f32 %v5337_v33, %v5216_v25  ;;  %v5605_v25 = vpack.c.bf16 %v13028_v57, %v13025_v6  ;;  %v5764_v33 = vpack.c.bf16 %v12664_v12, %v12623_v22 }
 0x5b5   : > { %v13016_v59 = vadd.f32 %v5667_v28, %v5551_v61 }
 0x5b7   : > { %14592 = vst [vmem:[#allocation28_spill] sm:$0xff] %v13016_v59 }
 0x5b9   : > { %v5170_v0 = vpop.f32.mrf.mxu2 }
 0x5ba   : > { %v5217_v23 = vadd.f32 %v5170_v0, %v5048_v13  ;;  %v5339_v38 = vpop.f32.mrf.mxu3  ;;  %v5501_v29 = vpop.f32.mrf.mxu0 }
 0x5bb   : > { %v5552_v17 = vadd.f32 %v5501_v29, %v5383_v63  ;;  %v5670_v61 = vpop.f32.mrf.mxu1 }
 0x5bc   : > { %v5386_v28 = vadd.f32 %v5339_v38, %v5217_v23 }
 0x5bd   : > { %v13040_v56 = vadd.f32 %v5670_v61, %v5552_v17  ;;  %9941 = vmatmul.msk.bf16.gmra.mxu0 %vm249_vm1, %v13034_v4 }
 0x5be   : > { %9954 = vmatmul.msk.bf16.gmra.mxu1 %vm249_vm1, %v5605_v25  ;;  %9957 = vmatmul.msk.bf16.gmra.mxu2 %vm249_vm1, %v5764_v33  ;;  %v5050_v25 = vadd.f32 %v12840_v10, %v12616_v27  ;;  %v5051_v27 = vadd.f32 %v12840_v10, %v12643_v52 }
 0x5bf   : > { %14593 = vst [vmem:[#allocation29_spill] sm:$0xff] %v13040_v56  ;;  %9970 = vmatmul.msk.bf16.gmra.mxu3 %vm249_vm1, %v12640_v2  ;;  %v5765_v2 = vpack.c.bf16 %v12708_v48, %v12667_v18 }
 0x5c1   : > { %v5173_v13 = vpop.f32.mrf.mxu2 }
 0x5c2   : > { %v5218_v22 = vadd.f32 %v5173_v13, %v5049_v42  ;;  %v5342_v12 = vpop.f32.mrf.mxu3  ;;  %v5503_v63 = vpop.f32.mrf.mxu0 }
 0x5c3   : > { %v5553_v0 = vadd.f32 %v5503_v63, %v5384_v44  ;;  %v5672_v23 = vpop.f32.mrf.mxu1 }
 0x5c4   : > { %v5387_v38 = vadd.f32 %v5342_v12, %v5218_v22 }
 0x5c5   : > { %v13050_v29 = vadd.f32 %v5672_v23, %v5553_v0 }
 0x5c9   : > { %v5175_v17 = vpop.f32.mrf.mxu2 }
 0x5ca   : > { %v5219_v33 = vadd.f32 %v5175_v17, %v5050_v25  ;;  %v5344_v61 = vpop.f32.mrf.mxu3  ;;  %v5506_v56 = vpop.f32.mrf.mxu0 }
 0x5cb   : > { %v5554_v5 = vadd.f32 %v5506_v56, %v5385_v1  ;;  %v5675_v59 = vpop.f32.mrf.mxu1 }
 0x5cc   : > { %v5388_v42 = vadd.f32 %v5344_v61, %v5219_v33 }
 0x5cd   : > { %v13056_v13 = vadd.f32 %v5675_v59, %v5554_v5  ;;  %9982 = vmatmul.msk.bf16.vlgmr.msra.gmra.mxu0 %vm249_vm1, %v12604_v50  ;;  %v5052_v50 = vadd.f32 %v12840_v10, %v12660_v54  ;;  %v14594_v54 = vld [vmem:[#allocation6_spill] sm:$0xff] }
 0x5ce   : > { %9958 = vmatmul.msk.bf16.gmra.mxu2 %vm249_vm1, %v5765_v2  ;;  %9995 = vmatmul.msk.bf16.vlgmr.msra.gmra.mxu1 %vm249_vm1, %v12675_v39 }
 0x5cf   : > { %9971 = vmatmul.msk.bf16.gmra.mxu3 %vm249_vm1, %v12683_v62  ;;  %v5766_v62 = vpack.c.bf16 %v12752_v20, %v12711_v45 }
 0x5d1   : > { %v5178_v18 = vpop.f32.mrf.mxu2 }
 0x5d2   : > { %v5220_v56 = vadd.f32 %v5178_v18, %v5051_v27  ;;  %v5347_v48 = vpop.f32.mrf.mxu3  ;;  %v5508_v44 = vpop.f32.mrf.mxu0 }
 0x5d3   : > { %v5555_v1 = vadd.f32 %v5508_v44, %v5386_v28  ;;  %v5677_v59 = vpop.f32.mrf.mxu1  ;;  %v5053_v28 = vadd.f32 %v12840_v10, %v14594_v54 }
 0x5d4   : > { %v5389_v22 = vadd.f32 %v5347_v48, %v5220_v56 }
 0x5d5   : > { %v13067_v12 = vadd.f32 %v5677_v59, %v5555_v1 }
 0x5d9   : > { %v5180_v63 = vpop.f32.mrf.mxu2 }
 0x5da   : > { %v5221_v39 = vadd.f32 %v5180_v63, %v5052_v50  ;;  %v5349_v0 = vpop.f32.mrf.mxu3  ;;  %v5511_v23 = vpop.f32.mrf.mxu0 }
 0x5db   : > { %v5556_v52 = vadd.f32 %v5511_v23, %v5387_v38  ;;  %v5680_v25 = vpop.f32.mrf.mxu1  ;;  %v14598_v23 = vld [vmem:[#allocation15_spill] sm:$0xff] }
 0x5dc   : > { %v5390_v17 = vadd.f32 %v5349_v0, %v5221_v39 }
 0x5dd   : > { %v13073_v33 = vadd.f32 %v5680_v25, %v5556_v52  ;;  %9983 = vmatmul.msk.bf16.gmra.mxu0 %vm249_vm1, %v12645_v58  ;;  %v14595_v58 = vld [vmem:[#allocation10_spill] sm:$0xff] }
 0x5de   : > { %9959 = vmatmul.msk.bf16.gmra.mxu2 %vm249_vm1, %v5766_v62  ;;  %9996 = vmatmul.msk.bf16.gmra.mxu1 %vm249_vm1, %v12725_v9  ;;  %v5054_v56 = vadd.f32 %v12840_v10, %v14595_v58  ;;  %v14599_v62 = vld [vmem:[#allocation11_spill] sm:$0xff] }
 0x5df   : > { %9972 = vmatmul.msk.bf16.gmra.mxu3 %vm249_vm1, %v12730_v46  ;;  %v14596_v46 = vld [vmem:[#allocation14_spill] sm:$0xff]  ;;  %v5055_v52 = vadd.f32 %v12840_v10, %v14599_v62 }
 0x5e0   : > { %v5767_v59 = vpack.c.bf16 %v12799_v7, %v14596_v46 }
 0x5e1   : > { %v5183_v45 = vpop.f32.mrf.mxu2 }
 0x5e2   : > { %v5222_v20 = vadd.f32 %v5183_v45, %v5053_v28  ;;  %v5352_v38 = vpop.f32.mrf.mxu3  ;;  %v5513_v61 = vpop.f32.mrf.mxu0 }
 0x5e3   : > { %v5557_v2 = vadd.f32 %v5513_v61, %v5388_v42  ;;  %v5682_v5 = vpop.f32.mrf.mxu1  ;;  %v14597_v42 = vld [vmem:[#allocation9_spill] sm:$0xff] }
 0x5e4   : > { %v5391_v27 = vadd.f32 %v5352_v38, %v5222_v20  ;;  %v14600_v61 = vld [vmem:[#allocation13_spill] sm:$0xff] }
 0x5e5   : > { %v13084_v18 = vadd.f32 %v5682_v5, %v5557_v2  ;;  %v5056_v2 = vadd.f32 %v12840_v10, %v14600_v61 }
 0x5e9   : > { %v5185_v48 = vpop.f32.mrf.mxu2 }
 0x5ea   : > { %v5223_v9 = vadd.f32 %v5185_v48, %v5054_v56  ;;  %v5354_v44 = vpop.f32.mrf.mxu3  ;;  %v5516_v1 = vpop.f32.mrf.mxu0  ;;  %v14601_v48 = vld [vmem:[#allocation19_spill] sm:$0xff] }
 0x5eb   : > { %v5558_v50 = vadd.f32 %v5516_v1, %v5389_v22  ;;  %v5685_v63 = vpop.f32.mrf.mxu1 }
 0x5ec   : > { %v5392_v39 = vadd.f32 %v5354_v44, %v5223_v9  ;;  %v5768_v9 = vpack.c.bf16 %v12852_v40, %v14601_v48  ;;  %v14607_v48 = vld [vmem:[#allocation20_spill] sm:$0xff] }
 0x5ed   : > { %v13090_v0 = vadd.f32 %v5685_v63, %v5558_v50  ;;  %9984 = vmatmul.msk.bf16.gmra.mxu0 %vm249_vm1, %v14597_v42  ;;  %v14603_v50 = vld [vmem:[#allocation16_spill] sm:$0xff] }
 0x5ee   : > { %9960 = vmatmul.msk.bf16.gmra.mxu2 %vm249_vm1, %v5767_v59  ;;  %9997 = vmatmul.msk.bf16.gmra.mxu1 %vm249_vm1, %v12769_v14  ;;  %v5057_v63 = vadd.f32 %v12840_v10, %v14603_v50 }
 0x5ef   : > { %9973 = vmatmul.msk.bf16.gmra.mxu3 %vm249_vm1, %v14598_v23 }
 0x5f1   : > { %v5188_v7 = vpop.f32.mrf.mxu2 }
 0x5f2   : > { %v5224_v22 = vadd.f32 %v5188_v7, %v5055_v52  ;;  %v5357_v25 = vpop.f32.mrf.mxu3  ;;  %v5518_v54 = vpop.f32.mrf.mxu0 }
 0x5f3   : > { %v5559_v28 = vadd.f32 %v5518_v54, %v5390_v17  ;;  %v5687_v45 = vpop.f32.mrf.mxu1  ;;  %v14602_v17 = vld [vmem:[#allocation12_spill] sm:$0xff] }
 0x5f4   : > { %v5393_v20 = vadd.f32 %v5357_v25, %v5224_v22  ;;  %v14604_v25 = vld [vmem:[#allocation18_spill] sm:$0xff] }
 0x5f5   : > { %v13101_v38 = vadd.f32 %v5687_v45, %v5559_v28  ;;  %v5058_v54 = vadd.f32 %v12840_v10, %v14604_v25 }
 0x5f9   : > { %v5190_v5 = vpop.f32.mrf.mxu2 }
 0x5fa   : > { %v5225_v14 = vadd.f32 %v5190_v5, %v5056_v2  ;;  %v5359_v58 = vpop.f32.mrf.mxu3  ;;  %v5521_v56 = vpop.f32.mrf.mxu0 }
 0x5fb   : > { %v5560_v44 = vadd.f32 %v5521_v56, %v5391_v27  ;;  %v5690_v1 = vpop.f32.mrf.mxu1  ;;  %v14606_v56 = vld [vmem:[#allocation23_spill] sm:$0xff] }
 0x5fc   : > { %v5394_v46 = vadd.f32 %v5359_v58, %v5225_v14 }
 0x5fd   : > { %v13107_v59 = vadd.f32 %v5690_v1, %v5560_v44  ;;  %9985 = vmatmul.msk.bf16.gmra.mxu0 %vm249_vm1, %v14602_v17 }
 0x5fe   : > { %9961 = vmatmul.msk.bf16.gmra.mxu2 %vm249_vm1, %v5768_v9  ;;  %9998 = vmatmul.msk.bf16.gmra.mxu1 %vm249_vm1, %v12810_v8  ;;  %v5059_v9 = vadd.f32 %v12840_v10, %v14607_v48 }
 0x5ff   : > { %9974 = vmatmul.msk.bf16.gmra.mxu3 %vm249_vm1, %v12820_v21  ;;  %v5769_v21 = vpack.c.bf16 %v12898_v60, %v12855_v3 }
 0x601   : > { %v5193_v40 = vpop.f32.mrf.mxu2 }
 0x602   : > { %v5226_v27 = vadd.f32 %v5193_v40, %v5057_v63  ;;  %v5362_v42 = vpop.f32.mrf.mxu3  ;;  %v5523_v23 = vpop.f32.mrf.mxu0  ;;  %v14608_v40 = vld [vmem:[#allocation22_spill] sm:$0xff] }
 0x603   : > { %v5561_v62 = vadd.f32 %v5523_v23, %v5392_v39  ;;  %v5692_v52 = vpop.f32.mrf.mxu1  ;;  %v14605_v39 = vld [vmem:[#allocation17_spill] sm:$0xff] }
 0x604   : > { %v5395_v7 = vadd.f32 %v5362_v42, %v5226_v27  ;;  %v5060_v27 = vadd.f32 %v12840_v10, %v14608_v40 }
 0x605   : > { %v13118_v22 = vadd.f32 %v5692_v52, %v5561_v62  ;;  %v14609_v52 = vld [vmem:[#allocation27_spill] sm:$0xff] }
 0x606   : > { %v5770_v25 = vpack.c.bf16 %v12940_v47, %v14609_v52 }
 0x609   : > { %v5195_v28 = vpop.f32.mrf.mxu2 }
 0x60a   : > { %v5227_v8 = vadd.f32 %v5195_v28, %v5058_v54  ;;  %v5364_v45 = vpop.f32.mrf.mxu3  ;;  %v5526_v61 = vpop.f32.mrf.mxu0 }
 0x60b   : > { %v5562_v2 = vadd.f32 %v5526_v61, %v5393_v20  ;;  %v5695_v5 = vpop.f32.mrf.mxu1  ;;  %v14611_v61 = vld [vmem:[#allocation24_spill] sm:$0xff] }
 0x60c   : > { %v5396_v14 = vadd.f32 %v5364_v45, %v5227_v8 }
 0x60d   : > { %v13124_v58 = vadd.f32 %v5695_v5, %v5562_v2  ;;  %9986 = vmatmul.msk.bf16.gmra.mxu0 %vm249_vm1, %v14605_v39 }
 0x60e   : > { %9962 = vmatmul.msk.bf16.gmra.mxu2 %vm249_vm1, %v5769_v21  ;;  %9999 = vmatmul.msk.bf16.gmra.mxu1 %vm249_vm1, %v12871_v43  ;;  %v5061_v21 = vadd.f32 %v12840_v10, %v14611_v61 }
 0x60f   : > { %9975 = vmatmul.msk.bf16.gmra.mxu3 %vm249_vm1, %v14606_v56 }
 0x611   : > { %v5198_v3 = vpop.f32.mrf.mxu2 }
 0x612   : > { %v5228_v60 = vadd.f32 %v5198_v3, %v5059_v9  ;;  %v5367_v20 = vpop.f32.mrf.mxu3  ;;  %v5528_v44 = vpop.f32.mrf.mxu0  ;;  %v14612_v3 = vld [vmem:[#allocation26_spill] sm:$0xff] }
 0x613   : > { %v5563_v1 = vadd.f32 %v5528_v44, %v5394_v46  ;;  %v5697_v17 = vpop.f32.mrf.mxu1  ;;  %v14610_v46 = vld [vmem:[#allocation21_spill] sm:$0xff] }
 0x614   : > { %v5397_v50 = vadd.f32 %v5367_v20, %v5228_v60  ;;  %v5062_v60 = vadd.f32 %v12840_v10, %v14612_v3 }
 0x615   : > { %v13135_v63 = vadd.f32 %v5697_v17, %v5563_v1 }
 0x619   : > { %v5200_v42 = vpop.f32.mrf.mxu2 }
 0x61a   : > { %v5229_v43 = vadd.f32 %v5200_v42, %v5060_v27  ;;  %v5369_v23 = vpop.f32.mrf.mxu3  ;;  %v5531_v62 = vpop.f32.mrf.mxu0 }
 0x61b   : > { %v5564_v54 = vadd.f32 %v5531_v62, %v5395_v7  ;;  %v5700_v28 = vpop.f32.mrf.mxu1 }
 0x61c   : > { %v5398_v8 = vadd.f32 %v5369_v23, %v5229_v43 }
 0x61d   : > { %v13141_v45 = vadd.f32 %v5700_v28, %v5564_v54  ;;  %9987 = vmatmul.msk.bf16.gmra.mxu0 %vm249_vm1, %v14610_v46 }
 0x61e   : > { %9963 = vmatmul.msk.bf16.gmra.mxu2 %vm249_vm1, %v5770_v25  ;;  %10000 = vmatmul.msk.bf16.gmra.mxu1 %vm249_vm1, %v12914_v15 }
 0x61f   : > { %9976 = vmatmul.msk.bf16.gmra.mxu3 %vm249_vm1, %v12916_v34  ;;  %v5771_v34 = vpack.c.bf16 %v12979_v35, %v12943_v16 }
 0x621   : > { %v5203_v47 = vpop.f32.mrf.mxu2 }
 0x622   : > { %v5230_v7 = vadd.f32 %v5203_v47, %v5061_v21  ;;  %v5372_v2 = vpop.f32.mrf.mxu3  ;;  %v5533_v5 = vpop.f32.mrf.mxu0 }
 0x623   : > { %v5565_v39 = vadd.f32 %v5533_v5, %v5396_v14  ;;  %v5702_v56 = vpop.f32.mrf.mxu1  ;;  %v14613_v14 = vld [vmem:[#allocation25_spill] sm:$0xff] }
 0x624   : > { %v5399_v48 = vadd.f32 %v5372_v2, %v5230_v7  ;;  %v5760_v5 = vld [vmem:[%s10458_s30 + $0x1b9] sm:$0xff] }
 0x625   : > { %v13152_v9 = vadd.f32 %v5702_v56, %v5565_v39  ;;  %v5929_v39 = vld [vmem:[%s10458_s30 + $0x1cf] sm:$0xff] }
 0x629   : > { %v5205_v20 = vpop.f32.mrf.mxu2 }
 0x62a   : > { %v5231_v15 = vadd.f32 %v5205_v20, %v5062_v60  ;;  %v5374_v44 = vpop.f32.mrf.mxu3  ;;  %v5536_v1 = vpop.f32.mrf.mxu0 }
 0x62b   : > { %v5566_v17 = vadd.f32 %v5536_v1, %v5397_v50  ;;  %v5705_v40 = vpop.f32.mrf.mxu1 }
 0x62c   : > { %v5400_v27 = vadd.f32 %v5374_v44, %v5231_v15 }
 0x62d   : > { %v13158_v42 = vadd.f32 %v5705_v40, %v5566_v17  ;;  %9988 = vmatmul.msk.bf16.gmra.mxu0 %vm249_vm1, %v14613_v14  ;;  %v6096_v14 = vld [vmem:[%s10458_s30 + $0x1c0] sm:$0xff] }
 0x62e   : > { %9964 = vmatmul.msk.bf16.gmra.mxu2 %vm249_vm1, %v5771_v34  ;;  %10001 = vmatmul.msk.bf16.gmra.mxu1 %vm249_vm1, %v12953_v53  ;;  %v5772_v53 = vpack.c.bf16 %v13019_v36, %v12982_v37 }
 0x62f   : > { %9977 = vmatmul.msk.bf16.gmra.mxu3 %vm249_vm1, %v12955_v11 }
 0x631   : > { %v5824_v10 = vpop.f32.mrf.mxu2 }
 0x632   : > { %v5884_v43 = vadd.f32 %v5824_v10, %v12922_v24  ;;  %v5538_v16 = vpop.f32.mrf.mxu0  ;;  %v5993_v35 = vpop.f32.mrf.mxu3  ;;  %v5941_v24 = vpack.c.bf16 %v13025_v6, %v12987_v30  ;;  %v5761_v10 = vld [vmem:[%s10458_s30 + $0x1c1] sm:$0xff] }
 0x633   : > { %v5567_v50 = vadd.f32 %v5538_v16, %v5398_v8  ;;  %v5707_v23 = vpop.f32.mrf.mxu1  ;;  %v5930_v16 = vld [vmem:[%s10458_s30 + $0x1d7] sm:$0xff] }
 0x634   : > { %v6053_v62 = vadd.f32 %v5993_v35, %v5884_v43  ;;  %v5762_v43 = vld [vmem:[%s10458_s30 + $0x1c9] sm:$0xff]  ;;  %v5931_v35 = vld [vmem:[%s10458_s30 + $0x1df] sm:$0xff] }
 0x635   : > { %v13168_v52 = vadd.f32 %v5707_v23, %v5567_v50  ;;  %v14614_v23 = vld [vmem:[#allocation28_spill] sm:$0xff] }
 0x639   : > { %v5826_v25 = vpop.f32.mrf.mxu2 }
 0x63a   : > { %v5885_v54 = vadd.f32 %v5826_v25, %v12937_v26  ;;  %v5541_v28 = vpop.f32.mrf.mxu0  ;;  %v5995_v46 = vpop.f32.mrf.mxu3 }
 0x63b   : > { %v5568_v61 = vadd.f32 %v5541_v28, %v5399_v48  ;;  %v5710_v11 = vpop.f32.mrf.mxu1  ;;  %v6279_v28 = vpack.c.bf16 %v5761_v10, %v5760_v5 }
 0x63c   : > { %v6054_v8 = vadd.f32 %v5995_v46, %v5885_v54 }
 0x63d   : > { %v13175_v21 = vadd.f32 %v5710_v11, %v5568_v61  ;;  %9989 = vmatmul.msk.bf16.gmra.mxu0 %vm249_vm1, %v12920_v32  ;;  %v5943_v61 = vpack.c.bf16 %v5931_v35, %v5930_v16 }
 0x63e   : > { %9965 = vmatmul.msk.bf16.gmra.mxu2 %vm249_vm1, %v5772_v53  ;;  %10002 = vmatmul.msk.bf16.gmra.mxu1 %vm249_vm1, %v12993_v55  ;;  %v5773_v55 = vpack.c.bf16 %v5760_v5, %v13022_v31 }
 0x63f   : > { %9978 = vmatmul.msk.bf16.gmra.mxu3 %vm249_vm1, %v5941_v24 }
 0x641   : > { %v5829_v26 = vpop.f32.mrf.mxu2 }
 0x642   : > { %v5886_v37 = vadd.f32 %v5829_v26, %v12959_v51  ;;  %v5543_v36 = vpop.f32.mrf.mxu0  ;;  %v5998_v47 = vpop.f32.mrf.mxu3  ;;  %v5942_v51 = vpack.c.bf16 %v5929_v39, %v13028_v57  ;;  %v14615_v26 = vld [vmem:[#allocation29_spill] sm:$0xff]  ;;  %v10059_v39 = vld [vmem:[%s14539_s1 + $0x34] sm:$0xf] }
 0x643   : > { %v5569_v30 = vadd.f32 %v5543_v36, %v5400_v27  ;;  %v5712_v6 = vpop.f32.mrf.mxu1 }
 0x644   : > { %v6055_v7 = vadd.f32 %v5998_v47, %v5886_v37 }
 0x645   : > { %v13184_v2 = vadd.f32 %v5712_v6, %v5569_v30 }
 0x649   : > { %v5831_v32 = vpop.f32.mrf.mxu2 }
 0x64a   : > { %v5887_v56 = vadd.f32 %v5831_v32, %v12970_v41  ;;  %v6000_v48 = vpop.f32.mrf.mxu3  ;;  %v6162_v3 = vpop.f32.mrf.mxu0  ;;  %v10072_v32 = vld [vmem:[%s14539_s1 + $0x38] sm:$0xf] }
 0x64b   : > { %v6222_v60 = vadd.f32 %v6162_v3, %v6053_v62  ;;  %v6331_v20 = vpop.f32.mrf.mxu1  ;;  %v7165_v3 = vsel %vm356_vm0, %v10059_v39, 0  ;;  %v6587_v39 = vld [vmem:[%s10458_s30 + $0xf8] sm:$0xff] }
 0x64c   : > { %v6056_v15 = vadd.f32 %v6000_v48, %v5887_v56  ;;  %v6097_v56 = vld [vmem:[%s10458_s30 + $0x1c8] sm:$0xff]  ;;  %v6098_v48 = vld [vmem:[%s10458_s30 + $0x1d0] sm:$0xff]  ;;  %7174 = vmatpush.bf16.msra.mxu2 %v7165_v3 }
 0x64d   : > { %v13191_v44 = vadd.f32 %v6331_v20, %v6222_v60  ;;  %9990 = vmatmul.msk.bf16.gmra.mxu0 %vm249_vm1, %v12957_v49  ;;  %v6095_v49 = vld [vmem:[%s10458_s30 + $0x1b8] sm:$0xff] }
 0x64e   : > { %9966 = vmatmul.msk.bf16.gmra.mxu2 %vm249_vm1, %v5773_v55  ;;  %10003 = vmatmul.msk.bf16.gmra.mxu1 %vm249_vm1, %v13034_v4  ;;  %v6110_v4 = vpack.c.bf16 %v6096_v14, %v6095_v49  ;;  %v7334_v55 = vsel %vm356_vm0, %v10072_v32, 0  ;;  %v6267_v60 = vld [vmem:[%s10458_s30 + $0x1d1] sm:$0xff]  ;;  %v6415_v20 = vld [vmem:[%s10458_s30 + $0xde] sm:$0xff] }
 0x64f   : > { %9979 = vmatmul.msk.bf16.gmra.mxu3 %vm249_vm1, %v5942_v51  ;;  %v6416_v51 = vld [vmem:[%s10458_s30 + $0xe6] sm:$0xff]  ;;  %v6280_v49 = vpack.c.bf16 %v6267_v60, %v5762_v43 }
 0x650   : > { %7343 = vmatpush.bf16.msra.mxu3 %v7334_v55  ;;  %v6439_v14 = vpack.c.bf16 %v6416_v51, %v6415_v20 }
 0x651   : > { %v5834_v41 = vpop.f32.mrf.mxu2 }
 0x652   : > { %v5888_v31 = vadd.f32 %v5834_v41, %v12998_v19  ;;  %v6003_v57 = vpop.f32.mrf.mxu3  ;;  %v6164_v1 = vpop.f32.mrf.mxu0  ;;  %v5774_v19 = vpack.c.bf16 %v5762_v43, %v5761_v10  ;;  %v6585_v41 = vld [vmem:[%s10458_s30 + $0xe8] sm:$0xff]  ;;  %v10098_v43 = vld [vmem:[%s14539_s1 + $0x40] sm:$0xf] }
 0x653   : > { %v6223_v34 = vadd.f32 %v6164_v1, %v6054_v8  ;;  %v6333_v17 = vpop.f32.mrf.mxu1 }
 0x654   : > { %v6057_v40 = vadd.f32 %v6003_v57, %v5888_v31  ;;  %v6111_v57 = vpack.c.bf16 %v6098_v48, %v6097_v56 }
 0x655   : > { %v13200_v27 = vadd.f32 %v6333_v17, %v6223_v34 }
 0x659   : > { %v5836_v50 = vpop.f32.mrf.mxu2 }
 0x65a   : > { %v5889_v62 = vadd.f32 %v5836_v50, %v14614_v23  ;;  %v6005_v25 = vpop.f32.mrf.mxu3  ;;  %v6167_v54 = vpop.f32.mrf.mxu0  ;;  %v7672_v23 = vsel %vm356_vm0, %v10098_v43, 0  ;;  %v6588_v43 = vld [vmem:[%s10458_s30 + $0x100] sm:$0xff] }
 0x65b   : > { %v6224_v46 = vadd.f32 %v6167_v54, %v6055_v7  ;;  %v6336_v53 = vpop.f32.mrf.mxu1  ;;  %7681 = vmatpush.bf16.msra.mxu1 %v7672_v23  ;;  %v6589_v23 = vld [vmem:[%s10458_s30 + $0x108] sm:$0xff] }
 0x65c   : > { %v6058_v11 = vadd.f32 %v6005_v25, %v5889_v62 }
 0x65d   : > { %v13209_v24 = vadd.f32 %v6336_v53, %v6224_v46  ;;  %9991 = vmatmul.msk.bf16.gmra.mxu0 %vm249_vm1, %v6110_v4 }
 0x65e   : > { %9967 = vmatmul.msk.bf16.gmra.mxu2 %vm249_vm1, %v5774_v19  ;;  %10004 = vmatmul.msk.bf16.gmra.mxu1 %vm249_vm1, %v6279_v28 }
 0x65f   : > { %9980 = vmatmul.msk.bf16.gmra.mxu3 %vm249_vm1, %v5943_v61 }
 0x661   : > { %v5839_v8 = vpop.f32.mrf.mxu2 }
 0x662   : > { %v5890_v37 = vadd.f32 %v5839_v8, %v14615_v26  ;;  %v6008_v36 = vpop.f32.mrf.mxu3  ;;  %v6169_v47 = vpop.f32.mrf.mxu0  ;;  %v6099_v8 = vld [vmem:[%s10458_s30 + $0x1d8] sm:$0xff]  ;;  %v6100_v26 = vld [vmem:[%s10458_s30 + $0x1e0] sm:$0xff] }
 0x663   : > { %v6225_v30 = vadd.f32 %v6169_v47, %v6056_v15  ;;  %v6338_v6 = vpop.f32.mrf.mxu1  ;;  %v6584_v15 = vld [vmem:[%s10458_s30 + $0xe0] sm:$0xff]  ;;  %v6417_v47 = vld [vmem:[%s10458_s30 + $0xee] sm:$0xff]  ;;  %v6112_v56 = vpack.c.bf16 %v6100_v26, %v6099_v8  ;;  %v6610_v26 = vpack.c.bf16 %v6589_v23, %v6588_v43 }
 0x664   : > { %v6059_v7 = vadd.f32 %v6008_v36, %v5890_v37  ;;  %v6608_v35 = vpack.c.bf16 %v6585_v41, %v6584_v15  ;;  %v6268_v37 = vld [vmem:[%s10458_s30 + $0x1d9] sm:$0xff]  ;;  %v6269_v36 = vld [vmem:[%s10458_s30 + $0x1e1] sm:$0xff] }
 0x665   : > { %v13216_v5 = vadd.f32 %v6338_v6, %v6225_v30  ;;  %v6418_v30 = vld [vmem:[%s10458_s30 + $0xf6] sm:$0xff]  ;;  %v6281_v55 = vpack.c.bf16 %v6269_v36, %v6268_v37  ;;  %v6757_v23 = vld [vmem:[%s10458_s30 + $0x102] sm:$0xff] }
 0x666   : > { %v6586_v6 = vld [vmem:[%s10458_s30 + $0xf0] sm:$0xff] }
 0x667   : > { %v6609_v51 = vpack.c.bf16 %v6587_v39, %v6586_v6 }
 0x669   : > { %v5841_v31 = vpop.f32.mrf.mxu2 }
 0x66a   : > { %v5891_v1 = vadd.f32 %v5841_v31, %v13050_v29  ;;  %v6010_v34 = vpop.f32.mrf.mxu3  ;;  %v6172_v17 = vpop.f32.mrf.mxu0  ;;  %v10085_v29 = vld [vmem:[%s14539_s1 + $0x3c] sm:$0xf] }
 0x66b   : > { %v6226_v10 = vadd.f32 %v6172_v17, %v6057_v40  ;;  %v6341_v16 = vpop.f32.mrf.mxu1  ;;  %v7503_v40 = vsel %vm356_vm0, %v10085_v29, 0  ;;  %v6922_v29 = vld [vmem:[%s10458_s30 + $0x10e] sm:$0xff] }
 0x66c   : > { %v6060_v50 = vadd.f32 %v6010_v34, %v5891_v1  ;;  %7512 = vmatpush.bf16.msra.mxu0 %v7503_v40  ;;  %v6923_v40 = vld [vmem:[%s10458_s30 + $0x116] sm:$0xff] }
 0x66d   : > { %v13234_v4 = vadd.f32 %v6341_v16, %v6226_v10  ;;  %9992 = vmatmul.msk.bf16.gmra.mxu0 %vm249_vm1, %v6111_v57  ;;  %v6753_v10 = vld [vmem:[%s10458_s30 + $0xe2] sm:$0xff]  ;;  %v6754_v16 = vld [vmem:[%s10458_s30 + $0xea] sm:$0xff] }
 0x66e   : > { %10005 = vmatmul.msk.bf16.gmra.mxu1 %vm249_vm1, %v6280_v49  ;;  %10008 = vmatmul.msk.bf16.vlgmr.msrb.gmra.mxu2 %vm249_vm1, %v6439_v14  ;;  %v6419_v14 = vld [vmem:[%s10458_s30 + $0xfe] sm:$0xff] }
 0x66f   : > { %10021 = vmatmul.msk.bf16.vlgmr.msrb.gmra.mxu3 %vm249_vm1, %v6608_v35  ;;  %v6420_v35 = vld [vmem:[%s10458_s30 + $0x106] sm:$0xff] }
 0x671   : > { %v5844_v62 = vpop.f32.mrf.mxu2 }
 0x672   : > { %v5892_v25 = vadd.f32 %v5844_v62, %v13056_v13  ;;  %v6013_v54 = vpop.f32.mrf.mxu3  ;;  %v6174_v19 = vpop.f32.mrf.mxu0 }
 0x673   : > { %v6227_v28 = vadd.f32 %v6174_v19, %v6058_v11  ;;  %v6343_v46 = vpop.f32.mrf.mxu1  ;;  %v6440_v11 = vpack.c.bf16 %v6418_v30, %v6417_v47 }
 0x674   : > { %v6061_v53 = vadd.f32 %v6013_v54, %v5892_v25  ;;  %v6777_v25 = vpack.c.bf16 %v6754_v16, %v6753_v10 }
 0x675   : > { %v13249_v61 = vadd.f32 %v6343_v46, %v6227_v28  ;;  %v6441_v28 = vpack.c.bf16 %v6420_v35, %v6419_v14 }
 0x679   : > { %v5846_v32 = vpop.f32.mrf.mxu2 }
 0x67a   : > { %v5893_v48 = vadd.f32 %v5846_v32, %v13067_v12  ;;  %v6015_v13 = vpop.f32.mrf.mxu3  ;;  %v6177_v3 = vpop.f32.mrf.mxu0 }
 0x67b   : > { %v6228_v60 = vadd.f32 %v6177_v3, %v6059_v7  ;;  %v6346_v20 = vpop.f32.mrf.mxu1  ;;  %v6924_v3 = vld [vmem:[%s10458_s30 + $0x11e] sm:$0xff] }
 0x67c   : > { %v6062_v15 = vadd.f32 %v6015_v13, %v5893_v48  ;;  %v6755_v48 = vld [vmem:[%s10458_s30 + $0xf2] sm:$0xff]  ;;  %v6756_v13 = vld [vmem:[%s10458_s30 + $0xfa] sm:$0xff] }
 0x67d   : > { %v13260_v41 = vadd.f32 %v6346_v20, %v6228_v60  ;;  %9993 = vmatmul.msk.bf16.gmra.mxu0 %vm249_vm1, %v6112_v56  ;;  %v6591_v60 = vld [vmem:[%s10458_s30 + $0x118] sm:$0xff] }
 0x67e   : > { %10006 = vmatmul.msk.bf16.gmra.mxu1 %vm249_vm1, %v6281_v55  ;;  %10009 = vmatmul.msk.bf16.gmra.mxu2 %vm249_vm1, %v6440_v11  ;;  %v6925_v55 = vld [vmem:[%s10458_s30 + $0x126] sm:$0xff]  ;;  %v6590_v11 = vld [vmem:[%s10458_s30 + $0x110] sm:$0xff] }
 0x67f   : > { %10022 = vmatmul.msk.bf16.gmra.mxu3 %vm249_vm1, %v6609_v51  ;;  %v6778_v51 = vpack.c.bf16 %v6756_v13, %v6755_v48 }
 0x681   : > { %v5849_v12 = vpop.f32.mrf.mxu2 }
 0x682   : > { %v5894_v7 = vadd.f32 %v5849_v12, %v13073_v33  ;;  %v6018_v31 = vpop.f32.mrf.mxu3  ;;  %v6179_v57 = vpop.f32.mrf.mxu0 }
 0x683   : > { %v6229_v1 = vadd.f32 %v6179_v57, %v6060_v50  ;;  %v6348_v34 = vpop.f32.mrf.mxu1  ;;  %v6946_v50 = vpack.c.bf16 %v6923_v40, %v6922_v29 }
 0x684   : > { %v6063_v17 = vadd.f32 %v6018_v31, %v5894_v7 }
 0x685   : > { %v13267_v49 = vadd.f32 %v6348_v34, %v6229_v1 }
 0x689   : > { %v5851_v62 = vpop.f32.mrf.mxu2 }
 0x68a   : > { %v5895_v54 = vadd.f32 %v5851_v62, %v13084_v18  ;;  %v6020_v33 = vpop.f32.mrf.mxu3  ;;  %v6182_v19 = vpop.f32.mrf.mxu0  ;;  %v6758_v62 = vld [vmem:[%s10458_s30 + $0x10a] sm:$0xff] }
 0x68b   : > { %v6230_v46 = vadd.f32 %v6182_v19, %v6061_v53  ;;  %v6351_v8 = vpop.f32.mrf.mxu1  ;;  %v6593_v19 = vld [vmem:[%s10458_s30 + $0x128] sm:$0xff] }
 0x68c   : > { %v6064_v37 = vadd.f32 %v6020_v33, %v5895_v54  ;;  %v6927_v54 = vld [vmem:[%s10458_s30 + $0x136] sm:$0xff]  ;;  %v6592_v33 = vld [vmem:[%s10458_s30 + $0x120] sm:$0xff] }
 0x68d   : > { %v13278_v36 = vadd.f32 %v6351_v8, %v6230_v46  ;;  %10034 = vmatmul.msk.bf16.vlgmr.msrb.gmra.mxu0 %vm249_vm1, %v6777_v25  ;;  %v6926_v25 = vld [vmem:[%s10458_s30 + $0x12e] sm:$0xff] }
 0x68e   : > { %10010 = vmatmul.msk.bf16.gmra.mxu2 %vm249_vm1, %v6441_v28  ;;  %10047 = vmatmul.msk.bf16.vlgmr.msrb.gmra.mxu1 %vm249_vm1, %v6946_v50 }
 0x68f   : > { %10023 = vmatmul.msk.bf16.gmra.mxu3 %vm249_vm1, %v6610_v26 }
 0x691   : > { %v5854_v18 = vpop.f32.mrf.mxu2 }
 0x692   : > { %v5896_v53 = vadd.f32 %v5854_v18, %v13090_v0  ;;  %v6023_v47 = vpop.f32.mrf.mxu3  ;;  %v6184_v30 = vpop.f32.mrf.mxu0  ;;  %v6947_v0 = vpack.c.bf16 %v6925_v55, %v6924_v3 }
 0x693   : > { %v6231_v6 = vadd.f32 %v6184_v30, %v6062_v15  ;;  %v6353_v39 = vpop.f32.mrf.mxu1  ;;  %v6611_v15 = vpack.c.bf16 %v6591_v60, %v6590_v11  ;;  %v6759_v11 = vld [vmem:[%s10458_s30 + $0x112] sm:$0xff]  ;;  %v6760_v60 = vld [vmem:[%s10458_s30 + $0x11a] sm:$0xff] }
 0x694   : > { %v6065_v32 = vadd.f32 %v6023_v47, %v5896_v53 }
 0x695   : > { %v13285_v56 = vadd.f32 %v6353_v39, %v6231_v6 }
 0x699   : > { %v5856_v20 = vpop.f32.mrf.mxu2 }
 0x69a   : > { %v5897_v12 = vadd.f32 %v5856_v20, %v13101_v38  ;;  %v6025_v7 = vpop.f32.mrf.mxu3  ;;  %v6187_v31 = vpop.f32.mrf.mxu0  ;;  %v6928_v20 = vld [vmem:[%s10458_s30 + $0x13e] sm:$0xff] }
 0x69b   : > { %v6232_v57 = vadd.f32 %v6187_v31, %v6063_v17  ;;  %v6356_v1 = vpop.f32.mrf.mxu1 }
 0x69c   : > { %v6066_v34 = vadd.f32 %v6025_v7, %v5897_v12  ;;  %v6594_v12 = vld [vmem:[%s10458_s30 + $0x130] sm:$0xff]  ;;  %v6595_v7 = vld [vmem:[%s10458_s30 + $0x138] sm:$0xff] }
 0x69d   : > { %v13294_v14 = vadd.f32 %v6356_v1, %v6232_v57  ;;  %10035 = vmatmul.msk.bf16.gmra.mxu0 %vm249_vm1, %v6778_v51  ;;  %v6929_v51 = vld [vmem:[%s10458_s30 + $0x146] sm:$0xff] }
 0x69e   : > { %10011 = vmatmul.msk.bf16.gmra.mxu2 %vm249_vm1, %v6946_v50  ;;  %10048 = vmatmul.msk.bf16.gmra.mxu1 %vm249_vm1, %v6947_v0  ;;  %v6779_v50 = vpack.c.bf16 %v6758_v62, %v6757_v23 }
 0x69f   : > { %10024 = vmatmul.msk.bf16.gmra.mxu3 %vm249_vm1, %v6611_v15  ;;  %v13328_v15 = vpack.c.bf16 %v6929_v51, %v6928_v20 }
 0x6a1   : > { %v5859_v38 = vpop.f32.mrf.mxu2 }
 0x6a2   : > { %v5898_v17 = vadd.f32 %v5859_v38, %v13107_v59  ;;  %v6028_v10 = vpop.f32.mrf.mxu3  ;;  %v6189_v16 = vpop.f32.mrf.mxu0  ;;  %v6948_v59 = vpack.c.bf16 %v6927_v54, %v6926_v25 }
 0x6a3   : > { %v6233_v35 = vadd.f32 %v6189_v16, %v6064_v37  ;;  %v6358_v29 = vpop.f32.mrf.mxu1  ;;  %v6612_v37 = vpack.c.bf16 %v6593_v19, %v6592_v33  ;;  %v6761_v33 = vld [vmem:[%s10458_s30 + $0x122] sm:$0xff]  ;;  %v6762_v19 = vld [vmem:[%s10458_s30 + $0x12a] sm:$0xff] }
 0x6a4   : > { %v6067_v40 = vadd.f32 %v6028_v10, %v5898_v17  ;;  %v6613_v17 = vpack.c.bf16 %v6595_v7, %v6594_v12  ;;  %v6763_v12 = vld [vmem:[%s10458_s30 + $0x132] sm:$0xff]  ;;  %v6764_v7 = vld [vmem:[%s10458_s30 + $0x13a] sm:$0xff] }
 0x6a5   : > { %v13301_v43 = vadd.f32 %v6358_v29, %v6233_v35 }
 0x6a9   : > { %v5861_v28 = vpop.f32.mrf.mxu2 }
 0x6aa   : > { %v5899_v46 = vadd.f32 %v5861_v28, %v13118_v22  ;;  %v6030_v8 = vpop.f32.mrf.mxu3  ;;  %v6192_v26 = vpop.f32.mrf.mxu0  ;;  %v6930_v28 = vld [vmem:[%s10458_s30 + $0x14e] sm:$0xff] }
 0x6ab   : > { %v6234_v18 = vadd.f32 %v6192_v26, %v6065_v32  ;;  %v6361_v53 = vpop.f32.mrf.mxu1 }
 0x6ac   : > { %v6068_v47 = vadd.f32 %v6030_v8, %v5899_v46  ;;  %v6596_v46 = vld [vmem:[%s10458_s30 + $0x140] sm:$0xff]  ;;  %v6597_v8 = vld [vmem:[%s10458_s30 + $0x148] sm:$0xff] }
 0x6ad   : > { %v13310_v30 = vadd.f32 %v6361_v53, %v6234_v18  ;;  %10036 = vmatmul.msk.bf16.gmra.mxu0 %vm249_vm1, %v6779_v50  ;;  %v6931_v50 = vld [vmem:[%s10458_s30 + $0x156] sm:$0xff] }
 0x6ae   : > { %10012 = vmatmul.msk.bf16.gmra.mxu2 %vm249_vm1, %v6947_v0  ;;  %10049 = vmatmul.msk.bf16.gmra.mxu1 %vm249_vm1, %v6948_v59  ;;  %v13325_v0 = vpack.c.bf16 %v6760_v60, %v6759_v11 }
 0x6af   : > { %10025 = vmatmul.msk.bf16.gmra.mxu3 %vm249_vm1, %v6612_v37  ;;  %v13350_v37 = vpack.c.bf16 %v6931_v50, %v6930_v28 }
 0x6b1   : > { %v5864_v22 = vpop.f32.mrf.mxu2 }
 0x6b2   : > { %v5900_v6 = vadd.f32 %v5864_v22, %v13124_v58  ;;  %v6033_v39 = vpop.f32.mrf.mxu3  ;;  %v6194_v32 = vpop.f32.mrf.mxu0 }
 0x6b3   : > { %v6235_v48 = vadd.f32 %v6194_v32, %v6066_v34  ;;  %v6363_v13 = vpop.f32.mrf.mxu1 }
 0x6b4   : > { %v6069_v3 = vadd.f32 %v6033_v39, %v5900_v6  ;;  %v13352_v6 = vpack.c.bf16 %v6597_v8, %v6596_v46 }
 0x6b5   : > { %v13317_v55 = vadd.f32 %v6363_v13, %v6235_v48 }
 0x6b9   : > { %v5866_v31 = vpop.f32.mrf.mxu2 }
 0x6ba   : > { %v5901_v57 = vadd.f32 %v5866_v31, %v13135_v63  ;;  %v6035_v1 = vpop.f32.mrf.mxu3  ;;  %v6197_v58 = vpop.f32.mrf.mxu0  ;;  %v6932_v31 = vld [vmem:[%s10458_s30 + $0x15e] sm:$0xff] }
 0x6bb   : > { %v6236_v34 = vadd.f32 %v6197_v58, %v6067_v40  ;;  %v6366_v38 = vpop.f32.mrf.mxu1  ;;  %v6599_v58 = vld [vmem:[%s10458_s30 + $0x158] sm:$0xff] }
 0x6bc   : > { %v6070_v10 = vadd.f32 %v6035_v1, %v5901_v57  ;;  %v6933_v57 = vld [vmem:[%s10458_s30 + $0x166] sm:$0xff]  ;;  %v6598_v1 = vld [vmem:[%s10458_s30 + $0x150] sm:$0xff] }
 0x6bd   : > { %v13330_v16 = vadd.f32 %v6366_v38, %v6236_v34  ;;  %10037 = vmatmul.msk.bf16.gmra.mxu0 %vm249_vm1, %v13325_v0  ;;  %v13373_v38 = vpack.c.bf16 %v6764_v7, %v6763_v12 }
 0x6be   : > { %10013 = vmatmul.msk.bf16.gmra.mxu2 %vm249_vm1, %v6948_v59  ;;  %10050 = vmatmul.msk.bf16.gmra.mxu1 %vm249_vm1, %v13328_v15  ;;  %v13347_v59 = vpack.c.bf16 %v6762_v19, %v6761_v33 }
 0x6bf   : > { %10026 = vmatmul.msk.bf16.gmra.mxu3 %vm249_vm1, %v6613_v17 }
 0x6c1   : > { %v5869_v63 = vpop.f32.mrf.mxu2 }
 0x6c2   : > { %v5902_v35 = vadd.f32 %v5869_v63, %v13141_v45  ;;  %v6038_v29 = vpop.f32.mrf.mxu3  ;;  %v6199_v40 = vpop.f32.mrf.mxu0 }
 0x6c3   : > { %v6237_v23 = vadd.f32 %v6199_v40, %v6068_v47  ;;  %v6368_v62 = vpop.f32.mrf.mxu1  ;;  %v13378_v40 = vpack.c.bf16 %v6599_v58, %v6598_v1 }
 0x6c4   : > { %v6071_v25 = vadd.f32 %v6038_v29, %v5902_v35  ;;  %v13376_v35 = vpack.c.bf16 %v6933_v57, %v6932_v31 }
 0x6c5   : > { %v13339_v54 = vadd.f32 %v6368_v62, %v6237_v23 }
 0x6c9   : > { %v5871_v26 = vpop.f32.mrf.mxu2 }
 0x6ca   : > { %v5903_v18 = vadd.f32 %v5871_v26, %v13152_v9  ;;  %v6040_v53 = vpop.f32.mrf.mxu3  ;;  %v6202_v45 = vpop.f32.mrf.mxu0  ;;  %v6765_v26 = vld [vmem:[%s10458_s30 + $0x142] sm:$0xff] }
 0x6cb   : > { %v6238_v47 = vadd.f32 %v6202_v45, %v6069_v3  ;;  %v6371_v22 = vpop.f32.mrf.mxu1  ;;  %v6935_v45 = vld [vmem:[%s10458_s30 + $0x176] sm:$0xff] }
 0x6cc   : > { %v6072_v39 = vadd.f32 %v6040_v53, %v5903_v18  ;;  %v6766_v18 = vld [vmem:[%s10458_s30 + $0x14a] sm:$0xff] }
 0x6cd   : > { %v13354_v32 = vadd.f32 %v6371_v22, %v6238_v47  ;;  %10038 = vmatmul.msk.bf16.gmra.mxu0 %vm249_vm1, %v13347_v59  ;;  %v6934_v53 = vld [vmem:[%s10458_s30 + $0x16e] sm:$0xff]  ;;  %v6600_v47 = vld [vmem:[%s10458_s30 + $0x160] sm:$0xff] }
 0x6ce   : > { %10014 = vmatmul.msk.bf16.gmra.mxu2 %vm249_vm1, %v13328_v15  ;;  %10051 = vmatmul.msk.bf16.gmra.mxu1 %vm249_vm1, %v13350_v37  ;;  %v6601_v22 = vld [vmem:[%s10458_s30 + $0x168] sm:$0xff] }
 0x6cf   : > { %10027 = vmatmul.msk.bf16.gmra.mxu3 %vm249_vm1, %v13352_v6  ;;  %v13404_v12 = vpack.c.bf16 %v6601_v22, %v6600_v47 }
 0x6d1   : > { %v5874_v9 = vpop.f32.mrf.mxu2 }
 0x6d2   : > { %v5904_v48 = vadd.f32 %v5874_v9, %v13158_v42  ;;  %v6043_v13 = vpop.f32.mrf.mxu3  ;;  %v6204_v3 = vpop.f32.mrf.mxu0 }
 0x6d3   : > { %v6239_v11 = vadd.f32 %v6204_v3, %v6070_v10  ;;  %v6373_v60 = vpop.f32.mrf.mxu1 }
 0x6d4   : > { %v6073_v20 = vadd.f32 %v6043_v13, %v5904_v48  ;;  %v13399_v48 = vpack.c.bf16 %v6766_v18, %v6765_v26 }
 0x6d5   : > { %v13365_v51 = vadd.f32 %v6373_v60, %v6239_v11  ;;  %v13402_v11 = vpack.c.bf16 %v6935_v45, %v6934_v53 }
 0x6d9   : > { %v5876_v34 = vpop.f32.mrf.mxu2 }
 0x6da   : > { %v5905_v17 = vadd.f32 %v5876_v34, %v13168_v52  ;;  %v6045_v63 = vpop.f32.mrf.mxu3  ;;  %v6207_v42 = vpop.f32.mrf.mxu0 }
 0x6db   : > { %v6240_v10 = vadd.f32 %v6207_v42, %v6071_v25  ;;  %v6376_v29 = vpop.f32.mrf.mxu1  ;;  %v6767_v42 = vld [vmem:[%s10458_s30 + $0x152] sm:$0xff] }
 0x6dc   : > { %v6074_v23 = vadd.f32 %v6045_v63, %v5905_v17 }
 0x6dd   : > { %v13380_v62 = vadd.f32 %v6376_v29, %v6240_v10  ;;  %10039 = vmatmul.msk.bf16.gmra.mxu0 %vm249_vm1, %v13373_v38  ;;  %v6768_v10 = vld [vmem:[%s10458_s30 + $0x15a] sm:$0xff] }
 0x6de   : > { %10015 = vmatmul.msk.bf16.gmra.mxu2 %vm249_vm1, %v13350_v37  ;;  %10052 = vmatmul.msk.bf16.gmra.mxu1 %vm249_vm1, %v13376_v35  ;;  %v6936_v29 = vld [vmem:[%s10458_s30 + $0x17e] sm:$0xff] }
 0x6df   : > { %10028 = vmatmul.msk.bf16.gmra.mxu3 %vm249_vm1, %v13378_v40 }
 0x6e1   : > { %v5879_v52 = vpop.f32.mrf.mxu2 }
 0x6e2   : > { %v5906_v25 = vadd.f32 %v5879_v52, %v13175_v21  ;;  %v6048_v33 = vpop.f32.mrf.mxu3  ;;  %v6209_v19 = vpop.f32.mrf.mxu0  ;;  %v6937_v52 = vld [vmem:[%s10458_s30 + $0x186] sm:$0xff] }
 0x6e3   : > { %v6241_v28 = vadd.f32 %v6209_v19, %v6072_v39  ;;  %v6378_v50 = vpop.f32.mrf.mxu1  ;;  %v13428_v18 = vpack.c.bf16 %v6937_v52, %v6936_v29 }
 0x6e4   : > { %v6075_v46 = vadd.f32 %v6048_v33, %v5906_v25  ;;  %v6602_v25 = vld [vmem:[%s10458_s30 + $0x170] sm:$0xff]  ;;  %v6603_v33 = vld [vmem:[%s10458_s30 + $0x178] sm:$0xff] }
 0x6e5   : > { %v13391_v8 = vadd.f32 %v6378_v50, %v6241_v28  ;;  %v13425_v28 = vpack.c.bf16 %v6768_v10, %v6767_v42  ;;  %v13430_v45 = vpack.c.bf16 %v6603_v33, %v6602_v25 }
 0x6e9   : > { %v5881_v9 = vpop.f32.mrf.mxu2 }
 0x6ea   : > { %v5907_v13 = vadd.f32 %v5881_v9, %v13184_v2  ;;  %v6050_v3 = vpop.f32.mrf.mxu3  ;;  %v6212_v21 = vpop.f32.mrf.mxu0 }
 0x6eb   : > { %v6242_v39 = vadd.f32 %v6212_v21, %v6073_v20  ;;  %v6381_v60 = vpop.f32.mrf.mxu1 }
 0x6ec   : > { %v6076_v7 = vadd.f32 %v6050_v3, %v5907_v13 }
 0x6ed   : > { %v13406_v31 = vadd.f32 %v6381_v60, %v6242_v39  ;;  %10040 = vmatmul.msk.bf16.gmra.mxu0 %vm249_vm1, %v13399_v48 }
 0x6ee   : > { %10016 = vmatmul.msk.bf16.gmra.mxu2 %vm249_vm1, %v13376_v35  ;;  %10053 = vmatmul.msk.bf16.gmra.mxu1 %vm249_vm1, %v13402_v11 }
 0x6ef   : > { %10029 = vmatmul.msk.bf16.gmra.mxu3 %vm249_vm1, %v13404_v12 }
 0x6f1   : > { %v6500_v2 = vpop.f32.mrf.mxu2 }
 0x6f2   : > { %v6560_v20 = vadd.f32 %v6500_v2, %v13191_v44  ;;  %v6214_v57 = vpop.f32.mrf.mxu0  ;;  %v6669_v1 = vpop.f32.mrf.mxu3  ;;  %v6769_v2 = vld [vmem:[%s10458_s30 + $0x162] sm:$0xff] }
 0x6f3   : > { %v6243_v58 = vadd.f32 %v6214_v57, %v6074_v23  ;;  %v6383_v34 = vpop.f32.mrf.mxu1  ;;  %v6938_v57 = vld [vmem:[%s10458_s30 + $0x18e] sm:$0xff] }
 0x6f4   : > { %v6729_v17 = vadd.f32 %v6669_v1, %v6560_v20  ;;  %v6770_v20 = vld [vmem:[%s10458_s30 + $0x16a] sm:$0xff]  ;;  %v6939_v1 = vld [vmem:[%s10458_s30 + $0x196] sm:$0xff] }
 0x6f5   : > { %v13417_v63 = vadd.f32 %v6383_v34, %v6243_v58  ;;  %v6604_v58 = vld [vmem:[%s10458_s30 + $0x180] sm:$0xff]  ;;  %v6605_v34 = vld [vmem:[%s10458_s30 + $0x188] sm:$0xff]  ;;  %v13451_v10 = vpack.c.bf16 %v6770_v20, %v6769_v2  ;;  %v13454_v25 = vpack.c.bf16 %v6939_v1, %v6938_v57  ;;  %v6606_v20 = vld [vmem:[%s10458_s30 + $0x190] sm:$0xff] }
 0x6f6   : > { %v6941_v2 = vld [vmem:[%s10458_s30 + $0x1a6] sm:$0xff]  ;;  %v6607_v57 = vld [vmem:[%s10458_s30 + $0x198] sm:$0xff] }
 0x6f9   : > { %v6502_v19 = vpop.f32.mrf.mxu2 }
 0x6fa   : > { %v6561_v50 = vadd.f32 %v6502_v19, %v13200_v27  ;;  %v6217_v26 = vpop.f32.mrf.mxu0  ;;  %v6671_v44 = vpop.f32.mrf.mxu3  ;;  %v13456_v19 = vpack.c.bf16 %v6605_v34, %v6604_v58 }
 0x6fb   : > { %v6244_v23 = vadd.f32 %v6217_v26, %v6075_v46  ;;  %v6386_v53 = vpop.f32.mrf.mxu1 }
 0x6fc   : > { %v6730_v47 = vadd.f32 %v6671_v44, %v6561_v50 }
 0x6fd   : > { %v13432_v22 = vadd.f32 %v6386_v53, %v6244_v23  ;;  %10041 = vmatmul.msk.bf16.gmra.mxu0 %vm249_vm1, %v13425_v28 }
 0x6fe   : > { %10017 = vmatmul.msk.bf16.gmra.mxu2 %vm249_vm1, %v13402_v11  ;;  %10054 = vmatmul.msk.bf16.gmra.mxu1 %vm249_vm1, %v13428_v18 }
 0x6ff   : > { %10030 = vmatmul.msk.bf16.gmra.mxu3 %vm249_vm1, %v13430_v45 }
 0x701   : > { %v6505_v27 = vpop.f32.mrf.mxu2 }
 0x702   : > { %v6562_v46 = vadd.f32 %v6505_v27, %v13209_v24  ;;  %v6219_v9 = vpop.f32.mrf.mxu0  ;;  %v6674_v13 = vpop.f32.mrf.mxu3 }
 0x703   : > { %v6245_v3 = vadd.f32 %v6219_v9, %v6076_v7  ;;  %v6388_v21 = vpop.f32.mrf.mxu1 }
 0x704   : > { %v6731_v39 = vadd.f32 %v6674_v13, %v6562_v46  ;;  %v6771_v13 = vld [vmem:[%s10458_s30 + $0x172] sm:$0xff] }
 0x705   : > { %v13443_v60 = vadd.f32 %v6388_v21, %v6245_v3  ;;  %v6772_v3 = vld [vmem:[%s10458_s30 + $0x17a] sm:$0xff] }
 0x706   : > { %v6940_v21 = vld [vmem:[%s10458_s30 + $0x19e] sm:$0xff]  ;;  %v13477_v58 = vpack.c.bf16 %v6772_v3, %v6771_v13  ;;  %v10124_v3 = vld [vmem:[%s14539_s1 + $0x48] sm:$0xf] }
 0x707   : > { %v10111_v13 = vld [vmem:[%s14539_s1 + $0x44] sm:$0xf] }
 0x709   : > { %v6507_v42 = vpop.f32.mrf.mxu2 }
 0x70a   : > { %v6563_v29 = vadd.f32 %v6507_v42, %v13216_v5  ;;  %v6676_v52 = vpop.f32.mrf.mxu3  ;;  %v6838_v24 = vpop.f32.mrf.mxu0 }
 0x70b   : > { %v6898_v7 = vadd.f32 %v6838_v24, %v6729_v17  ;;  %v7007_v33 = vpop.f32.mrf.mxu1  ;;  %v13482_v24 = vpack.c.bf16 %v6607_v57, %v6606_v20  ;;  %v7841_v20 = vsel %vm356_vm0, %v10111_v13, 0  ;;  %v6942_v57 = vld [vmem:[%s10458_s30 + $0x1ae] sm:$0xff] }
 0x70c   : > { %v6732_v50 = vadd.f32 %v6676_v52, %v6563_v29  ;;  %v13480_v29 = vpack.c.bf16 %v6941_v2, %v6940_v21  ;;  %v6773_v21 = vld [vmem:[%s10458_s30 + $0x182] sm:$0xff]  ;;  %v6774_v2 = vld [vmem:[%s10458_s30 + $0x18a] sm:$0xff]  ;;  %7850 = vmatpush.bf16.msrb.mxu2 %v7841_v20 }
 0x70d   : > { %v13458_v26 = vadd.f32 %v7007_v33, %v6898_v7  ;;  %10042 = vmatmul.msk.bf16.gmra.mxu0 %vm249_vm1, %v13451_v10 }
 0x70e   : > { %10018 = vmatmul.msk.bf16.gmra.mxu2 %vm249_vm1, %v13428_v18  ;;  %10055 = vmatmul.msk.bf16.gmra.mxu1 %vm249_vm1, %v13454_v25 }
 0x70f   : > { %10031 = vmatmul.msk.bf16.gmra.mxu3 %vm249_vm1, %v13456_v19 }
 0x711   : > { %v6510_v5 = vpop.f32.mrf.mxu2 }
 0x712   : > { %v6564_v17 = vadd.f32 %v6510_v5, %v13234_v4  ;;  %v6679_v44 = vpop.f32.mrf.mxu3  ;;  %v6840_v23 = vpop.f32.mrf.mxu0 }
 0x713   : > { %v6899_v53 = vadd.f32 %v6840_v23, %v6730_v47  ;;  %v7009_v27 = vpop.f32.mrf.mxu1 }
 0x714   : > { %v6733_v46 = vadd.f32 %v6679_v44, %v6564_v17 }
 0x715   : > { %v13469_v9 = vadd.f32 %v7009_v27, %v6899_v53 }
 0x719   : > { %v6512_v1 = vpop.f32.mrf.mxu2 }
 0x71a   : > { %v6565_v34 = vadd.f32 %v6512_v1, %v13249_v61  ;;  %v6681_v42 = vpop.f32.mrf.mxu3  ;;  %v6843_v4 = vpop.f32.mrf.mxu0 }
 0x71b   : > { %v6900_v47 = vadd.f32 %v6843_v4, %v6731_v39  ;;  %v7012_v52 = vpop.f32.mrf.mxu1 }
 0x71c   : > { %v6734_v7 = vadd.f32 %v6681_v42, %v6565_v34  ;;  %v13509_v34 = vpack.c.bf16 %v6774_v2, %v6773_v21 }
 0x71d   : > { %v13484_v33 = vadd.f32 %v7012_v52, %v6900_v47  ;;  %10043 = vmatmul.msk.bf16.gmra.mxu0 %vm249_vm1, %v13477_v58 }
 0x71e   : > { %10019 = vmatmul.msk.bf16.gmra.mxu2 %vm249_vm1, %v13454_v25  ;;  %10056 = vmatmul.msk.bf16.gmra.mxu1 %vm249_vm1, %v13480_v29 }
 0x71f   : > { %10032 = vmatmul.msk.bf16.gmra.mxu3 %vm249_vm1, %v13482_v24 }
 0x721   : > { %v6515_v61 = vpop.f32.mrf.mxu2 }
 0x722   : > { %v6566_v39 = vadd.f32 %v6515_v61, %v13260_v41  ;;  %v6684_v5 = vpop.f32.mrf.mxu3  ;;  %v6845_v17 = vpop.f32.mrf.mxu0  ;;  %v8010_v41 = vsel %vm356_vm0, %v10124_v3, 0 }
 0x723   : > { %v6901_v44 = vadd.f32 %v6845_v17, %v6732_v50  ;;  %v7014_v23 = vpop.f32.mrf.mxu1  ;;  %v6943_v50 = vld [vmem:[%s10458_s30 + $0x1b6] sm:$0xff]  ;;  %8019 = vmatpush.bf16.msrb.mxu3 %v8010_v41 }
 0x724   : > { %v6735_v53 = vadd.f32 %v6684_v5, %v6566_v39  ;;  %v13512_v52 = vpack.c.bf16 %v6943_v50, %v6942_v57  ;;  %v6775_v57 = vld [vmem:[%s10458_s30 + $0x192] sm:$0xff]  ;;  %v6776_v50 = vld [vmem:[%s10458_s30 + $0x19a] sm:$0xff] }
 0x725   : > { %v13495_v27 = vadd.f32 %v7014_v23, %v6901_v44  ;;  %v10150_v44 = vld [vmem:[%s14539_s1 + $0x50] sm:$0xf] }
 0x729   : > { %v6517_v1 = vpop.f32.mrf.mxu2 }
 0x72a   : > { %v6567_v42 = vadd.f32 %v6517_v1, %v13267_v49  ;;  %v6686_v4 = vpop.f32.mrf.mxu3  ;;  %v6848_v47 = vpop.f32.mrf.mxu0  ;;  %v10137_v49 = vld [vmem:[%s14539_s1 + $0x4c] sm:$0xf]  ;;  %v6944_v1 = vld [vmem:[%s10458_s30 + $0x1be] sm:$0xff] }
 0x72b   : > { %v6902_v61 = vadd.f32 %v6848_v47, %v6733_v46  ;;  %v7017_v39 = vpop.f32.mrf.mxu1  ;;  %v8179_v46 = vsel %vm356_vm0, %v10137_v49, 0  ;;  %v13539_v47 = vpack.c.bf16 %v6776_v50, %v6775_v57 }
 0x72c   : > { %v6736_v5 = vadd.f32 %v6686_v4, %v6567_v42  ;;  %8188 = vmatpush.bf16.msrb.mxu0 %v8179_v46  ;;  %v6945_v42 = vld [vmem:[%s10458_s30 + $0x1c6] sm:$0xff] }
 0x72d   : > { %v13514_v17 = vadd.f32 %v7017_v39, %v6902_v61  ;;  %10044 = vmatmul.msk.bf16.gmra.mxu0 %vm249_vm1, %v13509_v34  ;;  %v13542_v46 = vpack.c.bf16 %v6945_v42, %v6944_v1 }
 0x72e   : > { %10057 = vmatmul.msk.bf16.gmra.mxu1 %vm249_vm1, %v13512_v52  ;;  %10060 = vmatmul.msk.bf16.vlgmr.msra.gmra.mxu2 %vm249_vm1, %v13325_v0  ;;  %v8348_v0 = vsel %vm356_vm0, %v10150_v44, 0 }
 0x72f   : > { %10073 = vmatmul.msk.bf16.vlgmr.msra.gmra.mxu3 %vm249_vm1, %v13328_v15  ;;  %8357 = vmatpush.bf16.msrb.mxu1 %v8348_v0 }
 0x731   : > { %v6520_v23 = vpop.f32.mrf.mxu2 }
 0x732   : > { %v6568_v13 = vadd.f32 %v6520_v23, %v13278_v36  ;;  %v6689_v3 = vpop.f32.mrf.mxu3  ;;  %v6850_v21 = vpop.f32.mrf.mxu0 }
 0x733   : > { %v6903_v2 = vadd.f32 %v6850_v21, %v6734_v7  ;;  %v7019_v20 = vpop.f32.mrf.mxu1 }
 0x734   : > { %v6737_v15 = vadd.f32 %v6689_v3, %v6568_v13 }
 0x735   : > { %v13533_v41 = vadd.f32 %v7019_v20, %v6903_v2 }
 0x739   : > { %v6522_v4 = vpop.f32.mrf.mxu2 }
 0x73a   : > { %v6569_v61 = vadd.f32 %v6522_v4, %v13285_v56  ;;  %v6691_v39 = vpop.f32.mrf.mxu3  ;;  %v6853_v49 = vpop.f32.mrf.mxu0 }
 0x73b   : > { %v6904_v36 = vadd.f32 %v6853_v49, %v6735_v53  ;;  %v7022_v44 = vpop.f32.mrf.mxu1 }
 0x73c   : > { %v6738_v7 = vadd.f32 %v6691_v39, %v6569_v61 }
 0x73d   : > { %v13544_v0 = vadd.f32 %v7022_v44, %v6904_v36  ;;  %10045 = vmatmul.msk.bf16.gmra.mxu0 %vm249_vm1, %v13539_v47 }
 0x73e   : > { %10058 = vmatmul.msk.bf16.gmra.mxu1 %vm249_vm1, %v13542_v46  ;;  %10061 = vmatmul.msk.bf16.gmra.mxu2 %vm249_vm1, %v13347_v59 }
 0x73f   : > { %10074 = vmatmul.msk.bf16.gmra.mxu3 %vm249_vm1, %v13350_v37 }
 0x741   : > { %v6525_v56 = vpop.f32.mrf.mxu2 }
 0x742   : > { %v6570_v23 = vadd.f32 %v6525_v56, %v13294_v14  ;;  %v6694_v53 = vpop.f32.mrf.mxu3  ;;  %v6855_v13 = vpop.f32.mrf.mxu0 }
 0x743   : > { %v6905_v3 = vadd.f32 %v6855_v13, %v6736_v5  ;;  %v7024_v21 = vpop.f32.mrf.mxu1 }
 0x744   : > { %v6739_v2 = vadd.f32 %v6694_v53, %v6570_v23 }
 0x745   : > { %v13555_v20 = vadd.f32 %v7024_v21, %v6905_v3 }
 0x749   : > { %v6527_v57 = vpop.f32.mrf.mxu2 }
 0x74a   : > { %v6571_v50 = vadd.f32 %v6527_v57, %v13301_v43  ;;  %v6696_v1 = vpop.f32.mrf.mxu3  ;;  %v6858_v42 = vpop.f32.mrf.mxu0 }
 0x74b   : > { %v6906_v4 = vadd.f32 %v6858_v42, %v6737_v15  ;;  %v7027_v59 = vpop.f32.mrf.mxu1 }
 0x74c   : > { %v6740_v61 = vadd.f32 %v6696_v1, %v6571_v50 }
 0x74d   : > { %v13558_v39 = vadd.f32 %v7027_v59, %v6906_v4  ;;  %10086 = vmatmul.msk.bf16.vlgmr.msra.gmra.mxu0 %vm249_vm1, %v13352_v6 }
 0x74e   : > { %10062 = vmatmul.msk.bf16.gmra.mxu2 %vm249_vm1, %v13373_v38  ;;  %10099 = vmatmul.msk.bf16.vlgmr.msra.gmra.mxu1 %vm249_vm1, %v13399_v48 }
 0x74f   : > { %10075 = vmatmul.msk.bf16.gmra.mxu3 %vm249_vm1, %v13376_v35 }
 0x751   : > { %v6530_v14 = vpop.f32.mrf.mxu2 }
 0x752   : > { %v6572_v43 = vadd.f32 %v6530_v14, %v13310_v30  ;;  %v6699_v37 = vpop.f32.mrf.mxu3  ;;  %v6860_v5 = vpop.f32.mrf.mxu0 }
 0x753   : > { %v6907_v15 = vadd.f32 %v6860_v5, %v6738_v7  ;;  %v7029_v49 = vpop.f32.mrf.mxu1 }
 0x754   : > { %v6741_v36 = vadd.f32 %v6699_v37, %v6572_v43 }
 0x755   : > { %v13569_v44 = vadd.f32 %v7029_v49, %v6907_v15 }
 0x759   : > { %v6532_v6 = vpop.f32.mrf.mxu2 }
 0x75a   : > { %v6573_v56 = vadd.f32 %v6532_v6, %v13317_v55  ;;  %v6701_v38 = vpop.f32.mrf.mxu3  ;;  %v6863_v23 = vpop.f32.mrf.mxu0 }
 0x75b   : > { %v6908_v53 = vadd.f32 %v6863_v23, %v6739_v2  ;;  %v7032_v13 = vpop.f32.mrf.mxu1 }
 0x75c   : > { %v6742_v3 = vadd.f32 %v6701_v38, %v6573_v56 }
 0x75d   : > { %v13572_v21 = vadd.f32 %v7032_v13, %v6908_v53  ;;  %10087 = vmatmul.msk.bf16.gmra.mxu0 %vm249_vm1, %v13378_v40 }
 0x75e   : > { %10063 = vmatmul.msk.bf16.gmra.mxu2 %vm249_vm1, %v13399_v48  ;;  %10100 = vmatmul.msk.bf16.gmra.mxu1 %vm249_vm1, %v13425_v28 }
 0x75f   : > { %10076 = vmatmul.msk.bf16.gmra.mxu3 %vm249_vm1, %v13402_v11 }
 0x761   : > { %v6535_v30 = vpop.f32.mrf.mxu2 }
 0x762   : > { %v6574_v55 = vadd.f32 %v6535_v30, %v13330_v16  ;;  %v6704_v35 = vpop.f32.mrf.mxu3  ;;  %v6865_v7 = vpop.f32.mrf.mxu0 }
 0x763   : > { %v6909_v2 = vadd.f32 %v6865_v7, %v6740_v61  ;;  %v7034_v57 = vpop.f32.mrf.mxu1 }
 0x764   : > { %v6743_v50 = vadd.f32 %v6704_v35, %v6574_v55 }
 0x765   : > { %v13583_v1 = vadd.f32 %v7034_v57, %v6909_v2 }
 0x769   : > { %v6537_v40 = vpop.f32.mrf.mxu2 }
 0x76a   : > { %v6575_v42 = vadd.f32 %v6537_v40, %v13339_v54  ;;  %v6706_v48 = vpop.f32.mrf.mxu3  ;;  %v6868_v4 = vpop.f32.mrf.mxu0 }
 0x76b   : > { %v6910_v59 = vadd.f32 %v6868_v4, %v6741_v36  ;;  %v7037_v14 = vpop.f32.mrf.mxu1 }
 0x76c   : > { %v6744_v43 = vadd.f32 %v6706_v48, %v6575_v42 }
 0x76d   : > { %v13586_v37 = vadd.f32 %v7037_v14, %v6910_v59  ;;  %10088 = vmatmul.msk.bf16.gmra.mxu0 %vm249_vm1, %v13404_v12 }
 0x76e   : > { %10064 = vmatmul.msk.bf16.gmra.mxu2 %vm249_vm1, %v13425_v28  ;;  %10101 = vmatmul.msk.bf16.gmra.mxu1 %vm249_vm1, %v13451_v10 }
 0x76f   : > { %10077 = vmatmul.msk.bf16.gmra.mxu3 %vm249_vm1, %v13428_v18 }
 0x771   : > { %v6540_v16 = vpop.f32.mrf.mxu2 }
 0x772   : > { %v6576_v54 = vadd.f32 %v6540_v16, %v13354_v32  ;;  %v6709_v11 = vpop.f32.mrf.mxu3  ;;  %v6870_v61 = vpop.f32.mrf.mxu0 }
 0x773   : > { %v6911_v5 = vadd.f32 %v6870_v61, %v6742_v3  ;;  %v7039_v15 = vpop.f32.mrf.mxu1 }
 0x774   : > { %v6745_v49 = vadd.f32 %v6709_v11, %v6576_v54 }
 0x775   : > { %v13597_v36 = vadd.f32 %v7039_v15, %v6911_v5 }
 0x779   : > { %v6542_v12 = vpop.f32.mrf.mxu2 }
 0x77a   : > { %v6577_v6 = vadd.f32 %v6542_v12, %v13365_v51  ;;  %v6711_v28 = vpop.f32.mrf.mxu3  ;;  %v6873_v56 = vpop.f32.mrf.mxu0 }
 0x77b   : > { %v6912_v38 = vadd.f32 %v6873_v56, %v6743_v50  ;;  %v7042_v23 = vpop.f32.mrf.mxu1 }
 0x77c   : > { %v6746_v53 = vadd.f32 %v6711_v28, %v6577_v6 }
 0x77d   : > { %v13600_v13 = vadd.f32 %v7042_v23, %v6912_v38  ;;  %10089 = vmatmul.msk.bf16.gmra.mxu0 %vm249_vm1, %v13430_v45  ;;  %v7442_v23 = vld [vmem:[%s10458_s30 + $0x1a8] sm:$0xff] }
 0x77e   : > { %10065 = vmatmul.msk.bf16.gmra.mxu2 %vm249_vm1, %v13451_v10  ;;  %10102 = vmatmul.msk.bf16.gmra.mxu1 %vm249_vm1, %v13477_v58 }
 0x77f   : > { %10078 = vmatmul.msk.bf16.gmra.mxu3 %vm249_vm1, %v13454_v25 }
 0x781   : > { %v6545_v32 = vpop.f32.mrf.mxu2 }
 0x782   : > { %v6578_v51 = vadd.f32 %v6545_v32, %v13380_v62  ;;  %v6714_v18 = vpop.f32.mrf.mxu3  ;;  %v6875_v3 = vpop.f32.mrf.mxu0 }
 0x783   : > { %v6913_v30 = vadd.f32 %v6875_v3, %v6744_v43  ;;  %v7044_v55 = vpop.f32.mrf.mxu1 }
 0x784   : > { %v6747_v35 = vadd.f32 %v6714_v18, %v6578_v51 }
 0x785   : > { %v13611_v7 = vadd.f32 %v7044_v55, %v6913_v30 }
 0x789   : > { %v6547_v45 = vpop.f32.mrf.mxu2 }
 0x78a   : > { %v6579_v2 = vadd.f32 %v6547_v45, %v13391_v8  ;;  %v6716_v10 = vpop.f32.mrf.mxu3  ;;  %v6878_v57 = vpop.f32.mrf.mxu0 }
 0x78b   : > { %v6914_v50 = vadd.f32 %v6878_v57, %v6745_v49  ;;  %v7047_v40 = vpop.f32.mrf.mxu1 }
 0x78c   : > { %v6748_v42 = vadd.f32 %v6716_v10, %v6579_v2 }
 0x78d   : > { %v13614_v48 = vadd.f32 %v7047_v40, %v6914_v50  ;;  %10090 = vmatmul.msk.bf16.gmra.mxu0 %vm249_vm1, %v13456_v19 }
 0x78e   : > { %10066 = vmatmul.msk.bf16.gmra.mxu2 %vm249_vm1, %v13477_v58  ;;  %10103 = vmatmul.msk.bf16.gmra.mxu1 %vm249_vm1, %v13509_v34 }
 0x78f   : > { %10079 = vmatmul.msk.bf16.gmra.mxu3 %vm249_vm1, %v13480_v29 }
 0x791   : > { %v6550_v62 = vpop.f32.mrf.mxu2 }
 0x792   : > { %v6580_v8 = vadd.f32 %v6550_v62, %v13406_v31  ;;  %v6719_v25 = vpop.f32.mrf.mxu3  ;;  %v6880_v4 = vpop.f32.mrf.mxu0 }
 0x793   : > { %v6915_v59 = vadd.f32 %v6880_v4, %v6746_v53  ;;  %v7049_v14 = vpop.f32.mrf.mxu1  ;;  %v7610_v53 = vld [vmem:[%s10458_s30 + $0x1a2] sm:$0xff]  ;;  %v7612_v4 = vld [vmem:[%s10458_s30 + $0x1b2] sm:$0xff] }
 0x794   : > { %v6749_v43 = vadd.f32 %v6719_v25, %v6580_v8  ;;  %v7443_v8 = vld [vmem:[%s10458_s30 + $0x1b0] sm:$0xff]  ;;  %v7444_v25 = vld [vmem:[%s10458_s30 + $0x1b8] sm:$0xff] }
 0x795   : > { %v13625_v16 = vadd.f32 %v7049_v14, %v6915_v59  ;;  %v7278_v59 = vld [vmem:[%s10458_s30 + $0x1ce] sm:$0xff]  ;;  %v7279_v14 = vld [vmem:[%s10458_s30 + $0x1d6] sm:$0xff] }
 0x799   : > { %v6552_v19 = vpop.f32.mrf.mxu2 }
 0x79a   : > { %v6581_v54 = vadd.f32 %v6552_v19, %v13417_v63  ;;  %v6721_v58 = vpop.f32.mrf.mxu3  ;;  %v6883_v11 = vpop.f32.mrf.mxu0  ;;  %v7460_v19 = vpack.c.bf16 %v7444_v25, %v7443_v8 }
 0x79b   : > { %v6916_v61 = vadd.f32 %v6883_v11, %v6747_v35  ;;  %v7052_v5 = vpop.f32.mrf.mxu1 }
 0x79c   : > { %v6750_v29 = vadd.f32 %v6721_v58, %v6581_v54 }
 0x79d   : > { %v13628_v15 = vadd.f32 %v7052_v5, %v6916_v61  ;;  %10091 = vmatmul.msk.bf16.gmra.mxu0 %vm249_vm1, %v13482_v24  ;;  %v7441_v24 = vld [vmem:[%s10458_s30 + $0x1a0] sm:$0xff]  ;;  %v7293_v5 = vpack.c.bf16 %v7279_v14, %v7278_v59  ;;  %v7447_v59 = vld [vmem:[%s10458_s30 + $0x1d0] sm:$0xff]  ;;  %v7448_v14 = vld [vmem:[%s10458_s30 + $0x1d8] sm:$0xff] }
 0x79e   : > { %10067 = vmatmul.msk.bf16.gmra.mxu2 %vm249_vm1, %v13509_v34  ;;  %10104 = vmatmul.msk.bf16.gmra.mxu1 %vm249_vm1, %v13539_v47  ;;  %v7611_v34 = vld [vmem:[%s10458_s30 + $0x1aa] sm:$0xff]  ;;  %v7459_v51 = vpack.c.bf16 %v7442_v23, %v7441_v24  ;;  %v7445_v23 = vld [vmem:[%s10458_s30 + $0x1c0] sm:$0xff] }
 0x79f   : > { %10080 = vmatmul.msk.bf16.gmra.mxu3 %vm249_vm1, %v13512_v52  ;;  %v7628_v30 = vpack.c.bf16 %v7611_v34, %v7610_v53  ;;  %v7446_v53 = vld [vmem:[%s10458_s30 + $0x1c8] sm:$0xff] }
 0x7a0   : > { %v7614_v34 = vld [vmem:[%s10458_s30 + $0x1c2] sm:$0xff] }
 0x7a1   : > { %v6555_v31 = vpop.f32.mrf.mxu2 }
 0x7a2   : > { %v6582_v63 = vadd.f32 %v6555_v31, %v13432_v22  ;;  %v6724_v49 = vpop.f32.mrf.mxu3  ;;  %v6885_v12 = vpop.f32.mrf.mxu0 }
 0x7a3   : > { %v6917_v6 = vadd.f32 %v6885_v12, %v6748_v42  ;;  %v7054_v28 = vpop.f32.mrf.mxu1 }
 0x7a4   : > { %v6751_v56 = vadd.f32 %v6724_v49, %v6582_v63 }
 0x7a5   : > { %v13639_v38 = vadd.f32 %v7054_v28, %v6917_v6 }
 0x7a9   : > { %v6557_v32 = vpop.f32.mrf.mxu2 }
 0x7aa   : > { %v6583_v18 = vadd.f32 %v6557_v32, %v13443_v60  ;;  %v6726_v3 = vpop.f32.mrf.mxu3  ;;  %v6888_v52 = vpop.f32.mrf.mxu0  ;;  %v7615_v32 = vld [vmem:[%s10458_s30 + $0x1ca] sm:$0xff] }
 0x7ab   : > { %v6918_v55 = vadd.f32 %v6888_v52, %v6749_v43  ;;  %v7057_v22 = vpop.f32.mrf.mxu1  ;;  %v7461_v52 = vpack.c.bf16 %v7446_v53, %v7445_v23 }
 0x7ac   : > { %v6752_v35 = vadd.f32 %v6726_v3, %v6583_v18  ;;  %v7281_v18 = vld [vmem:[%s10458_s30 + $0x1e6] sm:$0xff] }
 0x7ad   : > { %v13646_v45 = vadd.f32 %v7057_v22, %v6918_v55  ;;  %10092 = vmatmul.msk.bf16.gmra.mxu0 %vm249_vm1, %v7459_v51  ;;  %v7280_v51 = vld [vmem:[%s10458_s30 + $0x1de] sm:$0xff] }
 0x7ae   : > { %10068 = vmatmul.msk.bf16.gmra.mxu2 %vm249_vm1, %v13539_v47  ;;  %10105 = vmatmul.msk.bf16.gmra.mxu1 %vm249_vm1, %v7628_v30  ;;  %v7613_v47 = vld [vmem:[%s10458_s30 + $0x1ba] sm:$0xff] }
 0x7af   : > { %10081 = vmatmul.msk.bf16.gmra.mxu3 %vm249_vm1, %v13542_v46 }
 0x7b1   : > { %v7176_v60 = vpop.f32.mrf.mxu2 }
 0x7b2   : > { %v7236_v2 = vadd.f32 %v7176_v60, %v13458_v26  ;;  %v6890_v10 = vpop.f32.mrf.mxu0  ;;  %v7345_v57 = vpop.f32.mrf.mxu3  ;;  %v7629_v26 = vpack.c.bf16 %v7613_v47, %v7612_v4 }
 0x7b3   : > { %v6919_v50 = vadd.f32 %v6890_v10, %v6750_v29  ;;  %v7059_v40 = vpop.f32.mrf.mxu1 }
 0x7b4   : > { %v7405_v42 = vadd.f32 %v7345_v57, %v7236_v2 }
 0x7b5   : > { %v13655_v62 = vadd.f32 %v7059_v40, %v6919_v50 }
 0x7b9   : > { %v7178_v43 = vpop.f32.mrf.mxu2 }
 0x7ba   : > { %v7237_v46 = vadd.f32 %v7178_v43, %v13469_v9  ;;  %v6893_v54 = vpop.f32.mrf.mxu0  ;;  %v7347_v58 = vpop.f32.mrf.mxu3  ;;  %v7616_v43 = vld [vmem:[%s10458_s30 + $0x1d2] sm:$0xff] }
 0x7bb   : > { %v6920_v11 = vadd.f32 %v6893_v54, %v6751_v56  ;;  %v7062_v61 = vpop.f32.mrf.mxu1  ;;  %v7283_v54 = vld [vmem:[%s10458_s30 + $0x1f6] sm:$0xff] }
 0x7bc   : > { %v7406_v29 = vadd.f32 %v7347_v58, %v7237_v46  ;;  %v7282_v46 = vld [vmem:[%s10458_s30 + $0x1ee] sm:$0xff] }
 0x7bd   : > { %v13664_v31 = vadd.f32 %v7062_v61, %v6920_v11  ;;  %10093 = vmatmul.msk.bf16.gmra.mxu0 %vm249_vm1, %v7460_v19  ;;  %v7617_v19 = vld [vmem:[%s10458_s30 + $0x1da] sm:$0xff] }
 0x7be   : > { %10069 = vmatmul.msk.bf16.gmra.mxu2 %vm249_vm1, %v7628_v30  ;;  %10106 = vmatmul.msk.bf16.gmra.mxu1 %vm249_vm1, %v7629_v26 }
 0x7bf   : > { %10082 = vmatmul.msk.bf16.gmra.mxu3 %vm249_vm1, %v7293_v5 }
 0x7c1   : > { %v7181_v9 = vpop.f32.mrf.mxu2 }
 0x7c2   : > { %v7238_v63 = vadd.f32 %v7181_v9, %v13484_v33  ;;  %v6895_v49 = vpop.f32.mrf.mxu0  ;;  %v7350_v12 = vpop.f32.mrf.mxu3  ;;  %v7630_v33 = vpack.c.bf16 %v7615_v32, %v7614_v34 }
 0x7c3   : > { %v6921_v6 = vadd.f32 %v6895_v49, %v6752_v35  ;;  %v7064_v28 = vpop.f32.mrf.mxu1  ;;  %v7294_v35 = vpack.c.bf16 %v7281_v18, %v7280_v51  ;;  %v10163_v51 = vld [vmem:[%s14539_s1 + $0x54] sm:$0xf]  ;;  %v10176_v18 = vld [vmem:[%s14539_s1 + $0x58] sm:$0xf] }
 0x7c4   : > { %v7407_v56 = vadd.f32 %v7350_v12, %v7238_v63 }
 0x7c5   : > { %v13671_v24 = vadd.f32 %v7064_v28, %v6921_v6 }
 0x7c9   : > { %v7183_v3 = vpop.f32.mrf.mxu2 }
 0x7ca   : > { %v7239_v30 = vadd.f32 %v7183_v3, %v13495_v27  ;;  %v7352_v55 = vpop.f32.mrf.mxu3  ;;  %v7514_v22 = vpop.f32.mrf.mxu0  ;;  %v7449_v3 = vld [vmem:[%s10458_s30 + $0x1e0] sm:$0xff] }
 0x7cb   : > { %v7574_v60 = vadd.f32 %v7514_v22, %v7405_v42  ;;  %v7683_v2 = vpop.f32.mrf.mxu1  ;;  %v7619_v22 = vld [vmem:[%s10458_s30 + $0x1ea] sm:$0xff] }
 0x7cc   : > { %v7408_v10 = vadd.f32 %v7352_v55, %v7239_v30  ;;  %v8517_v30 = vsel %vm356_vm0, %v10163_v51, 0  ;;  %v8686_v55 = vsel %vm356_vm0, %v10176_v18, 0  ;;  %v7938_v51 = vld [vmem:[%s10458_s30 + $0xd8] sm:$0xff]  ;;  %v7939_v18 = vld [vmem:[%s10458_s30 + $0xe0] sm:$0xff] }
 0x7cd   : > { %v13680_v57 = vadd.f32 %v7683_v2, %v7574_v60  ;;  %10094 = vmatmul.msk.bf16.gmra.mxu0 %vm249_vm1, %v7461_v52  ;;  %v7618_v52 = vld [vmem:[%s10458_s30 + $0x1e2] sm:$0xff]  ;;  %v7768_v60 = vld [vmem:[%s10458_s30 + $0xcd] sm:$0xff]  ;;  %8526 = vmatpush.bf16.msra.mxu2 %v8517_v30 }
 0x7ce   : > { %10070 = vmatmul.msk.bf16.gmra.mxu2 %vm249_vm1, %v7629_v26  ;;  %10107 = vmatmul.msk.bf16.gmra.mxu1 %vm249_vm1, %v7630_v33  ;;  %v7462_v26 = vpack.c.bf16 %v7448_v14, %v7447_v59  ;;  %v7936_v2 = vld [vmem:[%s10458_s30 + $0xc8] sm:$0xff] }
 0x7cf   : > { %10083 = vmatmul.msk.bf16.gmra.mxu3 %vm249_vm1, %v7294_v35  ;;  %v7937_v35 = vld [vmem:[%s10458_s30 + $0xd0] sm:$0xff] }
 0x7d0   : > { %8695 = vmatpush.bf16.msra.mxu3 %v8686_v55 }
 0x7d1   : > { %v7186_v27 = vpop.f32.mrf.mxu2 }
 0x7d2   : > { %v7240_v50 = vadd.f32 %v7186_v27, %v13514_v17  ;;  %v7355_v40 = vpop.f32.mrf.mxu3  ;;  %v7516_v42 = vpop.f32.mrf.mxu0  ;;  %v7631_v17 = vpack.c.bf16 %v7617_v19, %v7616_v43  ;;  %v7960_v43 = vpack.c.bf16 %v7937_v35, %v7936_v2 }
 0x7d3   : > { %v7575_v8 = vadd.f32 %v7516_v42, %v7406_v29  ;;  %v7685_v25 = vpop.f32.mrf.mxu1  ;;  %v7295_v29 = vpack.c.bf16 %v7283_v54, %v7282_v46  ;;  %v10202_v54 = vld [vmem:[%s14539_s1 + $0x60] sm:$0xf] }
 0x7d4   : > { %v7409_v4 = vadd.f32 %v7355_v40, %v7240_v50 }
 0x7d5   : > { %v13687_v47 = vadd.f32 %v7685_v25, %v7575_v8  ;;  %v7632_v8 = vpack.c.bf16 %v7619_v22, %v7618_v52 }
 0x7d9   : > { %v7188_v58 = vpop.f32.mrf.mxu2 }
 0x7da   : > { %v7241_v11 = vadd.f32 %v7188_v58, %v13533_v41  ;;  %v7357_v61 = vpop.f32.mrf.mxu3  ;;  %v7519_v5 = vpop.f32.mrf.mxu0  ;;  %v9024_v58 = vsel %vm356_vm0, %v10202_v54, 0  ;;  %v7940_v54 = vld [vmem:[%s10458_s30 + $0xe8] sm:$0xff] }
 0x7db   : > { %v7576_v9 = vadd.f32 %v7519_v5, %v7407_v56  ;;  %v7688_v63 = vpop.f32.mrf.mxu1  ;;  %9033 = vmatpush.bf16.msra.mxu1 %v9024_v58  ;;  %v7941_v58 = vld [vmem:[%s10458_s30 + $0xf0] sm:$0xff] }
 0x7dc   : > { %v7410_v49 = vadd.f32 %v7357_v61, %v7241_v11 }
 0x7dd   : > { %v13696_v12 = vadd.f32 %v7688_v63, %v7576_v9  ;;  %10095 = vmatmul.msk.bf16.gmra.mxu0 %vm249_vm1, %v7462_v26 }
 0x7de   : > { %10071 = vmatmul.msk.bf16.gmra.mxu2 %vm249_vm1, %v7630_v33  ;;  %10108 = vmatmul.msk.bf16.gmra.mxu1 %vm249_vm1, %v7631_v17  ;;  %v7767_v33 = vld [vmem:[%s10458_s30 + $0xc5] sm:$0xff] }
 0x7df   : > { %10084 = vmatmul.msk.bf16.gmra.mxu3 %vm249_vm1, %v7295_v29  ;;  %v7791_v25 = vpack.c.bf16 %v7768_v60, %v7767_v33  ;;  %v7961_v60 = vpack.c.bf16 %v7939_v18, %v7938_v51 }
 0x7e1   : > { %v7191_v41 = vpop.f32.mrf.mxu2 }
 0x7e2   : > { %v7242_v6 = vadd.f32 %v7191_v41, %v13544_v0  ;;  %v7360_v28 = vpop.f32.mrf.mxu3  ;;  %v7521_v56 = vpop.f32.mrf.mxu0  ;;  %v7450_v0 = vld [vmem:[%s10458_s30 + $0x1e8] sm:$0xff]  ;;  %v7451_v41 = vld [vmem:[%s10458_s30 + $0x1f0] sm:$0xff] }
 0x7e3   : > { %v7577_v23 = vadd.f32 %v7521_v56, %v7408_v10  ;;  %v7690_v53 = vpop.f32.mrf.mxu1  ;;  %v7463_v27 = vpack.c.bf16 %v7450_v0, %v7449_v3  ;;  %v7621_v56 = vld [vmem:[%s10458_s30 + $0x1fa] sm:$0xff] }
 0x7e4   : > { %v7411_v34 = vadd.f32 %v7360_v28, %v7242_v6  ;;  %v7452_v6 = vld [vmem:[%s10458_s30 + $0x1f8] sm:$0xff] }
 0x7e5   : > { %v13703_v32 = vadd.f32 %v7690_v53, %v7577_v23  ;;  %v7620_v28 = vld [vmem:[%s10458_s30 + $0x1f2] sm:$0xff]  ;;  %v7770_v53 = vld [vmem:[%s10458_s30 + $0xdd] sm:$0xff]  ;;  %v7464_v0 = vpack.c.bf16 %v7452_v6, %v7451_v41  ;;  %v7962_v6 = vpack.c.bf16 %v7941_v58, %v7940_v54 }
 0x7e6   : > { %v7769_v23 = vld [vmem:[%s10458_s30 + $0xd5] sm:$0xff]  ;;  %v7633_v55 = vpack.c.bf16 %v7621_v56, %v7620_v28 }
 0x7e9   : > { %v7193_v10 = vpop.f32.mrf.mxu2 }
 0x7ea   : > { %v7243_v50 = vadd.f32 %v7193_v10, %v13555_v20  ;;  %v7362_v40 = vpop.f32.mrf.mxu3  ;;  %v7524_v42 = vpop.f32.mrf.mxu0  ;;  %v10189_v20 = vld [vmem:[%s14539_s1 + $0x5c] sm:$0xf] }
 0x7eb   : > { %v7578_v59 = vadd.f32 %v7524_v42, %v7409_v4  ;;  %v7693_v14 = vpop.f32.mrf.mxu1  ;;  %v8855_v4 = vsel %vm356_vm0, %v10189_v20, 0  ;;  %v13762_v20 = vld [vmem:[%s10458_s30 + $0x10d] sm:$0xff] }
 0x7ec   : > { %v7412_v19 = vadd.f32 %v7362_v40, %v7243_v50  ;;  %8864 = vmatpush.bf16.msra.mxu0 %v8855_v4  ;;  %v13765_v4 = vld [vmem:[%s10458_s30 + $0x115] sm:$0xff] }
 0x7ed   : > { %v13722_v46 = vadd.f32 %v7693_v14, %v7578_v59  ;;  %10096 = vmatmul.msk.bf16.gmra.mxu0 %vm249_vm1, %v7463_v27  ;;  %v8105_v59 = vld [vmem:[%s10458_s30 + $0xcb] sm:$0xff]  ;;  %v8106_v14 = vld [vmem:[%s10458_s30 + $0xd3] sm:$0xff] }
 0x7ee   : > { %10109 = vmatmul.msk.bf16.gmra.mxu1 %vm249_vm1, %v7632_v8  ;;  %10112 = vmatmul.msk.bf16.vlgmr.msrb.gmra.mxu2 %vm249_vm1, %v7791_v25  ;;  %v7771_v25 = vld [vmem:[%s10458_s30 + $0xe5] sm:$0xff] }
 0x7ef   : > { %10125 = vmatmul.msk.bf16.vlgmr.msrb.gmra.mxu3 %vm249_vm1, %v7960_v43  ;;  %v7772_v43 = vld [vmem:[%s10458_s30 + $0xed] sm:$0xff] }
 0x7f1   : > { %v7196_v26 = vpop.f32.mrf.mxu2 }
 0x7f2   : > { %v7244_v11 = vadd.f32 %v7196_v26, %v13558_v39  ;;  %v7365_v61 = vpop.f32.mrf.mxu3  ;;  %v7526_v5 = vpop.f32.mrf.mxu0 }
 0x7f3   : > { %v7579_v17 = vadd.f32 %v7526_v5, %v7410_v49  ;;  %v7695_v9 = vpop.f32.mrf.mxu1  ;;  %v7792_v49 = vpack.c.bf16 %v7770_v53, %v7769_v23  ;;  %v7793_v5 = vpack.c.bf16 %v7772_v43, %v7771_v25 }
 0x7f4   : > { %v7413_v63 = vadd.f32 %v7365_v61, %v7244_v11  ;;  %v8129_v11 = vpack.c.bf16 %v8106_v14, %v8105_v59 }
 0x7f5   : > { %v13737_v29 = vadd.f32 %v7695_v9, %v7579_v17  ;;  %v8298_v17 = vpack.c.bf16 %v13765_v4, %v13762_v20 }
 0x7f9   : > { %v7198_v3 = vpop.f32.mrf.mxu2 }
 0x7fa   : > { %v7245_v52 = vadd.f32 %v7198_v3, %v13569_v44  ;;  %v7367_v39 = vpop.f32.mrf.mxu3  ;;  %v7529_v30 = vpop.f32.mrf.mxu0 }
 0x7fb   : > { %v7580_v22 = vadd.f32 %v7529_v30, %v7411_v34  ;;  %v7698_v33 = vpop.f32.mrf.mxu1  ;;  %v8108_v30 = vld [vmem:[%s10458_s30 + $0xe3] sm:$0xff] }
 0x7fc   : > { %v7414_v2 = vadd.f32 %v7367_v39, %v7245_v52  ;;  %v7773_v52 = vld [vmem:[%s10458_s30 + $0xf5] sm:$0xff] }
 0x7fd   : > { %v13748_v35 = vadd.f32 %v7698_v33, %v7580_v22  ;;  %10097 = vmatmul.msk.bf16.gmra.mxu0 %vm249_vm1, %v7464_v0  ;;  %v8107_v39 = vld [vmem:[%s10458_s30 + $0xdb] sm:$0xff]  ;;  %v13789_v22 = vld [vmem:[%s10458_s30 + $0x125] sm:$0xff] }
 0x7fe   : > { %10110 = vmatmul.msk.bf16.gmra.mxu1 %vm249_vm1, %v7633_v55  ;;  %10113 = vmatmul.msk.bf16.gmra.mxu2 %vm249_vm1, %v7792_v49  ;;  %v7774_v55 = vld [vmem:[%s10458_s30 + $0xfd] sm:$0xff] }
 0x7ff   : > { %10126 = vmatmul.msk.bf16.gmra.mxu3 %vm249_vm1, %v7961_v60  ;;  %v13786_v49 = vld [vmem:[%s10458_s30 + $0x11d] sm:$0xff] }
 0x800   : > { %v7942_v33 = vld [vmem:[%s10458_s30 + $0xf8] sm:$0xff]  ;;  %v7943_v60 = vld [vmem:[%s10458_s30 + $0x100] sm:$0xff] }
 0x801   : > { %v7201_v44 = vpop.f32.mrf.mxu2  ;;  %v7963_v59 = vpack.c.bf16 %v7943_v60, %v7942_v33 }
 0x802   : > { %v7246_v34 = vadd.f32 %v7201_v44, %v13572_v21  ;;  %v7370_v10 = vpop.f32.mrf.mxu3  ;;  %v7531_v27 = vpop.f32.mrf.mxu0 }
 0x803   : > { %v7581_v50 = vadd.f32 %v7531_v27, %v7412_v19  ;;  %v7700_v40 = vpop.f32.mrf.mxu1  ;;  %v7794_v27 = vpack.c.bf16 %v7774_v55, %v7773_v52 }
 0x804   : > { %v7415_v42 = vadd.f32 %v7370_v10, %v7246_v34  ;;  %v8130_v34 = vpack.c.bf16 %v8108_v30, %v8107_v39 }
 0x805   : > { %v13755_v8 = vadd.f32 %v7700_v40, %v7581_v50  ;;  %v8299_v50 = vpack.c.bf16 %v13789_v22, %v13786_v49 }
 0x809   : > { %v7203_v26 = vpop.f32.mrf.mxu2 }
 0x80a   : > { %v7247_v21 = vadd.f32 %v7203_v26, %v13583_v1  ;;  %v7372_v61 = vpop.f32.mrf.mxu3  ;;  %v7534_v19 = vpop.f32.mrf.mxu0 }
 0x80b   : > { %v7582_v9 = vadd.f32 %v7534_v19, %v7413_v63  ;;  %v7703_v41 = vpop.f32.mrf.mxu1  ;;  %v8109_v19 = vld [vmem:[%s10458_s30 + $0xeb] sm:$0xff] }
 0x80c   : > { %v7416_v28 = vadd.f32 %v7372_v61, %v7247_v21 }
 0x80d   : > { %v13772_v56 = vadd.f32 %v7703_v41, %v7582_v9  ;;  %10138 = vmatmul.msk.bf16.vlgmr.msrb.gmra.mxu0 %vm249_vm1, %v8129_v11  ;;  %v13809_v9 = vld [vmem:[%s10458_s30 + $0x12d] sm:$0xff]  ;;  %v13812_v41 = vld [vmem:[%s10458_s30 + $0x135] sm:$0xff] }
 0x80e   : > { %10114 = vmatmul.msk.bf16.gmra.mxu2 %vm249_vm1, %v7793_v5  ;;  %10151 = vmatmul.msk.bf16.vlgmr.msrb.gmra.mxu1 %vm249_vm1, %v8298_v17  ;;  %v8110_v5 = vld [vmem:[%s10458_s30 + $0xf3] sm:$0xff]  ;;  %v7775_v17 = vld [vmem:[%s10458_s30 + $0x105] sm:$0xff] }
 0x80f   : > { %10127 = vmatmul.msk.bf16.gmra.mxu3 %vm249_vm1, %v7962_v6  ;;  %v7944_v6 = vld [vmem:[%s10458_s30 + $0x108] sm:$0xff] }
 0x811   : > { %v7206_v1 = vpop.f32.mrf.mxu2 }
 0x812   : > { %v7248_v63 = vadd.f32 %v7206_v1, %v13586_v37  ;;  %v7375_v23 = vpop.f32.mrf.mxu3  ;;  %v7536_v53 = vpop.f32.mrf.mxu0  ;;  %v7945_v1 = vld [vmem:[%s10458_s30 + $0x110] sm:$0xff] }
 0x813   : > { %v7583_v51 = vadd.f32 %v7536_v53, %v7414_v2  ;;  %v7705_v18 = vpop.f32.mrf.mxu1  ;;  %v7964_v30 = vpack.c.bf16 %v7945_v1, %v7944_v6 }
 0x814   : > { %v7417_v3 = vadd.f32 %v7375_v23, %v7248_v63  ;;  %v8131_v23 = vpack.c.bf16 %v8110_v5, %v8109_v19 }
 0x815   : > { %v13779_v0 = vadd.f32 %v7705_v18, %v7583_v51  ;;  %v8300_v18 = vpack.c.bf16 %v13812_v41, %v13809_v9 }
 0x819   : > { %v7208_v44 = vpop.f32.mrf.mxu2 }
 0x81a   : > { %v7249_v37 = vadd.f32 %v7208_v44, %v13597_v36  ;;  %v7377_v10 = vpop.f32.mrf.mxu3  ;;  %v7539_v2 = vpop.f32.mrf.mxu0 }
 0x81b   : > { %v7584_v40 = vadd.f32 %v7539_v2, %v7415_v42  ;;  %v7708_v25 = vpop.f32.mrf.mxu1  ;;  %v8111_v2 = vld [vmem:[%s10458_s30 + $0xfb] sm:$0xff] }
 0x81c   : > { %v7418_v14 = vadd.f32 %v7377_v10, %v7249_v37 }
 0x81d   : > { %v13796_v43 = vadd.f32 %v7708_v25, %v7584_v40  ;;  %10139 = vmatmul.msk.bf16.gmra.mxu0 %vm249_vm1, %v8130_v34  ;;  %v13835_v40 = vld [vmem:[%s10458_s30 + $0x145] sm:$0xff]  ;;  %v7946_v25 = vld [vmem:[%s10458_s30 + $0x118] sm:$0xff] }
 0x81e   : > { %10115 = vmatmul.msk.bf16.gmra.mxu2 %vm249_vm1, %v7794_v27  ;;  %10152 = vmatmul.msk.bf16.gmra.mxu1 %vm249_vm1, %v8299_v50  ;;  %v8112_v27 = vld [vmem:[%s10458_s30 + $0x103] sm:$0xff] }
 0x81f   : > { %10128 = vmatmul.msk.bf16.gmra.mxu3 %vm249_vm1, %v7963_v59  ;;  %v13832_v50 = vld [vmem:[%s10458_s30 + $0x13d] sm:$0xff] }
 0x820   : > { %v7947_v59 = vld [vmem:[%s10458_s30 + $0x120] sm:$0xff] }
 0x821   : > { %v7211_v36 = vpop.f32.mrf.mxu2  ;;  %v7965_v5 = vpack.c.bf16 %v7947_v59, %v7946_v25 }
 0x822   : > { %v7250_v42 = vadd.f32 %v7211_v36, %v13600_v13  ;;  %v7380_v54 = vpop.f32.mrf.mxu3  ;;  %v7541_v58 = vpop.f32.mrf.mxu0 }
 0x823   : > { %v7585_v26 = vadd.f32 %v7541_v58, %v7416_v28  ;;  %v7710_v11 = vpop.f32.mrf.mxu1  ;;  %v7795_v28 = vpack.c.bf16 %v13762_v20, %v7775_v17 }
 0x824   : > { %v7419_v21 = vadd.f32 %v7380_v54, %v7250_v42  ;;  %v8132_v42 = vpack.c.bf16 %v8112_v27, %v8111_v2 }
 0x825   : > { %v13803_v61 = vadd.f32 %v7710_v11, %v7585_v26  ;;  %v8301_v26 = vpack.c.bf16 %v13835_v40, %v13832_v50 }
 0x829   : > { %v7213_v63 = vpop.f32.mrf.mxu2 }
 0x82a   : > { %v7251_v13 = vadd.f32 %v7213_v63, %v13611_v7  ;;  %v7382_v53 = vpop.f32.mrf.mxu3  ;;  %v7544_v51 = vpop.f32.mrf.mxu0 }
 0x82b   : > { %v7586_v52 = vadd.f32 %v7544_v51, %v7417_v3  ;;  %v7713_v39 = vpop.f32.mrf.mxu1  ;;  %v13855_v51 = vld [vmem:[%s10458_s30 + $0x113] sm:$0xff] }
 0x82c   : > { %v7420_v55 = vadd.f32 %v7382_v53, %v7251_v13  ;;  %v8113_v53 = vld [vmem:[%s10458_s30 + $0x10b] sm:$0xff] }
 0x82d   : > { %v13820_v33 = vadd.f32 %v7713_v39, %v7586_v52  ;;  %10140 = vmatmul.msk.bf16.gmra.mxu0 %vm249_vm1, %v8131_v23  ;;  %v7948_v52 = vld [vmem:[%s10458_s30 + $0x128] sm:$0xff]  ;;  %v7949_v39 = vld [vmem:[%s10458_s30 + $0x130] sm:$0xff] }
 0x82e   : > { %10116 = vmatmul.msk.bf16.gmra.mxu2 %vm249_vm1, %v7795_v28  ;;  %10153 = vmatmul.msk.bf16.gmra.mxu1 %vm249_vm1, %v8300_v18  ;;  %v13858_v28 = vld [vmem:[%s10458_s30 + $0x14d] sm:$0xff]  ;;  %v13861_v18 = vld [vmem:[%s10458_s30 + $0x155] sm:$0xff]  ;;  %v7966_v2 = vpack.c.bf16 %v7949_v39, %v7948_v52 }
 0x82f   : > { %10129 = vmatmul.msk.bf16.gmra.mxu3 %vm249_vm1, %v7964_v30 }
 0x831   : > { %v7216_v7 = vpop.f32.mrf.mxu2 }
 0x832   : > { %v7252_v20 = vadd.f32 %v7216_v7, %v13614_v48  ;;  %v7385_v3 = vpop.f32.mrf.mxu3  ;;  %v7546_v60 = vpop.f32.mrf.mxu0  ;;  %v8133_v7 = vpack.c.bf16 %v13855_v51, %v8113_v53 }
 0x833   : > { %v7587_v44 = vadd.f32 %v7546_v60, %v7418_v14  ;;  %v7715_v34 = vpop.f32.mrf.mxu1  ;;  %v7796_v14 = vpack.c.bf16 %v13786_v49, %v13765_v4  ;;  %v8302_v60 = vpack.c.bf16 %v13861_v18, %v13858_v28 }
 0x834   : > { %v7421_v37 = vadd.f32 %v7385_v3, %v7252_v20  ;;  %v7797_v3 = vpack.c.bf16 %v13809_v9, %v13789_v22 }
 0x835   : > { %v13827_v10 = vadd.f32 %v7715_v34, %v7587_v44 }
 0x839   : > { %v7218_v36 = vpop.f32.mrf.mxu2 }
 0x83a   : > { %v7253_v54 = vadd.f32 %v7218_v36, %v13625_v16  ;;  %v7387_v48 = vpop.f32.mrf.mxu3  ;;  %v7549_v58 = vpop.f32.mrf.mxu0 }
 0x83b   : > { %v7588_v11 = vadd.f32 %v7549_v58, %v7419_v21  ;;  %v7718_v19 = vpop.f32.mrf.mxu1  ;;  %v13884_v58 = vld [vmem:[%s10458_s30 + $0x123] sm:$0xff] }
 0x83c   : > { %v7422_v17 = vadd.f32 %v7387_v48, %v7253_v54  ;;  %v13881_v48 = vld [vmem:[%s10458_s30 + $0x11b] sm:$0xff] }
 0x83d   : > { %v13844_v6 = vadd.f32 %v7718_v19, %v7588_v11  ;;  %10141 = vmatmul.msk.bf16.gmra.mxu0 %vm249_vm1, %v8132_v42  ;;  %v7950_v11 = vld [vmem:[%s10458_s30 + $0x138] sm:$0xff]  ;;  %v7951_v19 = vld [vmem:[%s10458_s30 + $0x140] sm:$0xff] }
 0x83e   : > { %10117 = vmatmul.msk.bf16.gmra.mxu2 %vm249_vm1, %v7796_v14  ;;  %10154 = vmatmul.msk.bf16.gmra.mxu1 %vm249_vm1, %v8301_v26  ;;  %v13887_v14 = vld [vmem:[%s10458_s30 + $0x15d] sm:$0xff]  ;;  %v13890_v26 = vld [vmem:[%s10458_s30 + $0x165] sm:$0xff]  ;;  %v7967_v53 = vpack.c.bf16 %v7951_v19, %v7950_v11 }
 0x83f   : > { %10130 = vmatmul.msk.bf16.gmra.mxu3 %vm249_vm1, %v7965_v5 }
 0x841   : > { %v7221_v16 = vpop.f32.mrf.mxu2 }
 0x842   : > { %v7254_v4 = vadd.f32 %v7221_v16, %v13628_v15  ;;  %v7390_v49 = vpop.f32.mrf.mxu3  ;;  %v7551_v21 = vpop.f32.mrf.mxu0 }
 0x843   : > { %v7589_v1 = vadd.f32 %v7551_v21, %v7420_v55  ;;  %v7720_v63 = vpop.f32.mrf.mxu1  ;;  %v8303_v21 = vpack.c.bf16 %v13890_v26, %v13887_v14 }
 0x844   : > { %v7423_v23 = vadd.f32 %v7390_v49, %v7254_v4  ;;  %v7798_v49 = vpack.c.bf16 %v13832_v50, %v13812_v41 }
 0x845   : > { %v13851_v13 = vadd.f32 %v7720_v63, %v7589_v1 }
 0x849   : > { %v7223_v30 = vpop.f32.mrf.mxu2 }
 0x84a   : > { %v7255_v15 = vadd.f32 %v7223_v30, %v13639_v38  ;;  %v7392_v20 = vpop.f32.mrf.mxu3  ;;  %v7554_v55 = vpop.f32.mrf.mxu0 }
 0x84b   : > { %v7590_v44 = vadd.f32 %v7554_v55, %v7421_v37  ;;  %v7723_v34 = vpop.f32.mrf.mxu1  ;;  %v13911_v55 = vld [vmem:[%s10458_s30 + $0x12b] sm:$0xff] }
 0x84c   : > { %v7424_v27 = vadd.f32 %v7392_v20, %v7255_v15 }
 0x84d   : > { %v13871_v25 = vadd.f32 %v7723_v34, %v7590_v44  ;;  %10142 = vmatmul.msk.bf16.gmra.mxu0 %vm249_vm1, %v8133_v7  ;;  %v13920_v44 = vld [vmem:[%s10458_s30 + $0x175] sm:$0xff]  ;;  %v7952_v34 = vld [vmem:[%s10458_s30 + $0x148] sm:$0xff] }
 0x84e   : > { %10118 = vmatmul.msk.bf16.gmra.mxu2 %vm249_vm1, %v7797_v3  ;;  %10155 = vmatmul.msk.bf16.gmra.mxu1 %vm249_vm1, %v8302_v60  ;;  %v13914_v3 = vld [vmem:[%s10458_s30 + $0x133] sm:$0xff] }
 0x84f   : > { %10131 = vmatmul.msk.bf16.gmra.mxu3 %vm249_vm1, %v7966_v2  ;;  %v13917_v60 = vld [vmem:[%s10458_s30 + $0x16d] sm:$0xff] }
 0x850   : > { %v7953_v2 = vld [vmem:[%s10458_s30 + $0x150] sm:$0xff] }
 0x851   : > { %v7226_v38 = vpop.f32.mrf.mxu2  ;;  %v7968_v19 = vpack.c.bf16 %v7953_v2, %v7952_v34 }
 0x852   : > { %v7256_v22 = vadd.f32 %v7226_v38, %v13646_v45  ;;  %v7395_v9 = vpop.f32.mrf.mxu3  ;;  %v7556_v37 = vpop.f32.mrf.mxu0  ;;  %v8134_v45 = vpack.c.bf16 %v13884_v58, %v13881_v48 }
 0x853   : > { %v7591_v59 = vadd.f32 %v7556_v37, %v7422_v17  ;;  %v7725_v36 = vpop.f32.mrf.mxu1  ;;  %v7799_v37 = vpack.c.bf16 %v13858_v28, %v13835_v40 }
 0x854   : > { %v7425_v42 = vadd.f32 %v7395_v9, %v7256_v22 }
 0x855   : > { %v13878_v54 = vadd.f32 %v7725_v36, %v7591_v59  ;;  %v8304_v59 = vpack.c.bf16 %v13920_v44, %v13917_v60 }
 0x859   : > { %v7228_v5 = vpop.f32.mrf.mxu2 }
 0x85a   : > { %v7257_v17 = vadd.f32 %v7228_v5, %v13655_v62  ;;  %v7397_v16 = vpop.f32.mrf.mxu3  ;;  %v7559_v4 = vpop.f32.mrf.mxu0 }
 0x85b   : > { %v7592_v1 = vadd.f32 %v7559_v4, %v7423_v23  ;;  %v7728_v63 = vpop.f32.mrf.mxu1 }
 0x85c   : > { %v7426_v52 = vadd.f32 %v7397_v16, %v7257_v17 }
 0x85d   : > { %v13901_v39 = vadd.f32 %v7728_v63, %v7592_v1  ;;  %10143 = vmatmul.msk.bf16.gmra.mxu0 %vm249_vm1, %v8134_v45  ;;  %v13944_v1 = vld [vmem:[%s10458_s30 + $0x143] sm:$0xff] }
 0x85e   : > { %10119 = vmatmul.msk.bf16.gmra.mxu2 %vm249_vm1, %v7798_v49  ;;  %10156 = vmatmul.msk.bf16.gmra.mxu1 %vm249_vm1, %v8303_v21  ;;  %v13941_v21 = vld [vmem:[%s10458_s30 + $0x13b] sm:$0xff] }
 0x85f   : > { %10132 = vmatmul.msk.bf16.gmra.mxu3 %vm249_vm1, %v7967_v53  ;;  %v13947_v63 = vld [vmem:[%s10458_s30 + $0x17d] sm:$0xff]  ;;  %v13950_v53 = vld [vmem:[%s10458_s30 + $0x185] sm:$0xff] }
 0x860   : > { %v8305_v34 = vpack.c.bf16 %v13950_v53, %v13947_v63 }
 0x861   : > { %v7231_v62 = vpop.f32.mrf.mxu2 }
 0x862   : > { %v7258_v41 = vadd.f32 %v7231_v62, %v13664_v31  ;;  %v7400_v50 = vpop.f32.mrf.mxu3  ;;  %v7561_v23 = vpop.f32.mrf.mxu0  ;;  %v8135_v31 = vpack.c.bf16 %v13914_v3, %v13911_v55  ;;  %v7954_v62 = vld [vmem:[%s10458_s30 + $0x158] sm:$0xff] }
 0x863   : > { %v7593_v30 = vadd.f32 %v7561_v23, %v7424_v27  ;;  %v7730_v7 = vpop.f32.mrf.mxu1 }
 0x864   : > { %v7427_v15 = vadd.f32 %v7400_v50, %v7258_v41  ;;  %v7955_v41 = vld [vmem:[%s10458_s30 + $0x160] sm:$0xff] }
 0x865   : > { %v13908_v20 = vadd.f32 %v7730_v7, %v7593_v30  ;;  %v13959_v7 = vpack.c.bf16 %v13887_v14, %v13861_v18 }
 0x869   : > { %v7233_v38 = vpop.f32.mrf.mxu2 }
 0x86a   : > { %v7259_v27 = vadd.f32 %v7233_v38, %v13671_v24  ;;  %v7402_v22 = vpop.f32.mrf.mxu3  ;;  %v7564_v9 = vpop.f32.mrf.mxu0 }
 0x86b   : > { %v7594_v36 = vadd.f32 %v7564_v9, %v7425_v42  ;;  %v7733_v11 = vpop.f32.mrf.mxu1 }
 0x86c   : > { %v7428_v5 = vadd.f32 %v7402_v22, %v7259_v27 }
 0x86d   : > { %v13931_v45 = vadd.f32 %v7733_v11, %v7594_v36  ;;  %10144 = vmatmul.msk.bf16.gmra.mxu0 %vm249_vm1, %v8135_v31  ;;  %v13963_v31 = vpack.c.bf16 %v7955_v41, %v7954_v62  ;;  %v13977_v11 = vld [vmem:[%s10458_s30 + $0x14b] sm:$0xff]  ;;  %v13995_v41 = vpack.c.bf16 %v13917_v60, %v13890_v26 }
 0x86e   : > { %10120 = vmatmul.msk.bf16.gmra.mxu2 %vm249_vm1, %v7799_v37  ;;  %10157 = vmatmul.msk.bf16.gmra.mxu1 %vm249_vm1, %v8304_v59 }
 0x86f   : > { %10133 = vmatmul.msk.bf16.gmra.mxu3 %vm249_vm1, %v7968_v19  ;;  %v13980_v19 = vld [vmem:[%s10458_s30 + $0x153] sm:$0xff] }
 0x871   : > { %v7852_v24 = vpop.f32.mrf.mxu2 }
 0x872   : > { %v7912_v40 = vadd.f32 %v7852_v24, %v13680_v57  ;;  %v7566_v28 = vpop.f32.mrf.mxu0  ;;  %v8021_v42 = vpop.f32.mrf.mxu3  ;;  %v8136_v57 = vpack.c.bf16 %v13944_v1, %v13941_v21  ;;  %v13983_v24 = vld [vmem:[%s10458_s30 + $0x18d] sm:$0xff] }
 0x873   : > { %v7595_v17 = vadd.f32 %v7566_v28, %v7426_v52  ;;  %v7735_v16 = vpop.f32.mrf.mxu1  ;;  %v7956_v28 = vld [vmem:[%s10458_s30 + $0x168] sm:$0xff] }
 0x874   : > { %v8081_v4 = vadd.f32 %v8021_v42, %v7912_v40  ;;  %v13986_v40 = vld [vmem:[%s10458_s30 + $0x195] sm:$0xff] }
 0x875   : > { %v13938_v49 = vadd.f32 %v7735_v16, %v7595_v17  ;;  %v7957_v42 = vld [vmem:[%s10458_s30 + $0x170] sm:$0xff] }
 0x879   : > { %v7854_v50 = vpop.f32.mrf.mxu2 }
 0x87a   : > { %v7913_v52 = vadd.f32 %v7854_v50, %v13687_v47  ;;  %v7569_v23 = vpop.f32.mrf.mxu0  ;;  %v8023_v30 = vpop.f32.mrf.mxu3  ;;  %v8306_v50 = vpack.c.bf16 %v13986_v40, %v13983_v24 }
 0x87b   : > { %v7596_v2 = vadd.f32 %v7569_v23, %v7427_v15  ;;  %v7738_v38 = vpop.f32.mrf.mxu1  ;;  %v13999_v23 = vpack.c.bf16 %v7957_v42, %v7956_v28  ;;  %v7958_v28 = vld [vmem:[%s10458_s30 + $0x178] sm:$0xff]  ;;  %v7959_v42 = vld [vmem:[%s10458_s30 + $0x180] sm:$0xff] }
 0x87c   : > { %v8082_v27 = vadd.f32 %v8023_v30, %v7913_v52 }
 0x87d   : > { %v13965_v22 = vadd.f32 %v7738_v38, %v7596_v2  ;;  %10145 = vmatmul.msk.bf16.gmra.mxu0 %vm249_vm1, %v8136_v57 }
 0x87e   : > { %10121 = vmatmul.msk.bf16.gmra.mxu2 %vm249_vm1, %v13959_v7  ;;  %10158 = vmatmul.msk.bf16.gmra.mxu1 %vm249_vm1, %v8305_v34 }
 0x87f   : > { %10134 = vmatmul.msk.bf16.gmra.mxu3 %vm249_vm1, %v13963_v31 }
 0x881   : > { %v7857_v47 = vpop.f32.mrf.mxu2 }
 0x882   : > { %v7914_v18 = vadd.f32 %v7857_v47, %v13696_v12  ;;  %v7571_v14 = vpop.f32.mrf.mxu0  ;;  %v8026_v15 = vpop.f32.mrf.mxu3  ;;  %v8137_v12 = vpack.c.bf16 %v13980_v19, %v13977_v11 }
 0x883   : > { %v7597_v9 = vadd.f32 %v7571_v14, %v7428_v5  ;;  %v7740_v37 = vpop.f32.mrf.mxu1  ;;  %v14013_v14 = vld [vmem:[%s10458_s30 + $0x15b] sm:$0xff] }
 0x884   : > { %v8083_v59 = vadd.f32 %v8026_v15, %v7914_v18  ;;  %v14016_v15 = vld [vmem:[%s10458_s30 + $0x163] sm:$0xff] }
 0x885   : > { %v13974_v36 = vadd.f32 %v7740_v37, %v7597_v9  ;;  %v14019_v9 = vld [vmem:[%s10458_s30 + $0x19d] sm:$0xff]  ;;  %v14022_v37 = vld [vmem:[%s10458_s30 + $0x1a5] sm:$0xff] }
 0x889   : > { %v7859_v17 = vpop.f32.mrf.mxu2 }
 0x88a   : > { %v7915_v5 = vadd.f32 %v7859_v17, %v13703_v32  ;;  %v8028_v16 = vpop.f32.mrf.mxu3  ;;  %v8190_v62 = vpop.f32.mrf.mxu0 }
 0x88b   : > { %v8250_v57 = vadd.f32 %v8190_v62, %v8081_v4  ;;  %v8359_v52 = vpop.f32.mrf.mxu1  ;;  %v8307_v62 = vpack.c.bf16 %v14022_v37, %v14019_v9 }
 0x88c   : > { %v8084_v30 = vadd.f32 %v8028_v16, %v7915_v5  ;;  %v14033_v16 = vpack.c.bf16 %v13947_v63, %v13920_v44 }
 0x88d   : > { %v14001_v34 = vadd.f32 %v8359_v52, %v8250_v57  ;;  %10146 = vmatmul.msk.bf16.gmra.mxu0 %vm249_vm1, %v8137_v12  ;;  %v14037_v52 = vpack.c.bf16 %v7959_v42, %v7958_v28  ;;  %v9426_v28 = vld [vmem:[%s14541_s3] sm:$0xf]  ;;  %v14055_v42 = vld [vmem:[%s10458_s30 + $0x16b] sm:$0xff] }
 0x88e   : > { %10122 = vmatmul.msk.bf16.gmra.mxu2 %vm249_vm1, %v13995_v41  ;;  %10159 = vmatmul.msk.bf16.gmra.mxu1 %vm249_vm1, %v8306_v50 }
 0x88f   : > { %10135 = vmatmul.msk.bf16.gmra.mxu3 %vm249_vm1, %v13999_v23 }
 0x891   : > { %v7862_v32 = vpop.f32.mrf.mxu2 }
 0x892   : > { %v7916_v26 = vadd.f32 %v7862_v32, %v13722_v46  ;;  %v8031_v60 = vpop.f32.mrf.mxu3  ;;  %v8192_v4 = vpop.f32.mrf.mxu0  ;;  %v14028_v46 = vpack.c.bf16 %v14016_v15, %v14013_v14 }
 0x893   : > { %v8251_v2 = vadd.f32 %v8192_v4, %v8082_v27  ;;  %v8361_v38 = vpop.f32.mrf.mxu1 }
 0x894   : > { %v8085_v47 = vadd.f32 %v8031_v60, %v7916_v26 }
 0x895   : > { %v14010_v18 = vadd.f32 %v8361_v38, %v8251_v2 }
 0x899   : > { %v7864_v17 = vpop.f32.mrf.mxu2 }
 0x89a   : > { %v7917_v27 = vadd.f32 %v7864_v17, %v13737_v29  ;;  %v8033_v12 = vpop.f32.mrf.mxu3  ;;  %v8195_v5 = vpop.f32.mrf.mxu0  ;;  %v14058_v17 = vld [vmem:[%s10458_s30 + $0x173] sm:$0xff] }
 0x89b   : > { %v8252_v50 = vadd.f32 %v8195_v5, %v8083_v59  ;;  %v8364_v57 = vpop.f32.mrf.mxu1  ;;  %v14069_v5 = vpack.c.bf16 %v14058_v17, %v14055_v42 }
 0x89c   : > { %v8086_v32 = vadd.f32 %v8033_v12, %v7917_v27  ;;  %v9432_v27 = vsel %vm356_vm0, %v9426_v28, 0  ;;  %v14062_v12 = vld [vmem:[%s10458_s30 + $0x1ad] sm:$0xff] }
 0x89d   : > { %v14039_v26 = vadd.f32 %v8364_v57, %v8252_v50  ;;  %10147 = vmatmul.msk.bf16.gmra.mxu0 %vm249_vm1, %v14028_v46  ;;  %9441 = vmatpush.bf16.msrb.mxu2 %v9432_v27 }
 0x89e   : > { %10123 = vmatmul.msk.bf16.gmra.mxu2 %vm249_vm1, %v14033_v16  ;;  %10160 = vmatmul.msk.bf16.gmra.mxu1 %vm249_vm1, %v8307_v62 }
 0x89f   : > { %10136 = vmatmul.msk.bf16.gmra.mxu3 %vm249_vm1, %v14037_v52 }
 0x8a1   : > { %v7867_v29 = vpop.f32.mrf.mxu2 }
 0x8a2   : > { %v7918_v44 = vadd.f32 %v7867_v29, %v13748_v35  ;;  %v8036_v63 = vpop.f32.mrf.mxu3  ;;  %v8197_v59 = vpop.f32.mrf.mxu0  ;;  %v14065_v35 = vld [vmem:[%s10458_s30 + $0x1b5] sm:$0xff] }
 0x8a3   : > { %v8253_v60 = vadd.f32 %v8197_v59, %v8084_v30  ;;  %v8366_v4 = vpop.f32.mrf.mxu1  ;;  %v8308_v29 = vpack.c.bf16 %v14065_v35, %v14062_v12 }
 0x8a4   : > { %v8087_v2 = vadd.f32 %v8036_v63, %v7918_v44  ;;  %v8467_v44 = vpack.c.bf16 %v13881_v48, %v13855_v51 }
 0x8a5   : > { %v14049_v38 = vadd.f32 %v8366_v4, %v8253_v60 }
 0x8a7   : > { %14616 = vst [vmem:[#allocation6_spill] sm:$0xff] %v14049_v38 }
 0x8a9   : > { %v7869_v30 = vpop.f32.mrf.mxu2 }
 0x8aa   : > { %v7919_v62 = vadd.f32 %v7869_v30, %v13755_v8  ;;  %v8038_v50 = vpop.f32.mrf.mxu3  ;;  %v8200_v57 = vpop.f32.mrf.mxu0 }
 0x8ab   : > { %v8254_v63 = vadd.f32 %v8200_v57, %v8085_v47  ;;  %v8369_v59 = vpop.f32.mrf.mxu1  ;;  %v14091_v57 = vld [vmem:[%s10458_s30 + $0x183] sm:$0xff] }
 0x8ac   : > { %v8088_v60 = vadd.f32 %v8038_v50, %v7919_v62  ;;  %v14088_v50 = vld [vmem:[%s10458_s30 + $0x17b] sm:$0xff] }
 0x8ad   : > { %v14076_v4 = vadd.f32 %v8369_v59, %v8254_v63  ;;  %10148 = vmatmul.msk.bf16.gmra.mxu0 %vm249_vm1, %v14069_v5 }
 0x8ae   : > { %10161 = vmatmul.msk.bf16.gmra.mxu1 %vm249_vm1, %v8308_v29  ;;  %10164 = vmatmul.msk.bf16.vlgmr.msra.gmra.mxu2 %vm249_vm1, %v8467_v44  ;;  %v14094_v29 = vld [vmem:[%s10458_s30 + $0x1bd] sm:$0xff]  ;;  %v14097_v44 = vld [vmem:[%s10458_s30 + $0x1c5] sm:$0xff] }
 0x8af   : > { %14617 = vst [vmem:[#allocation10_spill] sm:$0xff] %v14076_v4  ;;  %10177 = vmatmul.msk.bf16.vlgmr.msra.gmra.mxu3 %vm249_vm1, %v13959_v7  ;;  %v14101_v7 = vpack.c.bf16 %v14091_v57, %v14088_v50 }
 0x8b1   : > { %v7872_v8 = vpop.f32.mrf.mxu2 }
 0x8b2   : > { %v7920_v51 = vadd.f32 %v7872_v8, %v13772_v56  ;;  %v8041_v48 = vpop.f32.mrf.mxu3  ;;  %v8202_v47 = vpop.f32.mrf.mxu0  ;;  %v8309_v8 = vpack.c.bf16 %v14097_v44, %v14094_v29 }
 0x8b3   : > { %v8255_v28 = vadd.f32 %v8202_v47, %v8086_v32  ;;  %v8371_v27 = vpop.f32.mrf.mxu1 }
 0x8b4   : > { %v8089_v30 = vadd.f32 %v8041_v48, %v7920_v51  ;;  %v8468_v51 = vpack.c.bf16 %v13911_v55, %v13884_v58 }
 0x8b5   : > { %v14085_v62 = vadd.f32 %v8371_v27, %v8255_v28 }
 0x8b7   : > { %14618 = vst [vmem:[#allocation14_spill] sm:$0xff] %v14085_v62 }
 0x8b9   : > { %v7874_v63 = vpop.f32.mrf.mxu2 }
 0x8ba   : > { %v7921_v56 = vadd.f32 %v7874_v63, %v13779_v0  ;;  %v8043_v32 = vpop.f32.mrf.mxu3  ;;  %v8205_v59 = vpop.f32.mrf.mxu0 }
 0x8bb   : > { %v8256_v48 = vadd.f32 %v8205_v59, %v8087_v2  ;;  %v8374_v47 = vpop.f32.mrf.mxu1 }
 0x8bc   : > { %v8090_v28 = vadd.f32 %v8043_v32, %v7921_v56 }
 0x8bd   : > { %v14108_v27 = vadd.f32 %v8374_v47, %v8256_v48  ;;  %10149 = vmatmul.msk.bf16.gmra.mxu0 %vm249_vm1, %v14101_v7 }
 0x8be   : > { %10162 = vmatmul.msk.bf16.gmra.mxu1 %vm249_vm1, %v8309_v8  ;;  %10165 = vmatmul.msk.bf16.gmra.mxu2 %vm249_vm1, %v8468_v51  ;;  %v8469_v51 = vpack.c.bf16 %v13941_v21, %v13914_v3 }
 0x8bf   : > { %14619 = vst [vmem:[#allocation9_spill] sm:$0xff] %v14108_v27  ;;  %10178 = vmatmul.msk.bf16.gmra.mxu3 %vm249_vm1, %v13995_v41 }
 0x8c1   : > { %v7877_v0 = vpop.f32.mrf.mxu2 }
 0x8c2   : > { %v7922_v63 = vadd.f32 %v7877_v0, %v13796_v43  ;;  %v8046_v62 = vpop.f32.mrf.mxu3  ;;  %v8207_v58 = vpop.f32.mrf.mxu0 }
 0x8c3   : > { %v8257_v55 = vadd.f32 %v8207_v58, %v8088_v60  ;;  %v8376_v2 = vpop.f32.mrf.mxu1 }
 0x8c4   : > { %v8091_v56 = vadd.f32 %v8046_v62, %v7922_v63 }
 0x8c5   : > { %v14117_v32 = vadd.f32 %v8376_v2, %v8257_v55 }
 0x8c9   : > { %v7879_v59 = vpop.f32.mrf.mxu2 }
 0x8ca   : > { %v7923_v48 = vadd.f32 %v7879_v59, %v13803_v61  ;;  %v8048_v47 = vpop.f32.mrf.mxu3  ;;  %v8210_v8 = vpop.f32.mrf.mxu0 }
 0x8cb   : > { %v8258_v27 = vadd.f32 %v8210_v8, %v8089_v30  ;;  %v8379_v41 = vpop.f32.mrf.mxu1 }
 0x8cc   : > { %v8092_v4 = vadd.f32 %v8048_v47, %v7923_v48 }
 0x8cd   : > { %v14122_v38 = vadd.f32 %v8379_v41, %v8258_v27  ;;  %10190 = vmatmul.msk.bf16.vlgmr.msra.gmra.mxu0 %vm249_vm1, %v13963_v31 }
 0x8ce   : > { %10166 = vmatmul.msk.bf16.gmra.mxu2 %vm249_vm1, %v8469_v51  ;;  %10203 = vmatmul.msk.bf16.vlgmr.msra.gmra.mxu1 %vm249_vm1, %v14028_v46  ;;  %v8470_v46 = vpack.c.bf16 %v13977_v11, %v13944_v1 }
 0x8cf   : > { %10179 = vmatmul.msk.bf16.gmra.mxu3 %vm249_vm1, %v14033_v16 }
 0x8d1   : > { %v7882_v43 = vpop.f32.mrf.mxu2 }
 0x8d2   : > { %v7924_v61 = vadd.f32 %v7882_v43, %v13820_v33  ;;  %v8051_v3 = vpop.f32.mrf.mxu3  ;;  %v8212_v21 = vpop.f32.mrf.mxu0  ;;  %v8639_v33 = vpack.c.bf16 %v13983_v24, %v13950_v53 }
 0x8d3   : > { %v8259_v60 = vadd.f32 %v8212_v21, %v8090_v28  ;;  %v8381_v30 = vpop.f32.mrf.mxu1 }
 0x8d4   : > { %v8093_v62 = vadd.f32 %v8051_v3, %v7924_v61 }
 0x8d5   : > { %v14132_v27 = vadd.f32 %v8381_v30, %v8259_v60  ;;  %v8787_v30 = vld [vmem:[%s10458_s30 + $0x188] sm:$0xff] }
 0x8d9   : > { %v7884_v0 = vpop.f32.mrf.mxu2 }
 0x8da   : > { %v7925_v31 = vadd.f32 %v7884_v0, %v13827_v10  ;;  %v8053_v63 = vpop.f32.mrf.mxu3  ;;  %v8215_v58 = vpop.f32.mrf.mxu0  ;;  %v14172_v0 = vld [vmem:[%s10458_s30 + $0x193] sm:$0xff] }
 0x8db   : > { %v8260_v55 = vadd.f32 %v8215_v58, %v8091_v56  ;;  %v8384_v16 = vpop.f32.mrf.mxu1 }
 0x8dc   : > { %v8094_v2 = vadd.f32 %v8053_v63, %v7925_v31 }
 0x8dd   : > { %v14139_v59 = vadd.f32 %v8384_v16, %v8260_v55  ;;  %10191 = vmatmul.msk.bf16.gmra.mxu0 %vm249_vm1, %v13999_v23 }
 0x8de   : > { %10167 = vmatmul.msk.bf16.gmra.mxu2 %vm249_vm1, %v8470_v46  ;;  %10204 = vmatmul.msk.bf16.gmra.mxu1 %vm249_vm1, %v14069_v5  ;;  %v8471_v5 = vpack.c.bf16 %v14013_v14, %v13980_v19 }
 0x8df   : > { %10180 = vmatmul.msk.bf16.gmra.mxu3 %vm249_vm1, %v8639_v33 }
 0x8e1   : > { %v7887_v10 = vpop.f32.mrf.mxu2 }
 0x8e2   : > { %v7926_v1 = vadd.f32 %v7887_v10, %v13844_v6  ;;  %v8056_v11 = vpop.f32.mrf.mxu3  ;;  %v8217_v28 = vpop.f32.mrf.mxu0  ;;  %v8640_v6 = vpack.c.bf16 %v14019_v9, %v13986_v40 }
 0x8e3   : > { %v8261_v56 = vadd.f32 %v8217_v28, %v8092_v4  ;;  %v8386_v53 = vpop.f32.mrf.mxu1 }
 0x8e4   : > { %v8095_v24 = vadd.f32 %v8056_v11, %v7926_v1 }
 0x8e5   : > { %v14148_v48 = vadd.f32 %v8386_v53, %v8261_v56  ;;  %v8789_v53 = vld [vmem:[%s10458_s30 + $0x198] sm:$0xff] }
 0x8e9   : > { %v7889_v47 = vpop.f32.mrf.mxu2 }
 0x8ea   : > { %v7927_v23 = vadd.f32 %v7889_v47, %v13851_v13  ;;  %v8058_v8 = vpop.f32.mrf.mxu3  ;;  %v8220_v51 = vpop.f32.mrf.mxu0  ;;  %v14193_v47 = vld [vmem:[%s10458_s30 + $0x19b] sm:$0xff] }
 0x8eb   : > { %v8262_v41 = vadd.f32 %v8220_v51, %v8093_v62  ;;  %v8389_v43 = vpop.f32.mrf.mxu1  ;;  %v8788_v62 = vld [vmem:[%s10458_s30 + $0x190] sm:$0xff] }
 0x8ec   : > { %v8096_v4 = vadd.f32 %v8058_v8, %v7927_v23  ;;  %v14196_v23 = vld [vmem:[%s10458_s30 + $0x1a3] sm:$0xff] }
 0x8ed   : > { %v14155_v61 = vadd.f32 %v8389_v43, %v8262_v41  ;;  %10192 = vmatmul.msk.bf16.gmra.mxu0 %vm249_vm1, %v14037_v52  ;;  %v14169_v52 = vld [vmem:[%s10458_s30 + $0x18b] sm:$0xff] }
 0x8ee   : > { %10168 = vmatmul.msk.bf16.gmra.mxu2 %vm249_vm1, %v8471_v5  ;;  %10205 = vmatmul.msk.bf16.gmra.mxu1 %vm249_vm1, %v14101_v7  ;;  %v8808_v7 = vpack.c.bf16 %v8788_v62, %v8787_v30  ;;  %v8977_v55 = vpack.c.bf16 %v14172_v0, %v14169_v52  ;;  %v8791_v30 = vld [vmem:[%s10458_s30 + $0x1a8] sm:$0xff]  ;;  %v8792_v62 = vld [vmem:[%s10458_s30 + $0x1b0] sm:$0xff] }
 0x8ef   : > { %10181 = vmatmul.msk.bf16.gmra.mxu3 %vm249_vm1, %v8640_v6  ;;  %v8978_v6 = vpack.c.bf16 %v14196_v23, %v14193_v47 }
 0x8f1   : > { %v7892_v13 = vpop.f32.mrf.mxu2 }
 0x8f2   : > { %v7928_v19 = vadd.f32 %v7892_v13, %v13871_v25  ;;  %v8061_v40 = vpop.f32.mrf.mxu3  ;;  %v8222_v14 = vpop.f32.mrf.mxu0  ;;  %v8472_v25 = vpack.c.bf16 %v14055_v42, %v14016_v15 }
 0x8f3   : > { %v8263_v9 = vadd.f32 %v8222_v14, %v8094_v2  ;;  %v8391_v3 = vpop.f32.mrf.mxu1  ;;  %v8641_v2 = vpack.c.bf16 %v14062_v12, %v14022_v37 }
 0x8f4   : > { %v8097_v21 = vadd.f32 %v8061_v40, %v7928_v19  ;;  %v8642_v19 = vpack.c.bf16 %v14094_v29, %v14065_v35 }
 0x8f5   : > { %v14164_v60 = vadd.f32 %v8391_v3, %v8263_v9 }
 0x8f9   : > { %v7894_v31 = vpop.f32.mrf.mxu2 }
 0x8fa   : > { %v7929_v63 = vadd.f32 %v7894_v31, %v13878_v54  ;;  %v8063_v58 = vpop.f32.mrf.mxu3  ;;  %v8225_v46 = vpop.f32.mrf.mxu0  ;;  %v14217_v31 = vld [vmem:[%s10458_s30 + $0x1ab] sm:$0xff] }
 0x8fb   : > { %v8264_v16 = vadd.f32 %v8225_v46, %v8095_v24  ;;  %v8394_v33 = vpop.f32.mrf.mxu1  ;;  %v8790_v24 = vld [vmem:[%s10458_s30 + $0x1a0] sm:$0xff]  ;;  %v8810_v46 = vpack.c.bf16 %v8792_v62, %v8791_v30  ;;  %v8795_v30 = vld [vmem:[%s10458_s30 + $0x1c8] sm:$0xff]  ;;  %v8796_v62 = vld [vmem:[%s10458_s30 + $0x1d0] sm:$0xff] }
 0x8fc   : > { %v8098_v10 = vadd.f32 %v8063_v58, %v7929_v63  ;;  %v8809_v51 = vpack.c.bf16 %v8790_v24, %v8789_v53  ;;  %v8627_v63 = vld [vmem:[%s10458_s30 + $0x1cd] sm:$0xff]  ;;  %v8793_v53 = vld [vmem:[%s10458_s30 + $0x1b8] sm:$0xff]  ;;  %v8794_v24 = vld [vmem:[%s10458_s30 + $0x1c0] sm:$0xff] }
 0x8fd   : > { %v14181_v1 = vadd.f32 %v8394_v33, %v8264_v16  ;;  %10193 = vmatmul.msk.bf16.gmra.mxu0 %vm249_vm1, %v8808_v7  ;;  %v14220_v7 = vld [vmem:[%s10458_s30 + $0x1b3] sm:$0xff]  ;;  %v8474_v16 = vpack.c.bf16 %v14169_v52, %v14091_v57 }
 0x8fe   : > { %10169 = vmatmul.msk.bf16.gmra.mxu2 %vm249_vm1, %v8472_v25  ;;  %10206 = vmatmul.msk.bf16.gmra.mxu1 %vm249_vm1, %v8977_v55  ;;  %v8979_v33 = vpack.c.bf16 %v14220_v7, %v14217_v31 }
 0x8ff   : > { %10182 = vmatmul.msk.bf16.gmra.mxu3 %vm249_vm1, %v8641_v2 }
 0x901   : > { %v7897_v54 = vpop.f32.mrf.mxu2 }
 0x902   : > { %v7930_v15 = vadd.f32 %v7897_v54, %v13901_v39  ;;  %v8066_v42 = vpop.f32.mrf.mxu3  ;;  %v8227_v11 = vpop.f32.mrf.mxu0  ;;  %v8473_v39 = vpack.c.bf16 %v14088_v50, %v14058_v17  ;;  %v8643_v54 = vpack.c.bf16 %v8627_v63, %v14097_v44  ;;  %v14264_v63 = vld [vmem:[%s10458_s30 + $0x1cb] sm:$0xff] }
 0x903   : > { %v8265_v37 = vadd.f32 %v8227_v11, %v8096_v4  ;;  %v8396_v12 = vpop.f32.mrf.mxu1 }
 0x904   : > { %v8099_v28 = vadd.f32 %v8066_v42, %v7930_v15 }
 0x905   : > { %v14188_v56 = vadd.f32 %v8396_v12, %v8265_v37 }
 0x909   : > { %v7899_v8 = vpop.f32.mrf.mxu2 }
 0x90a   : > { %v7931_v5 = vadd.f32 %v7899_v8, %v13908_v20  ;;  %v8068_v41 = vpop.f32.mrf.mxu3  ;;  %v8230_v43 = vpop.f32.mrf.mxu0  ;;  %v14241_v8 = vld [vmem:[%s10458_s30 + $0x1bb] sm:$0xff] }
 0x90b   : > { %v8266_v4 = vadd.f32 %v8230_v43, %v8097_v21  ;;  %v8399_v13 = vpop.f32.mrf.mxu1 }
 0x90c   : > { %v8100_v40 = vadd.f32 %v8068_v41, %v7931_v5  ;;  %v8628_v5 = vld [vmem:[%s10458_s30 + $0x1d5] sm:$0xff]  ;;  %v8629_v41 = vld [vmem:[%s10458_s30 + $0x1dd] sm:$0xff] }
 0x90d   : > { %v14205_v14 = vadd.f32 %v8399_v13, %v8266_v4  ;;  %10194 = vmatmul.msk.bf16.gmra.mxu0 %vm249_vm1, %v8809_v51  ;;  %v14244_v51 = vld [vmem:[%s10458_s30 + $0x1c3] sm:$0xff]  ;;  %v8475_v13 = vpack.c.bf16 %v14193_v47, %v14172_v0 }
 0x90e   : > { %10170 = vmatmul.msk.bf16.gmra.mxu2 %vm249_vm1, %v8473_v39  ;;  %10207 = vmatmul.msk.bf16.gmra.mxu1 %vm249_vm1, %v8978_v6  ;;  %v8811_v39 = vpack.c.bf16 %v8794_v24, %v8793_v53 }
 0x90f   : > { %10183 = vmatmul.msk.bf16.gmra.mxu3 %vm249_vm1, %v8642_v19  ;;  %v8980_v19 = vpack.c.bf16 %v14244_v51, %v14241_v8 }
 0x911   : > { %v7902_v20 = vpop.f32.mrf.mxu2 }
 0x912   : > { %v7932_v17 = vadd.f32 %v7902_v20, %v13931_v45  ;;  %v8071_v50 = vpop.f32.mrf.mxu3  ;;  %v8232_v35 = vpop.f32.mrf.mxu0 }
 0x913   : > { %v8267_v29 = vadd.f32 %v8232_v35, %v8098_v10  ;;  %v8401_v9 = vpop.f32.mrf.mxu1 }
 0x914   : > { %v8101_v3 = vadd.f32 %v8071_v50, %v7932_v17  ;;  %v8644_v17 = vpack.c.bf16 %v8629_v41, %v8628_v5  ;;  %v8797_v41 = vld [vmem:[%s10458_s30 + $0x1d8] sm:$0xff] }
 0x915   : > { %v14212_v21 = vadd.f32 %v8401_v9, %v8267_v29 }
 0x919   : > { %v7904_v58 = vpop.f32.mrf.mxu2 }
 0x91a   : > { %v7933_v25 = vadd.f32 %v7904_v58, %v13938_v49  ;;  %v8073_v55 = vpop.f32.mrf.mxu3  ;;  %v8235_v45 = vpop.f32.mrf.mxu0  ;;  %v8965_v58 = vld [vmem:[%s10458_s30 + $0x1d3] sm:$0xff] }
 0x91b   : > { %v8268_v2 = vadd.f32 %v8235_v45, %v8099_v28  ;;  %v8404_v10 = vpop.f32.mrf.mxu1  ;;  %v8812_v45 = vpack.c.bf16 %v8796_v62, %v8795_v30 }
 0x91c   : > { %v8102_v15 = vadd.f32 %v8073_v55, %v7933_v25  ;;  %v8631_v25 = vld [vmem:[%s10458_s30 + $0x1ed] sm:$0xff] }
 0x91d   : > { %v14229_v42 = vadd.f32 %v8404_v10, %v8268_v2  ;;  %10195 = vmatmul.msk.bf16.gmra.mxu0 %vm249_vm1, %v8810_v46  ;;  %v8630_v46 = vld [vmem:[%s10458_s30 + $0x1e5] sm:$0xff]  ;;  %v8476_v2 = vpack.c.bf16 %v14217_v31, %v14196_v23  ;;  %v8981_v10 = vpack.c.bf16 %v8965_v58, %v14264_v63  ;;  %v14620_v23 = vld [vmem:[#allocation8_spill] sm:$0xff] }
 0x91e   : > { %10171 = vmatmul.msk.bf16.gmra.mxu2 %vm249_vm1, %v8474_v16  ;;  %10208 = vmatmul.msk.bf16.gmra.mxu1 %vm249_vm1, %v8979_v33  ;;  %v4911_v31 = vrot.slane %v14620_v23, 4  ;;  %v14621_v58 = vld [vmem:[#allocation5_spill] sm:$0xff] }
 0x91f   : > { %10184 = vmatmul.msk.bf16.gmra.mxu3 %vm249_vm1, %v8643_v54 }
 0x920   : > { %v4912_v53 = vadd.f32 %v4911_v31, %v14620_v23 }
 0x921   : > { %v7907_v49 = vpop.f32.mrf.mxu2 }
 0x922   : > { %v7934_v57 = vadd.f32 %v7907_v49, %v13965_v22  ;;  %v8076_v44 = vpop.f32.mrf.mxu3  ;;  %v8237_v52 = vpop.f32.mrf.mxu0  ;;  %v8645_v49 = vpack.c.bf16 %v8631_v25, %v8630_v46 }
 0x923   : > { %v8269_v11 = vadd.f32 %v8237_v52, %v8100_v40  ;;  %v8406_v37 = vpop.f32.mrf.mxu1 }
 0x924   : > { %v8103_v12 = vadd.f32 %v8076_v44, %v7934_v57 }
 0x925   : > { %v14236_v28 = vadd.f32 %v8406_v37, %v8269_v11 }
 0x929   : > { %v7909_v43 = vpop.f32.mrf.mxu2 }
 0x92a   : > { %v7935_v6 = vadd.f32 %v7909_v43, %v13974_v36  ;;  %v8078_v22 = vpop.f32.mrf.mxu3  ;;  %v8240_v4 = vpop.f32.mrf.mxu0  ;;  %v8798_v43 = vld [vmem:[%s10458_s30 + $0x1e0] sm:$0xff] }
 0x92b   : > { %v8270_v40 = vadd.f32 %v8240_v4, %v8101_v3  ;;  %v8409_v20 = vpop.f32.mrf.mxu1 }
 0x92c   : > { %v8104_v50 = vadd.f32 %v8078_v22, %v7935_v6  ;;  %v8967_v6 = vld [vmem:[%s10458_s30 + $0x1e3] sm:$0xff] }
 0x92d   : > { %v14253_v35 = vadd.f32 %v8409_v20, %v8270_v40  ;;  %10196 = vmatmul.msk.bf16.gmra.mxu0 %vm249_vm1, %v8811_v39  ;;  %v8966_v39 = vld [vmem:[%s10458_s30 + $0x1db] sm:$0xff]  ;;  %v10284_v22 = vld [vmem:[%s10458_s30 + $0x108] sm:$0xff]  ;;  %v4913_v40 = vrot.slane %v4912_v53, 2 }
 0x92e   : > { %10172 = vmatmul.msk.bf16.gmra.mxu2 %vm249_vm1, %v8475_v13  ;;  %10209 = vmatmul.msk.bf16.gmra.mxu1 %vm249_vm1, %v8980_v19  ;;  %v295_v4 = vsel %vm249_vm1, %v10284_v22, 0.0  ;;  %v8632_v13 = vld [vmem:[%s10458_s30 + $0x1f5] sm:$0xff]  ;;  %v8633_v19 = vld [vmem:[%s10458_s30 + $0x1fd] sm:$0xff] }
 0x92f   : > { %10185 = vmatmul.msk.bf16.gmra.mxu3 %vm249_vm1, %v8644_v17  ;;  %v8646_v62 = vpack.c.bf16 %v8633_v19, %v8632_v13  ;;  %v296_v46 = vadd.f32 %v295_v4, %v14621_v58  ;;  %v4914_v25 = vadd.f32 %v4913_v40, %v4912_v53  ;;  %v8969_v19 = vld [vmem:[%s10458_s30 + $0x1f3] sm:$0xff]  ;;  %v8634_v40 = vld [vmem:[%s10458_s30 + $0x205] sm:$0xff] }
 0x931   : > { %v8528_v36 = vpop.f32.mrf.mxu2 }
 0x932   : > { %v8242_v0 = vpop.f32.mrf.mxu0  ;;  %v8697_v47 = vpop.f32.mrf.mxu3  ;;  %v8588_v24 = vadd.f32 %v8528_v36, %v14001_v34  ;;  %v8477_v34 = vpack.c.bf16 %v14241_v8, %v14220_v7  ;;  %v8982_v36 = vpack.c.bf16 %v8967_v6, %v8966_v39  ;;  %v4915_v8 = vrot.slane %v4914_v25, 1  ;;  %v8800_v39 = vld [vmem:[%s10458_s30 + $0x1f0] sm:$0xff] }
 0x933   : > { %v8271_v29 = vadd.f32 %v8242_v0, %v8102_v15  ;;  %v8411_v9 = vpop.f32.mrf.mxu1  ;;  %v8968_v6 = vld [vmem:[%s10458_s30 + $0x1eb] sm:$0xff] }
 0x934   : > { %v8757_v20 = vadd.f32 %v8697_v47, %v8588_v24  ;;  %v297_v47 = vrot.slane %v296_v46, 4  ;;  %v4916_v53 = vadd.f32 %v4915_v8, %v4914_v25  ;;  %v8983_v58 = vpack.c.bf16 %v8969_v19, %v8968_v6 }
 0x935   : > { %v14259_v3 = vadd.f32 %v8411_v9, %v8271_v29 }
 0x936   : > { %v298_v7 = vadd.f32 %v297_v47, %v296_v46 }
 0x939   : > { %v8530_v55 = vpop.f32.mrf.mxu2 }
 0x93a   : > { %v8245_v16 = vpop.f32.mrf.mxu0  ;;  %v8699_v33 = vpop.f32.mrf.mxu3 }
 0x93b   : > { %v8272_v54 = vadd.f32 %v8245_v16, %v8103_v12  ;;  %v8414_v15 = vpop.f32.mrf.mxu1 }
 0x93d   : > { %v14272_v57 = vadd.f32 %v8414_v15, %v8272_v54  ;;  %10197 = vmatmul.msk.bf16.gmra.mxu0 %vm249_vm1, %v8812_v45  ;;  %v8589_v45 = vadd.f32 %v8530_v55, %v14010_v18  ;;  %v299_v18 = vrot.slane %v298_v7, 2 }
 0x93e   : > { %10173 = vmatmul.msk.bf16.gmra.mxu2 %vm249_vm1, %v8476_v2  ;;  %10210 = vmatmul.msk.bf16.gmra.mxu1 %vm249_vm1, %v8981_v10 }
 0x93f   : > { %10186 = vmatmul.msk.bf16.gmra.mxu3 %vm249_vm1, %v8645_v49  ;;  %v8758_v10 = vadd.f32 %v8699_v33, %v8589_v45 }
 0x941   : > { %v8533_v44 = vpop.f32.mrf.mxu2 }
 0x942   : > { %v8247_v52 = vpop.f32.mrf.mxu0  ;;  %v8702_v11 = vpop.f32.mrf.mxu3  ;;  %v8590_v24 = vadd.f32 %v8533_v44, %v14039_v26  ;;  %v8478_v44 = vpack.c.bf16 %v14264_v63, %v14244_v51 }
 0x943   : > { %v8273_v37 = vadd.f32 %v8247_v52, %v8104_v50  ;;  %v8416_v12 = vpop.f32.mrf.mxu1  ;;  %v8813_v50 = vpack.c.bf16 %v8798_v43, %v8797_v41  ;;  %v8799_v43 = vld [vmem:[%s10458_s30 + $0x1e8] sm:$0xff] }
 0x945   : > { %v14281_v5 = vadd.f32 %v8416_v12, %v8273_v37  ;;  %v300_v12 = vadd.f32 %v299_v18, %v298_v7  ;;  %v14622_v7 = vld [vmem:[#allocation6_spill] sm:$0xff] }
 0x947   : > { %v301_v41 = vrot.slane %v300_v12, 1 }
 0x949   : > { %v8535_v17 = vpop.f32.mrf.mxu2 }
 0x94a   : > { %v14291_v0 = vpop.f32.mrf.mxu3  ;;  %v8866_v29 = vpop.f32.mrf.mxu0 }
 0x94b   : > { %v8926_v9 = vadd.f32 %v8866_v29, %v8757_v20  ;;  %v9035_v30 = vpop.f32.mrf.mxu1  ;;  %v8635_v20 = vld [vmem:[%s10458_s30 + $0x20d] sm:$0xff]  ;;  %v8759_v29 = vadd.f32 %v8702_v11, %v8590_v24  ;;  %v8591_v11 = vadd.f32 %v8535_v17, %v14622_v7 }
 0x94c   : > { %v8647_v46 = vpack.c.bf16 %v8635_v20, %v8634_v40 }
 0x94d   : > { %v9095_v16 = vadd.f32 %v9035_v30, %v8926_v9  ;;  %10198 = vmatmul.msk.bf16.gmra.mxu0 %vm249_vm1, %v8813_v50  ;;  %v302_v50 = vadd.f32 %v301_v41, %v300_v12  ;;  %v8814_v9 = vpack.c.bf16 %v8800_v39, %v8799_v43  ;;  %v14624_v43 = vld [vmem:[#allocation10_spill] sm:$0xff] }
 0x94e   : > { %10174 = vmatmul.msk.bf16.gmra.mxu2 %vm249_vm1, %v8477_v34  ;;  %10211 = vmatmul.msk.bf16.gmra.mxu1 %vm249_vm1, %v8982_v36 }
 0x94f   : > { %v9119_v2 = vmax.f32 %v9095_v16, 0.0  ;;  %10187 = vmatmul.msk.bf16.gmra.mxu3 %vm249_vm1, %v8646_v62  ;;  %v4917_v30 = vadd.f32 %v4916_v53, %v302_v50 }
 0x951   : > { %v9143_v54 = vpack.c.bf16 %v9119_v2, %v9119_v2  ;;  %v8538_v15 = vpop.f32.mrf.mxu2  ;;  %v9424_v19 = vmul.f32 0.00390625, %v4917_v30 }
 0x952   : > { %v14301_v55 = vpop.f32.mrf.mxu3  ;;  %v8868_v49 = vpop.f32.mrf.mxu0  ;;  %v8592_v39 = vadd.f32 %v8538_v15, %v14624_v43 }
 0x953   : > { %v9168_v23 = vshrl.u32 %v9143_v54, 16  ;;  %v9171_v31 = vshll.u32 %v9143_v54, 16  ;;  %v8927_v52 = vadd.f32 %v8868_v49, %v8758_v10  ;;  %v9037_v37 = vpop.f32.mrf.mxu1  ;;  %v8760_v49 = vadd.f32 %v14291_v0, %v8591_v11  ;;  %v14625_v11 = vld [vmem:[#allocation14_spill] sm:$0xff] }
 0x955   : > { %v9096_v33 = vadd.f32 %v9037_v37, %v8927_v52  ;;  %v9170_v22 = vrot.slane %v9168_v23, 5  ;;  %v9173_v4 = vrot.slane %v9171_v31, 6 }
 0x957   : > { %v9120_v13 = vmax.f32 %v9096_v33, 0.0  ;;  %v9174_v25 = vor.u32 %v9173_v4, %v9170_v22  ;;  %v8801_v4 = vld [vmem:[%s10458_s30 + $0x1f8] sm:$0xff] }
 0x959   : > { %v9144_v34 = vpack.c.bf16 %v9120_v13, %v9120_v13  ;;  %v8540_v36 = vpop.f32.mrf.mxu2  ;;  %v9175_v51 = vrot.slane %v9174_v25, 4  ;;  %v8802_v13 = vld [vmem:[%s10458_s30 + $0x200] sm:$0xff] }
 0x95a   : > { %v14310_v62 = vpop.f32.mrf.mxu3  ;;  %v8871_v26 = vpop.f32.mrf.mxu0  ;;  %v8815_v15 = vpack.c.bf16 %v8802_v13, %v8801_v4  ;;  %v8804_v4 = vld [vmem:[%s10458_s30 + $0x210] sm:$0xff] }
 0x95b   : > { %v9177_v45 = vshrl.u32 %v9144_v34, 16  ;;  %v9180_v16 = vshll.u32 %v9144_v34, 16  ;;  %v8928_v47 = vadd.f32 %v8871_v26, %v8759_v29  ;;  %v9040_v2 = vpop.f32.mrf.mxu1  ;;  %v8970_v29 = vld [vmem:[%s10458_s30 + $0x1fb] sm:$0xff]  ;;  %v8971_v34 = vld [vmem:[%s10458_s30 + $0x203] sm:$0xff] }
 0x95d   : > { %v9179_v8 = vrot.slane %v9177_v45, 5  ;;  %v9182_v10 = vrot.slane %v9180_v16, 6  ;;  %v9097_v54 = vadd.f32 %v9040_v2, %v8928_v47  ;;  %10199 = vmatmul.msk.bf16.gmra.mxu0 %vm249_vm1, %v8814_v9  ;;  %v8761_v9 = vadd.f32 %v14301_v55, %v8592_v39 }
 0x95e   : > { %10175 = vmatmul.msk.bf16.gmra.mxu2 %vm249_vm1, %v8478_v44  ;;  %10212 = vmatmul.msk.bf16.gmra.mxu1 %vm249_vm1, %v8983_v58  ;;  %v8984_v45 = vpack.c.bf16 %v8971_v34, %v8970_v29  ;;  %v9425_v16 = vpack.c.bf16 %v9424_v19, %v9424_v19 }
 0x95f   : > { %v9183_v63 = vor.u32 %v9182_v10, %v9179_v8  ;;  %v9121_v18 = vmax.f32 %v9097_v54, 0.0  ;;  %10188 = vmatmul.msk.bf16.gmra.mxu3 %vm249_vm1, %v8647_v46  ;;  %v8593_v8 = vadd.f32 %v8540_v36, %v14625_v11 }
 0x961   : > { %v9184_v17 = vsel %vm12442_vm4, %v9175_v51, %v9183_v63  ;;  %v9145_v31 = vpack.c.bf16 %v9121_v18, %v9121_v18  ;;  %v8543_v52 = vpop.f32.mrf.mxu2  ;;  %v9185_v40 = vrot.slane %v9183_v63, 4  ;;  %v8762_v63 = vadd.f32 %v14310_v62, %v8593_v8 }
 0x962   : > { %10215 = vst [vmem:[%s12453_s13 + $0x80] sm:$0xf] %v9184_v17  ;;  %v8712_v37 = vpop.f32.mrf.mxu3  ;;  %v8873_v12 = vpop.f32.mrf.mxu0 }
 0x963   : > { %v9187_v53 = vshrl.u32 %v9145_v31, 16  ;;  %v9190_v24 = vshll.u32 %v9145_v31, 16  ;;  %v8929_v33 = vadd.f32 %v8873_v12, %v8760_v49  ;;  %v9042_v41 = vpop.f32.mrf.mxu1 }
 0x965   : > { %v9189_v6 = vrot.slane %v9187_v53, 5  ;;  %v9192_v0 = vrot.slane %v9190_v24, 6  ;;  %v9098_v22 = vadd.f32 %v9042_v41, %v8929_v33  ;;  %v14626_v41 = vld [vmem:[#allocation9_spill] sm:$0xff] }
 0x966   : > { %v8594_v43 = vadd.f32 %v8543_v52, %v14626_v41 }
 0x967   : > { %v9193_v20 = vor.u32 %v9192_v0, %v9189_v6  ;;  %v9122_v50 = vmax.f32 %v9098_v22, 0.0  ;;  %v8803_v22 = vld [vmem:[%s10458_s30 + $0x208] sm:$0xff] }
 0x969   : > { %v9194_v26 = vsel %vm12442_vm4, %v9185_v40, %v9193_v20  ;;  %v9146_v44 = vpack.c.bf16 %v9122_v50, %v9122_v50  ;;  %v8545_v58 = vpop.f32.mrf.mxu2  ;;  %v8972_v40 = vld [vmem:[%s10458_s30 + $0x20b] sm:$0xff]  ;;  %v8973_v20 = vld [vmem:[%s10458_s30 + $0x213] sm:$0xff]  ;;  %v8763_v50 = vadd.f32 %v8712_v37, %v8594_v43 }
 0x96a   : > { %10216 = vst [vmem:[%s12453_s13 + $0x88] sm:$0xf] %v9194_v26  ;;  %v8714_v46 = vpop.f32.mrf.mxu3  ;;  %v8876_v25 = vpop.f32.mrf.mxu0  ;;  %v8816_v26 = vpack.c.bf16 %v8804_v4, %v8803_v22 }
 0x96b   : > { %v9196_v47 = vshrl.u32 %v9146_v44, 16  ;;  %v9199_v30 = vshll.u32 %v9146_v44, 16  ;;  %v8930_v2 = vadd.f32 %v8876_v25, %v8761_v9  ;;  %v9045_v7 = vpop.f32.mrf.mxu1 }
 0x96d   : > { %v9099_v10 = vadd.f32 %v9045_v7, %v8930_v2  ;;  %10200 = vmatmul.msk.bf16.gmra.mxu0 %vm249_vm1, %v8815_v15  ;;  %v9198_v55 = vrot.slane %v9196_v47, 5  ;;  %v9201_v54 = vrot.slane %v9199_v30, 6  ;;  %v8985_v15 = vpack.c.bf16 %v8973_v20, %v8972_v40 }
 0x96e   : > { %10213 = vmatmul.msk.bf16.gmra.mxu1 %vm249_vm1, %v8984_v45  ;;  %10231 = vmatmul.msk.bf16.vlgmr.msrb.gmra.mxu2 %vm249_vm1, %v9425_v16  ;;  %v8595_v30 = vadd.f32 %v8545_v58, %v14117_v32 }
 0x96f   : > { %v9123_v51 = vmax.f32 %v9099_v10, 0.0  ;;  %v9202_v36 = vor.u32 %v9201_v54, %v9198_v55 }
 0x970   : > { %v8764_v55 = vadd.f32 %v8714_v46, %v8595_v30 }
 0x971   : > { %v9147_v18 = vpack.c.bf16 %v9123_v51, %v9123_v51  ;;  %v8548_v49 = vpop.f32.mrf.mxu2  ;;  %v9203_v62 = vrot.slane %v9202_v36, 4 }
 0x972   : > { %v8717_v17 = vpop.f32.mrf.mxu3  ;;  %v8878_v31 = vpop.f32.mrf.mxu0 }
 0x973   : > { %v9205_v12 = vshrl.u32 %v9147_v18, 16  ;;  %v9208_v53 = vshll.u32 %v9147_v18, 16  ;;  %v8931_v24 = vadd.f32 %v8878_v31, %v8762_v63  ;;  %v9047_v33 = vpop.f32.mrf.mxu1 }
 0x975   : > { %v9207_v39 = vrot.slane %v9205_v12, 5  ;;  %v9210_v6 = vrot.slane %v9208_v53, 6  ;;  %v9100_v0 = vadd.f32 %v9047_v33, %v8931_v24  ;;  %v8596_v53 = vadd.f32 %v8548_v49, %v14122_v38 }
 0x977   : > { %v9211_v13 = vor.u32 %v9210_v6, %v9207_v39  ;;  %v9124_v19 = vmax.f32 %v9100_v0, 0.0  ;;  %v8765_v39 = vadd.f32 %v8717_v17, %v8596_v53 }
 0x979   : > { %v9212_v29 = vsel %vm12442_vm4, %v9203_v62, %v9211_v13  ;;  %v9148_v34 = vpack.c.bf16 %v9124_v19, %v9124_v19  ;;  %v8550_v9 = vpop.f32.mrf.mxu2  ;;  %v9213_v11 = vrot.slane %v9211_v13, 4 }
 0x97a   : > { %10217 = vst [vmem:[%s12453_s13 + $0x90] sm:$0xf] %v9212_v29  ;;  %v8719_v52 = vpop.f32.mrf.mxu3  ;;  %v8881_v44 = vpop.f32.mrf.mxu0  ;;  %v8597_v20 = vadd.f32 %v8550_v9, %v14132_v27 }
 0x97b   : > { %v9215_v25 = vshrl.u32 %v9148_v34, 16  ;;  %v9218_v45 = vshll.u32 %v9148_v34, 16  ;;  %v8932_v16 = vadd.f32 %v8881_v44, %v8763_v50  ;;  %v9050_v47 = vpop.f32.mrf.mxu1 }
 0x97c   : > { %v8766_v44 = vadd.f32 %v8719_v52, %v8597_v20 }
 0x97d   : > { %v9217_v2 = vrot.slane %v9215_v25, 5  ;;  %v9220_v7 = vrot.slane %v9218_v45, 6  ;;  %v9101_v37 = vadd.f32 %v9050_v47, %v8932_v16  ;;  %10201 = vmatmul.msk.bf16.gmra.mxu0 %vm249_vm1, %v8816_v26 }
 0x97e   : > { %10214 = vmatmul.msk.bf16.gmra.mxu1 %vm249_vm1, %v8985_v15 }
 0x97f   : > { %v9221_v8 = vor.u32 %v9220_v7, %v9217_v2  ;;  %v9125_v10 = vmax.f32 %v9101_v37, 0.0 }
 0x981   : > { %v9222_v54 = vsel %vm12442_vm4, %v9213_v11, %v9221_v8  ;;  %v9149_v51 = vpack.c.bf16 %v9125_v10, %v9125_v10  ;;  %v8553_v63 = vpop.f32.mrf.mxu2 }
 0x982   : > { %10218 = vst [vmem:[%s12453_s13 + $0x98] sm:$0xf] %v9222_v54  ;;  %v8722_v18 = vpop.f32.mrf.mxu3  ;;  %v8883_v31 = vpop.f32.mrf.mxu0  ;;  %v8598_v9 = vadd.f32 %v8553_v63, %v14139_v59 }
 0x983   : > { %v9224_v32 = vshrl.u32 %v9149_v51, 16  ;;  %v9227_v58 = vshll.u32 %v9149_v51, 16  ;;  %v8933_v36 = vadd.f32 %v8883_v31, %v8764_v55  ;;  %v9052_v12 = vpop.f32.mrf.mxu1 }
 0x984   : > { %v8767_v55 = vadd.f32 %v8722_v18, %v8598_v9 }
 0x985   : > { %v9102_v24 = vadd.f32 %v9052_v12, %v8933_v36  ;;  %v9226_v33 = vrot.slane %v9224_v32, 5  ;;  %v9229_v41 = vrot.slane %v9227_v58, 6 }
 0x987   : > { %v9126_v43 = vmax.f32 %v9102_v24, 0.0  ;;  %v9230_v4 = vor.u32 %v9229_v41, %v9226_v33 }
 0x989   : > { %v9150_v46 = vpack.c.bf16 %v9126_v43, %v9126_v43  ;;  %v8555_v6 = vpop.f32.mrf.mxu2  ;;  %v9231_v49 = vrot.slane %v9230_v4, 4 }
 0x98a   : > { %v8724_v0 = vpop.f32.mrf.mxu3  ;;  %v8886_v22 = vpop.f32.mrf.mxu0  ;;  %v8599_v59 = vadd.f32 %v8555_v6, %v14148_v48 }
 0x98b   : > { %v9233_v62 = vshrl.u32 %v9150_v46, 16  ;;  %v9236_v13 = vshll.u32 %v9150_v46, 16  ;;  %v8934_v19 = vadd.f32 %v8886_v22, %v8765_v39  ;;  %v9055_v40 = vpop.f32.mrf.mxu1 }
 0x98c   : > { %v8768_v39 = vadd.f32 %v8724_v0, %v8599_v59 }
 0x98d   : > { %v9235_v50 = vrot.slane %v9233_v62, 5  ;;  %v9238_v29 = vrot.slane %v9236_v13, 6  ;;  %v9103_v38 = vadd.f32 %v9055_v40, %v8934_v19 }
 0x98f   : > { %v9239_v34 = vor.u32 %v9238_v29, %v9235_v50  ;;  %v9127_v26 = vmax.f32 %v9103_v38, 0.0 }
 0x991   : > { %v9240_v17 = vsel %vm12442_vm4, %v9231_v49, %v9239_v34  ;;  %v9151_v15 = vpack.c.bf16 %v9127_v26, %v9127_v26  ;;  %v8558_v25 = vpop.f32.mrf.mxu2  ;;  %v9241_v8 = vrot.slane %v9239_v34, 4 }
 0x992   : > { %10219 = vst [vmem:[%s12453_s13 + $0xa0] sm:$0xf] %v9240_v17  ;;  %v8727_v45 = vpop.f32.mrf.mxu3  ;;  %v8888_v16 = vpop.f32.mrf.mxu0  ;;  %v8600_v50 = vadd.f32 %v8558_v25, %v14155_v61 }
 0x993   : > { %v9243_v47 = vshrl.u32 %v9151_v15, 16  ;;  %v9246_v30 = vshll.u32 %v9151_v15, 16  ;;  %v8935_v2 = vadd.f32 %v8888_v16, %v8766_v44  ;;  %v9057_v27 = vpop.f32.mrf.mxu1 }
 0x994   : > { %v8769_v26 = vadd.f32 %v8727_v45, %v8600_v50 }
 0x995   : > { %v9245_v7 = vrot.slane %v9243_v47, 5  ;;  %v9248_v37 = vrot.slane %v9246_v30, 6  ;;  %v9104_v11 = vadd.f32 %v9057_v27, %v8935_v2 }
 0x997   : > { %v9249_v52 = vor.u32 %v9248_v37, %v9245_v7  ;;  %v9128_v10 = vmax.f32 %v9104_v11, 0.0 }
 0x999   : > { %v9250_v54 = vsel %vm12442_vm4, %v9241_v8, %v9249_v52  ;;  %v9152_v51 = vpack.c.bf16 %v9128_v10, %v9128_v10  ;;  %v8560_v31 = vpop.f32.mrf.mxu2 }
 0x99a   : > { %10220 = vst [vmem:[%s12453_s13 + $0xa8] sm:$0xf] %v9250_v54  ;;  %v8729_v32 = vpop.f32.mrf.mxu3  ;;  %v8891_v58 = vpop.f32.mrf.mxu0  ;;  %v8601_v61 = vadd.f32 %v8560_v31, %v14164_v60 }
 0x99b   : > { %v9252_v36 = vshrl.u32 %v9152_v51, 16  ;;  %v9255_v12 = vshll.u32 %v9152_v51, 16  ;;  %v8936_v53 = vadd.f32 %v8891_v58, %v8767_v55  ;;  %v9060_v24 = vpop.f32.mrf.mxu1 }
 0x99c   : > { %v8770_v8 = vadd.f32 %v8729_v32, %v8601_v61 }
 0x99d   : > { %v9105_v63 = vadd.f32 %v9060_v24, %v8936_v53  ;;  %v9254_v33 = vrot.slane %v9252_v36, 5  ;;  %v9257_v41 = vrot.slane %v9255_v12, 6 }
 0x99f   : > { %v9129_v43 = vmax.f32 %v9105_v63, 0.0  ;;  %v9258_v4 = vor.u32 %v9257_v41, %v9254_v33 }
 0x9a1   : > { %v9153_v18 = vpack.c.bf16 %v9129_v43, %v9129_v43  ;;  %v8563_v46 = vpop.f32.mrf.mxu2  ;;  %v9259_v6 = vrot.slane %v9258_v4, 4 }
 0x9a2   : > { %v8893_v22 = vpop.f32.mrf.mxu0  ;;  %v8732_v20 = vpop.f32.mrf.mxu3  ;;  %v8602_v60 = vadd.f32 %v8563_v46, %v14181_v1 }
 0x9a3   : > { %v9261_v62 = vshrl.u32 %v9153_v18, 16  ;;  %v9264_v13 = vshll.u32 %v9153_v18, 16  ;;  %v8937_v19 = vadd.f32 %v8893_v22, %v8768_v39  ;;  %v9062_v40 = vpop.f32.mrf.mxu1 }
 0x9a4   : > { %v8771_v33 = vadd.f32 %v8732_v20, %v8602_v60 }
 0x9a5   : > { %v9263_v29 = vrot.slane %v9261_v62, 5  ;;  %v9266_v38 = vrot.slane %v9264_v13, 6  ;;  %v9106_v48 = vadd.f32 %v9062_v40, %v8937_v19 }
 0x9a7   : > { %v9267_v49 = vor.u32 %v9266_v38, %v9263_v29  ;;  %v9130_v34 = vmax.f32 %v9106_v48, 0.0 }
 0x9a9   : > { %v9268_v0 = vsel %vm12442_vm4, %v9259_v6, %v9267_v49  ;;  %v9154_v44 = vpack.c.bf16 %v9130_v34, %v9130_v34  ;;  %v8565_v17 = vpop.f32.mrf.mxu2  ;;  %v9269_v37 = vrot.slane %v9267_v49, 4 }
 0x9aa   : > { %10221 = vst [vmem:[%s12453_s13 + $0xb0] sm:$0xf] %v9268_v0  ;;  %v8896_v15 = vpop.f32.mrf.mxu0  ;;  %v8734_v7 = vpop.f32.mrf.mxu3  ;;  %v8603_v13 = vadd.f32 %v8565_v17, %v14188_v56 }
 0x9ab   : > { %v9271_v16 = vshrl.u32 %v9154_v44, 16  ;;  %v9274_v47 = vshll.u32 %v9154_v44, 16  ;;  %v8938_v30 = vadd.f32 %v8896_v15, %v8769_v26  ;;  %v9065_v2 = vpop.f32.mrf.mxu1 }
 0x9ac   : > { %v8772_v38 = vadd.f32 %v8734_v7, %v8603_v13 }
 0x9ad   : > { %v9273_v25 = vrot.slane %v9271_v16, 5  ;;  %v9276_v27 = vrot.slane %v9274_v47, 6  ;;  %v9107_v9 = vadd.f32 %v9065_v2, %v8938_v30 }
 0x9af   : > { %v9277_v45 = vor.u32 %v9276_v27, %v9273_v25  ;;  %v9131_v11 = vmax.f32 %v9107_v9, 0.0 }
 0x9b1   : > { %v9278_v52 = vsel %vm12442_vm4, %v9269_v37, %v9277_v45  ;;  %v9155_v10 = vpack.c.bf16 %v9131_v11, %v9131_v11  ;;  %v8568_v55 = vpop.f32.mrf.mxu2 }
 0x9b2   : > { %10222 = vst [vmem:[%s12453_s13 + $0xb8] sm:$0xf] %v9278_v52  ;;  %v8898_v54 = vpop.f32.mrf.mxu0  ;;  %v8737_v63 = vpop.f32.mrf.mxu3  ;;  %v8604_v17 = vadd.f32 %v8568_v55, %v14205_v14 }
 0x9b3   : > { %v9280_v51 = vshrl.u32 %v9155_v10, 16  ;;  %v9283_v58 = vshll.u32 %v9155_v10, 16  ;;  %v8939_v36 = vadd.f32 %v8898_v54, %v8770_v8  ;;  %v9067_v12 = vpop.f32.mrf.mxu1 }
 0x9b4   : > { %v8773_v25 = vadd.f32 %v8737_v63, %v8604_v17 }
 0x9b5   : > { %v9108_v31 = vadd.f32 %v9067_v12, %v8939_v36  ;;  %v9282_v53 = vrot.slane %v9280_v51, 5  ;;  %v9285_v24 = vrot.slane %v9283_v58, 6 }
 0x9b7   : > { %v9132_v59 = vmax.f32 %v9108_v31, 0.0  ;;  %v9286_v39 = vor.u32 %v9285_v24, %v9282_v53 }
 0x9b9   : > { %v9156_v32 = vpack.c.bf16 %v9132_v59, %v9132_v59  ;;  %v8570_v41 = vpop.f32.mrf.mxu2  ;;  %v9287_v46 = vrot.slane %v9286_v39, 4 }
 0x9ba   : > { %v8901_v43 = vpop.f32.mrf.mxu0  ;;  %v8739_v49 = vpop.f32.mrf.mxu3  ;;  %v8605_v14 = vadd.f32 %v8570_v41, %v14212_v21 }
 0x9bb   : > { %v9289_v18 = vshrl.u32 %v9156_v32, 16  ;;  %v9292_v22 = vshll.u32 %v9156_v32, 16  ;;  %v8940_v4 = vadd.f32 %v8901_v43, %v8771_v33  ;;  %v9070_v62 = vpop.f32.mrf.mxu1 }
 0x9bc   : > { %v8774_v36 = vadd.f32 %v8739_v49, %v8605_v14 }
 0x9bd   : > { %v9291_v19 = vrot.slane %v9289_v18, 5  ;;  %v9294_v40 = vrot.slane %v9292_v22, 6  ;;  %v9109_v1 = vadd.f32 %v9070_v62, %v8940_v4 }
 0x9bf   : > { %v9295_v50 = vor.u32 %v9294_v40, %v9291_v19  ;;  %v9133_v29 = vmax.f32 %v9109_v1, 0.0 }
 0x9c1   : > { %v9296_v20 = vsel %vm12442_vm4, %v9287_v46, %v9295_v50  ;;  %v9157_v48 = vpack.c.bf16 %v9133_v29, %v9133_v29  ;;  %v8573_v6 = vpop.f32.mrf.mxu2  ;;  %v9297_v30 = vrot.slane %v9295_v50, 4 }
 0x9c2   : > { %10223 = vst [vmem:[%s12453_s13 + $0xc0] sm:$0xf] %v9296_v20  ;;  %v8903_v34 = vpop.f32.mrf.mxu0  ;;  %v8742_v10 = vpop.f32.mrf.mxu3  ;;  %v8606_v32 = vadd.f32 %v8573_v6, %v14229_v42 }
 0x9c3   : > { %v9299_v26 = vshrl.u32 %v9157_v48, 16  ;;  %v9302_v0 = vshll.u32 %v9157_v48, 16  ;;  %v8941_v44 = vadd.f32 %v8903_v34, %v8772_v38  ;;  %v9072_v56 = vpop.f32.mrf.mxu1 }
 0x9c4   : > { %v8775_v62 = vadd.f32 %v8742_v10, %v8606_v32 }
 0x9c5   : > { %v9301_v15 = vrot.slane %v9299_v26, 5  ;;  %v9304_v16 = vrot.slane %v9302_v0, 6  ;;  %v9110_v47 = vadd.f32 %v9072_v56, %v8941_v44 }
 0x9c7   : > { %v9305_v2 = vor.u32 %v9304_v16, %v9301_v15  ;;  %v9134_v61 = vmax.f32 %v9110_v47, 0.0 }
 0x9c9   : > { %v9306_v27 = vsel %vm12442_vm4, %v9297_v30, %v9305_v2  ;;  %v9158_v9 = vpack.c.bf16 %v9134_v61, %v9134_v61  ;;  %v8575_v7 = vpop.f32.mrf.mxu2 }
 0x9ca   : > { %10224 = vst [vmem:[%s12453_s13 + $0xc8] sm:$0xf] %v9306_v27  ;;  %v8906_v37 = vpop.f32.mrf.mxu0  ;;  %v8744_v21 = vpop.f32.mrf.mxu3  ;;  %v8607_v38 = vadd.f32 %v8575_v7, %v14236_v28 }
 0x9cb   : > { %v9308_v45 = vshrl.u32 %v9158_v9, 16  ;;  %v9311_v11 = vshll.u32 %v9158_v9, 16  ;;  %v8942_v8 = vadd.f32 %v8906_v37, %v8773_v25  ;;  %v9075_v52 = vpop.f32.mrf.mxu1 }
 0x9cc   : > { %v8776_v44 = vadd.f32 %v8744_v21, %v8607_v38 }
 0x9cd   : > { %v9111_v55 = vadd.f32 %v9075_v52, %v8942_v8  ;;  %v9310_v54 = vrot.slane %v9308_v45, 5  ;;  %v9313_v51 = vrot.slane %v9311_v11, 6 }
 0x9cf   : > { %v9135_v58 = vmax.f32 %v9111_v55, 0.0  ;;  %v9314_v53 = vor.u32 %v9313_v51, %v9310_v54 }
 0x9d1   : > { %v9159_v12 = vpack.c.bf16 %v9135_v58, %v9135_v58  ;;  %v8578_v60 = vpop.f32.mrf.mxu2  ;;  %v9315_v41 = vrot.slane %v9314_v53, 4 }
 0x9d2   : > { %v8908_v31 = vpop.f32.mrf.mxu0  ;;  %v8747_v0 = vpop.f32.mrf.mxu3  ;;  %v8608_v28 = vadd.f32 %v8578_v60, %v14253_v35 }
 0x9d3   : > { %v9317_v24 = vshrl.u32 %v9159_v12, 16  ;;  %v9320_v59 = vshll.u32 %v9159_v12, 16  ;;  %v8943_v63 = vadd.f32 %v8908_v31, %v8774_v36  ;;  %v9077_v33 = vpop.f32.mrf.mxu1 }
 0x9d4   : > { %v8777_v37 = vadd.f32 %v8747_v0, %v8608_v28 }
 0x9d5   : > { %v9319_v43 = vrot.slane %v9317_v24, 5  ;;  %v9322_v39 = vrot.slane %v9320_v59, 6  ;;  %v9112_v18 = vadd.f32 %v9077_v33, %v8943_v63  ;;  %v9427_v24 = vld [vmem:[%s14542_s4] sm:$0x1] }
 0x9d7   : > { %v9323_v22 = vor.u32 %v9322_v39, %v9319_v43  ;;  %v9136_v4 = vmax.f32 %v9112_v18, 0.0 }
 0x9d9   : > { %v9324_v13 = vsel %vm12442_vm4, %v9315_v41, %v9323_v22  ;;  %v9160_v19 = vpack.c.bf16 %v9136_v4, %v9136_v4  ;;  %v8580_v40 = vpop.f32.mrf.mxu2  ;;  %v9325_v49 = vrot.slane %v9323_v22, 4 }
 0x9da   : > { %10225 = vst [vmem:[%s12453_s13 + $0xd0] sm:$0xf] %v9324_v13  ;;  %v8911_v1 = vpop.f32.mrf.mxu0  ;;  %v8749_v8 = vpop.f32.mrf.mxu3  ;;  %v8609_v58 = vadd.f32 %v8580_v40, %v14259_v3 }
 0x9db   : > { %v9327_v46 = vshrl.u32 %v9160_v19, 16  ;;  %v9330_v50 = vshll.u32 %v9160_v19, 16  ;;  %v8944_v29 = vadd.f32 %v8911_v1, %v8775_v62  ;;  %v9080_v42 = vpop.f32.mrf.mxu1 }
 0x9dc   : > { %v8778_v59 = vadd.f32 %v8749_v8, %v8609_v58 }
 0x9dd   : > { %v9329_v20 = vrot.slane %v9327_v46, 5  ;;  %v9332_v48 = vrot.slane %v9330_v50, 6  ;;  %v9113_v6 = vadd.f32 %v9080_v42, %v8944_v29 }
 0x9df   : > { %v9333_v34 = vor.u32 %v9332_v48, %v9329_v20  ;;  %v9137_v26 = vmax.f32 %v9113_v6, 0.0 }
 0x9e1   : > { %v9334_v56 = vsel %vm12442_vm4, %v9325_v49, %v9333_v34  ;;  %v9161_v17 = vpack.c.bf16 %v9137_v26, %v9137_v26  ;;  %v8583_v15 = vpop.f32.mrf.mxu2 }
 0x9e2   : > { %10226 = vst [vmem:[%s12453_s13 + $0xd8] sm:$0xf] %v9334_v56  ;;  %v8913_v16 = vpop.f32.mrf.mxu0  ;;  %v8752_v22 = vpop.f32.mrf.mxu3  ;;  %v8610_v62 = vadd.f32 %v8583_v15, %v14272_v57 }
 0x9e3   : > { %v9336_v47 = vshrl.u32 %v9161_v17, 16  ;;  %v9339_v30 = vshll.u32 %v9161_v17, 16  ;;  %v8945_v2 = vadd.f32 %v8913_v16, %v8776_v44  ;;  %v9082_v61 = vpop.f32.mrf.mxu1 }
 0x9e4   : > { %v8779_v38 = vadd.f32 %v8752_v22, %v8610_v62 }
 0x9e5   : > { %v9114_v25 = vadd.f32 %v9082_v61, %v8945_v2  ;;  %v9338_v27 = vrot.slane %v9336_v47, 5  ;;  %v9341_v9 = vrot.slane %v9339_v30, 6 }
 0x9e7   : > { %v9138_v7 = vmax.f32 %v9114_v25, 0.0  ;;  %v9342_v10 = vor.u32 %v9341_v9, %v9338_v27 }
 0x9e9   : > { %v9162_v45 = vpack.c.bf16 %v9138_v7, %v9138_v7  ;;  %v8585_v11 = vpop.f32.mrf.mxu2  ;;  %v9343_v60 = vrot.slane %v9342_v10, 4 }
 0x9ea   : > { %v8916_v52 = vpop.f32.mrf.mxu0  ;;  %v8611_v44 = vadd.f32 %v8585_v11, %v14281_v5  ;;  %v8754_v17 = vpop.f32.mrf.mxu3 }
 0x9eb   : > { %v9345_v14 = vshrl.u32 %v9162_v45, 16  ;;  %v9348_v55 = vshll.u32 %v9162_v45, 16  ;;  %v8946_v54 = vadd.f32 %v8916_v52, %v8777_v37  ;;  %v9085_v51 = vpop.f32.mrf.mxu1 }
 0x9ec   : > { %v8780_v5 = vadd.f32 %v8754_v17, %v8611_v44 }
 0x9ed   : > { %v9347_v36 = vrot.slane %v9345_v14, 5  ;;  %v9350_v12 = vrot.slane %v9348_v55, 6  ;;  %v9115_v35 = vadd.f32 %v9085_v51, %v8946_v54 }
 0x9ef   : > { %v9351_v31 = vor.u32 %v9350_v12, %v9347_v36  ;;  %v9139_v53 = vmax.f32 %v9115_v35, 0.0 }
 0x9f1   : > { %v9352_v63 = vsel %vm12442_vm4, %v9343_v60, %v9351_v31  ;;  %v9163_v33 = vpack.c.bf16 %v9139_v53, %v9139_v53  ;;  %v9443_v32 = vpop.f32.mrf.mxu2  ;;  %v9353_v46 = vrot.slane %v9351_v31, 4 }
 0x9f2   : > { %10227 = vst [vmem:[%s12453_s13 + $0xe0] sm:$0xf] %v9352_v63  ;;  %v8918_v43 = vpop.f32.mrf.mxu0  ;;  %v9444_v39 = vadd.f32 %v9443_v32, %v9427_v24 }
 0x9f3   : > { %v9355_v3 = vshrl.u32 %v9163_v33, 16  ;;  %v9358_v18 = vshll.u32 %v9163_v33, 16  ;;  %v8947_v21 = vadd.f32 %v8918_v43, %v8778_v59  ;;  %v9087_v41 = vpop.f32.mrf.mxu1 }
 0x9f4   : > { %v9447_v4 = vmax.f32 %v9444_v39, 0.0 }
 0x9f5   : > { %v9357_v13 = vrot.slane %v9355_v3, 5  ;;  %v9360_v19 = vrot.slane %v9358_v18, 6  ;;  %v9116_v40 = vadd.f32 %v9087_v41, %v8947_v21 }
 0x9f6   : > { %v9448_v1 = vperm.slane %v9447_v4, 0 }
 0x9f7   : > { %v9361_v50 = vor.u32 %v9360_v19, %v9357_v13  ;;  %v9140_v29 = vmax.f32 %v9116_v40, 0.0 }
 0x9f8   : > { %v14396_v42 = vpack.c.bf16 %v9448_v1, %v9448_v1 }
 0x9f9   : > { %v9362_v20 = vsel %vm12442_vm4, %v9353_v46, %v9361_v50  ;;  %v9164_v48 = vpack.c.bf16 %v9140_v29, %v9140_v29  ;;  %v9445_v57 = vpop.f32.mrf.mxu2 }
 0x9fa   : > { %10228 = vst [vmem:[%s12453_s13 + $0xe8] sm:$0xf] %v9362_v20  ;;  %v8921_v6 = vpop.f32.mrf.mxu0 }
 0x9fb   : > { %v9364_v49 = vshrl.u32 %v9164_v48, 16  ;;  %v9367_v34 = vshll.u32 %v9164_v48, 16  ;;  %v8948_v26 = vadd.f32 %v8921_v6, %v8779_v38  ;;  %v9090_v0 = vpop.f32.mrf.mxu1  ;;  %9451 = vst.msk [vmem:[%s12453_s13 + $0x4] sm:$0xf] %vm9450_vm5, %v14396_v42 }
 0x9fc   : > { %9452 = vst.msk [vmem:[%s12453_s13 + $0xc] sm:$0xf] %vm9450_vm5, %v14396_v42 }
 0x9fd   : > { %v9117_v56 = vadd.f32 %v9090_v0, %v8948_v26  ;;  %9453 = vst.msk [vmem:[%s12453_s13 + $0x14] sm:$0xf] %vm9450_vm5, %v14396_v42  ;;  %v9366_v15 = vrot.slane %v9364_v49, 5  ;;  %v9369_v16 = vrot.slane %v9367_v34, 6 }
 0x9fe   : > { %9454 = vst.msk [vmem:[%s12453_s13 + $0x1c] sm:$0xf] %vm9450_vm5, %v14396_v42 }
 0x9ff   : > { %v9141_v47 = vmax.f32 %v9117_v56, 0.0  ;;  %9455 = vst.msk [vmem:[%s12453_s13 + $0x24] sm:$0xf] %vm9450_vm5, %v14396_v42  ;;  %v9370_v61 = vor.u32 %v9369_v16, %v9366_v15 }
 0xa00   : > { %9456 = vst.msk [vmem:[%s12453_s13 + $0x2c] sm:$0xf] %vm9450_vm5, %v14396_v42 }
 0xa01   : > { %v9165_v30 = vpack.c.bf16 %v9141_v47, %v9141_v47  ;;  %9457 = vst.msk [vmem:[%s12453_s13 + $0x34] sm:$0xf] %vm9450_vm5, %v14396_v42  ;;  %v9371_v11 = vrot.slane %v9370_v61, 4 }
 0xa02   : > { %v8923_v2 = vpop.f32.mrf.mxu0  ;;  %9458 = vst.msk [vmem:[%s12453_s13 + $0x3c] sm:$0xf] %vm9450_vm5, %v14396_v42 }
 0xa03   : > { %v9373_v28 = vshrl.u32 %v9165_v30, 16  ;;  %v9376_v25 = vshll.u32 %v9165_v30, 16  ;;  %v8949_v27 = vadd.f32 %v8923_v2, %v8780_v5  ;;  %9459 = vst.msk [vmem:[%s12453_s13 + $0x44] sm:$0xf] %vm9450_vm5, %v14396_v42  ;;  %v9092_v9 = vpop.f32.mrf.mxu1 }
 0xa04   : > { %9460 = vst.msk [vmem:[%s12453_s13 + $0x4c] sm:$0xf] %vm9450_vm5, %v14396_v42 }
 0xa05   : > { %v9375_v7 = vrot.slane %v9373_v28, 5  ;;  %v9378_v37 = vrot.slane %v9376_v25, 6  ;;  %v9118_v45 = vadd.f32 %v9092_v9, %v8949_v27  ;;  %9461 = vst.msk [vmem:[%s12453_s13 + $0x54] sm:$0xf] %vm9450_vm5, %v14396_v42 }
 0xa06   : > { %9462 = vst.msk [vmem:[%s12453_s13 + $0x5c] sm:$0xf] %vm9450_vm5, %v14396_v42 }
 0xa07   : > { %v9379_v8 = vor.u32 %v9378_v37, %v9375_v7  ;;  %v9142_v52 = vmax.f32 %v9118_v45, 0.0  ;;  %9463 = vst.msk [vmem:[%s12453_s13 + $0x64] sm:$0xf] %vm9450_vm5, %v14396_v42 }
 0xa08   : > { %9464 = vst.msk [vmem:[%s12453_s13 + $0x6c] sm:$0xf] %vm9450_vm5, %v14396_v42 }
 0xa09   : > { %v9380_v10 = vsel %vm12442_vm4, %v9371_v11, %v9379_v8  ;;  %v9166_v14 = vpack.c.bf16 %v9142_v52, %v9142_v52  ;;  %9465 = vst.msk [vmem:[%s12453_s13 + $0x74] sm:$0xf] %vm9450_vm5, %v14396_v42  ;;  %v9381_v36 = vrot.slane %v9379_v8, 4 }
 0xa0a   : > { %10229 = vst [vmem:[%s12453_s13 + $0xf0] sm:$0xf] %v9380_v10 }
 0xa0b   : > { %v9383_v55 = vshrl.u32 %v9166_v14, 16  ;;  %v9386_v54 = vshll.u32 %v9166_v14, 16  ;;  %9466 = vst.msk [vmem:[%s12453_s13 + $0x7c] sm:$0xf] %vm9450_vm5, %v14396_v42 }
 0xa0c   : > { %9467 = vst.msk [vmem:[%s12453_s13 + $0x84] sm:$0xf] %vm9450_vm5, %v14396_v42 }
 0xa0d   : > { %v9385_v51 = vrot.slane %v9383_v55, 5  ;;  %v9388_v58 = vrot.slane %v9386_v54, 6  ;;  %9468 = vst.msk [vmem:[%s12453_s13 + $0x8c] sm:$0xf] %vm9450_vm5, %v14396_v42 }
 0xa0e   : > { %9469 = vst.msk [vmem:[%s12453_s13 + $0x94] sm:$0xf] %vm9450_vm5, %v14396_v42 }
 0xa0f   : > { %v9389_v12 = vor.u32 %v9388_v58, %v9385_v51  ;;  %9470 = vst.msk [vmem:[%s12453_s13 + $0x9c] sm:$0xf] %vm9450_vm5, %v14396_v42 }
 0xa10   : > { %9471 = vst.msk [vmem:[%s12453_s13 + $0xa4] sm:$0xf] %vm9450_vm5, %v14396_v42 }
 0xa11   : > { %v9390_v35 = vsel %vm12442_vm4, %v9381_v36, %v9389_v12  ;;  %9472 = vst.msk [vmem:[%s12453_s13 + $0xac] sm:$0xf] %vm9450_vm5, %v14396_v42 }
 0xa12   : > { %10230 = vst [vmem:[%s12453_s13 + $0xf8] sm:$0xf] %v9390_v35 }
 0xa13   : > { %9473 = vst.msk [vmem:[%s12453_s13 + $0xb4] sm:$0xf] %vm9450_vm5, %v14396_v42 }
 0xa14   : > { %9474 = vst.msk [vmem:[%s12453_s13 + $0xbc] sm:$0xf] %vm9450_vm5, %v14396_v42 }
 0xa15   : > { %9475 = vst.msk [vmem:[%s12453_s13 + $0xc4] sm:$0xf] %vm9450_vm5, %v14396_v42 }
 0xa16   : > { %9476 = vst.msk [vmem:[%s12453_s13 + $0xcc] sm:$0xf] %vm9450_vm5, %v14396_v42 }
 0xa17   : > { %9477 = vst.msk [vmem:[%s12453_s13 + $0xd4] sm:$0xf] %vm9450_vm5, %v14396_v42 }
 0xa18   : > { %9478 = vst.msk [vmem:[%s12453_s13 + $0xdc] sm:$0xf] %vm9450_vm5, %v14396_v42 }
 0xa19   : > { %9479 = vst.msk [vmem:[%s12453_s13 + $0xe4] sm:$0xf] %vm9450_vm5, %v14396_v42 }
 0xa1a   : > { %9480 = vst.msk [vmem:[%s12453_s13 + $0xec] sm:$0xf] %vm9450_vm5, %v14396_v42 }
 0xa1b   : > { %9481 = vst.msk [vmem:[%s12453_s13 + $0xf4] sm:$0xf] %vm9450_vm5, %v14396_v42 }
 0xa1c   : > { %9482 = vst.msk [vmem:[%s12453_s13 + $0xfc] sm:$0xf] %vm9450_vm5, %v14396_v42 }
 0xa1d   : > { %10312 = shalt.err (!%p10309_p3)
}
 0xa1e   : > { %s10349_s11 = smov 128   ;;  %s10350_s13 = smov 8  }
 0xa1f   : > { %10241 = dma.vmem_to_hbm [thread:$0]  (%p10419_p5), %s9497_s22, 4096, %s9499_s9, %s9484_s10, %s10349_s11, %s10349_s11, %s10350_s13  }
 0xa20 PF: > { %p10247_p4 = scmp.ge.s32.totalorder %s10347_s21, 2  ;;  %s9513_s25 = sand.u32 1, %s10335_s18  }
 0xa21   : > { %s9514_s26 = scalar_lea.sflag [#allocation3], %s9513_s25 }
 0xa22   : > { %p10244_p7 = pnand %p10247_p4, %p10423_p6 }
 0xa24   : > { %p10245_p8 = pneg %p10244_p7 }
 0xa26   : > { %10330 = dma.done.wait (%p10245_p8), %s9514_s26, 4096  }
 0xa27   : > { %10332 = vsyncadd (%p10245_p8), %s9514_s26, 4294963200  ;;  %p15_p9 = scmp.ge.s32.totalorder %s10406_s24, 4   ;;  %s14627_s18 = smov %s10339_s19 }
 0xa28   : > { %s14628_s19 = smov %s10343_s20  ;;  %s14629_s20 = smov %s10417_s27 }
 0xa29   : > { %s14630_s21 = smov %s10406_s24  ;;  %17 = sbr.rel (!%p15_p9) target bundleno = 3 (0x3), region = 100 }
 0xa2e   :  { %9520 = vsyncpa [#allocation3], 1 }
 0xa2f   :  { %9522 = vsyncpa [#allocation3 + $0x1], 1 }

</bundles_post_ra>
